<compile_context>
chip_gen: v6e
topology: v6e:2x2x1
jax: 0.10.0
libtpu: 0.0.40
codegen_flags: <defaults>
</compile_context>

<pallas_src>
import functools

import jax
import jax.numpy as jnp
from jax import lax
from jax.experimental import pallas as pl
from jax.experimental.pallas import tpu as pltpu


# ----------------------------- Pallas kernels ------------------------------

def _conv3x3_kernel(x_ref, w_ref, b_ref, o_ref, xpad_ref, *, N, H, W):
    # x_ref:    (N, H, W, Cin)  fp32
    # w_ref:    (9*Cin, Cout)   bf16, taps flattened as (dy*3+dx)*Cin + ci
    # b_ref:    (1, Cout)       fp32 bias
    # o_ref:    (N, H, W, Cout) fp32
    # xpad_ref: VMEM scratch (N, H+2, W+2, Cin) bf16
    Cin = x_ref.shape[-1]
    Cout = w_ref.shape[-1]
    HW = H * W

    # zero-padded tile built entirely in VMEM (halo zeroed once).
    xpad_ref[...] = jnp.zeros_like(xpad_ref)
    xpad_ref[:, 1:H + 1, 1:W + 1, :] = x_ref[...].astype(xpad_ref.dtype)

    # im2col: 9 shifted views concatenated on the channel axis -> one matmul.
    patches = jnp.concatenate(
        [xpad_ref[:, dy:dy + H, dx:dx + W, :]
         for dy in range(3) for dx in range(3)],
        axis=-1).reshape(N * HW, 9 * Cin)                  # (N*HW, 9*Cin) bf16

    y = jnp.dot(patches, w_ref[...],
                preferred_element_type=jnp.float32) + b_ref[...]
    o_ref[...] = y.reshape(N, H, W, Cout).astype(o_ref.dtype)


def _dnblock_kernel(x_ref, iw_ref, ib_ref, ew_ref, esc_ref, esh_ref,
                    mw_ref, mb_ref, xw_ref, xb_ref,
                    out_ref, xpad_ref, done_ref,
                    *, N, H, W, C, E, max_recursions):
    # x_ref:   (N, H, W, C)  block input (fp32)
    # iw_ref:  (9*C, C)      init-conv weights (bf16), ib_ref: (1, C) bias
    # ew_ref:  (9*C, E*C)    all expert conv taps (bf16), experts on Cout
    # esc_ref: (1, E*C)      folded BN scale,  esh_ref: (1, E*C) folded shift
    # mw_ref:  (C, E), mb_ref: (1, E)          MoE gate linear
    # xw_ref:  (C, 1), xb_ref: (1, 1)          exit gate linear
    # out_ref: (N, H, W, C)  final cache (also the VMEM-resident cache)
    # xpad_ref: VMEM scratch (N, H+2, W+2, C) bf16
    # done_ref: SMEM (1,) int32 early-exit flag
    HW = H * W

    def conv_all(wmat):
        # im2col over the current contents of the padded scratch.
        patches = jnp.concatenate(
            [xpad_ref[:, dy:dy + H, dx:dx + W, :]
             for dy in range(3) for dx in range(3)],
            axis=-1).reshape(N * HW, 9 * C)                # bf16
        return jnp.dot(patches, wmat, preferred_element_type=jnp.float32)

    # Zero the halo ONCE; the interior is overwritten before every conv.
    xpad_ref[...] = jnp.zeros_like(xpad_ref)

    # ---- init conv + ReLU: cache lives in out_ref (VMEM resident) ----
    xpad_ref[:, 1:H + 1, 1:W + 1, :] = x_ref[...].astype(xpad_ref.dtype)
    cache0 = jnp.maximum(conv_all(iw_ref[...]) + ib_ref[...], 0.0)   # (N*HW, C)
    out_ref[...] = cache0.reshape(N, H, W, C)
    done_ref[0] = jnp.int32(0)

    # ---- fused recursion loop (no HBM traffic / launches per step) ----
    @pl.loop(0, max_recursions)
    def _(step):
        @pl.when(done_ref[0] == 0)
        def _():
            cache = out_ref[...]                                     # (N,H,W,C)

            # MoE gate: GAP + Linear + softmax.
            pooled = jnp.mean(cache.reshape(N, HW, C), axis=1)       # (N, C)
            logits = jnp.dot(pooled, mw_ref[...],
                             preferred_element_type=jnp.float32) + mb_ref[...]
            m = jnp.max(logits, axis=-1, keepdims=True)
            expv = jnp.exp(logits - m)
            gw = expv / jnp.sum(expv, axis=-1, keepdims=True)        # (N, E)

            # All E expert convs as ONE matmul (K = 9*C, N_out = E*C).
            xpad_ref[:, 1:H + 1, 1:W + 1, :] = cache.astype(xpad_ref.dtype)
            y = conv_all(ew_ref[...])                                # (N*HW, E*C)
            y = jnp.maximum(y * esc_ref[...] + esh_ref[...], 0.0)    # BN + ReLU
            y3 = y.reshape(N, HW, E * C)

            # Gate-weighted expert combine: pure VPU broadcast (no one-hot).
            combined = jnp.zeros((N, HW, C), jnp.float32)
            for e in range(E):
                gwe = gw[:, e:e + 1].reshape(N, 1, 1)
                combined = combined + y3[:, :, e * C:(e + 1) * C] * gwe

            # Exit gate: GAP + Linear + sigmoid, whole-batch `.all()` check.
            pooled_c = jnp.mean(combined, axis=1)                    # (N, C)
            exit_logit = jnp.dot(pooled_c, xw_ref[...],
                                 preferred_element_type=jnp.float32) + xb_ref[...]
            exit_p = 1.0 / (1.0 + jnp.exp(-exit_logit))              # (N, 1)

            out_ref[...] = combined.reshape(N, H, W, C)
            done_ref[0] = (jnp.min(exit_p) > 0.5).astype(jnp.int32)


# ------------------------------ Pallas wrappers -----------------------------

def conv3x3(x, w, b):
    """3x3 same-padding conv with bias (no activation). NHWC, fp32 out."""
    N, H, W, Cin = x.shape
    Cout = w.shape[-1]
    kernel = functools.partial(_conv3x3_kernel, N=N, H=H, W=W)
    return pl.pallas_call(
        kernel,
        out_shape=jax.ShapeDtypeStruct((N, H, W, Cout), jnp.float32),
        grid=(1,),
        in_specs=[
            pl.BlockSpec((N, H, W, Cin), lambda i: (0, 0, 0, 0)),
            pl.BlockSpec((9 * Cin, Cout), lambda i: (0, 0)),
            pl.BlockSpec((1, Cout), lambda i: (0, 0)),
        ],
        out_specs=pl.BlockSpec((N, H, W, Cout), lambda i: (0, 0, 0, 0)),
        scratch_shapes=[pltpu.VMEM((N, H + 2, W + 2, Cin), jnp.bfloat16)],
        compiler_params=pltpu.CompilerParams(dimension_semantics=("arbitrary",)),
    )(x, w, b)


def dnblock_forward(x, bp, max_recursions):
    """Whole DNBlock (init conv + fused recursion) as ONE pallas_call. NHWC."""
    N, H, W, C = x.shape
    E = bp["moe_w"].shape[-1]
    kernel = functools.partial(_dnblock_kernel, N=N, H=H, W=W, C=C, E=E,
                               max_recursions=max_recursions)
    return pl.pallas_call(
        kernel,
        out_shape=jax.ShapeDtypeStruct((N, H, W, C), jnp.float32),
        grid=(1,),
        in_specs=[
            pl.BlockSpec((N, H, W, C), lambda i: (0, 0, 0, 0)),
            pl.BlockSpec((9 * C, C), lambda i: (0, 0)),
            pl.BlockSpec((1, C), lambda i: (0, 0)),
            pl.BlockSpec((9 * C, E * C), lambda i: (0, 0)),
            pl.BlockSpec((1, E * C), lambda i: (0, 0)),
            pl.BlockSpec((1, E * C), lambda i: (0, 0)),
            pl.BlockSpec((C, E), lambda i: (0, 0)),
            pl.BlockSpec((1, E), lambda i: (0, 0)),
            pl.BlockSpec((C, 1), lambda i: (0, 0)),
            pl.BlockSpec((1, 1), lambda i: (0, 0)),
        ],
        out_specs=pl.BlockSpec((N, H, W, C), lambda i: (0, 0, 0, 0)),
        scratch_shapes=[pltpu.VMEM((N, H + 2, W + 2, C), jnp.bfloat16),
                        pltpu.SMEM((1,), jnp.int32)],
        compiler_params=pltpu.CompilerParams(dimension_semantics=("arbitrary",)),
    )(x, bp["init_w"], bp["init_b"], bp["expert_w"], bp["expert_scale"],
      bp["expert_shift"], bp["moe_w"], bp["moe_b"], bp["exit_w"], bp["exit_b"])


# ------------------------------- model forward ------------------------------

@functools.partial(jax.jit, static_argnums=(2,))
def dnnet_forward(x_nchw, params, max_recursions):
    """DNNet forward. Input/output NCHW (PyTorch convention)."""
    x = jnp.transpose(x_nchw, (0, 2, 3, 1))                      # NCHW -> NHWC
    x = conv3x3(x, params["enc_w"], params["enc_b"])
    for bp in params["blocks"]:
        x = dnblock_forward(x, bp, max_recursions)
    x = conv3x3(x, params["final_w"], params["final_b"])
    x = jnp.transpose(x, (0, 3, 1, 2))                           # NHWC -> NCHW
    return x_nchw - x


# ------------------------------- parameters ---------------------------------

def init_params(key, in_channels, base_channels, num_blocks, num_experts):
    nkeys = 4 + num_blocks * (6 + 4 * num_experts)
    keys = iter(jax.random.split(key, nkeys))
    C = base_channels

    def conv_param(cin, cout):
        w = jax.random.normal(next(keys), (9, cin, cout), jnp.float32) / jnp.sqrt(9.0 * cin)
        b = 0.01 * jax.random.normal(next(keys), (cout,), jnp.float32)
        # weights pre-cast to bf16 for the MXU (halves weight DMA / no in-kernel cast)
        return w.reshape(9 * cin, cout).astype(jnp.bfloat16), b.reshape(1, cout)

    def bn_fold(cout, eps=1e-5):
        # eval-mode BN (running_mean=0, running_var=1) with random affine.
        gamma = 1.0 + 0.1 * jax.random.normal(next(keys), (cout,), jnp.float32)
        beta = 0.1 * jax.random.normal(next(keys), (cout,), jnp.float32)
        return gamma / jnp.sqrt(1.0 + eps), beta

    enc_w, enc_b = conv_param(in_channels, C)
    blocks = []
    for _ in range(num_blocks):
        init_w, init_b = conv_param(C, C)
        ew, esc, esh = [], [], []
        for _ in range(num_experts):
            w, b = conv_param(C, C)
            scale, shift = bn_fold(C)
            ew.append(w)                                 # (9*C, C) bf16
            esc.append(scale)                            # (C,)
            esh.append(shift + b[0] * scale)             # conv bias folded into BN
        moe_w = 0.1 * jax.random.normal(next(keys), (C, num_experts), jnp.float32)
        exit_w = 0.1 * jax.random.normal(next(keys), (C, 1), jnp.float32)
        blocks.append({
            "init_w": init_w, "init_b": init_b,
            "expert_w": jnp.concatenate(ew, axis=1),                 # (9C, E*C) bf16
            "expert_scale": jnp.concatenate(esc).reshape(1, -1),     # (1, E*C)
            "expert_shift": jnp.concatenate(esh).reshape(1, -1),     # (1, E*C)
            "moe_w": moe_w, "moe_b": jnp.zeros((1, num_experts), jnp.float32),
            "exit_w": exit_w, "exit_b": jnp.zeros((1, 1), jnp.float32),
        })
    final_w, final_b = conv_param(C, in_channels)
    return {"enc_w": enc_w, "enc_b": enc_b, "blocks": blocks,
            "final_w": final_w, "final_b": final_b}


# ---------------------------------- main -------------------------------------

if __name__ == "__main__":
    # Small, DNNet-consistent configuration (W * C = 8 * 16 = 128 lanes).
    batch, in_channels, H, W = 2, 3, 8, 8
    base_channels, num_blocks, num_experts, max_recursions = 16, 2, 3, 4

    key = jax.random.PRNGKey(0)
    k_params, k_x = jax.random.split(key)
    params = init_params(k_params, in_channels, base_channels, num_blocks, num_experts)
    x = jax.random.normal(k_x, (batch, in_channels, H, W), jnp.float32)   # NCHW

    out = dnnet_forward(x, params, max_recursions)
    out = jax.block_until_ready(out)
    assert out.shape == (batch, in_channels, H, W), out.shape
    assert bool(jnp.all(jnp.isfinite(out))), "non-finite output"
    print("KERNEL_OK")
</pallas_src>

<mosaic_0001>
module attributes {stable_mosaic.version = 11 : i64} {
  func.func @_conv3x3_kernel(%arg0: i32, %arg1: memref<2x8x8x3xf32, #tpu.memory_space<vmem>>, %arg2: memref<27x16xbf16, #tpu.memory_space<vmem>>, %arg3: memref<1x16xf32, #tpu.memory_space<vmem>>, %arg4: memref<2x8x8x16xf32, #tpu.memory_space<vmem>>, %arg5: memref<2x10x10x3xbf16, #tpu.memory_space<vmem>>) attributes {dimension_semantics = [#tpu.dimension_semantics<arbitrary>], iteration_bounds = array<i64: 1>, scalar_prefetch = 0 : i64, scratch_operands = 1 : i64, tpu.core_type = #tpu.core_type<tc>, window_params = [{pipeline_mode = #tpu.pipeline_mode<synchronous>, transform_indices = @transform_0, window_bounds = array<i64: 2, 8, 8, 3>}, {pipeline_mode = #tpu.pipeline_mode<synchronous>, transform_indices = @transform_1, window_bounds = array<i64: 27, 16>}, {pipeline_mode = #tpu.pipeline_mode<synchronous>, transform_indices = @transform_2, window_bounds = array<i64: 1, 16>}, {pipeline_mode = #tpu.pipeline_mode<synchronous>, transform_indices = @transform_3, window_bounds = array<i64: 2, 8, 8, 16>}]} {
    %cst = arith.constant 0.000000e+00 : bf16
    %0 = vector.broadcast %cst : bf16 to vector<2x10x10x3xbf16>
    %c0 = arith.constant 0 : index
    %c0_0 = arith.constant 0 : index
    %c0_1 = arith.constant 0 : index
    %c0_2 = arith.constant 0 : index
    %1 = vector.load %arg5[%c0, %c0_0, %c0_1, %c0_2] : memref<2x10x10x3xbf16, #tpu.memory_space<vmem>>, vector<2x10x10x3xbf16>
    tpu.vector_store %arg5[%c0, %c0_0, %c0_1, %c0_2], %0 {strides = array<i32>} : memref<2x10x10x3xbf16, #tpu.memory_space<vmem>>, vector<2x10x10x3xbf16>,
    %c0_3 = arith.constant 0 : index
    %c0_4 = arith.constant 0 : index
    %c0_5 = arith.constant 0 : index
    %c0_6 = arith.constant 0 : index
    %2 = vector.load %arg1[%c0_3, %c0_4, %c0_5, %c0_6] : memref<2x8x8x3xf32, #tpu.memory_space<vmem>>, vector<2x8x8x3xf32>
    %3 = arith.truncf %2 : vector<2x8x8x3xf32> to vector<2x8x8x3xbf16>
    %c0_7 = arith.constant 0 : index
    %c1 = arith.constant 1 : index
    %c1_8 = arith.constant 1 : index
    %c0_9 = arith.constant 0 : index
    %4 = vector.load %arg5[%c0_7, %c1, %c1_8, %c0_9] : memref<2x10x10x3xbf16, #tpu.memory_space<vmem>>, vector<2x8x8x3xbf16>
    tpu.vector_store %arg5[%c0_7, %c1, %c1_8, %c0_9], %3 {strides = array<i32>} : memref<2x10x10x3xbf16, #tpu.memory_space<vmem>>, vector<2x8x8x3xbf16>,
    %c0_10 = arith.constant 0 : index
    %c0_11 = arith.constant 0 : index
    %c0_12 = arith.constant 0 : index
    %c0_13 = arith.constant 0 : index
    %5 = vector.load %arg5[%c0_10, %c0_11, %c0_12, %c0_13] : memref<2x10x10x3xbf16, #tpu.memory_space<vmem>>, vector<2x8x8x3xbf16>
    %c0_14 = arith.constant 0 : index
    %c0_15 = arith.constant 0 : index
    %c1_16 = arith.constant 1 : index
    %c0_17 = arith.constant 0 : index
    %6 = vector.load %arg5[%c0_14, %c0_15, %c1_16, %c0_17] : memref<2x10x10x3xbf16, #tpu.memory_space<vmem>>, vector<2x8x8x3xbf16>
    %c0_18 = arith.constant 0 : index
    %c0_19 = arith.constant 0 : index
    %c2 = arith.constant 2 : index
    %c0_20 = arith.constant 0 : index
    %7 = vector.load %arg5[%c0_18, %c0_19, %c2, %c0_20] : memref<2x10x10x3xbf16, #tpu.memory_space<vmem>>, vector<2x8x8x3xbf16>
    %c0_21 = arith.constant 0 : index
    %c1_22 = arith.constant 1 : index
    %c0_23 = arith.constant 0 : index
    %c0_24 = arith.constant 0 : index
    %8 = vector.load %arg5[%c0_21, %c1_22, %c0_23, %c0_24] : memref<2x10x10x3xbf16, #tpu.memory_space<vmem>>, vector<2x8x8x3xbf16>
    %c0_25 = arith.constant 0 : index
    %c1_26 = arith.constant 1 : index
    %c1_27 = arith.constant 1 : index
    %c0_28 = arith.constant 0 : index
    %9 = vector.load %arg5[%c0_25, %c1_26, %c1_27, %c0_28] : memref<2x10x10x3xbf16, #tpu.memory_space<vmem>>, vector<2x8x8x3xbf16>
    %c0_29 = arith.constant 0 : index
    %c1_30 = arith.constant 1 : index
    %c2_31 = arith.constant 2 : index
    %c0_32 = arith.constant 0 : index
    %10 = vector.load %arg5[%c0_29, %c1_30, %c2_31, %c0_32] : memref<2x10x10x3xbf16, #tpu.memory_space<vmem>>, vector<2x8x8x3xbf16>
    %c0_33 = arith.constant 0 : index
    %c2_34 = arith.constant 2 : index
    %c0_35 = arith.constant 0 : index
    %c0_36 = arith.constant 0 : index
    %11 = vector.load %arg5[%c0_33, %c2_34, %c0_35, %c0_36] : memref<2x10x10x3xbf16, #tpu.memory_space<vmem>>, vector<2x8x8x3xbf16>
    %c0_37 = arith.constant 0 : index
    %c2_38 = arith.constant 2 : index
    %c1_39 = arith.constant 1 : index
    %c0_40 = arith.constant 0 : index
    %12 = vector.load %arg5[%c0_37, %c2_38, %c1_39, %c0_40] : memref<2x10x10x3xbf16, #tpu.memory_space<vmem>>, vector<2x8x8x3xbf16>
    %c0_41 = arith.constant 0 : index
    %c2_42 = arith.constant 2 : index
    %c2_43 = arith.constant 2 : index
    %c0_44 = arith.constant 0 : index
    %13 = vector.load %arg5[%c0_41, %c2_42, %c2_43, %c0_44] : memref<2x10x10x3xbf16, #tpu.memory_space<vmem>>, vector<2x8x8x3xbf16>
    %14 = tpu.concatenate %5, %6, %7, %8, %9, %10, %11, %12, %13 in 3 : vector<2x8x8x3xbf16>, vector<2x8x8x3xbf16>, vector<2x8x8x3xbf16>, vector<2x8x8x3xbf16>, vector<2x8x8x3xbf16>, vector<2x8x8x3xbf16>, vector<2x8x8x3xbf16>, vector<2x8x8x3xbf16>, vector<2x8x8x3xbf16> -> vector<2x8x8x27xbf16>
    %15 = vector.shape_cast %14 : vector<2x8x8x27xbf16> to vector<128x27xbf16>
    %c0_45 = arith.constant 0 : index
    %c0_46 = arith.constant 0 : index
    %16 = vector.load %arg2[%c0_45, %c0_46] : memref<27x16xbf16, #tpu.memory_space<vmem>>, vector<27x16xbf16>
    %cst_47 = arith.constant dense<0.000000e+00> : vector<128x16xf32>
    %17 = tpu.matmul %15, %16, %cst_47 {dimension_numbers = #tpu.dot_dimension_numbers<[1], [0], [0], [1], [0, 0, 1, 1], [], []>} : vector<128x27xbf16>, vector<27x16xbf16>, vector<128x16xf32> -> vector<128x16xf32>
    %c0_48 = arith.constant 0 : index
    %c0_49 = arith.constant 0 : index
    %18 = vector.load %arg3[%c0_48, %c0_49] : memref<1x16xf32, #tpu.memory_space<vmem>>, vector<1x16xf32>
    %19 = vector.broadcast %18 : vector<1x16xf32> to vector<128x16xf32>
    %20 = arith.addf %17, %19 : vector<128x16xf32>
    %21 = vector.shape_cast %20 : vector<128x16xf32> to vector<2x8x8x16xf32>
    %c0_50 = arith.constant 0 : index
    %c0_51 = arith.constant 0 : index
    %c0_52 = arith.constant 0 : index
    %c0_53 = arith.constant 0 : index
    %22 = vector.load %arg4[%c0_50, %c0_51, %c0_52, %c0_53] : memref<2x8x8x16xf32, #tpu.memory_space<vmem>>, vector<2x8x8x16xf32>
    tpu.vector_store %arg4[%c0_50, %c0_51, %c0_52, %c0_53], %21 {strides = array<i32>} : memref<2x8x8x16xf32, #tpu.memory_space<vmem>>, vector<2x8x8x16xf32>,
    return
  }
  func.func @transform_0(%arg0: i32) -> (i32, i32, i32, i32) {
    %c0_i32 = arith.constant 0 : i32
    %c0_i32_0 = arith.constant 0 : i32
    %c0_i32_1 = arith.constant 0 : i32
    %c0_i32_2 = arith.constant 0 : i32
    %c0_i32_3 = arith.constant 0 : i32
    return %c0_i32, %c0_i32_0, %c0_i32_1, %c0_i32_2 : i32, i32, i32, i32
  }
  func.func @transform_1(%arg0: i32) -> (i32, i32) {
    %c0_i32 = arith.constant 0 : i32
    %c0_i32_0 = arith.constant 0 : i32
    %c0_i32_1 = arith.constant 0 : i32
    return %c0_i32, %c0_i32_0 : i32, i32
  }
  func.func @transform_2(%arg0: i32) -> (i32, i32) {
    %c0_i32 = arith.constant 0 : i32
    %c0_i32_0 = arith.constant 0 : i32
    %c0_i32_1 = arith.constant 0 : i32
    return %c0_i32, %c0_i32_0 : i32, i32
  }
  func.func @transform_3(%arg0: i32) -> (i32, i32, i32, i32) {
    %c0_i32 = arith.constant 0 : i32
    %c0_i32_0 = arith.constant 0 : i32
    %c0_i32_1 = arith.constant 0 : i32
    %c0_i32_2 = arith.constant 0 : i32
    %c0_i32_3 = arith.constant 0 : i32
    return %c0_i32, %c0_i32_0, %c0_i32_1, %c0_i32_2 : i32, i32, i32, i32
  }
}

module attributes {stable_mosaic.version = 11 : i64} {
  func.func @_conv3x3_kernel(%arg0: i32, %arg1: memref<2x8x8x16xf32, #tpu.memory_space<vmem>>, %arg2: memref<144x3xbf16, #tpu.memory_space<vmem>>, %arg3: memref<1x3xf32, #tpu.memory_space<vmem>>, %arg4: memref<2x8x8x3xf32, #tpu.memory_space<vmem>>, %arg5: memref<2x10x10x16xbf16, #tpu.memory_space<vmem>>) attributes {dimension_semantics = [#tpu.dimension_semantics<arbitrary>], iteration_bounds = array<i64: 1>, scalar_prefetch = 0 : i64, scratch_operands = 1 : i64, tpu.core_type = #tpu.core_type<tc>, window_params = [{pipeline_mode = #tpu.pipeline_mode<synchronous>, transform_indices = @transform_0, window_bounds = array<i64: 2, 8, 8, 16>}, {pipeline_mode = #tpu.pipeline_mode<synchronous>, transform_indices = @transform_1, window_bounds = array<i64: 144, 3>}, {pipeline_mode = #tpu.pipeline_mode<synchronous>, transform_indices = @transform_2, window_bounds = array<i64: 1, 3>}, {pipeline_mode = #tpu.pipeline_mode<synchronous>, transform_indices = @transform_3, window_bounds = array<i64: 2, 8, 8, 3>}]} {
    %cst = arith.constant 0.000000e+00 : bf16
    %0 = vector.broadcast %cst : bf16 to vector<2x10x10x16xbf16>
    %c0 = arith.constant 0 : index
    %c0_0 = arith.constant 0 : index
    %c0_1 = arith.constant 0 : index
    %c0_2 = arith.constant 0 : index
    %1 = vector.load %arg5[%c0, %c0_0, %c0_1, %c0_2] : memref<2x10x10x16xbf16, #tpu.memory_space<vmem>>, vector<2x10x10x16xbf16>
    tpu.vector_store %arg5[%c0, %c0_0, %c0_1, %c0_2], %0 {strides = array<i32>} : memref<2x10x10x16xbf16, #tpu.memory_space<vmem>>, vector<2x10x10x16xbf16>,
    %c0_3 = arith.constant 0 : index
    %c0_4 = arith.constant 0 : index
    %c0_5 = arith.constant 0 : index
    %c0_6 = arith.constant 0 : index
    %2 = vector.load %arg1[%c0_3, %c0_4, %c0_5, %c0_6] : memref<2x8x8x16xf32, #tpu.memory_space<vmem>>, vector<2x8x8x16xf32>
    %3 = arith.truncf %2 : vector<2x8x8x16xf32> to vector<2x8x8x16xbf16>
    %c0_7 = arith.constant 0 : index
    %c1 = arith.constant 1 : index
    %c1_8 = arith.constant 1 : index
    %c0_9 = arith.constant 0 : index
    %4 = vector.load %arg5[%c0_7, %c1, %c1_8, %c0_9] : memref<2x10x10x16xbf16, #tpu.memory_space<vmem>>, vector<2x8x8x16xbf16>
    tpu.vector_store %arg5[%c0_7, %c1, %c1_8, %c0_9], %3 {strides = array<i32>} : memref<2x10x10x16xbf16, #tpu.memory_space<vmem>>, vector<2x8x8x16xbf16>,
    %c0_10 = arith.constant 0 : index
    %c0_11 = arith.constant 0 : index
    %c0_12 = arith.constant 0 : index
    %c0_13 = arith.constant 0 : index
    %5 = vector.load %arg5[%c0_10, %c0_11, %c0_12, %c0_13] : memref<2x10x10x16xbf16, #tpu.memory_space<vmem>>, vector<2x8x8x16xbf16>
    %c0_14 = arith.constant 0 : index
    %c0_15 = arith.constant 0 : index
    %c1_16 = arith.constant 1 : index
    %c0_17 = arith.constant 0 : index
    %6 = vector.load %arg5[%c0_14, %c0_15, %c1_16, %c0_17] : memref<2x10x10x16xbf16, #tpu.memory_space<vmem>>, vector<2x8x8x16xbf16>
    %c0_18 = arith.constant 0 : index
    %c0_19 = arith.constant 0 : index
    %c2 = arith.constant 2 : index
    %c0_20 = arith.constant 0 : index
    %7 = vector.load %arg5[%c0_18, %c0_19, %c2, %c0_20] : memref<2x10x10x16xbf16, #tpu.memory_space<vmem>>, vector<2x8x8x16xbf16>
    %c0_21 = arith.constant 0 : index
    %c1_22 = arith.constant 1 : index
    %c0_23 = arith.constant 0 : index
    %c0_24 = arith.constant 0 : index
    %8 = vector.load %arg5[%c0_21, %c1_22, %c0_23, %c0_24] : memref<2x10x10x16xbf16, #tpu.memory_space<vmem>>, vector<2x8x8x16xbf16>
    %c0_25 = arith.constant 0 : index
    %c1_26 = arith.constant 1 : index
    %c1_27 = arith.constant 1 : index
    %c0_28 = arith.constant 0 : index
    %9 = vector.load %arg5[%c0_25, %c1_26, %c1_27, %c0_28] : memref<2x10x10x16xbf16, #tpu.memory_space<vmem>>, vector<2x8x8x16xbf16>
    %c0_29 = arith.constant 0 : index
    %c1_30 = arith.constant 1 : index
    %c2_31 = arith.constant 2 : index
    %c0_32 = arith.constant 0 : index
    %10 = vector.load %arg5[%c0_29, %c1_30, %c2_31, %c0_32] : memref<2x10x10x16xbf16, #tpu.memory_space<vmem>>, vector<2x8x8x16xbf16>
    %c0_33 = arith.constant 0 : index
    %c2_34 = arith.constant 2 : index
    %c0_35 = arith.constant 0 : index
    %c0_36 = arith.constant 0 : index
    %11 = vector.load %arg5[%c0_33, %c2_34, %c0_35, %c0_36] : memref<2x10x10x16xbf16, #tpu.memory_space<vmem>>, vector<2x8x8x16xbf16>
    %c0_37 = arith.constant 0 : index
    %c2_38 = arith.constant 2 : index
    %c1_39 = arith.constant 1 : index
    %c0_40 = arith.constant 0 : index
    %12 = vector.load %arg5[%c0_37, %c2_38, %c1_39, %c0_40] : memref<2x10x10x16xbf16, #tpu.memory_space<vmem>>, vector<2x8x8x16xbf16>
    %c0_41 = arith.constant 0 : index
    %c2_42 = arith.constant 2 : index
    %c2_43 = arith.constant 2 : index
    %c0_44 = arith.constant 0 : index
    %13 = vector.load %arg5[%c0_41, %c2_42, %c2_43, %c0_44] : memref<2x10x10x16xbf16, #tpu.memory_space<vmem>>, vector<2x8x8x16xbf16>
    %14 = tpu.concatenate %5, %6, %7, %8, %9, %10, %11, %12, %13 in 3 : vector<2x8x8x16xbf16>, vector<2x8x8x16xbf16>, vector<2x8x8x16xbf16>, vector<2x8x8x16xbf16>, vector<2x8x8x16xbf16>, vector<2x8x8x16xbf16>, vector<2x8x8x16xbf16>, vector<2x8x8x16xbf16>, vector<2x8x8x16xbf16> -> vector<2x8x8x144xbf16>
    %15 = vector.shape_cast %14 : vector<2x8x8x144xbf16> to vector<128x144xbf16>
    %c0_45 = arith.constant 0 : index
    %c0_46 = arith.constant 0 : index
    %16 = vector.load %arg2[%c0_45, %c0_46] : memref<144x3xbf16, #tpu.memory_space<vmem>>, vector<144x3xbf16>
    %cst_47 = arith.constant dense<0.000000e+00> : vector<128x3xf32>
    %17 = tpu.matmul %15, %16, %cst_47 {dimension_numbers = #tpu.dot_dimension_numbers<[1], [0], [0], [1], [0, 0, 1, 1], [], []>} : vector<128x144xbf16>, vector<144x3xbf16>, vector<128x3xf32> -> vector<128x3xf32>
    %c0_48 = arith.constant 0 : index
    %c0_49 = arith.constant 0 : index
    %18 = vector.load %arg3[%c0_48, %c0_49] : memref<1x3xf32, #tpu.memory_space<vmem>>, vector<1x3xf32>
    %19 = vector.broadcast %18 : vector<1x3xf32> to vector<128x3xf32>
    %20 = arith.addf %17, %19 : vector<128x3xf32>
    %21 = vector.shape_cast %20 : vector<128x3xf32> to vector<2x8x8x3xf32>
    %c0_50 = arith.constant 0 : index
    %c0_51 = arith.constant 0 : index
    %c0_52 = arith.constant 0 : index
    %c0_53 = arith.constant 0 : index
    %22 = vector.load %arg4[%c0_50, %c0_51, %c0_52, %c0_53] : memref<2x8x8x3xf32, #tpu.memory_space<vmem>>, vector<2x8x8x3xf32>
    tpu.vector_store %arg4[%c0_50, %c0_51, %c0_52, %c0_53], %21 {strides = array<i32>} : memref<2x8x8x3xf32, #tpu.memory_space<vmem>>, vector<2x8x8x3xf32>,
    return
  }
  func.func @transform_0(%arg0: i32) -> (i32, i32, i32, i32) {
    %c0_i32 = arith.constant 0 : i32
    %c0_i32_0 = arith.constant 0 : i32
    %c0_i32_1 = arith.constant 0 : i32
    %c0_i32_2 = arith.constant 0 : i32
    %c0_i32_3 = arith.constant 0 : i32
    return %c0_i32, %c0_i32_0, %c0_i32_1, %c0_i32_2 : i32, i32, i32, i32
  }
  func.func @transform_1(%arg0: i32) -> (i32, i32) {
    %c0_i32 = arith.constant 0 : i32
    %c0_i32_0 = arith.constant 0 : i32
    %c0_i32_1 = arith.constant 0 : i32
    return %c0_i32, %c0_i32_0 : i32, i32
  }
  func.func @transform_2(%arg0: i32) -> (i32, i32) {
    %c0_i32 = arith.constant 0 : i32
    %c0_i32_0 = arith.constant 0 : i32
    %c0_i32_1 = arith.constant 0 : i32
    return %c0_i32, %c0_i32_0 : i32, i32
  }
  func.func @transform_3(%arg0: i32) -> (i32, i32, i32, i32) {
    %c0_i32 = arith.constant 0 : i32
    %c0_i32_0 = arith.constant 0 : i32
    %c0_i32_1 = arith.constant 0 : i32
    %c0_i32_2 = arith.constant 0 : i32
    %c0_i32_3 = arith.constant 0 : i32
    return %c0_i32, %c0_i32_0, %c0_i32_1, %c0_i32_2 : i32, i32, i32, i32
  }
}

module attributes {stable_mosaic.version = 11 : i64} {
  func.func @_dnblock_kernel(%arg0: i32, %arg1: memref<2x8x8x16xf32, #tpu.memory_space<vmem>>, %arg2: memref<144x16xbf16, #tpu.memory_space<vmem>>, %arg3: memref<1x16xf32, #tpu.memory_space<vmem>>, %arg4: memref<144x48xbf16, #tpu.memory_space<vmem>>, %arg5: memref<1x48xf32, #tpu.memory_space<vmem>>, %arg6: memref<1x48xf32, #tpu.memory_space<vmem>>, %arg7: memref<16x3xf32, #tpu.memory_space<vmem>>, %arg8: memref<1x3xf32, #tpu.memory_space<vmem>>, %arg9: memref<16x1xf32, #tpu.memory_space<vmem>>, %arg10: memref<1x1xf32, #tpu.memory_space<vmem>>, %arg11: memref<2x8x8x16xf32, #tpu.memory_space<vmem>>, %arg12: memref<2x10x10x16xbf16, #tpu.memory_space<vmem>>, %arg13: memref<1xi32, #tpu.memory_space<smem>>) attributes {dimension_semantics = [#tpu.dimension_semantics<arbitrary>], iteration_bounds = array<i64: 1>, scalar_prefetch = 0 : i64, scratch_operands = 2 : i64, tpu.core_type = #tpu.core_type<tc>, window_params = [{pipeline_mode = #tpu.pipeline_mode<synchronous>, transform_indices = @transform_0, window_bounds = array<i64: 2, 8, 8, 16>}, {pipeline_mode = #tpu.pipeline_mode<synchronous>, transform_indices = @transform_1, window_bounds = array<i64: 144, 16>}, {pipeline_mode = #tpu.pipeline_mode<synchronous>, transform_indices = @transform_2, window_bounds = array<i64: 1, 16>}, {pipeline_mode = #tpu.pipeline_mode<synchronous>, transform_indices = @transform_3, window_bounds = array<i64: 144, 48>}, {pipeline_mode = #tpu.pipeline_mode<synchronous>, transform_indices = @transform_4, window_bounds = array<i64: 1, 48>}, {pipeline_mode = #tpu.pipeline_mode<synchronous>, transform_indices = @transform_5, window_bounds = array<i64: 1, 48>}, {pipeline_mode = #tpu.pipeline_mode<synchronous>, transform_indices = @transform_6, window_bounds = array<i64: 16, 3>}, {pipeline_mode = #tpu.pipeline_mode<synchronous>, transform_indices = @transform_7, window_bounds = array<i64: 1, 3>}, {pipeline_mode = #tpu.pipeline_mode<synchronous>, transform_indices = @transform_8, window_bounds = array<i64: 16, 1>}, {pipeline_mode = #tpu.pipeline_mode<synchronous>, transform_indices = @transform_9, window_bounds = array<i64: 1, 1>}, {pipeline_mode = #tpu.pipeline_mode<synchronous>, transform_indices = @transform_10, window_bounds = array<i64: 2, 8, 8, 16>}]} {
    %cst = arith.constant 0.000000e+00 : bf16
    %0 = vector.broadcast %cst : bf16 to vector<2x10x10x16xbf16>
    %c0 = arith.constant 0 : index
    %c0_0 = arith.constant 0 : index
    %c0_1 = arith.constant 0 : index
    %c0_2 = arith.constant 0 : index
    %1 = vector.load %arg12[%c0, %c0_0, %c0_1, %c0_2] : memref<2x10x10x16xbf16, #tpu.memory_space<vmem>>, vector<2x10x10x16xbf16>
    tpu.vector_store %arg12[%c0, %c0_0, %c0_1, %c0_2], %0 {strides = array<i32>} : memref<2x10x10x16xbf16, #tpu.memory_space<vmem>>, vector<2x10x10x16xbf16>,
    %c0_3 = arith.constant 0 : index
    %c0_4 = arith.constant 0 : index
    %c0_5 = arith.constant 0 : index
    %c0_6 = arith.constant 0 : index
    %2 = vector.load %arg1[%c0_3, %c0_4, %c0_5, %c0_6] : memref<2x8x8x16xf32, #tpu.memory_space<vmem>>, vector<2x8x8x16xf32>
    %3 = arith.truncf %2 : vector<2x8x8x16xf32> to vector<2x8x8x16xbf16>
    %c0_7 = arith.constant 0 : index
    %c1 = arith.constant 1 : index
    %c1_8 = arith.constant 1 : index
    %c0_9 = arith.constant 0 : index
    %4 = vector.load %arg12[%c0_7, %c1, %c1_8, %c0_9] : memref<2x10x10x16xbf16, #tpu.memory_space<vmem>>, vector<2x8x8x16xbf16>
    tpu.vector_store %arg12[%c0_7, %c1, %c1_8, %c0_9], %3 {strides = array<i32>} : memref<2x10x10x16xbf16, #tpu.memory_space<vmem>>, vector<2x8x8x16xbf16>,
    %c0_10 = arith.constant 0 : index
    %c0_11 = arith.constant 0 : index
    %5 = vector.load %arg2[%c0_10, %c0_11] : memref<144x16xbf16, #tpu.memory_space<vmem>>, vector<144x16xbf16>
    %c0_12 = arith.constant 0 : index
    %c0_13 = arith.constant 0 : index
    %c0_14 = arith.constant 0 : index
    %c0_15 = arith.constant 0 : index
    %6 = vector.load %arg12[%c0_12, %c0_13, %c0_14, %c0_15] : memref<2x10x10x16xbf16, #tpu.memory_space<vmem>>, vector<2x8x8x16xbf16>
    %c0_16 = arith.constant 0 : index
    %c0_17 = arith.constant 0 : index
    %c1_18 = arith.constant 1 : index
    %c0_19 = arith.constant 0 : index
    %7 = vector.load %arg12[%c0_16, %c0_17, %c1_18, %c0_19] : memref<2x10x10x16xbf16, #tpu.memory_space<vmem>>, vector<2x8x8x16xbf16>
    %c0_20 = arith.constant 0 : index
    %c0_21 = arith.constant 0 : index
    %c2 = arith.constant 2 : index
    %c0_22 = arith.constant 0 : index
    %8 = vector.load %arg12[%c0_20, %c0_21, %c2, %c0_22] : memref<2x10x10x16xbf16, #tpu.memory_space<vmem>>, vector<2x8x8x16xbf16>
    %c0_23 = arith.constant 0 : index
    %c1_24 = arith.constant 1 : index
    %c0_25 = arith.constant 0 : index
    %c0_26 = arith.constant 0 : index
    %9 = vector.load %arg12[%c0_23, %c1_24, %c0_25, %c0_26] : memref<2x10x10x16xbf16, #tpu.memory_space<vmem>>, vector<2x8x8x16xbf16>
    %c0_27 = arith.constant 0 : index
    %c1_28 = arith.constant 1 : index
    %c1_29 = arith.constant 1 : index
    %c0_30 = arith.constant 0 : index
    %10 = vector.load %arg12[%c0_27, %c1_28, %c1_29, %c0_30] : memref<2x10x10x16xbf16, #tpu.memory_space<vmem>>, vector<2x8x8x16xbf16>
    %c0_31 = arith.constant 0 : index
    %c1_32 = arith.constant 1 : index
    %c2_33 = arith.constant 2 : index
    %c0_34 = arith.constant 0 : index
    %11 = vector.load %arg12[%c0_31, %c1_32, %c2_33, %c0_34] : memref<2x10x10x16xbf16, #tpu.memory_space<vmem>>, vector<2x8x8x16xbf16>
    %c0_35 = arith.constant 0 : index
    %c2_36 = arith.constant 2 : index
    %c0_37 = arith.constant 0 : index
    %c0_38 = arith.constant 0 : index
    %12 = vector.load %arg12[%c0_35, %c2_36, %c0_37, %c0_38] : memref<2x10x10x16xbf16, #tpu.memory_space<vmem>>, vector<2x8x8x16xbf16>
    %c0_39 = arith.constant 0 : index
    %c2_40 = arith.constant 2 : index
    %c1_41 = arith.constant 1 : index
    %c0_42 = arith.constant 0 : index
    %13 = vector.load %arg12[%c0_39, %c2_40, %c1_41, %c0_42] : memref<2x10x10x16xbf16, #tpu.memory_space<vmem>>, vector<2x8x8x16xbf16>
    %c0_43 = arith.constant 0 : index
    %c2_44 = arith.constant 2 : index
    %c2_45 = arith.constant 2 : index
    %c0_46 = arith.constant 0 : index
    %14 = vector.load %arg12[%c0_43, %c2_44, %c2_45, %c0_46] : memref<2x10x10x16xbf16, #tpu.memory_space<vmem>>, vector<2x8x8x16xbf16>
    %15 = tpu.concatenate %6, %7, %8, %9, %10, %11, %12, %13, %14 in 3 : vector<2x8x8x16xbf16>, vector<2x8x8x16xbf16>, vector<2x8x8x16xbf16>, vector<2x8x8x16xbf16>, vector<2x8x8x16xbf16>, vector<2x8x8x16xbf16>, vector<2x8x8x16xbf16>, vector<2x8x8x16xbf16>, vector<2x8x8x16xbf16> -> vector<2x8x8x144xbf16>
    %16 = vector.shape_cast %15 : vector<2x8x8x144xbf16> to vector<128x144xbf16>
    %cst_47 = arith.constant dense<0.000000e+00> : vector<128x16xf32>
    %17 = tpu.matmul %16, %5, %cst_47 {dimension_numbers = #tpu.dot_dimension_numbers<[1], [0], [0], [1], [0, 0, 1, 1], [], []>} : vector<128x144xbf16>, vector<144x16xbf16>, vector<128x16xf32> -> vector<128x16xf32>
    %c0_48 = arith.constant 0 : index
    %c0_49 = arith.constant 0 : index
    %18 = vector.load %arg3[%c0_48, %c0_49] : memref<1x16xf32, #tpu.memory_space<vmem>>, vector<1x16xf32>
    %19 = vector.broadcast %18 : vector<1x16xf32> to vector<128x16xf32>
    %20 = arith.addf %17, %19 : vector<128x16xf32>
    %cst_50 = arith.constant 0.000000e+00 : f32
    %21 = vector.broadcast %cst_50 : f32 to vector<128x16xf32>
    %22 = arith.maximumf %20, %21 : vector<128x16xf32>
    %23 = vector.shape_cast %22 : vector<128x16xf32> to vector<2x8x8x16xf32>
    %c0_51 = arith.constant 0 : index
    %c0_52 = arith.constant 0 : index
    %c0_53 = arith.constant 0 : index
    %c0_54 = arith.constant 0 : index
    %24 = vector.load %arg11[%c0_51, %c0_52, %c0_53, %c0_54] : memref<2x8x8x16xf32, #tpu.memory_space<vmem>>, vector<2x8x8x16xf32>
    tpu.vector_store %arg11[%c0_51, %c0_52, %c0_53, %c0_54], %23 {strides = array<i32>} : memref<2x8x8x16xf32, #tpu.memory_space<vmem>>, vector<2x8x8x16xf32>,
    %c0_i32 = arith.constant 0 : i32
    %c0_55 = arith.constant 0 : index
    %25 = memref.load %arg13[%c0_55] : memref<1xi32, #tpu.memory_space<smem>>
    memref.store %c0_i32, %arg13[%c0_55] : memref<1xi32, #tpu.memory_space<smem>>
    %c0_i32_56 = arith.constant 0 : i32
    %c4_i32 = arith.constant 4 : i32
    %26 = arith.addi %c0_i32_56, %c4_i32 : i32
    %c1_i32 = arith.constant 1 : i32
    scf.for %arg14 = %c0_i32_56 to %26 step %c1_i32  : i32 {
      %c0_57 = arith.constant 0 : index
      %27 = memref.load %arg13[%c0_57] : memref<1xi32, #tpu.memory_space<smem>>
      %c0_i32_58 = arith.constant 0 : i32
      %28 = arith.cmpi eq, %27, %c0_i32_58 : i32
      %29 = arith.extui %28 : i1 to i32
      %c0_i32_59 = arith.constant 0 : i32
      %30 = arith.cmpi ne, %29, %c0_i32_59 : i32
      scf.if %30 {
        %c0_60 = arith.constant 0 : index
        %c0_61 = arith.constant 0 : index
        %c0_62 = arith.constant 0 : index
        %c0_63 = arith.constant 0 : index
        %31 = vector.load %arg11[%c0_60, %c0_61, %c0_62, %c0_63] : memref<2x8x8x16xf32, #tpu.memory_space<vmem>>, vector<2x8x8x16xf32>
        %32 = vector.shape_cast %31 : vector<2x8x8x16xf32> to vector<2x64x16xf32>
        %cst_64 = arith.constant dense<0.000000e+00> : vector<2x16xf32>
        %33 = vector.multi_reduction <add>, %32, %cst_64 [1] : vector<2x64x16xf32> to vector<2x16xf32>
        %cst_65 = arith.constant 6.400000e+01 : f32
        %34 = vector.broadcast %cst_65 : f32 to vector<2x16xf32>
        %35 = arith.divf %33, %34 : vector<2x16xf32>
        %c0_66 = arith.constant 0 : index
        %c0_67 = arith.constant 0 : index
        %36 = vector.load %arg7[%c0_66, %c0_67] : memref<16x3xf32, #tpu.memory_space<vmem>>, vector<16x3xf32>
        %cst_68 = arith.constant dense<0.000000e+00> : vector<2x3xf32>
        %37 = tpu.matmul %35, %36, %cst_68 {dimension_numbers = #tpu.dot_dimension_numbers<[1], [0], [0], [1], [0, 0, 1, 1], [], []>} : vector<2x16xf32>, vector<16x3xf32>, vector<2x3xf32> -> vector<2x3xf32>
        %c0_69 = arith.constant 0 : index
        %c0_70 = arith.constant 0 : index
        %38 = vector.load %arg8[%c0_69, %c0_70] : memref<1x3xf32, #tpu.memory_space<vmem>>, vector<1x3xf32>
        %39 = vector.broadcast %38 : vector<1x3xf32> to vector<2x3xf32>
        %40 = arith.addf %37, %39 : vector<2x3xf32>
        %cst_71 = arith.constant dense<0xFF800000> : vector<2xf32>
        %41 = vector.multi_reduction <maximumf>, %40, %cst_71 [1] : vector<2x3xf32> to vector<2xf32>
        %42 = vector.shape_cast %41 : vector<2xf32> to vector<2x1xf32>
        %43 = vector.broadcast %42 : vector<2x1xf32> to vector<2x3xf32>
        %44 = arith.subf %40, %43 : vector<2x3xf32>
        %45 = math.exp %44 : vector<2x3xf32>
        %cst_72 = arith.constant dense<0.000000e+00> : vector<2xf32>
        %46 = vector.multi_reduction <add>, %45, %cst_72 [1] : vector<2x3xf32> to vector<2xf32>
        %47 = vector.shape_cast %46 : vector<2xf32> to vector<2x1xf32>
        %48 = vector.broadcast %47 : vector<2x1xf32> to vector<2x3xf32>
        %49 = arith.divf %45, %48 : vector<2x3xf32>
        %50 = arith.truncf %31 : vector<2x8x8x16xf32> to vector<2x8x8x16xbf16>
        %c0_73 = arith.constant 0 : index
        %c1_74 = arith.constant 1 : index
        %c1_75 = arith.constant 1 : index
        %c0_76 = arith.constant 0 : index
        %51 = vector.load %arg12[%c0_73, %c1_74, %c1_75, %c0_76] : memref<2x10x10x16xbf16, #tpu.memory_space<vmem>>, vector<2x8x8x16xbf16>
        tpu.vector_store %arg12[%c0_73, %c1_74, %c1_75, %c0_76], %50 {strides = array<i32>} : memref<2x10x10x16xbf16, #tpu.memory_space<vmem>>, vector<2x8x8x16xbf16>,
        %c0_77 = arith.constant 0 : index
        %c0_78 = arith.constant 0 : index
        %52 = vector.load %arg4[%c0_77, %c0_78] : memref<144x48xbf16, #tpu.memory_space<vmem>>, vector<144x48xbf16>
        %c0_79 = arith.constant 0 : index
        %c0_80 = arith.constant 0 : index
        %c0_81 = arith.constant 0 : index
        %c0_82 = arith.constant 0 : index
        %53 = vector.load %arg12[%c0_79, %c0_80, %c0_81, %c0_82] : memref<2x10x10x16xbf16, #tpu.memory_space<vmem>>, vector<2x8x8x16xbf16>
        %c0_83 = arith.constant 0 : index
        %c0_84 = arith.constant 0 : index
        %c1_85 = arith.constant 1 : index
        %c0_86 = arith.constant 0 : index
        %54 = vector.load %arg12[%c0_83, %c0_84, %c1_85, %c0_86] : memref<2x10x10x16xbf16, #tpu.memory_space<vmem>>, vector<2x8x8x16xbf16>
        %c0_87 = arith.constant 0 : index
        %c0_88 = arith.constant 0 : index
        %c2_89 = arith.constant 2 : index
        %c0_90 = arith.constant 0 : index
        %55 = vector.load %arg12[%c0_87, %c0_88, %c2_89, %c0_90] : memref<2x10x10x16xbf16, #tpu.memory_space<vmem>>, vector<2x8x8x16xbf16>
        %c0_91 = arith.constant 0 : index
        %c1_92 = arith.constant 1 : index
        %c0_93 = arith.constant 0 : index
        %c0_94 = arith.constant 0 : index
        %56 = vector.load %arg12[%c0_91, %c1_92, %c0_93, %c0_94] : memref<2x10x10x16xbf16, #tpu.memory_space<vmem>>, vector<2x8x8x16xbf16>
        %c0_95 = arith.constant 0 : index
        %c1_96 = arith.constant 1 : index
        %c1_97 = arith.constant 1 : index
        %c0_98 = arith.constant 0 : index
        %57 = vector.load %arg12[%c0_95, %c1_96, %c1_97, %c0_98] : memref<2x10x10x16xbf16, #tpu.memory_space<vmem>>, vector<2x8x8x16xbf16>
        %c0_99 = arith.constant 0 : index
        %c1_100 = arith.constant 1 : index
        %c2_101 = arith.constant 2 : index
        %c0_102 = arith.constant 0 : index
        %58 = vector.load %arg12[%c0_99, %c1_100, %c2_101, %c0_102] : memref<2x10x10x16xbf16, #tpu.memory_space<vmem>>, vector<2x8x8x16xbf16>
        %c0_103 = arith.constant 0 : index
        %c2_104 = arith.constant 2 : index
        %c0_105 = arith.constant 0 : index
        %c0_106 = arith.constant 0 : index
        %59 = vector.load %arg12[%c0_103, %c2_104, %c0_105, %c0_106] : memref<2x10x10x16xbf16, #tpu.memory_space<vmem>>, vector<2x8x8x16xbf16>
        %c0_107 = arith.constant 0 : index
        %c2_108 = arith.constant 2 : index
        %c1_109 = arith.constant 1 : index
        %c0_110 = arith.constant 0 : index
        %60 = vector.load %arg12[%c0_107, %c2_108, %c1_109, %c0_110] : memref<2x10x10x16xbf16, #tpu.memory_space<vmem>>, vector<2x8x8x16xbf16>
        %c0_111 = arith.constant 0 : index
        %c2_112 = arith.constant 2 : index
        %c2_113 = arith.constant 2 : index
        %c0_114 = arith.constant 0 : index
        %61 = vector.load %arg12[%c0_111, %c2_112, %c2_113, %c0_114] : memref<2x10x10x16xbf16, #tpu.memory_space<vmem>>, vector<2x8x8x16xbf16>
        %62 = tpu.concatenate %53, %54, %55, %56, %57, %58, %59, %60, %61 in 3 : vector<2x8x8x16xbf16>, vector<2x8x8x16xbf16>, vector<2x8x8x16xbf16>, vector<2x8x8x16xbf16>, vector<2x8x8x16xbf16>, vector<2x8x8x16xbf16>, vector<2x8x8x16xbf16>, vector<2x8x8x16xbf16>, vector<2x8x8x16xbf16> -> vector<2x8x8x144xbf16>
        %63 = vector.shape_cast %62 : vector<2x8x8x144xbf16> to vector<128x144xbf16>
        %cst_115 = arith.constant dense<0.000000e+00> : vector<128x48xf32>
        %64 = tpu.matmul %63, %52, %cst_115 {dimension_numbers = #tpu.dot_dimension_numbers<[1], [0], [0], [1], [0, 0, 1, 1], [], []>} : vector<128x144xbf16>, vector<144x48xbf16>, vector<128x48xf32> -> vector<128x48xf32>
        %c0_116 = arith.constant 0 : index
        %c0_117 = arith.constant 0 : index
        %65 = vector.load %arg5[%c0_116, %c0_117] : memref<1x48xf32, #tpu.memory_space<vmem>>, vector<1x48xf32>
        %66 = vector.broadcast %65 : vector<1x48xf32> to vector<128x48xf32>
        %67 = arith.mulf %64, %66 : vector<128x48xf32>
        %c0_118 = arith.constant 0 : index
        %c0_119 = arith.constant 0 : index
        %68 = vector.load %arg6[%c0_118, %c0_119] : memref<1x48xf32, #tpu.memory_space<vmem>>, vector<1x48xf32>
        %69 = vector.broadcast %68 : vector<1x48xf32> to vector<128x48xf32>
        %70 = arith.addf %67, %69 : vector<128x48xf32>
        %cst_120 = arith.constant 0.000000e+00 : f32
        %71 = vector.broadcast %cst_120 : f32 to vector<128x48xf32>
        %72 = arith.maximumf %70, %71 : vector<128x48xf32>
        %73 = vector.shape_cast %72 : vector<128x48xf32> to vector<2x64x48xf32>
        %cst_121 = arith.constant 0.000000e+00 : f32
        %74 = vector.broadcast %cst_121 : f32 to vector<2x64x16xf32>
        %75 = vector.extract_strided_slice %49 {offsets = [0, 0], sizes = [2, 1], strides = [1, 1]} : vector<2x3xf32> to vector<2x1xf32>
        %76 = vector.shape_cast %75 : vector<2x1xf32> to vector<2x1x1xf32>
        %77 = vector.extract_strided_slice %73 {offsets = [0, 0, 0], sizes = [2, 64, 16], strides = [1, 1, 1]} : vector<2x64x48xf32> to vector<2x64x16xf32>
        %78 = vector.broadcast %76 : vector<2x1x1xf32> to vector<2x64x16xf32>
        %79 = arith.mulf %77, %78 : vector<2x64x16xf32>
        %80 = arith.addf %74, %79 : vector<2x64x16xf32>
        %81 = vector.extract_strided_slice %49 {offsets = [0, 1], sizes = [2, 1], strides = [1, 1]} : vector<2x3xf32> to vector<2x1xf32>
        %82 = vector.shape_cast %81 : vector<2x1xf32> to vector<2x1x1xf32>
        %83 = vector.extract_strided_slice %73 {offsets = [0, 0, 16], sizes = [2, 64, 16], strides = [1, 1, 1]} : vector<2x64x48xf32> to vector<2x64x16xf32>
        %84 = vector.broadcast %82 : vector<2x1x1xf32> to vector<2x64x16xf32>
        %85 = arith.mulf %83, %84 : vector<2x64x16xf32>
        %86 = arith.addf %80, %85 : vector<2x64x16xf32>
        %87 = vector.extract_strided_slice %49 {offsets = [0, 2], sizes = [2, 1], strides = [1, 1]} : vector<2x3xf32> to vector<2x1xf32>
        %88 = vector.shape_cast %87 : vector<2x1xf32> to vector<2x1x1xf32>
        %89 = vector.extract_strided_slice %73 {offsets = [0, 0, 32], sizes = [2, 64, 16], strides = [1, 1, 1]} : vector<2x64x48xf32> to vector<2x64x16xf32>
        %90 = vector.broadcast %88 : vector<2x1x1xf32> to vector<2x64x16xf32>
        %91 = arith.mulf %89, %90 : vector<2x64x16xf32>
        %92 = arith.addf %86, %91 : vector<2x64x16xf32>
        %cst_122 = arith.constant dense<0.000000e+00> : vector<2x16xf32>
        %93 = vector.multi_reduction <add>, %92, %cst_122 [1] : vector<2x64x16xf32> to vector<2x16xf32>
        %cst_123 = arith.constant 6.400000e+01 : f32
        %94 = vector.broadcast %cst_123 : f32 to vector<2x16xf32>
        %95 = arith.divf %93, %94 : vector<2x16xf32>
        %c0_124 = arith.constant 0 : index
        %c0_125 = arith.constant 0 : index
        %96 = vector.load %arg9[%c0_124, %c0_125] : memref<16x1xf32, #tpu.memory_space<vmem>>, vector<16x1xf32>
        %cst_126 = arith.constant dense<0.000000e+00> : vector<2x1xf32>
        %97 = tpu.matmul %95, %96, %cst_126 {dimension_numbers = #tpu.dot_dimension_numbers<[1], [0], [0], [1], [0, 0, 1, 1], [], []>} : vector<2x16xf32>, vector<16x1xf32>, vector<2x1xf32> -> vector<2x1xf32>
        %c0_127 = arith.constant 0 : index
        %c0_128 = arith.constant 0 : index
        %98 = vector.load %arg10[%c0_127, %c0_128] : memref<1x1xf32, #tpu.memory_space<vmem>>, vector<1x1xf32>
        %99 = vector.broadcast %98 : vector<1x1xf32> to vector<2x1xf32>
        %100 = arith.addf %97, %99 : vector<2x1xf32>
        %cst_129 = arith.constant 0.000000e+00 : f32
        %101 = vector.broadcast %cst_129 : f32 to vector<2x1xf32>
        %102 = arith.subf %101, %100 : vector<2x1xf32>
        %103 = math.exp %102 : vector<2x1xf32>
        %cst_130 = arith.constant 1.000000e+00 : f32
        %104 = vector.broadcast %cst_130 : f32 to vector<2x1xf32>
        %105 = arith.addf %104, %103 : vector<2x1xf32>
        %cst_131 = arith.constant 1.000000e+00 : f32
        %106 = vector.broadcast %cst_131 : f32 to vector<2x1xf32>
        %107 = arith.divf %106, %105 : vector<2x1xf32>
        %108 = vector.shape_cast %92 : vector<2x64x16xf32> to vector<2x8x8x16xf32>
        %c0_132 = arith.constant 0 : index
        %c0_133 = arith.constant 0 : index
        %c0_134 = arith.constant 0 : index
        %c0_135 = arith.constant 0 : index
        %109 = vector.load %arg11[%c0_132, %c0_133, %c0_134, %c0_135] : memref<2x8x8x16xf32, #tpu.memory_space<vmem>>, vector<2x8x8x16xf32>
        tpu.vector_store %arg11[%c0_132, %c0_133, %c0_134, %c0_135], %108 {strides = array<i32>} : memref<2x8x8x16xf32, #tpu.memory_space<vmem>>, vector<2x8x8x16xf32>,
        %110 = vector.shape_cast %107 : vector<2x1xf32> to vector<1x2x1xf32>
        %cst_136 = arith.constant dense<0x7F800000> : vector<1xf32>
        %111 = vector.multi_reduction <minimumf>, %110, %cst_136 [1, 2] : vector<1x2x1xf32> to vector<1xf32>
        %112 = vector.shape_cast %111 : vector<1xf32> to vector<1x1x1xf32>
        %113 = vector.extract %112[0, 0, 0] : f32 from vector<1x1x1xf32>
        %cst_137 = arith.constant 5.000000e-01 : f32
        %114 = arith.cmpf ogt, %113, %cst_137 : f32
        %115 = arith.extui %114 : i1 to i32
        %c0_138 = arith.constant 0 : index
        %116 = memref.load %arg13[%c0_138] : memref<1xi32, #tpu.memory_space<smem>>
        memref.store %115, %arg13[%c0_138] : memref<1xi32, #tpu.memory_space<smem>>
      } else {
      }
    }
    return
  }
  func.func @transform_0(%arg0: i32) -> (i32, i32, i32, i32) {
    %c0_i32 = arith.constant 0 : i32
    %c0_i32_0 = arith.constant 0 : i32
    %c0_i32_1 = arith.constant 0 : i32
    %c0_i32_2 = arith.constant 0 : i32
    %c0_i32_3 = arith.constant 0 : i32
    return %c0_i32, %c0_i32_0, %c0_i32_1, %c0_i32_2 : i32, i32, i32, i32
  }
  func.func @transform_1(%arg0: i32) -> (i32, i32) {
    %c0_i32 = arith.constant 0 : i32
    %c0_i32_0 = arith.constant 0 : i32
    %c0_i32_1 = arith.constant 0 : i32
    return %c0_i32, %c0_i32_0 : i32, i32
  }
  func.func @transform_2(%arg0: i32) -> (i32, i32) {
    %c0_i32 = arith.constant 0 : i32
    %c0_i32_0 = arith.constant 0 : i32
    %c0_i32_1 = arith.constant 0 : i32
    return %c0_i32, %c0_i32_0 : i32, i32
  }
  func.func @transform_3(%arg0: i32) -> (i32, i32) {
    %c0_i32 = arith.constant 0 : i32
    %c0_i32_0 = arith.constant 0 : i32
    %c0_i32_1 = arith.constant 0 : i32
    return %c0_i32, %c0_i32_0 : i32, i32
  }
  func.func @transform_4(%arg0: i32) -> (i32, i32) {
    %c0_i32 = arith.constant 0 : i32
    %c0_i32_0 = arith.constant 0 : i32
    %c0_i32_1 = arith.constant 0 : i32
    return %c0_i32, %c0_i32_0 : i32, i32
  }
  func.func @transform_5(%arg0: i32) -> (i32, i32) {
    %c0_i32 = arith.constant 0 : i32
    %c0_i32_0 = arith.constant 0 : i32
    %c0_i32_1 = arith.constant 0 : i32
    return %c0_i32, %c0_i32_0 : i32, i32
  }
  func.func @transform_6(%arg0: i32) -> (i32, i32) {
    %c0_i32 = arith.constant 0 : i32
    %c0_i32_0 = arith.constant 0 : i32
    %c0_i32_1 = arith.constant 0 : i32
    return %c0_i32, %c0_i32_0 : i32, i32
  }
  func.func @transform_7(%arg0: i32) -> (i32, i32) {
    %c0_i32 = arith.constant 0 : i32
    %c0_i32_0 = arith.constant 0 : i32
    %c0_i32_1 = arith.constant 0 : i32
    return %c0_i32, %c0_i32_0 : i32, i32
  }
  func.func @transform_8(%arg0: i32) -> (i32, i32) {
    %c0_i32 = arith.constant 0 : i32
    %c0_i32_0 = arith.constant 0 : i32
    %c0_i32_1 = arith.constant 0 : i32
    return %c0_i32, %c0_i32_0 : i32, i32
  }
  func.func @transform_9(%arg0: i32) -> (i32, i32) {
    %c0_i32 = arith.constant 0 : i32
    %c0_i32_0 = arith.constant 0 : i32
    %c0_i32_1 = arith.constant 0 : i32
    return %c0_i32, %c0_i32_0 : i32, i32
  }
  func.func @transform_10(%arg0: i32) -> (i32, i32, i32, i32) {
    %c0_i32 = arith.constant 0 : i32
    %c0_i32_0 = arith.constant 0 : i32
    %c0_i32_1 = arith.constant 0 : i32
    %c0_i32_2 = arith.constant 0 : i32
    %c0_i32_3 = arith.constant 0 : i32
    return %c0_i32, %c0_i32_0, %c0_i32_1, %c0_i32_2 : i32, i32, i32, i32
  }
}

</mosaic_0001>

<bundles_post_ra>
// kernel: dnnet_forward.4
= control target key start
LH: loop header
LB: loop body
LE: loop exit
PB: predicated region body
PF: predicated region fallthrough
CT: control target
= control target key end

     0   :  { %vm15_vm0 = vcmask 19456   ;;  %vm17_vm1 = vcmask 16384   ;;  %v2458_v0 = vmov 0   ;;  %vm299_vm2 = vsmask.f32 7938  ;;  %s2459_s24 = smov 6   ;;  %s3412_s0 = inlined_call_operand.vmem [shape: f32[2,8,8,3], index: 0, kind: input, shape index: {}]   ;;  %s3413_s1 = inlined_call_operand.vmem [shape: bf16[27,16], index: 1, kind: input, shape index: {}]   ;;  %s3414_s2 = inlined_call_operand.vmem [shape: f32[1,16], index: 2, kind: input, shape index: {}]   ;;  %s3415_s3 = inlined_call_operand.vmem [shape: f32[2,8,8,16], index: 3, kind: output, shape index: {}]  }
   0x1   :  { %16 = vst.msk [vmem:[#allocation2] sm:$0xf] %vm15_vm0, %v2458_v0  ;;  %19 = vst.msk [vmem:[#allocation2 + $0x8] sm:$0xf] %vm15_vm0, %v2458_v0  ;;  %v57_v1 = vld [vmem:[%s3412_s0] sm:$0xff]  ;;  %v58_v2 = vld [vmem:[%s3412_s0 + $0x8] sm:$0xff] }
   0x2   :  { %18 = vst.msk [vmem:[#allocation2 + $0x4] sm:$0x1] %vm17_vm1, %v2458_v0  ;;  %20 = vst.msk [vmem:[#allocation2 + $0xc] sm:$0x1] %vm17_vm1, %v2458_v0  ;;  %v2256_v3 = vpack.c.bf16 %v57_v1, %v57_v1  ;;  %v2257_v4 = vpack.c.bf16 %v58_v2, %v58_v2  ;;  %v65_v5 = vld [vmem:[%s3412_s0 + $0x40] sm:$0xff]  ;;  %v59_v6 = vld [vmem:[%s3412_s0 + $0x10] sm:$0xff] }
   0x3   :  { %21 = vst.msk [vmem:[#allocation2 + $0x10] sm:$0xf] %vm15_vm0, %v2458_v0  ;;  %23 = vst.msk [vmem:[#allocation2 + $0x18] sm:$0xf] %vm15_vm0, %v2458_v0  ;;  %vm305_vm3 = vsmask.f32 256  ;;  %v2264_v7 = vpack.c.bf16 %v65_v5, %v65_v5  ;;  %v2258_v8 = vpack.c.bf16 %v59_v6, %v59_v6 }
   0x4   :  { %22 = vst.msk [vmem:[#allocation2 + $0x14] sm:$0x1] %vm17_vm1, %v2458_v0  ;;  %24 = vst.msk [vmem:[#allocation2 + $0x1c] sm:$0x1] %vm17_vm1, %v2458_v0  ;;  %v138_v9 = vshrl.u32 %v2256_v3, 16  ;;  %v141_v10 = vshll.u32 %v2256_v3, 16 }
   0x5   :  { %25 = vst.msk [vmem:[#allocation2 + $0x20] sm:$0xf] %vm15_vm0, %v2458_v0  ;;  %27 = vst.msk [vmem:[#allocation2 + $0x28] sm:$0xf] %vm15_vm0, %v2458_v0  ;;  %v146_v11 = vshrl.u32 %v2257_v4, 16  ;;  %v149_v12 = vshll.u32 %v2257_v4, 16 }
   0x6   :  { %26 = vst.msk [vmem:[#allocation2 + $0x24] sm:$0x1] %vm17_vm1, %v2458_v0  ;;  %28 = vst.msk [vmem:[#allocation2 + $0x2c] sm:$0x1] %vm17_vm1, %v2458_v0  ;;  %v202_v13 = vshrl.u32 %v2264_v7, 16  ;;  %v205_v14 = vshll.u32 %v2264_v7, 16 }
   0x7   :  { %29 = vst.msk [vmem:[#allocation2 + $0x30] sm:$0xf] %vm15_vm0, %v2458_v0  ;;  %31 = vst.msk [vmem:[#allocation2 + $0x38] sm:$0xf] %vm15_vm0, %v2458_v0  ;;  %v154_v15 = vshrl.u32 %v2258_v8, 16  ;;  %v157_v16 = vshll.u32 %v2258_v8, 16 }
   0x8   :  { %30 = vst.msk [vmem:[#allocation2 + $0x34] sm:$0x1] %vm17_vm1, %v2458_v0  ;;  %32 = vst.msk [vmem:[#allocation2 + $0x3c] sm:$0x1] %vm17_vm1, %v2458_v0  ;;  %v66_v17 = vld [vmem:[%s3412_s0 + $0x48] sm:$0xff]  ;;  %v67_v18 = vld [vmem:[%s3412_s0 + $0x50] sm:$0xff] }
   0x9   :  { %33 = vst.msk [vmem:[#allocation2 + $0x40] sm:$0xf] %vm15_vm0, %v2458_v0  ;;  %35 = vst.msk [vmem:[#allocation2 + $0x48] sm:$0xf] %vm15_vm0, %v2458_v0  ;;  %v140_v19 = vrot.slane %v138_v9, 7  ;;  %v148_v21 = vrot.slane %v146_v11, 7  ;;  %v2558_v30 = vpack.c.bf16 %v66_v17, %v66_v17  ;;  %v2560_v31 = vpack.c.bf16 %v67_v18, %v67_v18 }
   0xa   :  { %34 = vst.msk [vmem:[#allocation2 + $0x44] sm:$0x1] %vm17_vm1, %v2458_v0  ;;  %36 = vst.msk [vmem:[#allocation2 + $0x4c] sm:$0x1] %vm17_vm1, %v2458_v0  ;;  %v204_v23 = vrot.slane %v202_v13, 7  ;;  %v156_v24 = vrot.slane %v154_v15, 7 }
   0xb   :  { %37 = vst.msk [vmem:[#allocation2 + $0x50] sm:$0xf] %vm15_vm0, %v2458_v0  ;;  %39 = vst.msk [vmem:[#allocation2 + $0x58] sm:$0xf] %vm15_vm0, %v2458_v0  ;;  %v416_v25 = vld [vmem:[#allocation2 + $0x4] sm:$0x1]  ;;  %v143_v28 = vor.u32 %v141_v10, %v140_v19  ;;  %v151_v29 = vor.u32 %v149_v12, %v148_v21 }
   0xc   :  { %38 = vst.msk [vmem:[#allocation2 + $0x54] sm:$0x1] %vm17_vm1, %v2458_v0  ;;  %40 = vst.msk [vmem:[#allocation2 + $0x5c] sm:$0x1] %vm17_vm1, %v2458_v0  ;;  %v432_v26 = vld [vmem:[#allocation2] sm:$0xe]  ;;  %v207_v37 = vor.u32 %v205_v14, %v204_v23  ;;  %v159_v38 = vor.u32 %v157_v16, %v156_v24 }
   0xd   :  { %41 = vst.msk [vmem:[#allocation2 + $0x60] sm:$0xf] %vm15_vm0, %v2458_v0  ;;  %43 = vst.msk [vmem:[#allocation2 + $0x68] sm:$0xf] %vm15_vm0, %v2458_v0  ;;  %v400_v27 = vld [vmem:[#allocation2] sm:$0xf]  ;;  %v2125_v32 = vcombine.low %v432_v26, %v416_v25 }
   0xe   :  { %42 = vst.msk [vmem:[#allocation2 + $0x64] sm:$0x1] %vm17_vm1, %v2458_v0  ;;  %44 = vst.msk [vmem:[#allocation2 + $0x6c] sm:$0x1] %vm17_vm1, %v2458_v0  ;;  %v2109_v33 = vcombine.low %v400_v27, %v416_v25  ;;  %v144_v41 = vrot.slane %v140_v19, 4  ;;  %v152_v44 = vrot.slane %v148_v21, 4 }
   0xf   :  { %45 = vst.msk [vmem:[#allocation2 + $0x70] sm:$0xf] %vm15_vm0, %v2458_v0  ;;  %47 = vst.msk [vmem:[#allocation2 + $0x78] sm:$0xf] %vm15_vm0, %v2458_v0  ;;  %v301_v42 = vld [vmem:[#allocation2 + $0x8] sm:$0xf] }
  0x10   :  { %46 = vst.msk [vmem:[#allocation2 + $0x74] sm:$0x1] %vm17_vm1, %v2458_v0  ;;  %48 = vst.msk [vmem:[#allocation2 + $0x7c] sm:$0x1] %vm17_vm1, %v2458_v0  ;;  %v307_v43 = vld [vmem:[#allocation2 + $0xc] sm:$0x1] }
  0x11   :  { %49 = vst.msk [vmem:[#allocation2 + $0x80] sm:$0xf] %vm15_vm0, %v2458_v0  ;;  %51 = vst.msk [vmem:[#allocation2 + $0x88] sm:$0xf] %vm15_vm0, %v2458_v0  ;;  %v817_v45 = vrot.slane %v2125_v32, 1  ;;  %v628_v46 = vshll.u32 %v2109_v33, 16 }
  0x12   :  { %50 = vst.msk [vmem:[#allocation2 + $0x84] sm:$0x1] %vm17_vm1, %v2458_v0  ;;  %52 = vst.msk [vmem:[#allocation2 + $0x8c] sm:$0x1] %vm17_vm1, %v2458_v0  ;;  %v440_v35 = vld [vmem:[#allocation2 + $0x50] sm:$0xe] }
  0x13   :  { %53 = vst.msk [vmem:[#allocation2 + $0x90] sm:$0xf] %vm15_vm0, %v2458_v0  ;;  %55 = vst.msk [vmem:[#allocation2 + $0x98] sm:$0xf] %vm15_vm0, %v2458_v0  ;;  %v424_v34 = vld [vmem:[#allocation2 + $0x54] sm:$0x1]  ;;  %833 = vrot.lane.b32.xlu0 %v817_v45, %s2459_s24 }
  0x14   :  { %54 = vst.msk [vmem:[#allocation2 + $0x94] sm:$0x1] %vm17_vm1, %v2458_v0  ;;  %56 = vst.msk [vmem:[#allocation2 + $0x9c] sm:$0x1] %vm17_vm1, %v2458_v0  ;;  %v408_v36 = vld [vmem:[#allocation2 + $0x50] sm:$0xf]  ;;  %v2133_v39 = vcombine.low %v440_v35, %v424_v34 }
  0x15   :  { %vm2548_vm4 = vmand %vm15_vm0, %vm299_vm2  ;;  %v2117_v40 = vcombine.low %v408_v36, %v424_v34  ;;  %v626_v47 = vshrl.u32 %v2109_v33, 16  ;;  %v310_v49 = vld [vmem:[#allocation2 + $0x10] sm:$0xf]  ;;  %v313_v54 = vld [vmem:[#allocation2 + $0x14] sm:$0x1]  ;;  %v630_v55 = vrot.slane %v628_v46, 1 }
  0x16   :  { %vm2554_vm5 = vmand %vm17_vm1, %vm305_vm3  ;;  %v302_v48 = vsel %vm2548_vm4, %v143_v28, %v301_v42  ;;  %v825_v50 = vrot.slane %v2133_v39, 1  ;;  %v311_v56 = vsel %vm2548_vm4, %v151_v29, %v310_v49  ;;  %v208_v58 = vrot.slane %v204_v23, 4  ;;  %v352_v59 = vld [vmem:[#allocation2 + $0x58] sm:$0xf]  ;;  %v355_v60 = vld [vmem:[#allocation2 + $0x5c] sm:$0x1] }
  0x17   :  { %v682_v51 = vshrl.u32 %v2117_v40, 16  ;;  %v684_v52 = vshll.u32 %v2117_v40, 16  ;;  %303 = vst [vmem:[#allocation2 + $0x8] sm:$0xf] %v302_v48  ;;  %v308_v53 = vsel %vm2554_vm5, %v144_v41, %v307_v43  ;;  %v314_v57 = vsel %vm2554_vm5, %v152_v44, %v313_v54  ;;  %312 = vst [vmem:[#allocation2 + $0x10] sm:$0xf] %v311_v56 }
  0x18   :  { %309 = vst [vmem:[#allocation2 + $0xc] sm:$0x1] %v308_v53  ;;  %315 = vst [vmem:[#allocation2 + $0x14] sm:$0x1] %v314_v57  ;;  %v353_v62 = vsel %vm2548_vm4, %v207_v37, %v352_v59  ;;  %v160_v63 = vrot.slane %v156_v24, 4  ;;  %v356_v2 = vsel %vm2554_vm5, %v208_v58, %v355_v60  ;;  %v210_v4 = vshrl.u32 %v2558_v30, 16  ;;  %849 = vrot.lane.b32.xlu0 %v825_v50, %s2459_s24 }
  0x19   :  { %v686_v61 = vrot.slane %v684_v52, 1  ;;  %v316_v0 = vld [vmem:[#allocation2 + $0x18] sm:$0xf]  ;;  %v319_v1 = vld [vmem:[#allocation2 + $0x1c] sm:$0x1]  ;;  %v213_v7 = vshll.u32 %v2558_v30, 16  ;;  %v631_v11 = vor.u32 %v630_v55, %v626_v47 }
  0x1a   :  { %354 = vst [vmem:[#allocation2 + $0x58] sm:$0xf] %v353_v62  ;;  %v317_v3 = vsel %vm2548_vm4, %v159_v38, %v316_v0  ;;  %357 = vst [vmem:[#allocation2 + $0x5c] sm:$0x1] %v356_v2  ;;  %v320_v6 = vsel %vm2554_vm5, %v160_v63, %v319_v1  ;;  %v218_v8 = vshrl.u32 %v2560_v31, 16  ;;  %v60_v9 = vld [vmem:[%s3412_s0 + $0x18] sm:$0xff] }
  0x1b   :  { %v687_v5 = vor.u32 %v686_v61, %v682_v51  ;;  %318 = vst [vmem:[#allocation2 + $0x18] sm:$0xf] %v317_v3  ;;  %v68_v10 = vld [vmem:[%s3412_s0 + $0x58] sm:$0xff]  ;;  %321 = vst [vmem:[#allocation2 + $0x1c] sm:$0x1] %v320_v6  ;;  %v212_v12 = vrot.slane %v210_v4, 7  ;;  %v2591_v25 = vpack.c.bf16 %v60_v9, %v60_v9 }
  0x1c   :  { %v358_v13 = vld [vmem:[#allocation2 + $0x60] sm:$0xf]  ;;  %v361_v14 = vld [vmem:[#allocation2 + $0x64] sm:$0x1]  ;;  %v221_v15 = vshll.u32 %v2560_v31, 16  ;;  %s2460_s29 = smov 3   ;;  %v2593_v29 = vpack.c.bf16 %v68_v10, %v68_v10 }
  0x1d   :  { %753 = vrot.lane.b32.xlu1 %v687_v5, %s2460_s29  ;;  %v220_v16 = vrot.slane %v218_v8, 7  ;;  %v364_v17 = vld [vmem:[#allocation2 + $0x68] sm:$0xf]  ;;  %v367_v18 = vld [vmem:[#allocation2 + $0x6c] sm:$0x1]  ;;  %v215_v23 = vor.u32 %v213_v7, %v212_v12  ;;  %v216_v24 = vrot.slane %v212_v12, 4  ;;  %737 = vrot.lane.b32.xlu0 %v631_v11, %s2460_s29 }
  0x1e   :  { %v433_v19 = vld [vmem:[#allocation2 + $0x8] sm:$0xe]  ;;  %v434_v33 = vld [vmem:[#allocation2 + $0x10] sm:$0xe]  ;;  %v162_v47 = vshrl.u32 %v2591_v25, 16  ;;  %v226_v53 = vshrl.u32 %v2593_v29, 16 }
  0x1f   :  { %v401_v21 = vld [vmem:[#allocation2 + $0x8] sm:$0xf]  ;;  %v417_v26 = vld [vmem:[#allocation2 + $0xc] sm:$0x1]  ;;  %v223_v27 = vor.u32 %v221_v15, %v220_v16  ;;  %v224_v28 = vrot.slane %v220_v16, 4  ;;  %v359_v35 = vsel %vm2548_vm4, %v215_v23, %v358_v13  ;;  %v362_v36 = vsel %vm2554_vm5, %v216_v24, %v361_v14  ;;  %s2461_s5 = smov 9  }
  0x20   :  { %v2126_v30 = vcombine.low %v433_v19, %v417_v26  ;;  %v2110_v31 = vcombine.low %v401_v21, %v417_v26  ;;  %v418_v32 = vld [vmem:[#allocation2 + $0x14] sm:$0x1]  ;;  %v402_v34 = vld [vmem:[#allocation2 + $0x10] sm:$0xf]  ;;  %360 = vst [vmem:[#allocation2 + $0x60] sm:$0xf] %v359_v35 }
  0x21   :  { %v2127_v37 = vcombine.low %v434_v33, %v418_v32  ;;  %v2111_v38 = vcombine.low %v402_v34, %v418_v32  ;;  %v409_v39 = vld [vmem:[#allocation2 + $0x58] sm:$0xf]  ;;  %363 = vst [vmem:[#allocation2 + $0x64] sm:$0x1] %v362_v36  ;;  %v365_v41 = vsel %vm2548_vm4, %v223_v27, %v364_v17  ;;  %v368_v42 = vsel %vm2554_vm5, %v224_v28, %v367_v18  ;;  %v425_v44 = vld [vmem:[#allocation2 + $0x5c] sm:$0x1] }
  0x22   :  { %v441_v40 = vld [vmem:[#allocation2 + $0x58] sm:$0xe]  ;;  %v818_v43 = vrot.slane %v2126_v30, 1  ;;  %v633_v45 = vshrl.u32 %v2110_v31, 16  ;;  %v635_v46 = vshll.u32 %v2110_v31, 16  ;;  %v2118_v49 = vcombine.low %v409_v39, %v425_v44  ;;  %s2462_s8 = smov 12  }
  0x23   :  { %366 = vst [vmem:[#allocation2 + $0x68] sm:$0xf] %v365_v41  ;;  %369 = vst [vmem:[#allocation2 + $0x6c] sm:$0x1] %v368_v42  ;;  %v819_v48 = vrot.slane %v2127_v37, 1  ;;  %v2134_v50 = vcombine.low %v441_v40, %v425_v44  ;;  %v642_v57 = vshll.u32 %v2111_v38, 16 }
  0x24   :  { %v403_v51 = vld [vmem:[#allocation2 + $0x18] sm:$0xf]  ;;  %v419_v52 = vld [vmem:[#allocation2 + $0x1c] sm:$0x1]  ;;  %835 = vrot.lane.b32.xlu1 %v818_v43, %s2459_s24  ;;  %v637_v54 = vrot.slane %v635_v46, 1  ;;  %v640_v60 = vshrl.u32 %v2111_v38, 16 }
  0x25   :  { %v435_v55 = vld [vmem:[#allocation2 + $0x18] sm:$0xe]  ;;  %v2112_v56 = vcombine.low %v403_v51, %v419_v52  ;;  %837 = vrot.lane.b32.xlu0 %v819_v48, %s2459_s24  ;;  %v826_v58 = vrot.slane %v2134_v50, 1  ;;  %v691_v61 = vshll.u32 %v2118_v49, 16  ;;  %v644_v63 = vrot.slane %v642_v57, 1  ;;  %s2463_s17 = smov 15  }
  0x26   :  { %v2128_v59 = vcombine.low %v435_v55, %v419_v52  ;;  %v638_v62 = vor.u32 %v637_v54, %v633_v45  ;;  %v164_v0 = vrot.slane %v162_v47, 7  ;;  %v165_v1 = vshll.u32 %v2591_v25, 16  ;;  %v322_v23 = vld [vmem:[#allocation2 + $0x20] sm:$0xf]  ;;  %v370_v30 = vld [vmem:[#allocation2 + $0x70] sm:$0xf] }
  0x27   :  { %v689_v2 = vshrl.u32 %v2118_v49, 16  ;;  %v649_v3 = vshll.u32 %v2112_v56, 16  ;;  %v228_v4 = vrot.slane %v226_v53, 7  ;;  %v229_v5 = vshll.u32 %v2593_v29, 16  ;;  %v410_v8 = vld [vmem:[#allocation2 + $0x60] sm:$0xf] }
  0x28   :  { %851 = vrot.lane.b32.xlu1 %v826_v58, %s2459_s24  ;;  %v820_v6 = vrot.slane %v2128_v59, 1  ;;  %v693_v7 = vrot.slane %v691_v61, 1  ;;  %v426_v9 = vld [vmem:[#allocation2 + $0x64] sm:$0x1]  ;;  %v645_v10 = vor.u32 %v644_v63, %v640_v60  ;;  %v442_v14 = vld [vmem:[#allocation2 + $0x60] sm:$0xe]  ;;  %v167_v16 = vor.u32 %v165_v1, %v164_v0 }
  0x29   :  { %739 = vrot.lane.b32.xlu0 %v638_v62, %s2460_s29  ;;  %v2119_v11 = vcombine.low %v410_v8, %v426_v9  ;;  %v647_v19 = vshrl.u32 %v2112_v56, 16  ;;  %v651_v21 = vrot.slane %v649_v3, 1  ;;  %v231_v26 = vor.u32 %v229_v5, %v228_v4  ;;  %v325_v29 = vld [vmem:[#allocation2 + $0x24] sm:$0x1]  ;;  %v373_v33 = vld [vmem:[#allocation2 + $0x74] sm:$0x1] }
  0x2a   :  { %v411_v12 = vld [vmem:[#allocation2 + $0x68] sm:$0xf]  ;;  %v427_v13 = vld [vmem:[#allocation2 + $0x6c] sm:$0x1]  ;;  %v694_v24 = vor.u32 %v693_v7, %v689_v2  ;;  %v2135_v28 = vcombine.low %v442_v14, %v426_v9  ;;  %v168_v31 = vrot.slane %v164_v0, 4  ;;  %v323_v32 = vsel %vm2548_vm4, %v167_v16, %v322_v23  ;;  %v61_v49 = vld [vmem:[%s3412_s0 + $0x20] sm:$0xff] }
  0x2b   :  { %v2120_v15 = vcombine.low %v411_v12, %v427_v13  ;;  %v696_v17 = vshrl.u32 %v2119_v11, 16  ;;  %v698_v18 = vshll.u32 %v2119_v11, 16  ;;  %v652_v35 = vor.u32 %v651_v21, %v647_v19  ;;  %324 = vst [vmem:[#allocation2 + $0x20] sm:$0xf] %v323_v32  ;;  %v443_v42 = vld [vmem:[#allocation2 + $0x68] sm:$0xe] }
  0x2c   :  { %839 = vrot.lane.b32.xlu1 %v820_v6, %s2459_s24  ;;  %v232_v36 = vrot.slane %v228_v4, 4  ;;  %v326_v39 = vsel %vm2554_vm5, %v168_v31, %v325_v29  ;;  %v371_v40 = vsel %vm2548_vm4, %v231_v26, %v370_v30  ;;  %v827_v41 = vrot.slane %v2135_v28, 1  ;;  %v448_v44 = vld [vmem:[#allocation2 + $0x8] sm:$0xf]  ;;  %v2626_v47 = vld [vmem:[#allocation2 + $0xc] sm:$0x1] }
  0x2d   :  { %v705_v25 = vshll.u32 %v2120_v15, 16  ;;  %741 = vrot.lane.b32.xlu0 %v645_v10, %s2460_s29  ;;  %v700_v27 = vrot.slane %v698_v18, 1  ;;  %v703_v37 = vshrl.u32 %v2120_v15, 16  ;;  %327 = vst [vmem:[#allocation2 + $0x24] sm:$0x1] %v326_v39  ;;  %v2136_v46 = vcombine.low %v443_v42, %v427_v13  ;;  %v69_v58 = vld [vmem:[%s3412_s0 + $0x60] sm:$0xff] }
  0x2e   :  { %372 = vst [vmem:[#allocation2 + $0x70] sm:$0xf] %v371_v40  ;;  %v374_v43 = vsel %vm2554_vm5, %v232_v36, %v373_v33  ;;  %v2141_v48 = vcombine.low %v448_v44, %v448_v44  ;;  %v456_v50 = vld [vmem:[#allocation2 + $0x58] sm:$0xf]  ;;  %v2157_v51 = vcombine.low %v448_v44, %v2626_v47  ;;  %v2260_v53 = vpack.c.bf16 %v61_v49, %v61_v49  ;;  %v2634_v54 = vld [vmem:[#allocation2 + $0x5c] sm:$0x1] }
  0x2f   :  { %v701_v34 = vor.u32 %v700_v27, %v696_v17  ;;  %v707_v38 = vrot.slane %v705_v25, 1  ;;  %375 = vst [vmem:[#allocation2 + $0x74] sm:$0x1] %v374_v43  ;;  %v828_v52 = vrot.slane %v2136_v46, 1  ;;  %v2149_v55 = vcombine.low %v456_v50, %v456_v50  ;;  %v449_v56 = vld [vmem:[#allocation2 + $0x10] sm:$0xf] }
  0x30   :  { %755 = vrot.lane.b32.xlu1 %v694_v24, %s2460_s29  ;;  %v450_v57 = vld [vmem:[#allocation2 + $0x18] sm:$0xf]  ;;  %v2639_v59 = vld [vmem:[#allocation2 + $0x14] sm:$0x1]  ;;  %v2643_v60 = vcombine.low %v456_v50, %v2634_v54  ;;  %v2142_v61 = vcombine.low %v449_v56, %v449_v56  ;;  %v2645_v62 = vld [vmem:[#allocation2 + $0x1c] sm:$0x1]  ;;  %v2268_v3 = vpack.c.bf16 %v69_v58, %v69_v58 }
  0x31   :  { %757 = vrot.lane.b32.xlu0 %v701_v34, %s2460_s29  ;;  %v708_v45 = vor.u32 %v707_v38, %v703_v37  ;;  %v457_v63 = vld [vmem:[#allocation2 + $0x60] sm:$0xf]  ;;  %v996_v0 = vshll.u32 %v2157_v51, 16  ;;  %v170_v1 = vshrl.u32 %v2260_v53, 16  ;;  %v2143_v2 = vcombine.low %v450_v57, %v450_v57  ;;  %v458_v4 = vld [vmem:[#allocation2 + $0x68] sm:$0xf] }
  0x32   :  { %v2158_v5 = vcombine.low %v449_v56, %v2639_v59  ;;  %v2650_v6 = vcombine.low %v450_v57, %v2645_v62  ;;  %v2652_v7 = vld [vmem:[#allocation2 + $0x64] sm:$0x1]  ;;  %v2150_v8 = vcombine.low %v457_v63, %v457_v63  ;;  %v2654_v9 = vld [vmem:[#allocation2 + $0x6c] sm:$0x1]  ;;  %v994_v10 = vshrl.u32 %v2157_v51, 16  ;;  %s2464_s22 = smov 18  }
  0x33   :  { %v451_v11 = vld [vmem:[#allocation2 + $0x20] sm:$0xf]  ;;  %v998_v12 = vrot.slane %v996_v0, 1  ;;  %v1052_v13 = vshll.u32 %v2643_v60, 16  ;;  %v172_v14 = vrot.slane %v170_v1, 7  ;;  %v173_v15 = vshll.u32 %v2260_v53, 16 }
  0x34   :  { %743 = vrot.lane.b32.xlu1 %v652_v35, %s2460_s29  ;;  %v2151_v16 = vcombine.low %v458_v4, %v458_v4  ;;  %v328_v17 = vld [vmem:[#allocation2 + $0x28] sm:$0xf]  ;;  %v331_v18 = vld [vmem:[#allocation2 + $0x2c] sm:$0x1]  ;;  %v234_v19 = vshrl.u32 %v2268_v3, 16  ;;  %v237_v21 = vshll.u32 %v2268_v3, 16  ;;  %v2166_v23 = vcombine.low %v457_v63, %v2652_v7 }
  0x35   :  { %853 = vrot.lane.b32.xlu0 %v827_v41, %s2459_s24  ;;  %v175_v24 = vor.u32 %v173_v15, %v172_v14  ;;  %v176_v25 = vrot.slane %v172_v14, 4  ;;  %v2167_v26 = vcombine.low %v458_v4, %v2654_v9  ;;  %v1050_v27 = vshrl.u32 %v2643_v60, 16  ;;  %v376_v34 = vld [vmem:[#allocation2 + $0x78] sm:$0xf]  ;;  %v379_v35 = vld [vmem:[#allocation2 + $0x7c] sm:$0x1] }
  0x36   :  { %v1003_v28 = vshll.u32 %v2158_v5, 16  ;;  %v236_v29 = vrot.slane %v234_v19, 7  ;;  %v2144_v30 = vcombine.low %v451_v11, %v451_v11  ;;  %v1010_v31 = vshll.u32 %v2650_v6, 16  ;;  %v2669_v36 = vld [vmem:[#allocation2 + $0x24] sm:$0x1]  ;;  %v62_v63 = vld [vmem:[%s3412_s0 + $0x28] sm:$0xff] }
  0x37   :  { %v329_v32 = vsel %vm2548_vm4, %v175_v24, %v328_v17  ;;  %v332_v33 = vsel %vm2554_vm5, %v176_v25, %v331_v18  ;;  %v999_v37 = vor.u32 %v998_v12, %v994_v10  ;;  %v459_v38 = vld [vmem:[#allocation2 + $0x70] sm:$0xf]  ;;  %v1054_v39 = vrot.slane %v1052_v13, 1  ;;  %v2678_v50 = vld [vmem:[#allocation2 + $0x74] sm:$0x1]  ;;  %v70_v4 = vld [vmem:[%s3412_s0 + $0x68] sm:$0xff] }
  0x38   :  { %759 = vrot.lane.b32.xlu1 %v708_v45, %s2460_s29  ;;  %330 = vst [vmem:[#allocation2 + $0x28] sm:$0xf] %v329_v32  ;;  %333 = vst [vmem:[#allocation2 + $0x2c] sm:$0x1] %v332_v33  ;;  %v239_v40 = vor.u32 %v237_v21, %v236_v29  ;;  %v240_v41 = vrot.slane %v236_v29, 4  ;;  %v1001_v42 = vshrl.u32 %v2158_v5, 16  ;;  %v2160_v45 = vcombine.low %v451_v11, %v2669_v36 }
  0x39   :  { %913 = vrot.lane.b32.xlu0 %v2141_v48, %s2461_s5  ;;  %v2152_v46 = vcombine.low %v459_v38, %v459_v38  ;;  %v1005_v48 = vrot.slane %v1003_v28, 1  ;;  %v1059_v49 = vshll.u32 %v2166_v23, 16  ;;  %v1055_v51 = vor.u32 %v1054_v39, %v1050_v27  ;;  %v480_v3 = vld [vmem:[#allocation2 + $0x8] sm:$0xe]  ;;  %v488_v5 = vld [vmem:[#allocation2 + $0x58] sm:$0xe] }
  0x3a   :  { %v377_v43 = vsel %vm2548_vm4, %v239_v40, %v376_v34  ;;  %v380_v44 = vsel %vm2554_vm5, %v240_v41, %v379_v35  ;;  %v1012_v53 = vrot.slane %v1010_v31, 1  ;;  %v1057_v56 = vshrl.u32 %v2166_v23, 16  ;;  %v481_v24 = vld [vmem:[#allocation2 + $0x10] sm:$0xe]  ;;  %v489_v34 = vld [vmem:[#allocation2 + $0x60] sm:$0xe] }
  0x3b   :  { %378 = vst [vmem:[#allocation2 + $0x78] sm:$0xf] %v377_v43  ;;  %381 = vst [vmem:[#allocation2 + $0x7c] sm:$0x1] %v380_v44  ;;  %v2168_v57 = vcombine.low %v459_v38, %v2678_v50  ;;  %v1006_v58 = vor.u32 %v1005_v48, %v1001_v42  ;;  %v1061_v60 = vrot.slane %v1059_v49, 1  ;;  %v1064_v1 = vshrl.u32 %v2167_v26, 16 }
  0x3c   :  { %855 = vrot.lane.b32.xlu1 %v828_v52, %s2459_s24  ;;  %v1008_v52 = vshrl.u32 %v2650_v6, 16  ;;  %v2261_v6 = vpack.c.bf16 %v62_v63, %v62_v63  ;;  %v1015_v11 = vshrl.u32 %v2160_v45, 16  ;;  %v2173_v15 = vcombine.low %v480_v3, %v2626_v47  ;;  %v71_v47 = vld [vmem:[%s3412_s0 + $0x70] sm:$0xff]  ;;  %v382_v43 = vld [vmem:[#allocation2 + $0x80] sm:$0xf]  ;;  %s2466_s23 = smov 24  }
  0x3d   :  { %929 = vrot.lane.b32.xlu0 %v2149_v55, %s2461_s5  ;;  %v1066_v55 = vshll.u32 %v2167_v26, 16  ;;  %v1062_v10 = vor.u32 %v1061_v60, %v1057_v56  ;;  %v1073_v13 = vshll.u32 %v2168_v57, 16  ;;  %v2181_v17 = vcombine.low %v488_v5, %v2634_v54  ;;  %v334_v35 = vld [vmem:[#allocation2 + $0x30] sm:$0xf]  ;;  %v385_v44 = vld [vmem:[#allocation2 + $0x84] sm:$0x1] }
  0x3e   :  { %v1013_v0 = vor.u32 %v1012_v53, %v1008_v52  ;;  %v1071_v19 = vshrl.u32 %v2168_v57, 16  ;;  %v178_v25 = vshrl.u32 %v2261_v6, 16  ;;  %v181_v26 = vshll.u32 %v2261_v6, 16  ;;  %v340_v49 = vld [vmem:[#allocation2 + $0x38] sm:$0xf] }
  0x3f   :  { %v1075_v23 = vrot.slane %v1073_v13, 1  ;;  %v1185_v27 = vrot.slane %v2173_v15, 1  ;;  %v1193_v29 = vrot.slane %v2181_v17, 1  ;;  %v2174_v33 = vcombine.low %v481_v24, %v2639_v59  ;;  %v490_v53 = vld [vmem:[#allocation2 + $0x68] sm:$0xe] }
  0x40   :  { %915 = vrot.lane.b32.xlu1 %v2142_v61, %s2461_s5  ;;  %v1017_v61 = vshll.u32 %v2160_v45, 16  ;;  %v180_v54 = vrot.slane %v178_v25, 7  ;;  %v2270_v52 = vpack.c.bf16 %v71_v47, %v71_v47  ;;  %v2183_v5 = vcombine.low %v490_v53, %v2654_v9  ;;  %v483_v6 = vld [vmem:[#allocation2 + $0x20] sm:$0xe]  ;;  %v2735_v24 = vld [vmem:[#allocation2 + $0x14] sm:$0x1] }
  0x41   :  { %917 = vrot.lane.b32.xlu0 %v2143_v2, %s2461_s5  ;;  %v1068_v2 = vrot.slane %v1066_v55, 1  ;;  %v1076_v40 = vor.u32 %v1075_v23, %v1071_v19  ;;  %v1186_v60 = vrot.slane %v2174_v33, 1  ;;  %v64_v23 = vld [vmem:[%s3412_s0 + $0x38] sm:$0xff]  ;;  %v505_v25 = vld [vmem:[#allocation2 + $0x60] sm:$0xf]  ;;  %vm1968_vm6 = vcmask 1044480  }
  0x42   :  { %v1019_v12 = vrot.slane %v1017_v61, 1  ;;  %v183_v41 = vor.u32 %v181_v26, %v180_v54  ;;  %v184_v42 = vrot.slane %v180_v54, 4  ;;  %v250_v63 = vshrl.u32 %v2270_v52, 16  ;;  %v72_v26 = vld [vmem:[%s3412_s0 + $0x78] sm:$0xff]  ;;  %v2743_v47 = vld [vmem:[#allocation2 + $0x64] sm:$0x1] }
  0x43   :  { %v1069_v14 = vor.u32 %v1068_v2, %v1064_v1  ;;  %v253_v3 = vshll.u32 %v2270_v52, 16  ;;  %v1195_v15 = vrot.slane %v2183_v5, 1  ;;  %v2271_v54 = vpack.c.bf16 %v72_v26, %v72_v26  ;;  %v349_v52 = vld [vmem:[#allocation2 + $0x44] sm:$0x1] }
  0x44   :  { %931 = vrot.lane.b32.xlu1 %v2150_v8, %s2461_s5  ;;  %v63_v8 = vld [vmem:[%s3412_s0 + $0x30] sm:$0xff]  ;;  %v1020_v21 = vor.u32 %v1019_v12, %v1015_v11  ;;  %v335_v55 = vsel %vm2548_vm4, %v183_v41, %v334_v35  ;;  %v2749_v33 = vcombine.low %v505_v25, %v2743_v47  ;;  %v2751_v35 = vld [vmem:[#allocation2 + $0x24] sm:$0x1]  ;;  %s2465_s0 = smov 21   ;;  %vm1969_vm7 = vcmask 1045504  }
  0x45   :  { %933 = vrot.lane.b32.xlu0 %v2151_v16, %s2461_s5  ;;  %v2269_v16 = vpack.c.bf16 %v70_v4, %v70_v4  ;;  %v2262_v18 = vpack.c.bf16 %v63_v8, %v63_v8  ;;  %336 = vst [vmem:[#allocation2 + $0x30] sm:$0xf] %v335_v55  ;;  %v252_v8 = vrot.slane %v250_v63, 7  ;;  %vm1601_vm8 = vcmask 23552  }
  0x46   :  { %vm1650_vm9 = vcmask 48128   ;;  %vm1683_vm10 = vcmask 72704   ;;  %vm1716_vm11 = vcmask 97280   ;;  %vm1749_vm12 = vcmask 121856  }
  0x47   :  { %v242_v28 = vshrl.u32 %v2269_v16, 16  ;;  %v245_v31 = vshll.u32 %v2269_v16, 16  ;;  %v186_v32 = vshrl.u32 %v2262_v18, 16  ;;  %v189_v39 = vshll.u32 %v2262_v18, 16  ;;  %v491_v16 = vld [vmem:[#allocation2 + $0x70] sm:$0xe] }
  0x48   :  { %919 = vrot.lane.b32.xlu1 %v2144_v30, %s2461_s5  ;;  %v482_v30 = vld [vmem:[#allocation2 + $0x18] sm:$0xe]  ;;  %v255_v11 = vor.u32 %v253_v3, %v252_v8  ;;  %v256_v12 = vrot.slane %v252_v8, 4  ;;  %v497_v18 = vld [vmem:[#allocation2 + $0x10] sm:$0xf]  ;;  %vm1782_vm13 = vcmask 146432  }
  0x49   :  { %1105 = vrot.lane.b32.xlu0 %v999_v37, %s2462_s8  ;;  %v337_v37 = vld [vmem:[#allocation2 + $0x34] sm:$0x1]  ;;  %v244_v38 = vrot.slane %v242_v28, 7  ;;  %v188_v45 = vrot.slane %v186_v32, 7  ;;  %v2263_v28 = vpack.c.bf16 %v64_v23, %v64_v23  ;;  %v2745_v32 = vld [vmem:[#allocation2 + $0x1c] sm:$0x1] }
  0x4a   :  { %v338_v56 = vsel %vm2554_vm5, %v184_v42, %v337_v37  ;;  %v506_v37 = vld [vmem:[#allocation2 + $0x68] sm:$0xf]  ;;  %v2763_v3 = vld [vmem:[#allocation2 + $0x74] sm:$0x1]  ;;  %vm1815_vm14 = vcmask 171008   ;;  %vm1848_vm15 = vcmask 195584  }
  0x4b   :  { %v247_v48 = vor.u32 %v245_v31, %v244_v38  ;;  %v248_v59 = vrot.slane %v244_v38, 4  ;;  %v191_v57 = vor.u32 %v189_v39, %v188_v45  ;;  %339 = vst [vmem:[#allocation2 + $0x34] sm:$0x1] %v338_v56  ;;  %v499_v31 = vld [vmem:[#allocation2 + $0x20] sm:$0xf]  ;;  %v194_v38 = vshrl.u32 %v2263_v28, 16 }
  0x4c   :  { %935 = vrot.lane.b32.xlu1 %v2152_v46, %s2461_s5  ;;  %v2175_v46 = vcombine.low %v482_v30, %v2645_v62  ;;  %v498_v30 = vld [vmem:[#allocation2 + $0x18] sm:$0xf]  ;;  %v2191_v39 = vcombine.low %v499_v31, %v499_v31  ;;  %v197_v42 = vshll.u32 %v2263_v28, 16  ;;  %vm1943_vm0 = vcmask 220160  }
  0x4d   :  { %1121 = vrot.lane.b32.xlu0 %v1055_v51, %s2462_s8  ;;  %v343_v51 = vld [vmem:[#allocation2 + $0x3c] sm:$0x1]  ;;  %v383_v62 = vsel %vm2548_vm4, %v247_v48, %v382_v43  ;;  %v386_v61 = vsel %vm2554_vm5, %v248_v59, %v385_v44  ;;  %v341_v1 = vsel %vm2548_vm4, %v191_v57, %v340_v49  ;;  %v258_v43 = vshrl.u32 %v2271_v54, 16  ;;  %v2758_v59 = vld [vmem:[#allocation2 + $0x6c] sm:$0x1] }
  0x4e   :  { %384 = vst [vmem:[#allocation2 + $0x80] sm:$0xf] %v383_v62  ;;  %387 = vst [vmem:[#allocation2 + $0x84] sm:$0x1] %v386_v61  ;;  %v1187_v4 = vrot.slane %v2175_v46, 1  ;;  %v196_v44 = vrot.slane %v194_v38, 7  ;;  %v2206_v46 = vcombine.low %v498_v30, %v2745_v32  ;;  %v2756_v48 = vcombine.low %v499_v31, %v2751_v35 }
  0x4f   :  { %342 = vst [vmem:[#allocation2 + $0x38] sm:$0xf] %v341_v1  ;;  %v2198_v49 = vcombine.low %v506_v37, %v506_v37  ;;  %v260_v53 = vrot.slane %v258_v43, 7  ;;  %v397_v62 = vld [vmem:[#allocation2 + $0x94] sm:$0x1]  ;;  %vm2072_vm1 = vcmask 130048  }
  0x50   :  { %1107 = vrot.lane.b32.xlu1 %v1006_v58, %s2462_s8  ;;  %v192_v58 = vrot.slane %v188_v45, 4  ;;  %v261_v45 = vshll.u32 %v2271_v54, 16  ;;  %v199_v57 = vor.u32 %v197_v42, %v196_v44  ;;  %v500_v61 = vld [vmem:[#allocation2 + $0x28] sm:$0xf]  ;;  %v404_v31 = vld [vmem:[#allocation2 + $0x20] sm:$0xf] }
  0x51   :  { %1109 = vrot.lane.b32.xlu0 %v1013_v0, %s2462_s8  ;;  %v2182_v0 = vcombine.low %v489_v34, %v2652_v7  ;;  %v391_v7 = vld [vmem:[#allocation2 + $0x8c] sm:$0x1]  ;;  %v2190_v34 = vcombine.low %v498_v30, %v498_v30 }
  0x52   :  { %v344_v2 = vsel %vm2554_vm5, %v192_v58, %v343_v51  ;;  %v392_v17 = vsel %vm2554_vm5, %v256_v12, %v391_v7  ;;  %v346_v51 = vld [vmem:[#allocation2 + $0x40] sm:$0xf]  ;;  %v200_v58 = vrot.slane %v196_v44, 4  ;;  %v263_v1 = vor.u32 %v261_v45, %v260_v53 }
  0x53   :  { %345 = vst [vmem:[#allocation2 + $0x3c] sm:$0x1] %v344_v2  ;;  %v1194_v13 = vrot.slane %v2182_v0, 1  ;;  %393 = vst [vmem:[#allocation2 + $0x8c] sm:$0x1] %v392_v17  ;;  %v1420_v0 = vshll.u32 %v2749_v33, 16  ;;  %v2192_v7 = vcombine.low %v500_v61, %v500_v61 }
  0x54   :  { %1123 = vrot.lane.b32.xlu1 %v1062_v10, %s2462_s8  ;;  %v388_v10 = vld [vmem:[#allocation2 + $0x88] sm:$0xf]  ;;  %v264_v2 = vrot.slane %v260_v53, 4  ;;  %v350_v5 = vsel %vm2554_vm5, %v200_v58, %v349_v52  ;;  %v1371_v12 = vshll.u32 %v2206_v46, 16  ;;  %v537_v45 = vld [vmem:[#allocation2 + $0x60] sm:$0xe] }
  0x55   :  { %1125 = vrot.lane.b32.xlu0 %v1069_v14, %s2462_s8  ;;  %v2176_v14 = vcombine.low %v483_v6, %v2669_v36  ;;  %v389_v9 = vsel %vm2548_vm4, %v255_v11, %v388_v10  ;;  %v2189_v36 = vcombine.low %v497_v18, %v497_v18  ;;  %351 = vst [vmem:[#allocation2 + $0x44] sm:$0x1] %v350_v5  ;;  %v1418_v11 = vshrl.u32 %v2749_v33, 16  ;;  %v2789_v33 = vld [vmem:[#allocation2 + $0x24] sm:$0x1] }
  0x56   :  { %390 = vst [vmem:[#allocation2 + $0x88] sm:$0xf] %v389_v9  ;;  %v398_v8 = vsel %vm2554_vm5, %v264_v2, %v397_v62  ;;  %v2214_v10 = vcombine.low %v506_v37, %v2758_v59  ;;  %v1422_v22 = vrot.slane %v1420_v0, 1  ;;  %v1369_v9 = vshrl.u32 %v2206_v46, 16 }
  0x57   :  { %v1188_v19 = vrot.slane %v2176_v14, 1  ;;  %399 = vst [vmem:[#allocation2 + $0x94] sm:$0x1] %v398_v8  ;;  %v2778_v14 = vld [vmem:[#allocation2 + $0x2c] sm:$0x1]  ;;  %v2229_v52 = vcombine.low %v537_v45, %v2743_v47 }
  0x58   :  { %1111 = vrot.lane.b32.xlu1 %v1020_v21, %s2462_s8  ;;  %v2184_v21 = vcombine.low %v491_v16, %v2678_v50  ;;  %v2205_v50 = vcombine.low %v497_v18, %v2735_v24  ;;  %v1378_v16 = vshll.u32 %v2756_v48, 16  ;;  %v2208_v17 = vcombine.low %v500_v61, %v2778_v14  ;;  %v405_v61 = vld [vmem:[#allocation2 + $0x28] sm:$0xf]  ;;  %v413_v8 = vld [vmem:[#allocation2 + $0x78] sm:$0xf] }
  0x59   :  { %1201 = vrot.lane.b32.xlu0 %v1185_v27, %s2463_s17  ;;  %v1423_v23 = vor.u32 %v1422_v22, %v1418_v11  ;;  %v1425_v28 = vshrl.u32 %v2214_v10, 16  ;;  %v2437_v11 = vld [vmem:[%s3413_s1 + $0x8] sm:$0x3f]  }
  0x5a   :  { %v1196_v27 = vrot.slane %v2184_v21, 1  ;;  %v1364_v41 = vshll.u32 %v2205_v50, 16  ;;  %v1362_v56 = vshrl.u32 %v2205_v50, 16  ;;  %v1427_v21 = vshll.u32 %v2214_v10, 16  ;;  %v2808_v10 = vld [vmem:[#allocation2 + $0x7c] sm:$0x1] }
  0x5b   :  { %v1380_v26 = vrot.slane %v1378_v16, 1  ;;  %v1385_v54 = vshll.u32 %v2208_v17, 16  ;;  %v1383_v42 = vshrl.u32 %v2208_v17, 16 }
  0x5c   :  { %1127 = vrot.lane.b32.xlu1 %v1076_v40, %s2462_s8  ;;  %v507_v40 = vld [vmem:[#allocation2 + $0x70] sm:$0xf]  ;;  %v1366_v63 = vrot.slane %v1364_v41, 1  ;;  %v1429_v30 = vrot.slane %v1427_v21, 1  ;;  %v531_v21 = vld [vmem:[#allocation2 + $0x20] sm:$0xe] }
  0x5d   :  { %1217 = vrot.lane.b32.xlu0 %v1193_v29, %s2463_s17  ;;  %v2197_v29 = vcombine.low %v505_v25, %v505_v25  ;;  %v2199_v55 = vcombine.low %v507_v40, %v507_v40  ;;  %v1376_v25 = vshrl.u32 %v2756_v48, 16  ;;  %v1387_v43 = vrot.slane %v1385_v54, 1 }
  0x5e   :  { %v1367_v20 = vor.u32 %v1366_v63, %v1362_v56  ;;  %v1430_v41 = vor.u32 %v1429_v30, %v1425_v28  ;;  %v2802_v63 = vld [vmem:[#allocation2 + $0x2c] sm:$0x1]  ;;  %v2440_v30 = vld [vmem:[%s3413_s1] sm:$0xff]  }
  0x5f   :  { %v1388_v53 = vor.u32 %v1387_v43, %v1383_v42  ;;  %v2114_v5 = vcombine.low %v405_v61, %v2802_v63 }
  0x60   :  { %1203 = vrot.lane.b32.xlu1 %v1186_v60, %s2463_s17  ;;  %v394_v60 = vld [vmem:[#allocation2 + $0x90] sm:$0xf] }
  0x61   :  { %1205 = vrot.lane.b32.xlu0 %v1187_v4, %s2463_s17  ;;  %v347_v4 = vsel %vm2548_vm4, %v199_v57, %v346_v51  ;;  %v395_v6 = vsel %vm2548_vm4, %v263_v1, %v394_v60  ;;  %v2796_v51 = vld [vmem:[#allocation2 + $0x74] sm:$0x1]  ;;  %v530_v57 = vld [vmem:[#allocation2 + $0x18] sm:$0xe]  ;;  %v661_v28 = vshrl.u32 %v2114_v5, 16 }
  0x62   :  { %348 = vst [vmem:[#allocation2 + $0x40] sm:$0xf] %v347_v4  ;;  %396 = vst [vmem:[#allocation2 + $0x90] sm:$0xf] %v395_v6  ;;  %v2222_v0 = vcombine.low %v530_v57, %v2745_v32  ;;  %v538_v4 = vld [vmem:[#allocation2 + $0x68] sm:$0xe] }
  0x64   :  { %1219 = vrot.lane.b32.xlu1 %v1194_v13, %s2463_s17  ;;  %v2215_v13 = vcombine.low %v507_v40, %v2763_v3  ;;  %v2113_v40 = vcombine.low %v404_v31, %v2789_v33  ;;  %v1554_v32 = vrot.slane %v2222_v0, 1  ;;  %v2223_v31 = vcombine.low %v531_v21, %v2751_v35  ;;  %v2859_v0 = vld [vmem:[#allocation2 + $0x88] sm:$0xf]  ;;  %v444_v21 = vld [vmem:[#allocation2 + $0x70] sm:$0xe] }
  0x65   :  { %1221 = vrot.lane.b32.xlu0 %v1195_v15, %s2463_s17  ;;  %v508_v15 = vld [vmem:[#allocation2 + $0x78] sm:$0xf]  ;;  %3427 = vst [vmem:[#allocation6_spill] sm:$0xff] %v2859_v0 }
  0x66   :  { %v2200_v18 = vcombine.low %v508_v15, %v508_v15  ;;  %v1432_v37 = vshrl.u32 %v2215_v13, 16  ;;  %v656_v58 = vshll.u32 %v2113_v40, 16  ;;  %v654_v1 = vshrl.u32 %v2113_v40, 16  ;;  %v2839_v40 = vld [vmem:[#allocation2 + $0x84] sm:$0x1] }
  0x67   :  { %v1555_v45 = vrot.slane %v2223_v31, 1 }
  0x68   :  { %1207 = vrot.lane.b32.xlu1 %v1188_v19, %s2463_s17  ;;  %v1373_v19 = vrot.slane %v1371_v12, 1  ;;  %v658_v2 = vrot.slane %v656_v58, 1  ;;  %v2230_v12 = vcombine.low %v538_v4, %v2758_v59 }
  0x69   :  { %1281 = vrot.lane.b32.xlu0 %v2189_v36, %s2464_s22  ;;  %v2784_v36 = vld [vmem:[#allocation2 + $0x7c] sm:$0x1] }
  0x6a   :  { %v2216_v50 = vcombine.low %v508_v15, %v2784_v36  ;;  %v2467_v15 = vmov 65535   ;;  %v659_v16 = vor.u32 %v658_v2, %v654_v1 }
  0x6b   :  { %v1970_v22 = vsel %vm1968_vm6, 4294967295, %v2467_v15 }
  0x6c   :  { %1223 = vrot.lane.b32.xlu1 %v1196_v27, %s2463_s17  ;;  %v1434_v27 = vshll.u32 %v2215_v13, 16  ;;  %v1441_v44 = vshll.u32 %v2216_v50, 16  ;;  %v663_v13 = vshll.u32 %v2114_v5, 16 }
  0x6d   :  { %1297 = vrot.lane.b32.xlu0 %v2197_v29, %s2464_s22  ;;  %v1374_v29 = vor.u32 %v1373_v19, %v1369_v9 }
  0x6e   :  { %v1436_v38 = vrot.slane %v1434_v27, 1  ;;  %v1443_v56 = vrot.slane %v1441_v44, 1  ;;  %v1562_v27 = vrot.slane %v2230_v12, 1  ;;  %v532_v44 = vld [vmem:[#allocation2 + $0x28] sm:$0xe] }
  0x70   :  { %1283 = vrot.lane.b32.xlu1 %v2190_v34, %s2464_s22  ;;  %v1381_v34 = vor.u32 %v1380_v26, %v1376_v25  ;;  %v1437_v46 = vor.u32 %v1436_v38, %v1432_v37  ;;  %v2823_v25 = vld [vmem:[#allocation2 + $0x34] sm:$0x1] }
  0x71   :  { %1285 = vrot.lane.b32.xlu0 %v2191_v39, %s2464_s22  ;;  %v529_v39 = vld [vmem:[#allocation2 + $0x10] sm:$0xe] }
  0x72   :  { %v2221_v48 = vcombine.low %v529_v39, %v2735_v24  ;;  %v1561_v24 = vrot.slane %v2229_v52, 1  ;;  %v2837_v39 = vld [vmem:[#allocation2 + $0x80] sm:$0xf]  ;;  %v2848_v52 = vld [vmem:[#allocation2 + $0x3c] sm:$0x1] }
  0x73   :  { %3425 = vst [vmem:[#allocation4_spill] sm:$0xff] %v2837_v39 }
  0x74   :  { %1299 = vrot.lane.b32.xlu1 %v2198_v49, %s2464_s22  ;;  %v412_v49 = vld [vmem:[#allocation2 + $0x70] sm:$0xf]  ;;  %v1553_v60 = vrot.slane %v2221_v48, 1  ;;  %v2123_v48 = vcombine.low %v2837_v39, %v2839_v40 }
  0x75   :  { %1301 = vrot.lane.b32.xlu0 %v2199_v55, %s2464_s22  ;;  %v1439_v55 = vshrl.u32 %v2216_v50, 16  ;;  %v2121_v62 = vcombine.low %v412_v49, %v2796_v51  ;;  %v665_v50 = vrot.slane %v663_v13, 1  ;;  %v2846_v49 = vld [vmem:[#allocation2 + $0x38] sm:$0xf]  ;;  %v436_v13 = vld [vmem:[#allocation2 + $0x20] sm:$0xe] }
  0x76   :  { %3426 = vst [vmem:[#allocation5_spill] sm:$0xff] %v2846_v49 }
  0x77   :  { %v1444_v47 = vor.u32 %v1443_v56, %v1439_v55  ;;  %v712_v6 = vshll.u32 %v2121_v62, 16  ;;  %v710_v9 = vshrl.u32 %v2121_v62, 16  ;;  %v2116_v62 = vcombine.low %v2846_v49, %v2848_v52 }
  0x78   :  { %1287 = vrot.lane.b32.xlu1 %v2192_v7, %s2464_s22 }
  0x79   :  { %1473 = vrot.lane.b32.xlu0 %v1367_v20, %s2465_s0  ;;  %v2122_v20 = vcombine.low %v413_v8, %v2808_v10  ;;  %v714_v17 = vrot.slane %v712_v6, 1  ;;  %v677_v5 = vshll.u32 %v2116_v62, 16 }
  0x7b   :  { %v715_v54 = vor.u32 %v714_v17, %v710_v9  ;;  %v717_v42 = vshrl.u32 %v2122_v20, 16  ;;  %v2129_v17 = vcombine.low %v436_v13, %v2789_v33 }
  0x7c   :  { %1303 = vrot.lane.b32.xlu1 %v2200_v18, %s2464_s22  ;;  %v1971_v18 = vsel %vm1969_vm7, %v1970_v22, 0  ;;  %v675_v22 = vshrl.u32 %v2116_v62, 16 }
  0x7d   :  { %1489 = vrot.lane.b32.xlu0 %v1423_v23, %s2465_s0  ;;  %v2821_v23 = vld [vmem:[#allocation2 + $0x30] sm:$0xf]  ;;  %v1973_v26 = vand.u32 %v2437_v11, %v1971_v18 }
  0x7e   :  { %3424 = vst [vmem:[#allocation3_spill] sm:$0xff] %v2821_v23  ;;  %v2115_v37 = vcombine.low %v2821_v23, %v2823_v25 }
  0x7f   :  { %2282 = vmatprep.subr.bf16.mxu0 %v1973_v26  ;;  %2302 = vmatprep.subr.bf16.mxu1 %v1973_v26 }
  0x80   :  { %1475 = vrot.lane.b32.xlu1 %v1374_v29, %s2465_s0  ;;  %v719_v29 = vshll.u32 %v2122_v20, 16  ;;  %2283 = vmatpush3.bf16.msra.mxu0 %v1973_v26  ;;  %v668_v58 = vshrl.u32 %v2115_v37, 16 }
  0x81   :  { %1477 = vrot.lane.b32.xlu0 %v1381_v34, %s2465_s0  ;;  %v539_v34 = vld [vmem:[#allocation2 + $0x70] sm:$0xe]  ;;  %2284 = vmatprep.subr.bf16.mxu0 %v2440_v30 }
  0x82   :  { %2304 = vmatpush3.bf16.msra.mxu1 %v1973_v26  ;;  %v721_v43 = vrot.slane %v719_v29, 1  ;;  %v2231_v35 = vcombine.low %v539_v34, %v2763_v3  ;;  %v2224_v3 = vcombine.low %v532_v44, %v2778_v14  ;;  %v821_v29 = vrot.slane %v2129_v17, 1  ;;  %v438_v34 = vld [vmem:[#allocation2 + $0x30] sm:$0xe] }
  0x83   :  { %2303 = vmatprep.subr.bf16.mxu1 %v2440_v30 }
  0x84   :  { %1491 = vrot.lane.b32.xlu1 %v1430_v41, %s2465_s0  ;;  %v666_v41 = vor.u32 %v665_v50, %v661_v28  ;;  %2285 = vmatpush3.bf16.msra.mxu0 %v2440_v30  ;;  %v722_v56 = vor.u32 %v721_v43, %v717_v42  ;;  %v1563_v57 = vrot.slane %v2231_v35, 1  ;;  %v1556_v2 = vrot.slane %v2224_v3, 1  ;;  %v445_v35 = vld [vmem:[#allocation2 + $0x78] sm:$0xe] }
  0x85   :  { %1493 = vrot.lane.b32.xlu0 %v1437_v46, %s2465_s0  ;;  %v2810_v7 = vpop.permute.xlu0 %833  ;;  %v670_v46 = vshll.u32 %v2115_v37, 16  ;;  %v2131_v43 = vcombine.low %v438_v34, %v2823_v25  ;;  %v462_v34 = vld [vmem:[#allocation2 + $0x88] sm:$0xf] }
  0x86   :  { %2305 = vmatpush3.bf16.msra.mxu1 %v2440_v30  ;;  %v2137_v30 = vcombine.low %v444_v21, %v2796_v51  ;;  %v446_v51 = vld [vmem:[#allocation2 + $0x80] sm:$0xe] }
  0x87   :  { %v672_v61 = vrot.slane %v670_v46, 1  ;;  %v823_v3 = vrot.slane %v2131_v43, 1 }
  0x88   :  { %1479 = vrot.lane.b32.xlu1 %v1388_v53, %s2465_s0  ;;  %v829_v42 = vrot.slane %v2137_v30, 1 }
  0x89   :  { %1569 = vrot.lane.b32.xlu0 %v1553_v60, %s2466_s23  ;;  %v540_v60 = vld [vmem:[#allocation2 + $0x78] sm:$0xe]  ;;  %v673_v8 = vor.u32 %v672_v61, %v668_v58  ;;  %v447_v61 = vld [vmem:[#allocation2 + $0x88] sm:$0xe] }
  0x8a   :  { %v2819_v19 = vpop.permute.xlu0 %849  ;;  %v2232_v4 = vcombine.low %v540_v60, %v2784_v36 }
  0x8c   :  { %1495 = vrot.lane.b32.xlu1 %v1444_v47, %s2465_s0  ;;  %v2861_v47 = vld [vmem:[#allocation2 + $0x8c] sm:$0x1]  ;;  %v1564_v15 = vrot.slane %v2232_v4, 1 }
  0x8d   :  { %1585 = vrot.lane.b32.xlu0 %v1561_v24, %s2466_s23  ;;  %v726_v24 = vshll.u32 %v2123_v48, 16  ;;  %v2124_v6 = vcombine.low %v2859_v0, %v2861_v47  ;;  %v2140_v4 = vcombine.low %v447_v61, %v2861_v47 }
  0x8f   :  { %v2826_v59 = vpop.permute.xlu1 %753  ;;  %v2835_v38 = vpop.permute.xlu0 %737  ;;  %v728_v11 = vrot.slane %v726_v24, 1  ;;  %v733_v36 = vshll.u32 %v2124_v6, 16  ;;  %v731_v28 = vshrl.u32 %v2124_v6, 16  ;;  %v452_v24 = vld [vmem:[#allocation2 + $0x28] sm:$0xf] }
  0x90   :  { %1571 = vrot.lane.b32.xlu1 %v1554_v32, %s2466_s23  ;;  %v724_v32 = vshrl.u32 %v2123_v48, 16  ;;  %v2138_v48 = vcombine.low %v445_v35, %v2808_v10 }
  0x91   :  { %745 = vrot.lane.b32.xlu0 %v659_v16, %s2460_s29  ;;  %v679_v16 = vrot.slane %v677_v5, 1  ;;  %v735_v50 = vrot.slane %v733_v36, 1  ;;  %v2145_v5 = vcombine.low %v452_v24, %v452_v24  ;;  %v454_v36 = vld [vmem:[#allocation2 + $0x38] sm:$0xf] }
  0x92   :  { %v729_v9 = vor.u32 %v728_v11, %v724_v32  ;;  %v830_v58 = vrot.slane %v2138_v48, 1  ;;  %v832_v11 = vrot.slane %v2140_v4, 1  ;;  %v455_v48 = vld [vmem:[#allocation2 + $0x40] sm:$0xf] }
  0x93   :  { %v736_v37 = vor.u32 %v735_v50, %v731_v28  ;;  %v2147_v28 = vcombine.low %v454_v36, %v454_v36  ;;  %v461_v50 = vld [vmem:[#allocation2 + $0x80] sm:$0xf]  ;;  %v2148_v61 = vcombine.low %v455_v48, %v455_v48 }
  0x94   :  { %1587 = vrot.lane.b32.xlu1 %v1562_v27, %s2466_s23  ;;  %v680_v27 = vor.u32 %v679_v16, %v675_v22  ;;  %v453_v22 = vld [vmem:[#allocation2 + $0x30] sm:$0xf]  ;;  %v2927_v16 = vld [vmem:[#allocation2 + $0x7c] sm:$0x1] }
  0x95   :  { %761 = vrot.lane.b32.xlu0 %v715_v54, %s2460_s29  ;;  %v437_v54 = vld [vmem:[#allocation2 + $0x28] sm:$0xe]  ;;  %v2146_v17 = vcombine.low %v453_v22, %v453_v22 }
  0x96   :  { %v2850_v53 = vpop.permute.xlu1 %835 }
  0x97   :  { %v2852_v55 = vpop.permute.xlu0 %837 }
  0x98   :  { %747 = vrot.lane.b32.xlu1 %v666_v41, %s2460_s29  ;;  %v2130_v41 = vcombine.low %v437_v54, %v2802_v63  ;;  %v2139_v63 = vcombine.low %v446_v51, %v2839_v40  ;;  %v2938_v54 = vld [vmem:[#allocation2 + $0x3c] sm:$0x1]  ;;  %v2946_v51 = vld [vmem:[#allocation2 + $0x84] sm:$0x1] }
  0x99   :  { %1573 = vrot.lane.b32.xlu0 %v1555_v45, %s2466_s23  ;;  %v2163_v35 = vcombine.low %v454_v36, %v2938_v54 }
  0x9a   :  { %v2863_v1 = vpop.permute.xlu1 %851  ;;  %v822_v46 = vrot.slane %v2130_v41, 1  ;;  %v831_v62 = vrot.slane %v2139_v63, 1 }
  0x9b   :  { %v2865_v14 = vpop.permute.xlu0 %739 }
  0x9c   :  { %763 = vrot.lane.b32.xlu1 %v722_v56, %s2460_s29  ;;  %v439_v56 = vld [vmem:[#allocation2 + $0x38] sm:$0xe] }
  0x9d   :  { %1589 = vrot.lane.b32.xlu0 %v1563_v57, %s2466_s23  ;;  %v2132_v60 = vcombine.low %v439_v56, %v2848_v52  ;;  %v2918_v52 = vld [vmem:[#allocation2 + $0x2c] sm:$0x1] }
  0x9e   :  { %v2872_v12 = vpop.permute.xlu1 %839  ;;  %v2161_v13 = vcombine.low %v452_v24, %v2918_v52 }
  0x9f   :  { %3428 = vst [vmem:[#allocation7_spill] sm:$0xff] %v2872_v12  ;;  %v2874_v20 = vpop.permute.xlu0 %741  ;;  %v824_v40 = vrot.slane %v2132_v60, 1  ;;  %v2447_v12 = vld [vmem:[#allocation2 + $0x8] sm:$0xf] }
  0xa0   :  { %1575 = vrot.lane.b32.xlu1 %v1556_v2, %s2466_s23  ;;  %v1022_v43 = vshrl.u32 %v2161_v13, 16 }
  0xa1   :  { %749 = vrot.lane.b32.xlu0 %v673_v8, %s2460_s29  ;;  %v460_v8 = vld [vmem:[#allocation2 + $0x78] sm:$0xf] }
  0xa2   :  { %v2879_v18 = vpop.permute.xlu1 %755  ;;  %v2169_v21 = vcombine.low %v460_v8, %v2927_v16 }
  0xa3   :  { %v2881_v26 = vpop.permute.xlu0 %757 }
  0xa4   :  { %3429 = vst [vmem:[#allocation8_spill] sm:$0xff] %v2881_v26  ;;  %1591 = vrot.lane.b32.xlu1 %v1564_v15, %s2466_s23  ;;  %v2153_v15 = vcombine.low %v460_v8, %v460_v8  ;;  %v1080_v63 = vshll.u32 %v2169_v21, 16  ;;  %v1078_v24 = vshrl.u32 %v2169_v21, 16  ;;  %v2446_v26 = vld [vmem:[#allocation2] sm:$0xf] }
  0xa5   :  { %765 = vrot.lane.b32.xlu0 %v729_v9, %s2460_s29 }
  0xa6   :  { %v2886_v31 = vpop.permute.xlu1 %743 }
  0xa7   :  { %v2888_v33 = vpop.permute.xlu0 %853 }
  0xa8   :  { %3430 = vst [vmem:[#allocation9_spill] sm:$0xff] %v2888_v33  ;;  %751 = vrot.lane.b32.xlu1 %v680_v27, %s2460_s29  ;;  %v2934_v27 = vld [vmem:[#allocation2 + $0x34] sm:$0x1] }
  0xa9   :  { %841 = vrot.lane.b32.xlu0 %v821_v29, %s2459_s24  ;;  %v1024_v29 = vshll.u32 %v2161_v13, 16  ;;  %v2162_v41 = vcombine.low %v453_v22, %v2934_v27  ;;  %v1082_v13 = vrot.slane %v1080_v63, 1 }
  0xaa   :  { %v2894_v44 = vpop.permute.xlu1 %759 }
  0xab   :  { %3431 = vst [vmem:[#allocation10_spill] sm:$0xff] %v2894_v44  ;;  %v2896_v45 = vpop.permute.xlu0 %913 }
  0xac   :  { %767 = vrot.lane.b32.xlu1 %v736_v37, %s2460_s29 }
  0xad   :  { %857 = vrot.lane.b32.xlu0 %v829_v42, %s2459_s24  ;;  %v2154_v42 = vcombine.low %v461_v50, %v461_v50 }
  0xae   :  { %v2902_v57 = vpop.permute.xlu1 %855 }
  0xaf   :  { %3432 = vst [vmem:[#allocation11_spill] sm:$0xff] %v2902_v57  ;;  %v2904_v25 = vpop.permute.xlu0 %929 }
  0xb0   :  { %843 = vrot.lane.b32.xlu1 %v822_v46, %s2459_s24  ;;  %v2155_v46 = vcombine.low %v462_v34, %v462_v34 }
  0xb1   :  { %845 = vrot.lane.b32.xlu0 %v823_v3, %s2459_s24  ;;  %v1026_v3 = vrot.slane %v1024_v29, 1 }
  0xb2   :  { %v2909_v10 = vpop.permute.xlu1 %915 }
  0xb3   :  { %v2911_v2 = vpop.permute.xlu0 %917  ;;  %v1027_v8 = vor.u32 %v1026_v3, %v1022_v43  ;;  %v1036_v43 = vshrl.u32 %v2163_v35, 16 }
  0xb4   :  { %3433 = vst [vmem:[#allocation12_spill] sm:$0xff] %v2911_v2  ;;  %859 = vrot.lane.b32.xlu1 %v830_v58, %s2459_s24  ;;  %v2950_v58 = vld [vmem:[#allocation2 + $0x8c] sm:$0x1] }
  0xb5   :  { %861 = vrot.lane.b32.xlu0 %v831_v62, %s2459_s24  ;;  %v2170_v62 = vcombine.low %v461_v50, %v2946_v51  ;;  %v2171_v4 = vcombine.low %v462_v34, %v2950_v58  ;;  %v2967_v34 = vld [vmem:[#allocation2 + $0x94] sm:$0x1] }
  0xb6   :  { %v2916_v6 = vpop.permute.xlu1 %931 }
  0xb7   :  { %v2920_v32 = vpop.permute.xlu0 %933  ;;  %v1087_v29 = vshll.u32 %v2170_v62, 16  ;;  %v1094_v3 = vshll.u32 %v2171_v4, 16  ;;  %v1092_v39 = vshrl.u32 %v2171_v4, 16  ;;  %v492_v4 = vld [vmem:[#allocation2 + $0x78] sm:$0xe] }
  0xb8   :  { %3434 = vst [vmem:[#allocation13_spill] sm:$0xff] %v2920_v32  ;;  %847 = vrot.lane.b32.xlu1 %v824_v40, %s2459_s24  ;;  %v1031_v40 = vshll.u32 %v2162_v41, 16  ;;  %v3059_v32 = vld [vmem:[#allocation2 + $0x4c] sm:$0x1] }
  0xb9   :  { %921 = vrot.lane.b32.xlu0 %v2145_v5, %s2461_s5  ;;  %v2958_v5 = vld [vmem:[#allocation2 + $0x44] sm:$0x1] }
  0xba   :  { %v2925_v47 = vpop.permute.xlu1 %919  ;;  %v1033_v50 = vrot.slane %v1031_v40, 1  ;;  %v1089_v40 = vrot.slane %v1087_v29, 1 }
  0xbb   :  { %3435 = vst [vmem:[#allocation14_spill] sm:$0xff] %v2925_v47  ;;  %v2929_v9 = vpop.permute.xlu0 %1105 }
  0xbc   :  { %863 = vrot.lane.b32.xlu1 %v832_v11, %s2459_s24  ;;  %v463_v11 = vld [vmem:[#allocation2 + $0x90] sm:$0xf] }
  0xbd   :  { %937 = vrot.lane.b32.xlu0 %v2153_v15, %s2461_s5  ;;  %v1038_v15 = vshll.u32 %v2163_v35, 16  ;;  %v2156_v21 = vcombine.low %v463_v11, %v463_v11 }
  0xbe   :  { %v2936_v30 = vpop.permute.xlu1 %935 }
  0xbf   :  { %3436 = vst [vmem:[#allocation15_spill] sm:$0xff] %v2936_v30  ;;  %v2940_v37 = vpop.permute.xlu0 %1121  ;;  %v504_v30 = vld [vmem:[#allocation2 + $0x48] sm:$0xf] }
  0xc0   :  { %923 = vrot.lane.b32.xlu1 %v2146_v17, %s2461_s5  ;;  %v1029_v17 = vshrl.u32 %v2162_v41, 16  ;;  %v1085_v41 = vshrl.u32 %v2170_v62, 16  ;;  %v3070_v33 = vcombine.low %v504_v30, %v3059_v32 }
  0xc1   :  { %925 = vrot.lane.b32.xlu0 %v2147_v28, %s2461_s5  ;;  %v2164_v28 = vcombine.low %v455_v48, %v2958_v5  ;;  %v2172_v48 = vcombine.low %v463_v11, %v2967_v34 }
  0xc2   :  { %v2948_v56 = vpop.permute.xlu1 %1107  ;;  %v1090_v62 = vor.u32 %v1089_v40, %v1085_v41 }
  0xc3   :  { %v2952_v60 = vpop.permute.xlu0 %1109  ;;  %v1045_v49 = vshll.u32 %v2164_v28, 16  ;;  %v1043_v23 = vshrl.u32 %v2164_v28, 16 }
  0xc4   :  { %3437 = vst [vmem:[#allocation16_spill] sm:$0xff] %v2952_v60  ;;  %939 = vrot.lane.b32.xlu1 %v2154_v42, %s2461_s5  ;;  %v1083_v42 = vor.u32 %v1082_v13, %v1078_v24  ;;  %v1096_v24 = vrot.slane %v1094_v3, 1  ;;  %v484_v13 = vld [vmem:[#allocation2 + $0x28] sm:$0xe]  ;;  %v485_v3 = vld [vmem:[#allocation2 + $0x30] sm:$0xe] }
  0xc5   :  { %941 = vrot.lane.b32.xlu0 %v2155_v46, %s2461_s5  ;;  %v1040_v46 = vrot.slane %v1038_v15, 1  ;;  %v1047_v11 = vrot.slane %v1045_v49, 1  ;;  %v2185_v49 = vcombine.low %v492_v4, %v2927_v16  ;;  %v2178_v40 = vcombine.low %v485_v3, %v2934_v27  ;;  %v494_v16 = vld [vmem:[#allocation2 + $0x88] sm:$0xe] }
  0xc6   :  { %v2960_v22 = vpop.permute.xlu1 %1123  ;;  %v2187_v27 = vcombine.low %v494_v16, %v2950_v58 }
  0xc7   :  { %v2962_v36 = vpop.permute.xlu0 %1125 }
  0xc8   :  { %3438 = vst [vmem:[#allocation17_spill] sm:$0xff] %v2962_v36  ;;  %927 = vrot.lane.b32.xlu1 %v2148_v61, %s2461_s5  ;;  %v1034_v61 = vor.u32 %v1033_v50, %v1029_v17  ;;  %v1101_v36 = vshll.u32 %v2172_v48, 16  ;;  %v1097_v17 = vor.u32 %v1096_v24, %v1092_v39  ;;  %v486_v39 = vld [vmem:[#allocation2 + $0x38] sm:$0xe] }
  0xc9   :  { %1113 = vrot.lane.b32.xlu0 %v1027_v8, %s2462_s8  ;;  %v1041_v8 = vor.u32 %v1040_v46, %v1036_v43  ;;  %v1099_v43 = vshrl.u32 %v2172_v48, 16  ;;  %v493_v48 = vld [vmem:[#allocation2 + $0x80] sm:$0xe] }
  0xca   :  { %v2969_v63 = vpop.permute.xlu1 %1111  ;;  %v1103_v46 = vrot.slane %v1101_v36, 1  ;;  %v2179_v36 = vcombine.low %v486_v39, %v2938_v54 }
  0xcb   :  { %3439 = vst [vmem:[#allocation18_spill] sm:$0xff] %v2969_v63  ;;  %v2971_v0 = vpop.permute.xlu0 %1201 }
  0xcc   :  { %943 = vrot.lane.b32.xlu1 %v2156_v21, %s2461_s5  ;;  %v2177_v21 = vcombine.low %v484_v13, %v2918_v52  ;;  %v1190_v13 = vrot.slane %v2178_v40, 1  ;;  %v509_v40 = vld [vmem:[#allocation2 + $0x80] sm:$0xf] }
  0xcd   :  { %1129 = vrot.lane.b32.xlu0 %v1083_v42, %s2462_s8  ;;  %v1048_v42 = vor.u32 %v1047_v11, %v1043_v23  ;;  %v1197_v23 = vrot.slane %v2185_v49, 1  ;;  %v1191_v11 = vrot.slane %v2179_v36, 1  ;;  %v2201_v16 = vcombine.low %v509_v40, %v509_v40 }
  0xce   :  { %v2976_v35 = vpop.permute.xlu1 %1127  ;;  %v1189_v28 = vrot.slane %v2177_v21, 1 }
  0xcf   :  { %3440 = vst [vmem:[#allocation19_spill] sm:$0xff] %v2976_v35  ;;  %v2978_v15 = vpop.permute.xlu0 %1217  ;;  %v3056_v35 = vld [vmem:[#allocation2 + $0x94] sm:$0x1] }
  0xd0   :  { %1115 = vrot.lane.b32.xlu1 %v1034_v61, %s2462_s8  ;;  %v1104_v61 = vor.u32 %v1103_v46, %v1099_v43  ;;  %v1199_v43 = vrot.slane %v2187_v27, 1  ;;  %v495_v46 = vld [vmem:[#allocation2 + $0x90] sm:$0xe] }
  0xd1   :  { %1117 = vrot.lane.b32.xlu0 %v1041_v8, %s2462_s8  ;;  %v2188_v3 = vcombine.low %v495_v46, %v2967_v34  ;;  %v3040_v46 = vld [vmem:[#allocation2 + $0x44] sm:$0x1] }
  0xd2   :  { %v2983_v50 = vpop.permute.xlu1 %1203 }
  0xd3   :  { %v2985_v29 = vpop.permute.xlu0 %1205  ;;  %v1200_v36 = vrot.slane %v2188_v3, 1 }
  0xd4   :  { %3441 = vst [vmem:[#allocation20_spill] sm:$0xff] %v2985_v29  ;;  %1131 = vrot.lane.b32.xlu1 %v1090_v62, %s2462_s8  ;;  %v2186_v62 = vcombine.low %v493_v48, %v2946_v51 }
  0xd5   :  { %1133 = vrot.lane.b32.xlu0 %v1097_v17, %s2462_s8  ;;  %v487_v17 = vld [vmem:[#allocation2 + $0x40] sm:$0xe] }
  0xd6   :  { %v2990_v41 = vpop.permute.xlu1 %1219  ;;  %v1198_v4 = vrot.slane %v2186_v62, 1  ;;  %v3031_v62 = vld [vmem:[#allocation2 + $0x84] sm:$0x1] }
  0xd7   :  { %v2992_v52 = vpop.permute.xlu0 %1221 }
  0xd8   :  { %3442 = vst [vmem:[#allocation21_spill] sm:$0xff] %v2992_v52  ;;  %1119 = vrot.lane.b32.xlu1 %v1048_v42, %s2462_s8  ;;  %v2180_v42 = vcombine.low %v487_v17, %v2958_v5  ;;  %v3022_v5 = vld [vmem:[#allocation2 + $0x34] sm:$0x1]  ;;  %v3036_v17 = vld [vmem:[#allocation2 + $0x3c] sm:$0x1] }
  0xd9   :  { %1209 = vrot.lane.b32.xlu0 %v1189_v28, %s2463_s17  ;;  %v501_v28 = vld [vmem:[#allocation2 + $0x30] sm:$0xf] }
  0xda   :  { %v2998_v8 = vpop.permute.xlu1 %1207  ;;  %v1192_v58 = vrot.slane %v2180_v42, 1  ;;  %v2193_v39 = vcombine.low %v501_v28, %v501_v28  ;;  %v2209_v48 = vcombine.low %v501_v28, %v3022_v5  ;;  %v510_v42 = vld [vmem:[#allocation2 + $0x88] sm:$0xf] }
  0xdb   :  { %3443 = vst [vmem:[#allocation22_spill] sm:$0xff] %v2998_v8  ;;  %v3000_v24 = vpop.permute.xlu0 %1281  ;;  %v2202_v52 = vcombine.low %v510_v42, %v510_v42 }
  0xdc   :  { %1135 = vrot.lane.b32.xlu1 %v1104_v61, %s2462_s8  ;;  %v1392_v3 = vshll.u32 %v2209_v48, 16 }
  0xdd   :  { %1225 = vrot.lane.b32.xlu0 %v1197_v23, %s2463_s17 }
  0xde   :  { %v3006_v21 = vpop.permute.xlu1 %1223 }
  0xdf   :  { %3444 = vst [vmem:[#allocation23_spill] sm:$0xff] %v3006_v21  ;;  %v3008_v54 = vpop.permute.xlu0 %1297 }
  0xe0   :  { %1211 = vrot.lane.b32.xlu1 %v1190_v13, %s2463_s17  ;;  %v502_v13 = vld [vmem:[#allocation2 + $0x38] sm:$0xf] }
  0xe1   :  { %1213 = vrot.lane.b32.xlu0 %v1191_v11, %s2463_s17  ;;  %v503_v11 = vld [vmem:[#allocation2 + $0x40] sm:$0xf] }
  0xe2   :  { %v3013_v51 = vpop.permute.xlu1 %1283  ;;  %v2195_v28 = vcombine.low %v503_v11, %v503_v11 }
  0xe3   :  { %v3015_v49 = vpop.permute.xlu0 %1285 }
  0xe4   :  { %3445 = vst [vmem:[#allocation24_spill] sm:$0xff] %v3015_v49  ;;  %1227 = vrot.lane.b32.xlu1 %v1198_v4, %s2463_s17  ;;  %v2194_v4 = vcombine.low %v502_v13, %v502_v13  ;;  %v1394_v49 = vrot.slane %v1392_v3, 1 }
  0xe5   :  { %1229 = vrot.lane.b32.xlu0 %v1199_v43, %s2463_s17  ;;  %v2217_v43 = vcombine.low %v509_v40, %v3031_v62  ;;  %v2211_v40 = vcombine.low %v503_v11, %v3040_v46 }
  0xe6   :  { %v3020_v61 = vpop.permute.xlu1 %1299 }
  0xe7   :  { %v3024_v23 = vpop.permute.xlu0 %1301  ;;  %v1406_v29 = vshll.u32 %v2211_v40, 16  ;;  %v1446_v3 = vshrl.u32 %v2217_v43, 16 }
  0xe8   :  { %3446 = vst [vmem:[#allocation25_spill] sm:$0xff] %v3024_v23  ;;  %1215 = vrot.lane.b32.xlu1 %v1192_v58, %s2463_s17  ;;  %v3042_v58 = vld [vmem:[#allocation2 + $0x8c] sm:$0x1]  ;;  %v511_v23 = vld [vmem:[#allocation2 + $0x90] sm:$0xf] }
  0xe9   :  { %1289 = vrot.lane.b32.xlu0 %v2193_v39, %s2464_s22  ;;  %v3066_v11 = vcombine.low %v511_v23, %v3056_v35 }
  0xea   :  { %v3029_v34 = vpop.permute.xlu1 %1287 }
  0xeb   :  { %3447 = vst [vmem:[#allocation26_spill] sm:$0xff] %v3029_v34  ;;  %v3033_v27 = vpop.permute.xlu0 %1473  ;;  %v1390_v34 = vshrl.u32 %v2209_v48, 16 }
  0xec   :  { %1231 = vrot.lane.b32.xlu1 %v1200_v36, %s2463_s17  ;;  %v3049_v36 = vcombine.low %v502_v13, %v3036_v17  ;;  %v1448_v13 = vshll.u32 %v2217_v43, 16  ;;  %v1404_v43 = vshrl.u32 %v2211_v40, 16  ;;  %v533_v40 = vld [vmem:[#allocation2 + $0x30] sm:$0xe] }
  0xed   :  { %1305 = vrot.lane.b32.xlu0 %v2201_v16, %s2464_s22  ;;  %v3054_v16 = vcombine.low %v510_v42, %v3042_v58  ;;  %v2196_v42 = vcombine.low %v504_v30, %v504_v30  ;;  %v1395_v48 = vor.u32 %v1394_v49, %v1390_v34  ;;  %v1462_v49 = vshll.u32 %v3066_v11, 16 }
  0xee   :  { %v3044_v39 = vpop.permute.xlu1 %1303  ;;  %v1399_v8 = vshll.u32 %v3049_v36, 16  ;;  %v1450_v44 = vrot.slane %v1448_v13, 1  ;;  %v1397_v60 = vshrl.u32 %v3049_v36, 16  ;;  %v1413_v13 = vshll.u32 %v3070_v33, 16 }
  0xef   :  { %3448 = vst [vmem:[#allocation27_spill] sm:$0xff] %v3044_v39  ;;  %v3046_v21 = vpop.permute.xlu0 %1489  ;;  %v2203_v39 = vcombine.low %v511_v23, %v511_v23  ;;  %v3079_v23 = vld [vmem:[#allocation2 + $0x9c] sm:$0x1]  ;;  %v1604_v36 = vsel %vm1601_vm8, %v2446_v26, %v2835_v38 }
  0xf0   :  { %1291 = vrot.lane.b32.xlu1 %v2194_v4, %s2464_s22  ;;  %v1401_v34 = vrot.slane %v1399_v8, 1  ;;  %v1451_v47 = vor.u32 %v1450_v44, %v1446_v3 }
  0xf1   :  { %1293 = vrot.lane.b32.xlu0 %v2195_v28, %s2464_s22  ;;  %v512_v28 = vld [vmem:[#allocation2 + $0x98] sm:$0xf] }
  0xf2   :  { %v3061_v57 = vpop.permute.xlu1 %1475  ;;  %v2204_v63 = vcombine.low %v512_v28, %v512_v28  ;;  %v1402_v38 = vor.u32 %v1401_v34, %v1397_v60  ;;  %v2449_v60 = vld [vmem:[#allocation2 + $0x58] sm:$0xf] }
  0xf3   :  { %v3063_v4 = vpop.permute.xlu0 %1477 }
  0xf4   :  { %3449 = vst [vmem:[#allocation28_spill] sm:$0xff] %v3063_v4  ;;  %1307 = vrot.lane.b32.xlu1 %v2202_v52, %s2464_s22  ;;  %v1455_v4 = vshll.u32 %v3054_v16, 16 }
  0xf5   :  { %1309 = vrot.lane.b32.xlu0 %v2203_v39, %s2464_s22  ;;  %v1408_v39 = vrot.slane %v1406_v29, 1  ;;  %v3094_v29 = vcombine.low %v512_v28, %v3079_v23 }
  0xf6   :  { %v3075_v52 = vpop.permute.xlu1 %1491  ;;  %v1457_v2 = vrot.slane %v1455_v4, 1  ;;  %v1464_v4 = vrot.slane %v1462_v49, 1  ;;  %v2448_v49 = vld [vmem:[#allocation2 + $0x50] sm:$0xf] }
  0xf7   :  { %v3077_v30 = vpop.permute.xlu0 %1493  ;;  %v1409_v26 = vor.u32 %v1408_v39, %v1404_v43  ;;  %v1469_v43 = vshll.u32 %v3094_v29, 16 }
  0xf8   :  { %3450 = vst [vmem:[#allocation29_spill] sm:$0xff] %v3077_v30  ;;  %1295 = vrot.lane.b32.xlu1 %v2196_v42, %s2464_s22  ;;  %v1453_v30 = vshrl.u32 %v3054_v16, 16  ;;  %v1607_v42 = vsel %vm1601_vm8, %v2447_v12, %v2865_v14  ;;  %v1460_v16 = vshrl.u32 %v3066_v11, 16  ;;  %v1415_v14 = vrot.slane %v1413_v13, 1 }
  0xf9   :  { %1481 = vrot.lane.b32.xlu0 %v1395_v48, %s2465_s0  ;;  %v1411_v48 = vshrl.u32 %v3070_v33, 16  ;;  %v1652_v12 = vsel %vm1650_vm9, %v1604_v36, %v2810_v7  ;;  %v1654_v28 = vsel %vm1650_vm9, %v1607_v42, %v2850_v53  ;;  %v2225_v11 = vcombine.low %v533_v40, %v3022_v5  ;;  %v541_v42 = vld [vmem:[#allocation2 + $0x80] sm:$0xe] }
  0xfa   :  { %v3091_v8 = vpop.permute.xlu1 %1479  ;;  %v1458_v3 = vor.u32 %v1457_v2, %v1453_v30  ;;  %v1631_v33 = vsel %vm1601_vm8, %v2449_v60, %v2879_v18  ;;  %v1685_v34 = vsel %vm1683_vm10, %v1652_v12, %v2896_v45  ;;  %v1687_v7 = vsel %vm1683_vm10, %v1654_v28, %v2909_v10 }
  0xfb   :  { %v1570_v44 = vpop.permute.xlu0 %1569  ;;  %v1718_v2 = vsel %vm1716_vm11, %v1685_v34, %v2929_v9  ;;  %v1467_v30 = vshrl.u32 %v3094_v29, 16  ;;  %v1416_v10 = vor.u32 %v1415_v14, %v1411_v48  ;;  %v535_v48 = vld [vmem:[#allocation2 + $0x40] sm:$0xe] }
  0xfc   :  { %1311 = vrot.lane.b32.xlu1 %v2204_v63, %s2464_s22  ;;  %v1628_v63 = vsel %vm1601_vm8, %v2448_v49, %v2826_v59  ;;  %v1465_v59 = vor.u32 %v1464_v4, %v1460_v16  ;;  %v1751_v18 = vsel %vm1749_vm12, %v1718_v2, %v2971_v0  ;;  %v1471_v16 = vrot.slane %v1469_v43, 1  ;;  %v536_v49 = vld [vmem:[#allocation2 + $0x48] sm:$0xe]  ;;  %v3454_v43 = vld [vmem:[#allocation14_spill] sm:$0xff] }
  0xfd   :  { %1497 = vrot.lane.b32.xlu0 %v1451_v47, %s2465_s0  ;;  %v1720_v47 = vsel %vm1716_vm11, %v1687_v7, %v2948_v56  ;;  %v1668_v9 = vsel %vm1650_vm9, %v1628_v63, %v2819_v19  ;;  %v1670_v56 = vsel %vm1650_vm9, %v1631_v33, %v2863_v1  ;;  %v1784_v39 = vsel %vm1782_vm13, %v1751_v18, %v3000_v24  ;;  %v2450_v63 = vld [vmem:[#allocation2 + $0x10] sm:$0xf]  ;;  %v2451_v33 = vld [vmem:[#allocation2 + $0x18] sm:$0xf]  ;;  %v2452_v18 = vld [vmem:[#allocation2 + $0x60] sm:$0xf] }
  0xfe   :  { %v3113_v53 = vpop.permute.xlu1 %1495  ;;  %v1753_v45 = vsel %vm1749_vm12, %v1720_v47, %v2983_v50  ;;  %v1701_v50 = vsel %vm1683_vm10, %v1668_v9, %v2904_v25  ;;  %v1703_v13 = vsel %vm1683_vm10, %v1670_v56, %v2916_v6  ;;  %v1817_v19 = vsel %vm1815_vm14, %v1784_v39, %v3033_v27  ;;  %v3455_v56 = vld [vmem:[#allocation16_spill] sm:$0xff]  ;;  %v3456_v39 = vld [vmem:[#allocation18_spill] sm:$0xff] }
  0xff   :  { %v1586_v5 = vpop.permute.xlu0 %1585  ;;  %v1786_v0 = vsel %vm1782_vm13, %v1753_v45, %v3013_v51  ;;  %v1734_v24 = vsel %vm1716_vm11, %v1701_v50, %v2940_v37  ;;  %v1736_v51 = vsel %vm1716_vm11, %v1703_v13, %v2960_v22  ;;  %v1850_v29 = vsel %vm1848_vm15, %v1817_v19, %v1570_v44  ;;  %v3452_v45 = vld [vmem:[#allocation8_spill] sm:$0xff] }
 0x100   :  { %1483 = vrot.lane.b32.xlu1 %v1402_v38, %s2465_s0  ;;  %v1819_v1 = vsel %vm1815_vm14, %v1786_v0, %v3061_v57  ;;  %v1767_v6 = vsel %vm1749_vm12, %v1734_v24, %v2978_v15  ;;  %v1769_v57 = vsel %vm1749_vm12, %v1736_v51, %v2990_v41  ;;  %v1557_v44 = vrot.slane %v2225_v11, 1  ;;  %v534_v38 = vld [vmem:[#allocation2 + $0x38] sm:$0xe]  ;;  %v3458_v24 = vld [vmem:[#allocation20_spill] sm:$0xff] }
 0x101   :  { %1485 = vrot.lane.b32.xlu0 %v1409_v26, %s2465_s0  ;;  %v1800_v37 = vsel %vm1782_vm13, %v1767_v6, %v3008_v54  ;;  %v1802_v22 = vsel %vm1782_vm13, %v1769_v57, %v3020_v61  ;;  %v2233_v4 = vcombine.low %v541_v42, %v3031_v62  ;;  %v1472_v12 = vor.u32 %v1471_v16, %v1467_v30  ;;  %v3460_v57 = vld [vmem:[#allocation9_spill] sm:$0xff]  ;;  %v3461_v16 = vld [vmem:[#allocation11_spill] sm:$0xff] }
 0x102   :  { %v1572_v36 = vpop.permute.xlu1 %1571  ;;  %v1833_v15 = vsel %vm1815_vm14, %v1800_v37, %v3046_v21  ;;  %v1835_v41 = vsel %vm1815_vm14, %v1802_v22, %v3075_v52  ;;  %v2226_v28 = vcombine.low %v534_v38, %v3036_v17  ;;  %v542_v21 = vld [vmem:[#allocation2 + $0x88] sm:$0xe]  ;;  %v2227_v11 = vcombine.low %v535_v48, %v3040_v46  ;;  %v3465_v48 = vld [vmem:[#allocation15_spill] sm:$0xff] }
 0x103   :  { %v1852_v25 = vsel %vm1848_vm15, %v1819_v1, %v1572_v36  ;;  %v3149_v40 = vpop.permute.xlu0 %745  ;;  %v1866_v54 = vsel %vm1848_vm15, %v1833_v15, %v1586_v5  ;;  %v1565_v52 = vrot.slane %v2233_v4, 1  ;;  %v1610_v60 = vsel %vm1601_vm8, %v2450_v63, %v2874_v20  ;;  %v2453_v1 = vld [vmem:[#allocation2 + $0x68] sm:$0xf]  ;;  %v3457_v36 = vld [vmem:[#allocation10_spill] sm:$0xff] }
 0x104   :  { %1499 = vrot.lane.b32.xlu1 %v1458_v3, %s2465_s0  ;;  %v2238_v27 = vcombine.low %v1850_v29, %v1852_v25  ;;  %v543_v3 = vld [vmem:[#allocation2 + $0x90] sm:$0xe]  ;;  %v1613_v34 = vsel %vm1601_vm8, %v2451_v33, %v2886_v31  ;;  %v2234_v2 = vcombine.low %v542_v21, %v3042_v58  ;;  %v1558_v46 = vrot.slane %v2226_v28, 1  ;;  %v3459_v29 = vld [vmem:[#allocation22_spill] sm:$0xff]  ;;  %v3462_v22 = vld [vmem:[#allocation24_spill] sm:$0xff] }
 0x105   :  { %1501 = vrot.lane.b32.xlu0 %v1465_v59, %s2465_s0  ;;  %v2235_v47 = vcombine.low %v543_v3, %v3056_v35  ;;  %v2228_v5 = vcombine.low %v536_v49, %v3059_v32  ;;  %v1656_v20 = vsel %vm1650_vm9, %v1610_v60, %v2852_v55  ;;  %v3451_v59 = vld [vmem:[#allocation7_spill] sm:$0xff]  ;;  %v1559_v30 = vrot.slane %v2227_v11, 1  ;;  %v3463_v4 = vld [vmem:[#allocation26_spill] sm:$0xff]  ;;  %v3467_v21 = vld [vmem:[#allocation17_spill] sm:$0xff] }
 0x106   :  { %v1588_v26 = vpop.permute.xlu1 %1587  ;;  %2286 = vmatprep.mubr.msk.bf16.mxu0 %vm1943_vm0, %v2238_v27  ;;  %v1658_v31 = vsel %vm1650_vm9, %v1613_v34, %v3451_v59  ;;  %v1634_v58 = vsel %vm1601_vm8, %v2452_v18, %v3452_v45  ;;  %v1566_v13 = vrot.slane %v2234_v2, 1  ;;  %v1637_v42 = vsel %vm1601_vm8, %v2453_v1, %v3457_v36  ;;  %v544_v15 = vld [vmem:[#allocation2 + $0x98] sm:$0xe]  ;;  %v3469_v33 = vld [vmem:[#allocation21_spill] sm:$0xff]  ;;  %v3470_v2 = vld [vmem:[#allocation23_spill] sm:$0xff] }
 0x107   :  { %v1868_v61 = vsel %vm1848_vm15, %v1835_v41, %v1588_v26  ;;  %v3169_v14 = vpop.permute.xlu0 %761  ;;  %v1691_v9 = vsel %vm1683_vm10, %v1658_v31, %v3454_v43  ;;  %v1567_v19 = vrot.slane %v2235_v47, 1  ;;  %v1560_v6 = vrot.slane %v2228_v5, 1  ;;  %v3464_v41 = vld [vmem:[#allocation13_spill] sm:$0xff]  ;;  %v3472_v59 = vld [vmem:[#allocation27_spill] sm:$0xff]  ;;  %v2456_v36 = vld [vmem:[#allocation2 + $0x28] sm:$0xf] }
 0x108   :  { %1487 = vrot.lane.b32.xlu1 %v1416_v10, %s2465_s0  ;;  %v2242_v62 = vcombine.low %v1866_v54, %v1868_v61  ;;  %v3453_v10 = vld [vmem:[#allocation12_spill] sm:$0xff]  ;;  %v1724_v0 = vsel %vm1716_vm11, %v1691_v9, %v3456_v39  ;;  %v1672_v27 = vsel %vm1650_vm9, %v1634_v58, %v3460_v57  ;;  %v1674_v37 = vsel %vm1650_vm9, %v1637_v42, %v3461_v16  ;;  %v3471_v5 = vld [vmem:[#allocation25_spill] sm:$0xff]  ;;  %v2457_v57 = vld [vmem:[#allocation2 + $0x78] sm:$0xf] }
 0x109   :  { %1577 = vrot.lane.b32.xlu0 %v1557_v44, %s2466_s23  ;;  %v1689_v35 = vsel %vm1683_vm10, %v1656_v20, %v3453_v10  ;;  %v1757_v25 = vsel %vm1749_vm12, %v1724_v0, %v3459_v29  ;;  %v1705_v26 = vsel %vm1683_vm10, %v1672_v27, %v3464_v41  ;;  %v1707_v54 = vsel %vm1683_vm10, %v1674_v37, %v3465_v48  ;;  %v3466_v61 = vld [vmem:[#allocation28_spill] sm:$0xff]  ;;  %v3473_v31 = vld [vmem:[#allocation29_spill] sm:$0xff] }
 0x10a   :  { %v3179_v7 = vpop.permute.xlu1 %747  ;;  %2294 = vmatprep.mubr.msk.bf16.mxu1 %vm1943_vm0, %v2242_v62  ;;  %v1722_v55 = vsel %vm1716_vm11, %v1689_v35, %v3455_v56  ;;  %v1790_v38 = vsel %vm1782_vm13, %v1757_v25, %v3463_v4  ;;  %v1738_v3 = vsel %vm1716_vm11, %v1705_v26, %v3467_v21  ;;  %v2454_v56 = vld [vmem:[#allocation2 + $0x20] sm:$0xf]  ;;  %v3475_v16 = vld [vmem:[#allocation4_spill] sm:$0xff]  ;;  %v3476_v4 = vld [vmem:[#allocation5_spill] sm:$0xff] }
 0x10b   :  { %v1574_v17 = vpop.permute.xlu0 %1573  ;;  %v1755_v51 = vsel %vm1749_vm12, %v1722_v55, %v3458_v24  ;;  %v1771_v34 = vsel %vm1749_vm12, %v1738_v3, %v3469_v33  ;;  %v1616_v55 = vsel %vm1601_vm8, %v2454_v56, %v3149_v40  ;;  %v1619_v42 = vsel %vm1601_vm8, %v2456_v36, %v3179_v7 }
 0x10c   :  { %1503 = vrot.lane.b32.xlu1 %v1472_v12, %s2465_s0  ;;  %v1788_v44 = vsel %vm1782_vm13, %v1755_v51, %v3462_v22  ;;  %v1823_v12 = vsel %vm1815_vm14, %v1790_v38, %v3091_v8  ;;  %v2236_v8 = vcombine.low %v544_v15, %v3079_v23  ;;  %v1804_v20 = vsel %vm1782_vm13, %v1771_v34, %v3471_v5  ;;  %v3474_v51 = vld [vmem:[#allocation3_spill] sm:$0xff] }
 0x10d   :  { %1593 = vrot.lane.b32.xlu0 %v1565_v52, %s2466_s23  ;;  %v1821_v62 = vsel %vm1815_vm14, %v1788_v44, %v3466_v61  ;;  %v3468_v52 = vld [vmem:[#allocation19_spill] sm:$0xff] }
 0x10e   :  { %v3197_v32 = vpop.permute.xlu1 %763  ;;  %v1740_v11 = vsel %vm1716_vm11, %v1707_v54, %v3468_v52  ;;  %v1854_v49 = vsel %vm1848_vm15, %v1821_v62, %v1574_v17  ;;  %v1568_v43 = vrot.slane %v2236_v8, 1  ;;  %v3477_v54 = vld [vmem:[#allocation6_spill] sm:$0xff] }
 0x10f   :  { %v1590_v50 = vpop.permute.xlu0 %1589  ;;  %v1773_v47 = vsel %vm1749_vm12, %v1740_v11, %v3470_v2 }
 0x110   :  { %1579 = vrot.lane.b32.xlu1 %v1558_v46, %s2466_s23  ;;  %v1806_v17 = vsel %vm1782_vm13, %v1773_v47, %v3472_v59 }
 0x111   :  { %1581 = vrot.lane.b32.xlu0 %v1559_v30, %s2466_s23  ;;  %v1837_v30 = vsel %vm1815_vm14, %v1804_v20, %v3473_v31  ;;  %v1839_v18 = vsel %vm1815_vm14, %v1806_v17, %v3113_v53 }
 0x112   :  { %v1576_v28 = vpop.permute.xlu1 %1575  ;;  %v1870_v58 = vsel %vm1848_vm15, %v1837_v30, %v1590_v50  ;;  %v2455_v50 = vld [vmem:[#allocation2 + $0x70] sm:$0xf] }
 0x113   :  { %v1856_v63 = vsel %vm1848_vm15, %v1823_v12, %v1576_v28  ;;  %v750_v60 = vpop.permute.xlu0 %749 }
 0x114   :  { %v2239_v46 = vcombine.low %v1854_v49, %v1856_v63  ;;  %1595 = vrot.lane.b32.xlu1 %v1566_v13, %s2466_s23  ;;  %v1640_v13 = vsel %vm1601_vm8, %v2455_v50, %v3169_v14  ;;  %v1622_v40 = vsel %vm1601_vm8, %v3474_v51, %v750_v60  ;;  %v1643_v14 = vsel %vm1601_vm8, %v2457_v57, %v3197_v32 }
 0x115   :  { %1597 = vrot.lane.b32.xlu0 %v1567_v19, %s2466_s23 }
 0x116   :  { %v1592_v45 = vpop.permute.xlu1 %1591  ;;  %2287 = vmatmul.mubr.msk.bf16.vlgmr.msra.gmra.mxu0 %vm1943_vm0, %v2239_v46 }
 0x117   :  { %v1872_v23 = vsel %vm1848_vm15, %v1839_v18, %v1592_v45  ;;  %v766_v10 = vpop.permute.xlu0 %765 }
 0x118   :  { %v2243_v35 = vcombine.low %v1870_v58, %v1872_v23  ;;  %1583 = vrot.lane.b32.xlu1 %v1560_v6, %s2466_s23  ;;  %v1646_v37 = vsel %vm1601_vm8, %v3475_v16, %v766_v10 }
 0x11a   :  { %v752_v9 = vpop.permute.xlu1 %751  ;;  %2295 = vmatmul.mubr.msk.bf16.vlgmr.msra.gmra.mxu1 %vm1943_vm0, %v2243_v35 }
 0x11b   :  { %v842_v53 = vpop.permute.xlu0 %841  ;;  %v1625_v38 = vsel %vm1601_vm8, %v3476_v4, %v752_v9 }
 0x11c   :  { %1599 = vrot.lane.b32.xlu1 %v1568_v43, %s2466_s23  ;;  %v1660_v39 = vsel %vm1650_vm9, %v1616_v55, %v842_v53 }
 0x11e   :  { %v768_v0 = vpop.permute.xlu1 %767 }
 0x11f   :  { %v858_v19 = vpop.permute.xlu0 %857  ;;  %v1649_v32 = vsel %vm1601_vm8, %v3477_v54, %v768_v0 }
 0x120   :  { %v1676_v1 = vsel %vm1650_vm9, %v1640_v13, %v858_v19 }
 0x122   :  { %v844_v24 = vpop.permute.xlu1 %843 }
 0x123   :  { %v1662_v29 = vsel %vm1650_vm9, %v1619_v42, %v844_v24  ;;  %v846_v25 = vpop.permute.xlu0 %845 }
 0x124   :  { %v1664_v6 = vsel %vm1650_vm9, %v1622_v40, %v846_v25 }
 0x126   :  { %v860_v27 = vpop.permute.xlu1 %859 }
 0x127   :  { %v1678_v22 = vsel %vm1650_vm9, %v1643_v14, %v860_v27  ;;  %v862_v7 = vpop.permute.xlu0 %861 }
 0x128   :  { %v1680_v44 = vsel %vm1650_vm9, %v1646_v37, %v862_v7 }
 0x12a   :  { %v848_v15 = vpop.permute.xlu1 %847 }
 0x12b   :  { %v1666_v41 = vsel %vm1650_vm9, %v1625_v38, %v848_v15  ;;  %v922_v26 = vpop.permute.xlu0 %921 }
 0x12c   :  { %v1693_v48 = vsel %vm1683_vm10, %v1660_v39, %v922_v26 }
 0x12e   :  { %v864_v61 = vpop.permute.xlu1 %863 }
 0x12f   :  { %v1682_v62 = vsel %vm1650_vm9, %v1649_v32, %v864_v61  ;;  %v938_v12 = vpop.permute.xlu0 %937 }
 0x130   :  { %v1709_v28 = vsel %vm1683_vm10, %v1676_v1, %v938_v12 }
 0x132   :  { %v924_v21 = vpop.permute.xlu1 %923 }
 0x133   :  { %v1695_v3 = vsel %vm1683_vm10, %v1662_v29, %v924_v21  ;;  %v926_v52 = vpop.permute.xlu0 %925 }
 0x134   :  { %v3282_v11 = vsel %vm1683_vm10, %v1664_v6, %v926_v52 }
 0x136   :  { %v940_v49 = vpop.permute.xlu1 %939 }
 0x137   :  { %v1711_v63 = vsel %vm1683_vm10, %v1678_v22, %v940_v49  ;;  %v942_v60 = vpop.permute.xlu0 %941 }
 0x138   :  { %v3286_v33 = vsel %vm1683_vm10, %v1680_v44, %v942_v60 }
 0x13a   :  { %v928_v34 = vpop.permute.xlu1 %927 }
 0x13b   :  { %v1699_v2 = vsel %vm1683_vm10, %v1666_v41, %v928_v34  ;;  %v1114_v47 = vpop.permute.xlu0 %1113 }
 0x13c   :  { %v1726_v14 = vsel %vm1716_vm11, %v1693_v48, %v1114_v47 }
 0x13e   :  { %v944_v46 = vpop.permute.xlu1 %943 }
 0x13f   :  { %v3290_v8 = vsel %vm1683_vm10, %v1682_v62, %v944_v46  ;;  %v1130_v5 = vpop.permute.xlu0 %1129 }
 0x140   :  { %v1742_v41 = vsel %vm1716_vm11, %v1709_v28, %v1130_v5 }
 0x142   :  { %v1116_v20 = vpop.permute.xlu1 %1115 }
 0x143   :  { %v1118_v59 = vpop.permute.xlu0 %1117  ;;  %v1728_v27 = vsel %vm1716_vm11, %v1695_v3, %v1116_v20 }
 0x146   :  { %v1132_v17 = vpop.permute.xlu1 %1131 }
 0x147   :  { %v3292_v31 = vpop.permute.xlu0 %1133  ;;  %v1744_v26 = vsel %vm1716_vm11, %v1711_v63, %v1132_v17  ;;  %v1730_v63 = vsel %vm1716_vm11, %v3282_v11, %v1118_v59 }
 0x14a   :  { %v1120_v30 = vpop.permute.xlu1 %1119 }
 0x14b   :  { %v1210_v18 = vpop.permute.xlu0 %1209  ;;  %v1732_v60 = vsel %vm1716_vm11, %v1699_v2, %v1120_v30  ;;  %v1746_v2 = vsel %vm1716_vm11, %v3286_v33, %v3292_v31 }
 0x14c   :  { %v1759_v16 = vsel %vm1749_vm12, %v1726_v14, %v1210_v18 }
 0x14e   :  { %v3294_v45 = vpop.permute.xlu1 %1135 }
 0x14f   :  { %v1226_v58 = vpop.permute.xlu0 %1225  ;;  %v1748_v59 = vsel %vm1716_vm11, %v3290_v8, %v3294_v45 }
 0x150   :  { %v1775_v32 = vsel %vm1749_vm12, %v1742_v41, %v1226_v58 }
 0x152   :  { %v1212_v23 = vpop.permute.xlu1 %1211 }
 0x153   :  { %v1214_v10 = vpop.permute.xlu0 %1213  ;;  %v1761_v37 = vsel %vm1749_vm12, %v1728_v27, %v1212_v23 }
 0x154   :  { %v1763_v46 = vsel %vm1749_vm12, %v1730_v63, %v1214_v10 }
 0x156   :  { %v1228_v35 = vpop.permute.xlu1 %1227 }
 0x157   :  { %v1230_v43 = vpop.permute.xlu0 %1229  ;;  %v1777_v61 = vsel %vm1749_vm12, %v1744_v26, %v1228_v35 }
 0x158   :  { %v1779_v35 = vsel %vm1749_vm12, %v1746_v2, %v1230_v43 }
 0x15a   :  { %v1216_v9 = vpop.permute.xlu1 %1215 }
 0x15b   :  { %v1290_v56 = vpop.permute.xlu0 %1289  ;;  %v1765_v5 = vsel %vm1749_vm12, %v1732_v60, %v1216_v9 }
 0x15c   :  { %v1792_v7 = vsel %vm1782_vm13, %v1759_v16, %v1290_v56 }
 0x15e   :  { %v1232_v55 = vpop.permute.xlu1 %1231 }
 0x15f   :  { %v1306_v53 = vpop.permute.xlu0 %1305  ;;  %v1781_v9 = vsel %vm1749_vm12, %v1748_v59, %v1232_v55  ;;  %v2237_v55 = vld [vmem:[%s3414_s2] ss:$0 sm:$0xff] }
 0x160   :  { %v1808_v12 = vsel %vm1782_vm13, %v1775_v32, %v1306_v53 }
 0x162   :  { %v1292_v39 = vpop.permute.xlu1 %1291 }
 0x163   :  { %v1294_v0 = vpop.permute.xlu0 %1293  ;;  %v1794_v44 = vsel %vm1782_vm13, %v1761_v37, %v1292_v39 }
 0x164   :  { %v1796_v17 = vsel %vm1782_vm13, %v1763_v46, %v1294_v0 }
 0x166   :  { %v1308_v50 = vpop.permute.xlu1 %1307 }
 0x167   :  { %v1310_v13 = vpop.permute.xlu0 %1309  ;;  %v1810_v21 = vsel %vm1782_vm13, %v1777_v61, %v1308_v50 }
 0x168   :  { %v1812_v39 = vsel %vm1782_vm13, %v1779_v35, %v1310_v13 }
 0x16a   :  { %v1296_v19 = vpop.permute.xlu1 %1295 }
 0x16b   :  { %v1482_v1 = vpop.permute.xlu0 %1481  ;;  %v1798_v18 = vsel %vm1782_vm13, %v1765_v5, %v1296_v19 }
 0x16c   :  { %v1825_v4 = vsel %vm1815_vm14, %v1792_v7, %v1482_v1 }
 0x16e   :  { %v1312_v36 = vpop.permute.xlu1 %1311 }
 0x16f   :  { %v1498_v42 = vpop.permute.xlu0 %1497  ;;  %v1814_v0 = vsel %vm1782_vm13, %v1781_v9, %v1312_v36 }
 0x170   :  { %v1841_v3 = vsel %vm1815_vm14, %v1808_v12, %v1498_v42 }
 0x172   :  { %v1484_v24 = vpop.permute.xlu1 %1483 }
 0x173   :  { %v1486_v51 = vpop.permute.xlu0 %1485  ;;  %v1827_v38 = vsel %vm1815_vm14, %v1794_v44, %v1484_v24 }
 0x174   :  { %v1829_v58 = vsel %vm1815_vm14, %v1796_v17, %v1486_v51 }
 0x176   :  { %v1500_v40 = vpop.permute.xlu1 %1499 }
 0x177   :  { %v1502_v29 = vpop.permute.xlu0 %1501  ;;  %v1843_v52 = vsel %vm1815_vm14, %v1810_v21, %v1500_v40 }
 0x178   :  { %v1845_v33 = vsel %vm1815_vm14, %v1812_v39, %v1502_v29 }
 0x17a   :  { %v1488_v25 = vpop.permute.xlu1 %1487 }
 0x17b   :  { %v1578_v6 = vpop.permute.xlu0 %1577  ;;  %v1831_v23 = vsel %vm1815_vm14, %v1798_v18, %v1488_v25 }
 0x17c   :  { %v1858_v48 = vsel %vm1848_vm15, %v1825_v4, %v1578_v6 }
 0x17e   :  { %v1504_v57 = vpop.permute.xlu1 %1503 }
 0x17f   :  { %v1594_v22 = vpop.permute.xlu0 %1593  ;;  %v1847_v31 = vsel %vm1815_vm14, %v1814_v0, %v1504_v57 }
 0x180   :  { %v1874_v34 = vsel %vm1848_vm15, %v1841_v3, %v1594_v22 }
 0x182   :  { %v1580_v15 = vpop.permute.xlu1 %1579 }
 0x183   :  { %v1860_v54 = vsel %vm1848_vm15, %v1827_v38, %v1580_v15  ;;  %v1582_v28 = vpop.permute.xlu0 %1581 }
 0x184   :  { %v2240_v62 = vcombine.low %v1858_v48, %v1860_v54  ;;  %v1862_v30 = vsel %vm1848_vm15, %v1829_v58, %v1582_v28 }
 0x186   :  { %v1596_v49 = vpop.permute.xlu1 %1595  ;;  %2290 = vmatprep.mubr.msk.bf16.mxu0 %vm1943_vm0, %v2240_v62 }
 0x187   :  { %v1876_v47 = vsel %vm1848_vm15, %v1843_v52, %v1596_v49  ;;  %v1598_v56 = vpop.permute.xlu0 %1597 }
 0x188   :  { %v2244_v20 = vcombine.low %v1874_v34, %v1876_v47  ;;  %v1878_v8 = vsel %vm1848_vm15, %v1845_v33, %v1598_v56 }
 0x18a   :  { %v1584_v11 = vpop.permute.xlu1 %1583  ;;  %2298 = vmatprep.mubr.msk.bf16.mxu1 %vm1943_vm0, %v2244_v20 }
 0x18b   :  { %v1864_v10 = vsel %vm1848_vm15, %v1831_v23, %v1584_v11 }
 0x18c   :  { %v2241_v53 = vcombine.low %v1862_v30, %v1864_v10 }
 0x18e   :  { %v1600_v50 = vpop.permute.xlu1 %1599  ;;  %2291 = vmatmul.mubr.msk.bf16.gmra.mxu0 %vm1943_vm0, %v2241_v53 }
 0x18f   :  { %v1880_v45 = vsel %vm1848_vm15, %v1847_v31, %v1600_v50 }
 0x190   :  { %v2245_v43 = vcombine.low %v1878_v8, %v1880_v45 }
 0x192   :  { %2299 = vmatmul.mubr.msk.bf16.gmra.mxu1 %vm1943_vm0, %v2245_v43 }
 0x1d6   :  { %v2288_v13 = vpop.f32.mrf.mxu0 }
 0x1d7   :  { %v2018_v19 = vadd.f32 %v2288_v13, %v2237_v55 }
 0x1d8   :  { %v2009_v1 = vpop.f32.mrf.mxu0 }
 0x1d9   :  { %2075 = vst.msk [vmem:[%s3415_s3 + $0x10] sm:$0xff] %vm2072_vm1, %v2018_v19  ;;  %v2010_v36 = vadd.f32 %v2237_v55, %v2009_v1 }
 0x1da   :  { %v2289_v42 = vpop.f32.mrf.mxu0  ;;  %v2296_v24 = vpop.f32.mrf.mxu1 }
 0x1db   :  { %2073 = vst.msk [vmem:[%s3415_s3] sm:$0xff] %vm2072_vm1, %v2010_v36  ;;  %v2021_v51 = vadd.f32 %v2289_v42, %v2237_v55  ;;  %v2050_v40 = vadd.f32 %v2296_v24, %v2237_v55 }
 0x1dc   :  { %v2012_v29 = vpop.f32.mrf.mxu0  ;;  %v2041_v25 = vpop.f32.mrf.mxu1 }
 0x1dd   :  { %2076 = vst.msk [vmem:[%s3415_s3 + $0x18] sm:$0xff] %vm2072_vm1, %v2021_v51  ;;  %2083 = vst.msk [vmem:[%s3415_s3 + $0x50] sm:$0xff] %vm2072_vm1, %v2050_v40  ;;  %v2013_v6 = vadd.f32 %v2237_v55, %v2012_v29  ;;  %v2042_v57 = vadd.f32 %v2237_v55, %v2041_v25 }
 0x1de   :  { %v2297_v14 = vpop.f32.mrf.mxu1 }
 0x1df   :  { %2074 = vst.msk [vmem:[%s3415_s3 + $0x8] sm:$0xff] %vm2072_vm1, %v2013_v6  ;;  %2081 = vst.msk [vmem:[%s3415_s3 + $0x40] sm:$0xff] %vm2072_vm1, %v2042_v57  ;;  %v2053_v27 = vadd.f32 %v2297_v14, %v2237_v55 }
 0x1e0   :  { %v2044_v16 = vpop.f32.mrf.mxu1 }
 0x1e1   :  { %2084 = vst.msk [vmem:[%s3415_s3 + $0x58] sm:$0xff] %vm2072_vm1, %v2053_v27  ;;  %v2045_v37 = vadd.f32 %v2237_v55, %v2044_v16 }
 0x1e3   :  { %2082 = vst.msk [vmem:[%s3415_s3 + $0x48] sm:$0xff] %vm2072_vm1, %v2045_v37 }
 0x24e   :  { %v2292_v22 = vpop.f32.mrf.mxu0 }
 0x24f   :  { %v2034_v7 = vadd.f32 %v2292_v22, %v2237_v55 }
 0x250   :  { %v2025_v44 = vpop.f32.mrf.mxu0 }
 0x251   :  { %2079 = vst.msk [vmem:[%s3415_s3 + $0x30] sm:$0xff] %vm2072_vm1, %v2034_v7  ;;  %v2026_v4 = vadd.f32 %v2237_v55, %v2025_v44 }
 0x252   :  { %v2293_v38 = vpop.f32.mrf.mxu0  ;;  %v2300_v15 = vpop.f32.mrf.mxu1 }
 0x253   :  { %2077 = vst.msk [vmem:[%s3415_s3 + $0x20] sm:$0xff] %vm2072_vm1, %v2026_v4  ;;  %v2037_v41 = vadd.f32 %v2293_v38, %v2237_v55  ;;  %v2066_v26 = vadd.f32 %v2300_v15, %v2237_v55 }
 0x254   :  { %v2028_v48 = vpop.f32.mrf.mxu0  ;;  %v2057_v54 = vpop.f32.mrf.mxu1 }
 0x255   :  { %2080 = vst.msk [vmem:[%s3415_s3 + $0x38] sm:$0xff] %vm2072_vm1, %v2037_v41  ;;  %2087 = vst.msk [vmem:[%s3415_s3 + $0x70] sm:$0xff] %vm2072_vm1, %v2066_v26  ;;  %v2029_v32 = vadd.f32 %v2237_v55, %v2028_v48  ;;  %v2058_v61 = vadd.f32 %v2237_v55, %v2057_v54 }
 0x256   :  { %v2301_v62 = vpop.f32.mrf.mxu1 }
 0x257   :  { %2078 = vst.msk [vmem:[%s3415_s3 + $0x28] sm:$0xff] %vm2072_vm1, %v2029_v32  ;;  %2085 = vst.msk [vmem:[%s3415_s3 + $0x60] sm:$0xff] %vm2072_vm1, %v2058_v61  ;;  %v2069_v12 = vadd.f32 %v2301_v62, %v2237_v55 }
 0x258   :  { %v2060_v21 = vpop.f32.mrf.mxu1 }
 0x259   :  { %2088 = vst.msk [vmem:[%s3415_s3 + $0x78] sm:$0xff] %vm2072_vm1, %v2069_v12  ;;  %v2061_v3 = vadd.f32 %v2237_v55, %v2060_v21 }
 0x25b   :  { %2086 = vst.msk [vmem:[%s3415_s3 + $0x68] sm:$0xff] %vm2072_vm1, %v2061_v3 }

// kernel: dnnet_forward.7
= control target key start
LH: loop header
LB: loop body
LE: loop exit
PB: predicated region body
PF: predicated region fallthrough
CT: control target
= control target key end

     0   :  { %vm15_vm0 = vcmask 125952   ;;  %vm17_vm1 = vcmask 122880   ;;  %v2476_v0 = vmov 0   ;;  %vm299_vm2 = vsmask.f32 7938  ;;  %s2477_s26 = smov 32   ;;  %s3496_s0 = inlined_call_operand.vmem [shape: f32[2,8,8,16], index: 0, kind: input, shape index: {}]   ;;  %s3497_s1 = inlined_call_operand.vmem [shape: bf16[144,3], index: 1, kind: input, shape index: {}]   ;;  %s3498_s2 = inlined_call_operand.vmem [shape: f32[1,3], index: 2, kind: input, shape index: {}]   ;;  %s3499_s3 = inlined_call_operand.vmem [shape: f32[2,8,8,3], index: 3, kind: output, shape index: {}]  }
   0x1   :  { %16 = vst.msk [vmem:[#allocation2] sm:$0xf] %vm15_vm0, %v2476_v0  ;;  %19 = vst.msk [vmem:[#allocation2 + $0x8] sm:$0xf] %vm15_vm0, %v2476_v0  ;;  %v58_v1 = vld [vmem:[%s3496_s0 + $0x8] sm:$0xff]  ;;  %1991 = vmatprep.subr.bf16.mxu0 %v2476_v0  ;;  %2303 = vmatprep.subr.bf16.mxu1 %v2476_v0  ;;  %v57_v4 = vld [vmem:[%s3496_s0] sm:$0xff] }
   0x2   :  { %18 = vst.msk [vmem:[#allocation2 + $0x4] sm:$0x1] %vm17_vm1, %v2476_v0  ;;  %20 = vst.msk [vmem:[#allocation2 + $0xc] sm:$0x1] %vm17_vm1, %v2476_v0  ;;  %v2288_v2 = vpack.c.bf16 %v58_v1, %v58_v1  ;;  %v66_v3 = vld [vmem:[%s3496_s0 + $0x48] sm:$0xff]  ;;  %v2287_v6 = vpack.c.bf16 %v57_v4, %v57_v4  ;;  %v65_v7 = vld [vmem:[%s3496_s0 + $0x40] sm:$0xff] }
   0x3   :  { %21 = vst.msk [vmem:[#allocation2 + $0x10] sm:$0xf] %vm15_vm0, %v2476_v0  ;;  %23 = vst.msk [vmem:[#allocation2 + $0x18] sm:$0xf] %vm15_vm0, %v2476_v0  ;;  %v2296_v5 = vpack.c.bf16 %v66_v3, %v66_v3  ;;  %v59_v8 = vld [vmem:[%s3496_s0 + $0x10] sm:$0xff]  ;;  %v2601_v11 = vpack.c.bf16 %v65_v7, %v65_v7  ;;  %v60_v18 = vld [vmem:[%s3496_s0 + $0x18] sm:$0xff] }
   0x4   :  { %22 = vst.msk [vmem:[#allocation2 + $0x14] sm:$0x1] %vm17_vm1, %v2476_v0  ;;  %24 = vst.msk [vmem:[#allocation2 + $0x1c] sm:$0x1] %vm17_vm1, %v2476_v0  ;;  %v146_v9 = vshrl.u32 %v2288_v2, 16  ;;  %v149_v10 = vshll.u32 %v2288_v2, 16  ;;  %v2603_v12 = vpack.c.bf16 %v59_v8, %v59_v8  ;;  %v2623_v32 = vpack.c.bf16 %v60_v18, %v60_v18 }
   0x5   :  { %25 = vst.msk [vmem:[#allocation2 + $0x20] sm:$0xf] %vm15_vm0, %v2476_v0  ;;  %27 = vst.msk [vmem:[#allocation2 + $0x28] sm:$0xf] %vm15_vm0, %v2476_v0  ;;  %v210_v13 = vshrl.u32 %v2296_v5, 16  ;;  %v213_v14 = vshll.u32 %v2296_v5, 16 }
   0x6   :  { %26 = vst.msk [vmem:[#allocation2 + $0x24] sm:$0x1] %vm17_vm1, %v2476_v0  ;;  %28 = vst.msk [vmem:[#allocation2 + $0x2c] sm:$0x1] %vm17_vm1, %v2476_v0  ;;  %v138_v15 = vshrl.u32 %v2287_v6, 16  ;;  %v141_v16 = vshll.u32 %v2287_v6, 16 }
   0x7   :  { %29 = vst.msk [vmem:[#allocation2 + $0x30] sm:$0xf] %vm15_vm0, %v2476_v0  ;;  %31 = vst.msk [vmem:[#allocation2 + $0x38] sm:$0xf] %vm15_vm0, %v2476_v0  ;;  %v67_v17 = vld [vmem:[%s3496_s0 + $0x50] sm:$0xff]  ;;  %v148_v19 = vrot.slane %v146_v9, 7 }
   0x8   :  { %30 = vst.msk [vmem:[#allocation2 + $0x34] sm:$0x1] %vm17_vm1, %v2476_v0  ;;  %32 = vst.msk [vmem:[#allocation2 + $0x3c] sm:$0x1] %vm17_vm1, %v2476_v0  ;;  %vm305_vm3 = vsmask.f32 256  ;;  %v2621_v31 = vpack.c.bf16 %v67_v17, %v67_v17 }
   0x9   :  { %33 = vst.msk [vmem:[#allocation2 + $0x40] sm:$0xf] %vm15_vm0, %v2476_v0  ;;  %35 = vst.msk [vmem:[#allocation2 + $0x48] sm:$0xf] %vm15_vm0, %v2476_v0  ;;  %v202_v20 = vshrl.u32 %v2601_v11, 16  ;;  %v205_v21 = vshll.u32 %v2601_v11, 16  ;;  %v151_v30 = vor.u32 %v149_v10, %v148_v19 }
   0xa   :  { %34 = vst.msk [vmem:[#allocation2 + $0x44] sm:$0x1] %vm17_vm1, %v2476_v0  ;;  %36 = vst.msk [vmem:[#allocation2 + $0x4c] sm:$0x1] %vm17_vm1, %v2476_v0  ;;  %v212_v23 = vrot.slane %v210_v13, 7  ;;  %v140_v24 = vrot.slane %v138_v15, 7 }
   0xb   :  { %37 = vst.msk [vmem:[#allocation2 + $0x50] sm:$0xf] %vm15_vm0, %v2476_v0  ;;  %39 = vst.msk [vmem:[#allocation2 + $0x58] sm:$0xf] %vm15_vm0, %v2476_v0  ;;  %v154_v25 = vshrl.u32 %v2603_v12, 16  ;;  %v157_v26 = vshll.u32 %v2603_v12, 16 }
   0xc   :  { %38 = vst.msk [vmem:[#allocation2 + $0x54] sm:$0x1] %vm17_vm1, %v2476_v0  ;;  %40 = vst.msk [vmem:[#allocation2 + $0x5c] sm:$0x1] %vm17_vm1, %v2476_v0  ;;  %v416_v27 = vld [vmem:[#allocation2 + $0x4] sm:$0x1]  ;;  %v215_v38 = vor.u32 %v213_v14, %v212_v23  ;;  %v143_v39 = vor.u32 %v141_v16, %v140_v24 }
   0xd   :  { %41 = vst.msk [vmem:[#allocation2 + $0x60] sm:$0xf] %vm15_vm0, %v2476_v0  ;;  %43 = vst.msk [vmem:[#allocation2 + $0x68] sm:$0xf] %vm15_vm0, %v2476_v0  ;;  %v432_v28 = vld [vmem:[#allocation2] sm:$0xe] }
   0xe   :  { %42 = vst.msk [vmem:[#allocation2 + $0x64] sm:$0x1] %vm17_vm1, %v2476_v0  ;;  %44 = vst.msk [vmem:[#allocation2 + $0x6c] sm:$0x1] %vm17_vm1, %v2476_v0  ;;  %v400_v29 = vld [vmem:[#allocation2] sm:$0xf]  ;;  %v2141_v33 = vcombine.low %v432_v28, %v416_v27 }
   0xf   :  { %45 = vst.msk [vmem:[#allocation2 + $0x70] sm:$0xf] %vm15_vm0, %v2476_v0  ;;  %47 = vst.msk [vmem:[#allocation2 + $0x78] sm:$0xf] %vm15_vm0, %v2476_v0  ;;  %v2125_v34 = vcombine.low %v400_v29, %v416_v27  ;;  %v152_v42 = vrot.slane %v148_v19, 4  ;;  %v216_v45 = vrot.slane %v212_v23, 4 }
  0x10   :  { %46 = vst.msk [vmem:[#allocation2 + $0x74] sm:$0x1] %vm17_vm1, %v2476_v0  ;;  %48 = vst.msk [vmem:[#allocation2 + $0x7c] sm:$0x1] %vm17_vm1, %v2476_v0  ;;  %v310_v43 = vld [vmem:[#allocation2 + $0x10] sm:$0xf] }
  0x11   :  { %49 = vst.msk [vmem:[#allocation2 + $0x80] sm:$0xf] %vm15_vm0, %v2476_v0  ;;  %51 = vst.msk [vmem:[#allocation2 + $0x88] sm:$0xf] %vm15_vm0, %v2476_v0  ;;  %v313_v44 = vld [vmem:[#allocation2 + $0x14] sm:$0x1] }
  0x12   :  { %50 = vst.msk [vmem:[#allocation2 + $0x84] sm:$0x1] %vm17_vm1, %v2476_v0  ;;  %52 = vst.msk [vmem:[#allocation2 + $0x8c] sm:$0x1] %vm17_vm1, %v2476_v0  ;;  %v408_v35 = vld [vmem:[#allocation2 + $0x50] sm:$0xf] }
  0x13   :  { %53 = vst.msk [vmem:[#allocation2 + $0x90] sm:$0xf] %vm15_vm0, %v2476_v0  ;;  %55 = vst.msk [vmem:[#allocation2 + $0x98] sm:$0xf] %vm15_vm0, %v2476_v0  ;;  %v424_v36 = vld [vmem:[#allocation2 + $0x54] sm:$0x1] }
  0x14   :  { %54 = vst.msk [vmem:[#allocation2 + $0x94] sm:$0x1] %vm17_vm1, %v2476_v0  ;;  %56 = vst.msk [vmem:[#allocation2 + $0x9c] sm:$0x1] %vm17_vm1, %v2476_v0  ;;  %v440_v37 = vld [vmem:[#allocation2 + $0x50] sm:$0xe]  ;;  %v2133_v40 = vcombine.low %v408_v35, %v424_v36 }
  0x15   :  { %vm2615_vm4 = vmand %vm15_vm0, %vm299_vm2  ;;  %v2149_v41 = vcombine.low %v440_v37, %v424_v36  ;;  %v817_v46 = vrot.slane %v2141_v33, 1  ;;  %v628_v47 = vshll.u32 %v2125_v34, 16  ;;  %v626_v48 = vshrl.u32 %v2125_v34, 16  ;;  %v358_v51 = vld [vmem:[#allocation2 + $0x60] sm:$0xf]  ;;  %s2478_s27 = smov 16  }
  0x16   :  { %vm2627_vm5 = vmand %vm17_vm1, %vm305_vm3  ;;  %v311_v50 = vsel %vm2615_vm4, %v151_v30, %v310_v43  ;;  %v682_v52 = vshrl.u32 %v2133_v40, 16  ;;  %v684_v53 = vshll.u32 %v2133_v40, 16  ;;  %v361_v56 = vld [vmem:[#allocation2 + $0x64] sm:$0x1]  ;;  %v359_v58 = vsel %vm2615_vm4, %v215_v38, %v358_v51  ;;  %v301_v61 = vld [vmem:[#allocation2 + $0x8] sm:$0xf] }
  0x17   :  { %v825_v54 = vrot.slane %v2149_v41, 1  ;;  %312 = vst [vmem:[#allocation2 + $0x10] sm:$0xf] %v311_v50  ;;  %v314_v55 = vsel %vm2627_vm5, %v152_v42, %v313_v44  ;;  %833 = vrot.lane.b32.xlu0 %v817_v46, %s2477_s26  ;;  %v630_v57 = vrot.slane %v628_v47, 1  ;;  %v362_v59 = vsel %vm2627_vm5, %v216_v45, %v361_v56  ;;  %v307_v62 = vld [vmem:[#allocation2 + $0xc] sm:$0x1] }
  0x18   :  { %315 = vst [vmem:[#allocation2 + $0x14] sm:$0x1] %v314_v55  ;;  %v144_v60 = vrot.slane %v140_v24, 4  ;;  %v686_v63 = vrot.slane %v684_v53, 1  ;;  %360 = vst [vmem:[#allocation2 + $0x60] sm:$0xf] %v359_v58  ;;  %v302_v1 = vsel %vm2615_vm4, %v143_v39, %v301_v61 }
  0x19   :  { %363 = vst [vmem:[#allocation2 + $0x64] sm:$0x1] %v362_v59  ;;  %v204_v2 = vrot.slane %v202_v20, 7  ;;  %v631_v3 = vor.u32 %v630_v57, %v626_v48  ;;  %303 = vst [vmem:[#allocation2 + $0x8] sm:$0xf] %v302_v1  ;;  %v156_v7 = vrot.slane %v154_v25, 7 }
  0x1a   :  { %v308_v4 = vsel %vm2627_vm5, %v144_v60, %v307_v62  ;;  %v352_v5 = vld [vmem:[#allocation2 + $0x58] sm:$0xf]  ;;  %v355_v6 = vld [vmem:[#allocation2 + $0x5c] sm:$0x1]  ;;  %v218_v8 = vshrl.u32 %v2621_v31, 16  ;;  %v687_v9 = vor.u32 %v686_v63, %v682_v52  ;;  %v221_v14 = vshll.u32 %v2621_v31, 16 }
  0x1b   :  { %309 = vst [vmem:[#allocation2 + $0xc] sm:$0x1] %v308_v4  ;;  %v207_v10 = vor.u32 %v205_v21, %v204_v2  ;;  %v208_v11 = vrot.slane %v204_v2, 4  ;;  %v316_v12 = vld [vmem:[#allocation2 + $0x18] sm:$0xf]  ;;  %849 = vrot.lane.b32.xlu0 %v825_v54, %s2477_s26  ;;  %v159_v15 = vor.u32 %v157_v26, %v156_v7  ;;  %v160_v16 = vrot.slane %v156_v7, 4 }
  0x1c   :  { %v319_v13 = vld [vmem:[#allocation2 + $0x1c] sm:$0x1]  ;;  %v220_v17 = vrot.slane %v218_v8, 7  ;;  %v162_v18 = vshrl.u32 %v2623_v32, 16  ;;  %753 = vrot.lane.b32.xlu1 %v687_v9, %s2478_s27  ;;  %v364_v21 = vld [vmem:[#allocation2 + $0x68] sm:$0xf] }
  0x1d   :  { %v353_v19 = vsel %vm2615_vm4, %v207_v10, %v352_v5  ;;  %v356_v20 = vsel %vm2627_vm5, %v208_v11, %v355_v6  ;;  %v317_v24 = vsel %vm2615_vm4, %v159_v15, %v316_v12  ;;  %v320_v25 = vsel %vm2627_vm5, %v160_v16, %v319_v13  ;;  %v367_v27 = vld [vmem:[#allocation2 + $0x6c] sm:$0x1]  ;;  %s2479_s28 = smov 48   ;;  %v322_v47 = vld [vmem:[#allocation2 + $0x20] sm:$0xf]  ;;  %v2403_v48 = vld [vmem:[%s3497_s1 + $0x38] sm:$0xff]  }
  0x1e   :  { %v449_v23 = vld [vmem:[#allocation2 + $0x10] sm:$0xf]  ;;  %354 = vst [vmem:[#allocation2 + $0x58] sm:$0xf] %v353_v19  ;;  %357 = vst [vmem:[#allocation2 + $0x5c] sm:$0x1] %v356_v20  ;;  %v223_v26 = vor.u32 %v221_v14, %v220_v17  ;;  %1992 = vmatpush1.bf16.msra.mxu0 %v2403_v48  ;;  %2312 = vmatpush1.bf16.msra.mxu1 %v2403_v48 }
  0x1f   :  { %v165_v28 = vshll.u32 %v2623_v32, 16  ;;  %v2158_v29 = vcombine.low %v449_v23, %v449_v23  ;;  %318 = vst [vmem:[#allocation2 + $0x18] sm:$0xf] %v317_v24  ;;  %321 = vst [vmem:[#allocation2 + $0x1c] sm:$0x1] %v320_v25  ;;  %v224_v30 = vrot.slane %v220_v17, 4  ;;  %737 = vrot.lane.b32.xlu0 %v631_v3, %s2478_s27  ;;  %1993 = vmatprep.subr.bf16.mxu0 %v2476_v0 }
  0x20   :  { %v2658_v31 = vrot.slane %v162_v18, 7  ;;  %v2661_v33 = vld [vmem:[#allocation2 + $0x14] sm:$0x1]  ;;  %v457_v34 = vld [vmem:[#allocation2 + $0x60] sm:$0xf]  ;;  %v365_v35 = vsel %vm2615_vm4, %v223_v26, %v364_v21  ;;  %2304 = vmatprep.subr.bf16.mxu1 %v2476_v0  ;;  %v2407_v13 = vld [vmem:[%s3497_s1 + $0x28] sm:$0xff]  }
  0x21   :  { %915 = vrot.lane.b32.xlu1 %v2158_v29, %s2479_s28  ;;  %v2166_v36 = vcombine.low %v457_v34, %v457_v34  ;;  %v448_v37 = vld [vmem:[#allocation2 + $0x8] sm:$0xf]  ;;  %366 = vst [vmem:[#allocation2 + $0x68] sm:$0xf] %v365_v35  ;;  %v368_v39 = vsel %vm2627_vm5, %v224_v30, %v367_v27  ;;  %v2671_v44 = vld [vmem:[#allocation2 + $0x64] sm:$0x1]  ;;  %v2677_v50 = vcombine.low %v449_v23, %v2661_v33 }
  0x22   :  { %v433_v32 = vld [vmem:[#allocation2 + $0x8] sm:$0xe]  ;;  %v2668_v40 = vld [vmem:[#allocation2 + $0xc] sm:$0x1]  ;;  %v2157_v41 = vcombine.low %v448_v37, %v448_v37  ;;  %369 = vst [vmem:[#allocation2 + $0x6c] sm:$0x1] %v368_v39  ;;  %v167_v43 = vor.u32 %v165_v28, %v2658_v31  ;;  %v2688_v56 = vcombine.low %v457_v34, %v2671_v44 }
  0x23   :  { %v401_v38 = vld [vmem:[#allocation2 + $0x8] sm:$0xf]  ;;  %v417_v42 = vld [vmem:[#allocation2 + $0xc] sm:$0x1]  ;;  %v2173_v51 = vcombine.low %v448_v37, %v2668_v40  ;;  %v2406_v55 = vld [vmem:[%s3497_s1 + $0x30] sm:$0xff]   ;;  %v1003_v6 = vshll.u32 %v2677_v50, 16 }
  0x24   :  { %v2142_v45 = vcombine.low %v433_v32, %v417_v42  ;;  %v2126_v46 = vcombine.low %v401_v38, %v417_v42  ;;  %913 = vrot.lane.b32.xlu0 %v2157_v41, %s2479_s28  ;;  %v323_v62 = vsel %vm2615_vm4, %v167_v43, %v322_v47  ;;  %1994 = vmatpush1.bf16.msra.mxu0 %v2406_v55  ;;  %v1001_v16 = vshrl.u32 %v2677_v50, 16  ;;  %v480_v24 = vld [vmem:[#allocation2 + $0x8] sm:$0xe]  ;;  %v2409_v25 = vld [vmem:[%s3497_s1 + $0x20] sm:$0xff]   ;;  %v68_v26 = vld [vmem:[%s3496_s0 + $0x58] sm:$0xff]  ;;  %s2480_s12 = smov 64  }
  0x25   :  { %931 = vrot.lane.b32.xlu1 %v2166_v36, %s2479_s28  ;;  %v456_v52 = vld [vmem:[#allocation2 + $0x58] sm:$0xf]  ;;  %v2682_v53 = vld [vmem:[#allocation2 + $0x5c] sm:$0x1]  ;;  %324 = vst [vmem:[#allocation2 + $0x20] sm:$0xf] %v323_v62  ;;  %1995 = vmatprep.subr.bf16.mxu0 %v2476_v0  ;;  %v2189_v34 = vcombine.low %v480_v24, %v2668_v40  ;;  %v2298_v37 = vpack.c.bf16 %v68_v26, %v68_v26 }
  0x26   :  { %v818_v54 = vrot.slane %v2142_v45, 1  ;;  %v2165_v57 = vcombine.low %v456_v52, %v456_v52  ;;  %v2181_v58 = vcombine.low %v456_v52, %v2682_v53  ;;  %v409_v59 = vld [vmem:[#allocation2 + $0x58] sm:$0xf]  ;;  %v425_v60 = vld [vmem:[#allocation2 + $0x5c] sm:$0x1]  ;;  %v633_v2 = vshrl.u32 %v2126_v46, 16  ;;  %2313 = vmatpush1.bf16.msra.mxu1 %v2406_v55 }
  0x27   :  { %v441_v61 = vld [vmem:[#allocation2 + $0x58] sm:$0xe]  ;;  %v2134_v63 = vcombine.low %v409_v59, %v425_v60  ;;  %v635_v3 = vshll.u32 %v2126_v46, 16  ;;  %v994_v4 = vshrl.u32 %v2173_v51, 16  ;;  %v996_v5 = vshll.u32 %v2173_v51, 16  ;;  %2305 = vmatprep.subr.bf16.mxu1 %v2476_v0  ;;  %v61_v45 = vld [vmem:[%s3496_s0 + $0x20] sm:$0xff] }
  0x28   :  { %v2150_v1 = vcombine.low %v441_v61, %v425_v60  ;;  %929 = vrot.lane.b32.xlu0 %v2165_v57, %s2479_s28  ;;  %v1052_v7 = vshll.u32 %v2181_v58, 16  ;;  %v1005_v17 = vrot.slane %v1003_v6, 1  ;;  %v1059_v18 = vshll.u32 %v2688_v56, 16  ;;  %1996 = vmatpush1.bf16.msra.mxu0 %v2407_v13  ;;  %v481_v35 = vld [vmem:[#allocation2 + $0x10] sm:$0xe]  ;;  %v2412_v46 = vld [vmem:[%s3497_s1 + $0x18] sm:$0xff]  }
  0x29   :  { %835 = vrot.lane.b32.xlu1 %v818_v54, %s2477_s26  ;;  %v637_v9 = vrot.slane %v635_v3, 1  ;;  %v689_v10 = vshrl.u32 %v2134_v63, 16  ;;  %v691_v11 = vshll.u32 %v2134_v63, 16  ;;  %v998_v12 = vrot.slane %v996_v5, 1  ;;  %1997 = vmatprep.subr.bf16.mxu0 %v2476_v0  ;;  %v488_v36 = vld [vmem:[#allocation2 + $0x58] sm:$0xe] }
  0x2a   :  { %v826_v8 = vrot.slane %v2150_v1, 1  ;;  %v1050_v21 = vshrl.u32 %v2181_v58, 16  ;;  %v1054_v23 = vrot.slane %v1052_v7, 1  ;;  %2314 = vmatpush1.bf16.msra.mxu1 %v2407_v13  ;;  %v1057_v27 = vshrl.u32 %v2688_v56, 16  ;;  %v2725_v40 = vld [vmem:[#allocation2 + $0x14] sm:$0x1] }
  0x2b   :  { %v638_v14 = vor.u32 %v637_v9, %v633_v2  ;;  %v693_v15 = vrot.slane %v691_v11, 1  ;;  %v999_v20 = vor.u32 %v998_v12, %v994_v4  ;;  %2306 = vmatprep.subr.bf16.mxu1 %v2476_v0  ;;  %v1006_v28 = vor.u32 %v1005_v17, %v1001_v16  ;;  %v489_v42 = vld [vmem:[#allocation2 + $0x60] sm:$0xe]  ;;  %v2733_v47 = vld [vmem:[#allocation2 + $0x10] sm:$0xf]  ;;  %s2481_s21 = smov 80  }
  0x2c   :  { %v1055_v29 = vor.u32 %v1054_v23, %v1050_v21  ;;  %v1061_v30 = vrot.slane %v1059_v18, 1  ;;  %1998 = vmatpush1.bf16.msra.mxu0 %v2409_v25  ;;  %v1185_v38 = vrot.slane %v2189_v34, 1  ;;  %v2190_v39 = vcombine.low %v481_v35, %v2661_v33  ;;  %v325_v48 = vld [vmem:[#allocation2 + $0x24] sm:$0x1]  ;;  %v2742_v51 = vld [vmem:[#allocation2 + $0x1c] sm:$0x1] }
  0x2d   :  { %851 = vrot.lane.b32.xlu1 %v826_v8, %s2477_s26  ;;  %739 = vrot.lane.b32.xlu0 %v638_v14, %s2478_s27  ;;  %v694_v19 = vor.u32 %v693_v15, %v689_v10  ;;  %v2197_v41 = vcombine.low %v488_v36, %v2682_v53  ;;  %v226_v43 = vshrl.u32 %v2298_v37, 16  ;;  %v69_v33 = vld [vmem:[%s3496_s0 + $0x60] sm:$0xff]  ;;  %v2740_v50 = vcombine.low %v2733_v47, %v2725_v40  ;;  %v2417_v53 = vld [vmem:[%s3497_s1 + $0x10] sm:$0xff]   ;;  %v2755_v59 = vld [vmem:[#allocation2 + $0x18] sm:$0xf]  ;;  %s2482_s29 = smov 96  }
  0x2e   :  { %1999 = vmatprep.subr.bf16.mxu0 %v2476_v0  ;;  %2315 = vmatpush1.bf16.msra.mxu1 %v2409_v25  ;;  %v1062_v32 = vor.u32 %v1061_v30, %v1057_v27  ;;  %v2744_v52 = vld [vmem:[#allocation2 + $0x64] sm:$0x1]  ;;  %v1186_v54 = vrot.slane %v2190_v39, 1  ;;  %v2198_v56 = vcombine.low %v489_v42, %v2671_v44  ;;  %v2752_v57 = vld [vmem:[#allocation2 + $0x60] sm:$0xf]  ;;  %v168_v58 = vrot.slane %v2658_v31, 4 }
  0x2f   :  { %2307 = vmatprep.subr.bf16.mxu1 %v2476_v0  ;;  %v1193_v55 = vrot.slane %v2197_v41, 1  ;;  %v2757_v60 = vld [vmem:[#allocation2 + $0x6c] sm:$0x1]  ;;  %v228_v61 = vrot.slane %v226_v43, 7  ;;  %v229_v62 = vshll.u32 %v2298_v37, 16  ;;  %v2291_v63 = vpack.c.bf16 %v61_v45, %v61_v45  ;;  %v2428_v37 = vld [vmem:[%s3497_s1] sm:$0xff]  }
  0x30   :  { %2000 = vmatpush1.bf16.msra.mxu0 %v2412_v46  ;;  %v2763_v1 = vcombine.low %v2755_v59, %v2742_v51  ;;  %v2767_v44 = vcombine.low %v2752_v57, %v2744_v52  ;;  %v2769_v31 = vld [vmem:[#allocation2 + $0x68] sm:$0xf]  ;;  %v326_v2 = vsel %vm2627_vm5, %v168_v58, %v325_v48  ;;  %v370_v3 = vld [vmem:[#allocation2 + $0x70] sm:$0xf]  ;;  %v373_v4 = vld [vmem:[#allocation2 + $0x74] sm:$0x1]  ;;  %v2299_v5 = vpack.c.bf16 %v69_v33, %v69_v33 }
  0x31   :  { %755 = vrot.lane.b32.xlu1 %v694_v19, %s2478_s27  ;;  %1105 = vrot.lane.b32.xlu0 %v999_v20, %s2480_s12  ;;  %v1364_v6 = vshll.u32 %v2740_v50, 16  ;;  %327 = vst [vmem:[#allocation2 + $0x24] sm:$0x1] %v326_v2  ;;  %v231_v7 = vor.u32 %v229_v62, %v228_v61  ;;  %v232_v8 = vrot.slane %v228_v61, 4  ;;  %v2424_v9 = vld [vmem:[%s3497_s1 + $0x8] sm:$0xff]   ;;  %v1194_v10 = vrot.slane %v2198_v56, 1 }
  0x32   :  { %2316 = vmatpush1.bf16.msra.mxu1 %v2412_v46  ;;  %2001 = vmatprep.subr.bf16.mxu0 %v2476_v0  ;;  %v2205_v11 = vcombine.low %v2733_v47, %v2733_v47  ;;  %v2783_v12 = vcombine.low %v2769_v31, %v2757_v60  ;;  %v402_v13 = vld [vmem:[#allocation2 + $0x10] sm:$0xf]  ;;  %v1362_v14 = vshrl.u32 %v2740_v50, 16  ;;  %v2786_v15 = vld [vmem:[#allocation2 + $0x14] sm:$0x1]  ;;  %v170_v18 = vshrl.u32 %v2291_v63, 16 }
  0x33   :  { %2308 = vmatprep.subr.bf16.mxu1 %v2476_v0  ;;  %v371_v16 = vsel %vm2615_vm4, %v231_v7, %v370_v3  ;;  %v374_v17 = vsel %vm2627_vm5, %v232_v8, %v373_v4  ;;  %v1371_v19 = vshll.u32 %v2763_v1, 16  ;;  %v1420_v20 = vshll.u32 %v2767_v44, 16  ;;  %v403_v21 = vld [vmem:[#allocation2 + $0x18] sm:$0xf]  ;;  %v2796_v23 = vld [vmem:[#allocation2 + $0x1c] sm:$0x1] }
  0x34   :  { %2002 = vmatpush1.bf16.msra.mxu0 %v2417_v53  ;;  %v410_v24 = vld [vmem:[#allocation2 + $0x60] sm:$0xf]  ;;  %v2798_v25 = vld [vmem:[#allocation2 + $0x64] sm:$0x1]  ;;  %372 = vst [vmem:[#allocation2 + $0x70] sm:$0xf] %v371_v16  ;;  %v2127_v39 = vcombine.low %v402_v13, %v2786_v15  ;;  %v2214_v43 = vcombine.low %v2769_v31, %v2769_v31 }
  0x35   :  { %1107 = vrot.lane.b32.xlu1 %v1006_v28, %s2480_s12  ;;  %1121 = vrot.lane.b32.xlu0 %v1055_v29, %s2480_s12  ;;  %375 = vst [vmem:[#allocation2 + $0x74] sm:$0x1] %v374_v17  ;;  %v173_v26 = vshll.u32 %v2291_v63, 16  ;;  %v234_v27 = vshrl.u32 %v2299_v5, 16  ;;  %v2213_v28 = vcombine.low %v2752_v57, %v2752_v57  ;;  %v1366_v29 = vrot.slane %v1364_v6, 1  ;;  %v62_v62 = vld [vmem:[%s3496_s0 + $0x28] sm:$0xff] }
  0x36   :  { %2317 = vmatpush1.bf16.msra.mxu1 %v2417_v53  ;;  %2003 = vmatprep.subr.bf16.mxu0 %v2476_v0  ;;  %v172_v30 = vrot.slane %v170_v18, 7  ;;  %v328_v34 = vld [vmem:[#allocation2 + $0x28] sm:$0xf]  ;;  %v331_v35 = vld [vmem:[#allocation2 + $0x2c] sm:$0x1]  ;;  %v237_v36 = vshll.u32 %v2299_v5, 16  ;;  %v2135_v61 = vcombine.low %v410_v24, %v2798_v25  ;;  %v2292_v4 = vpack.c.bf16 %v62_v62, %v62_v62 }
  0x37   :  { %2309 = vmatprep.subr.bf16.mxu1 %v2476_v0  ;;  %v236_v41 = vrot.slane %v234_v27, 7  ;;  %v376_v42 = vld [vmem:[#allocation2 + $0x78] sm:$0xf]  ;;  %v1418_v45 = vshrl.u32 %v2767_v44, 16  ;;  %v1373_v48 = vrot.slane %v1371_v19, 1  ;;  %v1427_v33 = vshll.u32 %v2783_v12, 16 }
  0x38   :  { %2004 = vmatpush1.bf16.msra.mxu0 %v2424_v9  ;;  %v175_v46 = vor.u32 %v173_v26, %v172_v30  ;;  %v176_v47 = vrot.slane %v172_v30, 4  ;;  %v411_v50 = vld [vmem:[#allocation2 + $0x68] sm:$0xf]  ;;  %v2817_v53 = vld [vmem:[#allocation2 + $0x6c] sm:$0x1]  ;;  %v1367_v57 = vor.u32 %v1366_v29, %v1362_v14  ;;  %v1422_v58 = vrot.slane %v1420_v20, 1 }
  0x39   :  { %1123 = vrot.lane.b32.xlu1 %v1062_v32, %s2480_s12  ;;  %1201 = vrot.lane.b32.xlu0 %v1185_v38, %s2481_s21  ;;  %v2206_v32 = vcombine.low %v2755_v59, %v2755_v59  ;;  %v1369_v38 = vshrl.u32 %v2763_v1, 16  ;;  %v379_v56 = vld [vmem:[#allocation2 + $0x7c] sm:$0x1]  ;;  %v2128_v59 = vcombine.low %v403_v21, %v2796_v23  ;;  %v642_v63 = vshll.u32 %v2127_v39, 16  ;;  %s2483_s5 = smov 112  }
  0x3a   :  { %2318 = vmatpush1.bf16.msra.mxu1 %v2424_v9  ;;  %2005 = vmatprep.subr.bf16.mxu0 %v2476_v0  ;;  %v329_v1 = vsel %vm2615_vm4, %v175_v46, %v328_v34  ;;  %v332_v44 = vsel %vm2627_vm5, %v176_v47, %v331_v35  ;;  %v1425_v3 = vshrl.u32 %v2783_v12, 16  ;;  %v1429_v6 = vrot.slane %v1427_v33, 1  ;;  %v2429_v12 = vld [vmem:[%s3497_s1 + $0x40] sm:$0xff]   ;;  %v434_v24 = vld [vmem:[#allocation2 + $0x10] sm:$0xe] }
  0x3b   :  { %2310 = vmatprep.subr.bf16.mxu1 %v2476_v0  ;;  %330 = vst [vmem:[#allocation2 + $0x28] sm:$0xf] %v329_v1  ;;  %333 = vst [vmem:[#allocation2 + $0x2c] sm:$0x1] %v332_v44  ;;  %v1374_v5 = vor.u32 %v1373_v48, %v1369_v38  ;;  %v640_v7 = vshrl.u32 %v2127_v39, 16  ;;  %v2136_v8 = vcombine.low %v411_v50, %v2817_v53  ;;  %v698_v13 = vshll.u32 %v2135_v61, 16 }
  0x3c   :  { %2006 = vmatpush1.bf16.msra.mxu0 %v2428_v37  ;;  %v1423_v9 = vor.u32 %v1422_v58, %v1418_v45  ;;  %v1430_v14 = vor.u32 %v1429_v6, %v1425_v3  ;;  %v696_v16 = vshrl.u32 %v2135_v61, 16  ;;  %v178_v17 = vshrl.u32 %v2292_v4, 16  ;;  %v443_v39 = vld [vmem:[#allocation2 + $0x68] sm:$0xe]  ;;  %v334_v47 = vld [vmem:[#allocation2 + $0x30] sm:$0xf] }
  0x3d   :  { %1203 = vrot.lane.b32.xlu1 %v1186_v54, %s2481_s21  ;;  %1217 = vrot.lane.b32.xlu0 %v1193_v55, %s2481_s21  ;;  %v239_v54 = vor.u32 %v237_v36, %v236_v41  ;;  %v240_v55 = vrot.slane %v236_v41, 4  ;;  %v700_v20 = vrot.slane %v698_v13, 1  ;;  %v705_v21 = vshll.u32 %v2136_v8, 16  ;;  %v435_v36 = vld [vmem:[#allocation2 + $0x18] sm:$0xe]  ;;  %v71_v13 = vld [vmem:[%s3496_s0 + $0x70] sm:$0xff] }
  0x3e   :  { %2021 = vmatprep.subr.bf16.mxu0 %v2476_v0  ;;  %2319 = vmatpush1.bf16.msra.mxu1 %v2428_v37  ;;  %v703_v26 = vshrl.u32 %v2136_v8, 16  ;;  %v180_v27 = vrot.slane %v178_v17, 7  ;;  %v2143_v35 = vcombine.low %v434_v24, %v2786_v15  ;;  %v442_v37 = vld [vmem:[#allocation2 + $0x60] sm:$0xe]  ;;  %v2144_v38 = vcombine.low %v435_v36, %v2796_v23  ;;  %v2852_v41 = vld [vmem:[#allocation2 + $0x1c] sm:$0x1] }
  0x3f   :  { %v377_v31 = vsel %vm2615_vm4, %v239_v54, %v376_v42  ;;  %v380_v2 = vsel %vm2627_vm5, %v240_v55, %v379_v56  ;;  %2311 = vmatprep.subr.bf16.mxu1 %v2476_v0  ;;  %v647_v0 = vshrl.u32 %v2128_v59, 16  ;;  %v701_v30 = vor.u32 %v700_v20, %v696_v16  ;;  %v337_v48 = vld [vmem:[#allocation2 + $0x34] sm:$0x1]  ;;  %v450_v50 = vld [vmem:[#allocation2 + $0x18] sm:$0xf] }
  0x40   :  { %378 = vst [vmem:[#allocation2 + $0x78] sm:$0xf] %v377_v31  ;;  %381 = vst [vmem:[#allocation2 + $0x7c] sm:$0x1] %v380_v2  ;;  %2022 = vmatpush2.bf16.msra.mxu0 %v2429_v12  ;;  %v707_v34 = vrot.slane %v705_v21, 1  ;;  %v819_v46 = vrot.slane %v2143_v35, 1  ;;  %v2151_v15 = vcombine.low %v442_v37, %v2798_v25  ;;  %v2175_v54 = vcombine.low %v450_v50, %v2852_v41 }
  0x41   :  { %1219 = vrot.lane.b32.xlu1 %v1194_v10, %s2481_s21  ;;  %1281 = vrot.lane.b32.xlu0 %v2205_v11, %s2482_s29  ;;  %v644_v10 = vrot.slane %v642_v63, 1  ;;  %v649_v11 = vshll.u32 %v2128_v59, 16  ;;  %v63_v23 = vld [vmem:[%s3496_s0 + $0x30] sm:$0xff]  ;;  %v2861_v55 = vld [vmem:[#allocation2 + $0x6c] sm:$0x1]  ;;  %v820_v56 = vrot.slane %v2144_v38, 1  ;;  %v2301_v24 = vpack.c.bf16 %v71_v13, %v71_v13 }
  0x42   :  { %2320 = vmatpush2.bf16.msra.mxu1 %v2429_v12  ;;  %v708_v45 = vor.u32 %v707_v34, %v703_v26  ;;  %v458_v58 = vld [vmem:[#allocation2 + $0x68] sm:$0xf]  ;;  %v827_v61 = vrot.slane %v2151_v15, 1  ;;  %v2293_v63 = vpack.c.bf16 %v63_v23, %v63_v23  ;;  %v2870_v1 = vld [vmem:[#allocation2 + $0x24] sm:$0x1]  ;;  %v1010_v2 = vshll.u32 %v2175_v54, 16 }
  0x43   :  { %v645_v18 = vor.u32 %v644_v10, %v640_v7  ;;  %v651_v19 = vrot.slane %v649_v11, 1  ;;  %v451_v31 = vld [vmem:[#allocation2 + $0x20] sm:$0xf]  ;;  %v385_v7 = vld [vmem:[#allocation2 + $0x84] sm:$0x1]  ;;  %vm1569_vm6 = vcmask 130048  }
  0x44   :  { %v382_v6 = vld [vmem:[#allocation2 + $0x80] sm:$0xf]  ;;  %v2176_v8 = vcombine.low %v451_v31, %v2870_v1  ;;  %v186_v11 = vshrl.u32 %v2293_v63, 16  ;;  %v2879_v12 = vld [vmem:[#allocation2 + $0x74] sm:$0x1]  ;;  %v189_v16 = vshll.u32 %v2293_v63, 16  ;;  %v2160_v26 = vcombine.low %v451_v31, %v451_v31 }
  0x45   :  { %1283 = vrot.lane.b32.xlu1 %v2206_v32, %s2482_s29  ;;  %1297 = vrot.lane.b32.xlu0 %v2213_v28, %s2482_s29  ;;  %v181_v28 = vshll.u32 %v2292_v4, 16  ;;  %v652_v29 = vor.u32 %v651_v19, %v647_v0  ;;  %v70_v32 = vld [vmem:[%s3496_s0 + $0x68] sm:$0xff]  ;;  %v1012_v17 = vrot.slane %v1010_v2, 1  ;;  %v459_v21 = vld [vmem:[#allocation2 + $0x70] sm:$0xf]  ;;  %vm1618_vm7 = vcmask 261120  }
  0x46   :  { %v2300_v33 = vpack.c.bf16 %v70_v32, %v70_v32  ;;  %v188_v20 = vrot.slane %v186_v11, 7  ;;  %v343_v35 = vld [vmem:[#allocation2 + $0x3c] sm:$0x1]  ;;  %v529_v23 = vld [vmem:[#allocation2 + $0x10] sm:$0xe]  ;;  %vm1651_vm8 = vcmask 392192  }
  0x47   :  { %v183_v42 = vor.u32 %v181_v28, %v180_v27  ;;  %v2184_v28 = vcombine.low %v459_v21, %v2879_v12  ;;  %v2237_v31 = vcombine.low %v529_v23, %v2725_v40  ;;  %v483_v2 = vld [vmem:[#allocation2 + $0x20] sm:$0xe]  ;;  %v491_v13 = vld [vmem:[#allocation2 + $0x70] sm:$0xe]  ;;  %vm1684_vm9 = vcmask 523264  }
  0x48   :  { %v242_v62 = vshrl.u32 %v2300_v33, 16  ;;  %v245_v44 = vshll.u32 %v2300_v33, 16  ;;  %v191_v34 = vor.u32 %v189_v16, %v188_v20  ;;  %v192_v38 = vrot.slane %v188_v20, 4  ;;  %v539_v20 = vld [vmem:[#allocation2 + $0x70] sm:$0xe] }
  0x49   :  { %1299 = vrot.lane.b32.xlu1 %v2214_v43, %s2482_s29  ;;  %1473 = vrot.lane.b32.xlu0 %v1367_v57, %s2483_s5  ;;  %v184_v43 = vrot.slane %v180_v27, 4  ;;  %v2152_v57 = vcombine.low %v443_v39, %v2817_v53  ;;  %v335_v59 = vsel %vm2615_vm4, %v183_v42, %v334_v47  ;;  %v2183_v53 = vcombine.low %v458_v58, %v2861_v55 }
  0x4a   :  { %336 = vst [vmem:[#allocation2 + $0x30] sm:$0xf] %v335_v59  ;;  %v244_v3 = vrot.slane %v242_v62, 7  ;;  %v2167_v27 = vcombine.low %v458_v58, %v458_v58  ;;  %v1015_v39 = vshrl.u32 %v2176_v8, 16  ;;  %v1073_v47 = vshll.u32 %v2184_v28, 16 }
  0x4b   :  { %v338_v25 = vsel %vm2627_vm5, %v184_v43, %v337_v48  ;;  %v828_v4 = vrot.slane %v2152_v57, 1  ;;  %v1066_v0 = vshll.u32 %v2183_v53, 16  ;;  %v1064_v37 = vshrl.u32 %v2183_v53, 16  ;;  %v482_v48 = vld [vmem:[#allocation2 + $0x18] sm:$0xe] }
  0x4c   :  { %339 = vst [vmem:[#allocation2 + $0x34] sm:$0x1] %v338_v25  ;;  %v248_v10 = vrot.slane %v244_v3, 4  ;;  %v250_v43 = vshrl.u32 %v2301_v24, 16  ;;  %v344_v33 = vsel %vm2627_vm5, %v192_v38, %v343_v35  ;;  %v1071_v57 = vshrl.u32 %v2184_v28, 16 }
  0x4d   :  { %1475 = vrot.lane.b32.xlu1 %v1374_v5, %s2483_s5  ;;  %1489 = vrot.lane.b32.xlu0 %v1423_v9, %s2483_s5  ;;  %v2159_v5 = vcombine.low %v450_v50, %v450_v50  ;;  %v247_v9 = vor.u32 %v245_v44, %v244_v3  ;;  %v1068_v32 = vrot.slane %v1066_v0, 1  ;;  %345 = vst [vmem:[#allocation2 + $0x3c] sm:$0x1] %v344_v33  ;;  %v391_v25 = vld [vmem:[#allocation2 + $0x8c] sm:$0x1]  ;;  %v1075_v63 = vrot.slane %v1073_v47, 1 }
  0x4e   :  { %v386_v19 = vsel %vm2627_vm5, %v248_v10, %v385_v7  ;;  %v252_v50 = vrot.slane %v250_v43, 7  ;;  %v2191_v58 = vcombine.low %v482_v48, %v2852_v41  ;;  %v490_v53 = vld [vmem:[#allocation2 + $0x68] sm:$0xe]  ;;  %v537_v7 = vld [vmem:[#allocation2 + $0x60] sm:$0xe]  ;;  %v2192_v10 = vcombine.low %v483_v2, %v2870_v1 }
  0x4f   :  { %387 = vst [vmem:[#allocation2 + $0x84] sm:$0x1] %v386_v19  ;;  %v1076_v40 = vor.u32 %v1075_v63, %v1071_v57  ;;  %v1553_v11 = vrot.slane %v2237_v31, 1  ;;  %v531_v0 = vld [vmem:[#allocation2 + $0x20] sm:$0xe]  ;;  %vm1717_vm10 = vcmask 654336  }
  0x50   :  { %v256_v44 = vrot.slane %v252_v50, 4  ;;  %v1188_v1 = vrot.slane %v2192_v10, 1  ;;  %v2916_v28 = vld [vmem:[#allocation2 + $0x24] sm:$0x1]  ;;  %v524_v47 = vld [vmem:[#allocation2 + $0x7c] sm:$0x1] }
  0x51   :  { %1491 = vrot.lane.b32.xlu1 %v1430_v14, %s2483_s5  ;;  %741 = vrot.lane.b32.xlu0 %v645_v18, %s2478_s27  ;;  %v1008_v14 = vshrl.u32 %v2175_v54, 16  ;;  %v383_v18 = vsel %vm2615_vm4, %v247_v9, %v382_v6  ;;  %v388_v54 = vld [vmem:[#allocation2 + $0x88] sm:$0xf]  ;;  %v515_v6 = vld [vmem:[#allocation2 + $0x24] sm:$0x1]  ;;  %v1187_v9 = vrot.slane %v2191_v58, 1 }
  0x52   :  { %384 = vst [vmem:[#allocation2 + $0x80] sm:$0xf] %v383_v18  ;;  %v392_v41 = vsel %vm2627_vm5, %v256_v44, %v391_v25  ;;  %v2949_v44 = vld [vmem:[#allocation2 + $0x74] sm:$0x1]  ;;  %vm1750_vm11 = vcmask 785408   ;;  %vm1783_vm12 = vcmask 916480  }
  0x53   :  { %v1013_v36 = vor.u32 %v1012_v17, %v1008_v14  ;;  %393 = vst [vmem:[#allocation2 + $0x8c] sm:$0x1] %v392_v41  ;;  %v499_v14 = vld [vmem:[#allocation2 + $0x20] sm:$0xf]  ;;  %v2245_v17 = vcombine.low %v537_v7, %v2744_v52  ;;  %v64_v52 = vld [vmem:[%s3496_s0 + $0x38] sm:$0xff]  ;;  %vm2088_vm13 = vcmask 23552  }
  0x54   :  { %v2907_v16 = vcombine.low %v499_v14, %v515_v6  ;;  %v2207_v38 = vcombine.low %v499_v14, %v499_v14  ;;  %v2294_v43 = vpack.c.bf16 %v64_v52, %v64_v52  ;;  %v346_v14 = vld [vmem:[#allocation2 + $0x40] sm:$0xf] }
  0x55   :  { %743 = vrot.lane.b32.xlu1 %v652_v29, %s2478_s27  ;;  %757 = vrot.lane.b32.xlu0 %v701_v30, %s2478_s27  ;;  %v1017_v29 = vshll.u32 %v2176_v8, 16  ;;  %v340_v30 = vld [vmem:[#allocation2 + $0x38] sm:$0xf]  ;;  %v538_v8 = vld [vmem:[#allocation2 + $0x68] sm:$0xe] }
  0x56   :  { %v341_v42 = vsel %vm2615_vm4, %v191_v34, %v340_v30  ;;  %v2246_v18 = vcombine.low %v538_v8, %v2757_v60  ;;  %v516_v60 = vld [vmem:[#allocation2 + $0x2c] sm:$0x1]  ;;  %v532_v34 = vld [vmem:[#allocation2 + $0x28] sm:$0xe]  ;;  %v1376_v23 = vshrl.u32 %v2907_v16, 16  ;;  %v194_v31 = vshrl.u32 %v2294_v43, 16 }
  0x57   :  { %v1019_v15 = vrot.slane %v1017_v29, 1  ;;  %342 = vst [vmem:[#allocation2 + $0x38] sm:$0xf] %v341_v42  ;;  %v2240_v33 = vcombine.low %v532_v34, %v516_v60  ;;  %v2958_v8 = vld [vmem:[#allocation2 + $0x2c] sm:$0x1] }
  0x59   :  { %759 = vrot.lane.b32.xlu1 %v708_v45, %s2478_s27  ;;  %837 = vrot.lane.b32.xlu0 %v819_v46, %s2477_s26  ;;  %v253_v45 = vshll.u32 %v2301_v24, 16  ;;  %v2168_v46 = vcombine.low %v459_v21, %v459_v21  ;;  %v1020_v62 = vor.u32 %v1019_v15, %v1015_v39  ;;  %v404_v21 = vld [vmem:[#allocation2 + $0x20] sm:$0xf]  ;;  %v2200_v24 = vcombine.low %v491_v13, %v2879_v12  ;;  %v500_v39 = vld [vmem:[#allocation2 + $0x28] sm:$0xf] }
  0x5a   :  { %v1561_v12 = vrot.slane %v2245_v17, 1  ;;  %v2930_v42 = vcombine.low %v404_v21, %v2916_v28  ;;  %v2936_v15 = vcombine.low %v500_v39, %v516_v60  ;;  %v2208_v2 = vcombine.low %v500_v39, %v500_v39  ;;  %v3125_v22 = vld [vmem:[#allocation2 + $0x8c] sm:$0x1] }
  0x5b   :  { %v255_v59 = vor.u32 %v253_v45, %v252_v50  ;;  %v1196_v45 = vrot.slane %v2200_v24, 1  ;;  %v540_v50 = vld [vmem:[#allocation2 + $0x78] sm:$0xe]  ;;  %v394_v24 = vld [vmem:[#allocation2 + $0x90] sm:$0xf] }
  0x5c   :  { %v1385_v41 = vshll.u32 %v2936_v15, 16 }
  0x5d   :  { %839 = vrot.lane.b32.xlu1 %v820_v56, %s2477_s26  ;;  %853 = vrot.lane.b32.xlu0 %v827_v61, %s2477_s26  ;;  %v1069_v56 = vor.u32 %v1068_v32, %v1064_v37  ;;  %v530_v61 = vld [vmem:[#allocation2 + $0x18] sm:$0xe]  ;;  %v389_v3 = vsel %vm2615_vm4, %v255_v59, %v388_v54  ;;  %v1562_v37 = vrot.slane %v2246_v18, 1 }
  0x5e   :  { %390 = vst [vmem:[#allocation2 + $0x88] sm:$0xf] %v389_v3  ;;  %v72_v32 = vld [vmem:[%s3496_s0 + $0x78] sm:$0xff]  ;;  %v2248_v3 = vcombine.low %v540_v50, %v524_v47  ;;  %v1387_v21 = vrot.slane %v1385_v41, 1 }
  0x5f   :  { %v2263_v48 = vcombine.low %v1561_v12, %v1562_v37  ;;  %v508_v59 = vld [vmem:[#allocation2 + $0x78] sm:$0xf] }
  0x61   :  { %855 = vrot.lane.b32.xlu1 %v828_v4, %s2477_s26  ;;  %917 = vrot.lane.b32.xlu0 %v2159_v5, %s2479_s28  ;;  %v2238_v4 = vcombine.low %v530_v61, %v2742_v51  ;;  %v2199_v5 = vcombine.low %v490_v53, %v2861_v55  ;;  %v523_v51 = vld [vmem:[#allocation2 + $0x74] sm:$0x1]  ;;  %v412_v61 = vld [vmem:[#allocation2 + $0x70] sm:$0xf]  ;;  %v656_v53 = vshll.u32 %v2930_v42, 16 }
  0x62   :  { %v2247_v35 = vcombine.low %v539_v20, %v523_v51  ;;  %2283 = vmatprep.mubr.msk.bf16.mxu1 %vm1569_vm6, %v2263_v48  ;;  %v2137_v13 = vcombine.low %v412_v61, %v2949_v44  ;;  %v2965_v20 = vrot.slane %v2248_v3, 1 }
  0x63   :  { %v1554_v55 = vrot.slane %v2238_v4, 1  ;;  %v1195_v19 = vrot.slane %v2199_v5, 1  ;;  %v2954_v4 = vld [vmem:[#allocation2 + $0x28] sm:$0xf]  ;;  %v197_v5 = vshll.u32 %v2294_v43, 16  ;;  %v658_v12 = vrot.slane %v656_v53, 1 }
  0x64   :  { %v2942_v58 = vrot.slane %v2247_v35, 1 }
  0x65   :  { %919 = vrot.lane.b32.xlu1 %v2160_v26, %s2479_s28  ;;  %933 = vrot.lane.b32.xlu0 %v2167_v27, %s2479_s28  ;;  %v2239_v26 = vcombine.low %v531_v0, %v515_v6  ;;  %v2914_v27 = vld [vmem:[#allocation2 + $0x70] sm:$0xf]  ;;  %v2255_v29 = vcombine.low %v1553_v11, %v1554_v55  ;;  %v2956_v6 = vrot.slane %v2240_v33, 1  ;;  %v1383_v11 = vshrl.u32 %v2936_v15, 16  ;;  %v349_v0 = vld [vmem:[#allocation2 + $0x44] sm:$0x1] }
  0x66   :  { %v2922_v30 = vcombine.low %v2914_v27, %v523_v51  ;;  %v2215_v57 = vcombine.low %v2914_v27, %v2914_v27  ;;  %v2969_v27 = vld [vmem:[#allocation2 + $0x78] sm:$0xf]  ;;  %v712_v15 = vshll.u32 %v2137_v13, 16  ;;  %v710_v33 = vshrl.u32 %v2137_v13, 16 }
  0x67   :  { %2279 = vmatprep.mubr.msk.bf16.mxu0 %vm1569_vm6, %v2255_v29  ;;  %v2971_v29 = vld [vmem:[#allocation2 + $0x7c] sm:$0x1]  ;;  %v1388_v43 = vor.u32 %v1387_v21, %v1383_v11  ;;  %v452_v11 = vld [vmem:[#allocation2 + $0x28] sm:$0xf] }
  0x68   :  { %v1434_v54 = vshll.u32 %v2922_v30, 16  ;;  %v1432_v63 = vshrl.u32 %v2922_v30, 16 }
  0x69   :  { %935 = vrot.lane.b32.xlu1 %v2168_v46, %s2479_s28  ;;  %1109 = vrot.lane.b32.xlu0 %v1013_v36, %s2480_s12  ;;  %v1378_v36 = vshll.u32 %v2907_v16, 16  ;;  %v2934_v46 = vrot.slane %v2239_v26, 1  ;;  %v397_v26 = vld [vmem:[#allocation2 + $0x94] sm:$0x1] }
  0x6a   :  { %v1436_v7 = vrot.slane %v1434_v54, 1  ;;  %v714_v54 = vrot.slane %v712_v15, 1 }
  0x6b   :  { %v1380_v25 = vrot.slane %v1378_v36, 1  ;;  %v654_v36 = vshrl.u32 %v2930_v42, 16  ;;  %v2138_v42 = vcombine.low %v2969_v27, %v2971_v29 }
  0x6c   :  { %v1437_v35 = vor.u32 %v1436_v7, %v1432_v63  ;;  %v715_v61 = vor.u32 %v714_v54, %v710_v33  ;;  %v3002_v7 = vld [vmem:[#allocation2 + $0x2c] sm:$0x1] }
  0x6d   :  { %1111 = vrot.lane.b32.xlu1 %v1020_v62, %s2480_s12  ;;  %1125 = vrot.lane.b32.xlu0 %v1069_v56, %s2480_s12  ;;  %v2302_v56 = vpack.c.bf16 %v72_v32, %v72_v32  ;;  %v2945_v62 = vcombine.low %v508_v59, %v524_v47  ;;  %v1381_v10 = vor.u32 %v1380_v25, %v1376_v23 }
  0x6e   :  { %v659_v49 = vor.u32 %v658_v12, %v654_v36  ;;  %v2177_v13 = vcombine.low %v452_v11, %v3002_v7 }
  0x6f   :  { %v261_v16 = vshll.u32 %v2302_v56, 16  ;;  %v1441_v51 = vshll.u32 %v2945_v62, 16  ;;  %v1439_v37 = vshrl.u32 %v2945_v62, 16  ;;  %v717_v62 = vshrl.u32 %v2138_v42, 16 }
  0x70   :  { %v1024_v21 = vshll.u32 %v2177_v13, 16 }
  0x71   :  { %1127 = vrot.lane.b32.xlu1 %v1076_v40, %s2480_s12  ;;  %1205 = vrot.lane.b32.xlu0 %v1187_v9, %s2481_s21  ;;  %v196_v40 = vrot.slane %v194_v31, 7  ;;  %v258_v9 = vshrl.u32 %v2302_v56, 16  ;;  %v1443_v32 = vrot.slane %v1441_v51, 1  ;;  %v719_v56 = vshll.u32 %v2138_v42, 16  ;;  %v437_v31 = vld [vmem:[#allocation2 + $0x28] sm:$0xe] }
  0x72   :  { %v3016_v51 = vld [vmem:[#allocation2 + $0x34] sm:$0x1] }
  0x73   :  { %v199_v55 = vor.u32 %v197_v5, %v196_v40  ;;  %v200_v17 = vrot.slane %v196_v40, 4  ;;  %v260_v18 = vrot.slane %v258_v9, 7  ;;  %v1444_v50 = vor.u32 %v1443_v32, %v1439_v37  ;;  %v445_v9 = vld [vmem:[#allocation2 + $0x78] sm:$0xe] }
  0x74   :  { %v721_v63 = vrot.slane %v719_v56, 1 }
  0x75   :  { %1207 = vrot.lane.b32.xlu1 %v1188_v1, %s2481_s21  ;;  %1221 = vrot.lane.b32.xlu0 %v1195_v19, %s2481_s21  ;;  %v2216_v19 = vcombine.low %v508_v59, %v508_v59  ;;  %v2130_v1 = vcombine.low %v2954_v4, %v2958_v8  ;;  %v347_v52 = vsel %vm2615_vm4, %v199_v55, %v346_v14  ;;  %v264_v34 = vrot.slane %v260_v18, 4 }
  0x76   :  { %v350_v60 = vsel %vm2627_vm5, %v200_v17, %v349_v0  ;;  %v263_v30 = vor.u32 %v261_v16, %v260_v18  ;;  %348 = vst [vmem:[#allocation2 + $0x40] sm:$0xf] %v347_v52  ;;  %v722_v3 = vor.u32 %v721_v63, %v717_v62  ;;  %v3012_v16 = vld [vmem:[#allocation2 + $0x7c] sm:$0x1]  ;;  %v460_v17 = vld [vmem:[#allocation2 + $0x78] sm:$0xf] }
  0x77   :  { %351 = vst [vmem:[#allocation2 + $0x44] sm:$0x1] %v350_v60  ;;  %v398_v39 = vsel %vm2627_vm5, %v264_v34, %v397_v26  ;;  %v661_v48 = vshrl.u32 %v2130_v1, 16  ;;  %v453_v18 = vld [vmem:[#allocation2 + $0x30] sm:$0xf]  ;;  %v1022_v34 = vshrl.u32 %v2177_v13, 16  ;;  %v2169_v37 = vcombine.low %v460_v17, %v460_v17 }
  0x78   :  { %399 = vst [vmem:[#allocation2 + $0x94] sm:$0x1] %v398_v39  ;;  %v2178_v26 = vcombine.low %v453_v18, %v3016_v51  ;;  %v3026_v52 = vld [vmem:[#allocation2 + $0x84] sm:$0x1]  ;;  %v2162_v12 = vcombine.low %v453_v18, %v453_v18  ;;  %v485_v63 = vld [vmem:[#allocation2 + $0x30] sm:$0xe] }
  0x79   :  { %1223 = vrot.lane.b32.xlu1 %v1196_v45, %s2481_s21  ;;  %1285 = vrot.lane.b32.xlu0 %v2207_v38, %s2482_s29  ;;  %v395_v38 = vsel %vm2615_vm4, %v263_v30, %v394_v24  ;;  %v663_v45 = vshll.u32 %v2130_v1, 16  ;;  %v2161_v24 = vcombine.low %v452_v11, %v452_v11  ;;  %v461_v30 = vld [vmem:[#allocation2 + $0x80] sm:$0xf]  ;;  %v534_v11 = vld [vmem:[#allocation2 + $0x38] sm:$0xe] }
  0x7a   :  { %396 = vst [vmem:[#allocation2 + $0x90] sm:$0xf] %v395_v38  ;;  %v2186_v32 = vcombine.low %v461_v30, %v3026_v52  ;;  %v1031_v38 = vshll.u32 %v2178_v26, 16  ;;  %v493_v13 = vld [vmem:[#allocation2 + $0x80] sm:$0xe] }
  0x7b   :  { %v665_v23 = vrot.slane %v663_v45, 1  ;;  %v541_v18 = vld [vmem:[#allocation2 + $0x80] sm:$0xe] }
  0x7c   :  { %v1033_v33 = vrot.slane %v1031_v38, 1  ;;  %v3065_v38 = vld [vmem:[#allocation2 + $0x30] sm:$0xf] }
  0x7d   :  { %1287 = vrot.lane.b32.xlu1 %v2208_v2, %s2482_s29  ;;  %1301 = vrot.lane.b32.xlu0 %v2215_v57, %s2482_s29  ;;  %v436_v57 = vld [vmem:[#allocation2 + $0x20] sm:$0xe]  ;;  %v666_v25 = vor.u32 %v665_v23, %v661_v48  ;;  %v444_v2 = vld [vmem:[#allocation2 + $0x70] sm:$0xe]  ;;  %v1029_v48 = vshrl.u32 %v2178_v26, 16 }
  0x7e   :  { %v2145_v59 = vcombine.low %v436_v57, %v2916_v28  ;;  %v2146_v28 = vcombine.low %v437_v31, %v2958_v8  ;;  %v2153_v5 = vcombine.low %v444_v2, %v2949_v44  ;;  %v2154_v8 = vcombine.low %v445_v9, %v2971_v29  ;;  %v484_v23 = vld [vmem:[#allocation2 + $0x28] sm:$0xe]  ;;  %v492_v31 = vld [vmem:[#allocation2 + $0x78] sm:$0xe]  ;;  %v533_v9 = vld [vmem:[#allocation2 + $0x30] sm:$0xe] }
  0x7f   :  { %v2193_v57 = vcombine.low %v484_v23, %v3002_v7  ;;  %v2201_v7 = vcombine.low %v492_v31, %v3012_v16 }
  0x80   :  { %v821_v41 = vrot.slane %v2145_v59, 1  ;;  %v822_v14 = vrot.slane %v2146_v28, 1  ;;  %v829_v0 = vrot.slane %v2153_v5, 1  ;;  %v830_v1 = vrot.slane %v2154_v8, 1 }
  0x81   :  { %1303 = vrot.lane.b32.xlu1 %v2216_v19, %s2482_s29  ;;  %1477 = vrot.lane.b32.xlu0 %v1381_v10, %s2483_s5  ;;  %v2185_v19 = vcombine.low %v460_v17, %v3012_v16  ;;  %v1034_v59 = vor.u32 %v1033_v33, %v1029_v48  ;;  %v1189_v28 = vrot.slane %v2193_v57, 1  ;;  %v2194_v5 = vcombine.low %v485_v63, %v3016_v51  ;;  %v518_v17 = vld [vmem:[#allocation2 + $0x3c] sm:$0x1] }
  0x82   :  { %v2202_v16 = vcombine.low %v493_v13, %v3026_v52  ;;  %v3071_v52 = vld [vmem:[#allocation2 + $0x34] sm:$0x1] }
  0x83   :  { %v1080_v36 = vshll.u32 %v2185_v19, 16  ;;  %v1078_v15 = vshrl.u32 %v2185_v19, 16  ;;  %v501_v19 = vld [vmem:[#allocation2 + $0x30] sm:$0xf]  ;;  %v1190_v51 = vrot.slane %v2194_v5, 1 }
  0x84   :  { %v1198_v33 = vrot.slane %v2202_v16, 1  ;;  %v3089_v5 = vld [vmem:[#allocation2 + $0x38] sm:$0xf] }
  0x85   :  { %1479 = vrot.lane.b32.xlu1 %v1388_v43, %s2483_s5  ;;  %1493 = vrot.lane.b32.xlu0 %v1437_v35, %s2483_s5  ;;  %v1026_v35 = vrot.slane %v1024_v21, 1  ;;  %v1082_v42 = vrot.slane %v1080_v36, 1 }
  0x87   :  { %v1027_v45 = vor.u32 %v1026_v35, %v1022_v34  ;;  %v542_v34 = vld [vmem:[#allocation2 + $0x88] sm:$0xe] }
  0x89   :  { %1495 = vrot.lane.b32.xlu1 %v1444_v50, %s2483_s5  ;;  %745 = vrot.lane.b32.xlu0 %v659_v49, %s2478_s27  ;;  %v2996_v53 = vpop.permute.xlu0 %833  ;;  %v2170_v49 = vcombine.low %v461_v30, %v461_v30  ;;  %v1087_v50 = vshll.u32 %v2186_v32, 16  ;;  %v525_v30 = vld [vmem:[#allocation2 + $0x84] sm:$0x1] }
  0x8a   :  { %v2249_v35 = vcombine.low %v541_v18, %v525_v30 }
  0x8b   :  { %v1089_v62 = vrot.slane %v1087_v50, 1  ;;  %v2209_v50 = vcombine.low %v501_v19, %v501_v19 }
  0x8d   :  { %747 = vrot.lane.b32.xlu1 %v666_v25, %s2478_s27  ;;  %761 = vrot.lane.b32.xlu0 %v715_v61, %s2478_s27  ;;  %v3004_v40 = vpop.permute.xlu0 %849  ;;  %v1083_v25 = vor.u32 %v1082_v42, %v1078_v15  ;;  %v1085_v61 = vshrl.u32 %v2186_v32, 16  ;;  %v526_v32 = vld [vmem:[#allocation2 + $0x8c] sm:$0x1]  ;;  %v502_v15 = vld [vmem:[#allocation2 + $0x38] sm:$0xf] }
  0x8e   :  { %v3006_v10 = vpop.permute.xlu1 %753  ;;  %v2250_v48 = vcombine.low %v542_v34, %v526_v32  ;;  %v2226_v23 = vcombine.low %v502_v15, %v518_v17 }
  0x91   :  { %763 = vrot.lane.b32.xlu1 %v722_v3, %s2478_s27  ;;  %841 = vrot.lane.b32.xlu0 %v821_v41, %s2477_s26  ;;  %v3014_v44 = vpop.permute.xlu0 %737  ;;  %v1090_v41 = vor.u32 %v1089_v62, %v1085_v61  ;;  %v3077_v61 = vld [vmem:[#allocation2 + $0x80] sm:$0xf]  ;;  %v3079_v62 = vld [vmem:[#allocation2 + $0x84] sm:$0x1] }
  0x92   :  { %3505 = vst [vmem:[#allocation3_spill] sm:$0xff] %v3077_v61 }
  0x93   :  { %v3018_v55 = vpop.permute.xlu1 %915 }
  0x95   :  { %843 = vrot.lane.b32.xlu1 %v822_v14, %s2477_s26  ;;  %857 = vrot.lane.b32.xlu0 %v829_v0, %s2477_s26  ;;  %v517_v14 = vld [vmem:[#allocation2 + $0x34] sm:$0x1] }
  0x96   :  { %v3024_v29 = vpop.permute.xlu0 %913  ;;  %v2241_v21 = vcombine.low %v533_v9, %v517_v14  ;;  %v2225_v26 = vcombine.low %v501_v19, %v517_v14  ;;  %v3123_v14 = vld [vmem:[#allocation2 + $0x88] sm:$0xf] }
  0x97   :  { %v3028_v60 = vpop.permute.xlu1 %931 }
  0x98   :  { %v1392_v57 = vshll.u32 %v2225_v26, 16 }
  0x99   :  { %859 = vrot.lane.b32.xlu1 %v830_v1, %s2477_s26  ;;  %921 = vrot.lane.b32.xlu0 %v2161_v24, %s2479_s28  ;;  %v2242_v1 = vcombine.low %v534_v11, %v518_v17  ;;  %v1197_v24 = vrot.slane %v2201_v7, 1  ;;  %v3091_v7 = vld [vmem:[#allocation2 + $0x3c] sm:$0x1]  ;;  %v3095_v11 = vrot.slane %v2250_v48, 1  ;;  %v2210_v17 = vcombine.low %v502_v15, %v502_v15 }
  0x9a   :  { %v3033_v39 = vpop.permute.xlu0 %929  ;;  %v1394_v19 = vrot.slane %v1392_v57, 1  ;;  %v1397_v48 = vshrl.u32 %v2226_v23, 16 }
  0x9b   :  { %v3035_v43 = vpop.permute.xlu1 %835  ;;  %v3069_v42 = vrot.slane %v2242_v1, 1  ;;  %v3103_v1 = vcombine.low %v3089_v5, %v3091_v7 }
  0x9d   :  { %923 = vrot.lane.b32.xlu1 %v2162_v12, %s2479_s28  ;;  %937 = vrot.lane.b32.xlu0 %v2169_v37, %s2479_s28  ;;  %v509_v37 = vld [vmem:[#allocation2 + $0x80] sm:$0xf] }
  0x9e   :  { %v2217_v18 = vcombine.low %v509_v37, %v509_v37 }
  0x9f   :  { %v3039_v54 = vpop.permute.xlu1 %851  ;;  %v3041_v56 = vpop.permute.xlu0 %739 }
  0xa1   :  { %939 = vrot.lane.b32.xlu1 %v2170_v49, %s2479_s28  ;;  %1113 = vrot.lane.b32.xlu0 %v1027_v45, %s2480_s12  ;;  %v3067_v45 = vrot.slane %v2241_v21, 1  ;;  %v2233_v49 = vcombine.low %v509_v37, %v525_v30  ;;  %v1399_v21 = vshll.u32 %v2226_v23, 16  ;;  %v3131_v37 = vld [vmem:[#allocation2 + $0x30] sm:$0xe] }
  0xa3   :  { %v3046_v2 = vpop.permute.xlu1 %755  ;;  %v3048_v3 = vpop.permute.xlu0 %1105  ;;  %v1448_v13 = vshll.u32 %v2233_v49, 16  ;;  %v1446_v30 = vshrl.u32 %v2233_v49, 16  ;;  %v677_v49 = vshll.u32 %v3103_v1, 16 }
  0xa5   :  { %1115 = vrot.lane.b32.xlu1 %v1034_v59, %s2480_s12  ;;  %1129 = vrot.lane.b32.xlu0 %v1083_v25, %s2480_s12  ;;  %v3075_v59 = vrot.slane %v2249_v35, 1  ;;  %v1390_v25 = vshrl.u32 %v2225_v26, 16  ;;  %v1450_v34 = vrot.slane %v1448_v13, 1 }
  0xa7   :  { %v3054_v0 = vpop.permute.xlu1 %1107  ;;  %v3056_v8 = vpop.permute.xlu0 %1121  ;;  %v1395_v15 = vor.u32 %v1394_v19, %v1390_v25 }
  0xa9   :  { %1131 = vrot.lane.b32.xlu1 %v1090_v41, %s2480_s12  ;;  %1209 = vrot.lane.b32.xlu0 %v1189_v28, %s2481_s21  ;;  %v510_v41 = vld [vmem:[#allocation2 + $0x88] sm:$0xf]  ;;  %v3087_v28 = vcombine.low %v3065_v38, %v3071_v52 }
  0xaa   :  { %v3093_v9 = vcombine.low %v510_v41, %v526_v32  ;;  %v2218_v32 = vcombine.low %v510_v41, %v510_v41  ;;  %v2467_v41 = vld [vmem:[#allocation2] sm:$0xf] }
  0xab   :  { %v3061_v36 = vpop.permute.xlu1 %1123  ;;  %v3063_v12 = vpop.permute.xlu0 %1201  ;;  %v670_v26 = vshll.u32 %v3087_v28, 16  ;;  %v668_v25 = vshrl.u32 %v3087_v28, 16  ;;  %v1572_v19 = vsel %vm1569_vm6, %v2467_v41, %v3014_v44  ;;  %v2468_v44 = vld [vmem:[#allocation2 + $0x58] sm:$0xf] }
  0xac   :  { %v1455_v35 = vshll.u32 %v3093_v9, 16 }
  0xad   :  { %1211 = vrot.lane.b32.xlu1 %v1190_v51, %s2481_s21  ;;  %1225 = vrot.lane.b32.xlu0 %v1197_v24, %s2481_s21  ;;  %v3107_v51 = vcombine.low %v3077_v61, %v3079_v62  ;;  %v672_v23 = vrot.slane %v670_v26, 1  ;;  %v2140_v26 = vcombine.low %v3123_v14, %v3125_v22 }
  0xaf   :  { %v3081_v63 = vpop.permute.xlu1 %1203  ;;  %v3083_v31 = vpop.permute.xlu0 %1217  ;;  %v726_v13 = vshll.u32 %v3107_v51, 16  ;;  %v724_v28 = vshrl.u32 %v3107_v51, 16  ;;  %v2147_v51 = vcombine.low %v3131_v37, %v3071_v52 }
  0xb1   :  { %1227 = vrot.lane.b32.xlu1 %v1198_v33, %s2481_s21  ;;  %1289 = vrot.lane.b32.xlu0 %v2209_v50, %s2482_s29  ;;  %v1401_v33 = vrot.slane %v1399_v21, 1  ;;  %v2466_v50 = vld [vmem:[#allocation2 + $0x8] sm:$0xf]  ;;  %v1453_v21 = vshrl.u32 %v3093_v9, 16  ;;  %v1599_v9 = vsel %vm1569_vm6, %v2468_v44, %v3046_v2 }
  0xb2   :  { %v1575_v57 = vsel %vm1569_vm6, %v2466_v50, %v3041_v56  ;;  %v1451_v56 = vor.u32 %v1450_v34, %v1446_v30  ;;  %v1457_v50 = vrot.slane %v1455_v35, 1  ;;  %v675_v30 = vshrl.u32 %v3103_v1, 16 }
  0xb3   :  { %v3109_v24 = vpop.permute.xlu1 %1219  ;;  %v3111_v16 = vpop.permute.xlu0 %1281  ;;  %v1622_v47 = vsel %vm1618_vm7, %v1575_v57, %v3035_v43  ;;  %v1402_v61 = vor.u32 %v1401_v33, %v1397_v48  ;;  %v679_v34 = vrot.slane %v677_v49, 1  ;;  %v728_v35 = vrot.slane %v726_v13, 1  ;;  %v2469_v33 = vld [vmem:[#allocation2 + $0x50] sm:$0xf] }
  0xb4   :  { %v1620_v43 = vsel %vm1618_vm7, %v1572_v19, %v2996_v53  ;;  %v673_v48 = vor.u32 %v672_v23, %v668_v25  ;;  %v1596_v57 = vsel %vm1569_vm6, %v2469_v33, %v3006_v10  ;;  %v1655_v1 = vsel %vm1651_vm8, %v1622_v47, %v3018_v55 }
  0xb5   :  { %1291 = vrot.lane.b32.xlu1 %v2210_v17, %s2482_s29  ;;  %1305 = vrot.lane.b32.xlu0 %v2217_v18, %s2482_s29  ;;  %v1653_v2 = vsel %vm1651_vm8, %v1620_v43, %v3024_v29  ;;  %v1458_v49 = vor.u32 %v1457_v50, %v1453_v21  ;;  %v1638_v53 = vsel %vm1618_vm7, %v1599_v9, %v3039_v54  ;;  %v733_v10 = vshll.u32 %v2140_v26, 16  ;;  %v439_v50 = vld [vmem:[#allocation2 + $0x38] sm:$0xe]  ;;  %v3200_v43 = vld [vmem:[#allocation2 + $0x3c] sm:$0x1] }
  0xb6   :  { %v1686_v13 = vsel %vm1684_vm9, %v1653_v2, %v3048_v3  ;;  %v1688_v52 = vsel %vm1684_vm9, %v1655_v1, %v3054_v0  ;;  %v680_v55 = vor.u32 %v679_v34, %v675_v30  ;;  %v729_v37 = vor.u32 %v728_v35, %v724_v28  ;;  %v3216_v2 = vld [vmem:[#allocation2 + $0x44] sm:$0x1] }
  0xb7   :  { %v1284_v17 = vpop.permute.xlu1 %1283  ;;  %v1298_v18 = vpop.permute.xlu0 %1297  ;;  %v1719_v29 = vsel %vm1717_vm10, %v1686_v13, %v3063_v12  ;;  %v1721_v47 = vsel %vm1717_vm10, %v1688_v52, %v3081_v63  ;;  %v1636_v54 = vsel %vm1618_vm7, %v1596_v57, %v3004_v40  ;;  %v731_v23 = vshrl.u32 %v2140_v26, 16  ;;  %v3214_v57 = vld [vmem:[#allocation2 + $0x8c] sm:$0x1] }
  0xb8   :  { %v1752_v3 = vsel %vm1750_vm11, %v1719_v29, %v3111_v16  ;;  %v1754_v0 = vsel %vm1750_vm11, %v1721_v47, %v1284_v17  ;;  %v1669_v41 = vsel %vm1651_vm8, %v1636_v54, %v3033_v39  ;;  %v1671_v12 = vsel %vm1651_vm8, %v1638_v53, %v3028_v60  ;;  %v446_v39 = vld [vmem:[#allocation2 + $0x80] sm:$0xe]  ;;  %v462_v53 = vld [vmem:[#allocation2 + $0x88] sm:$0xf]  ;;  %v3226_v29 = vld [vmem:[#allocation2 + $0x94] sm:$0x1] }
  0xb9   :  { %1307 = vrot.lane.b32.xlu1 %v2218_v32, %s2482_s29  ;;  %1481 = vrot.lane.b32.xlu0 %v1395_v15, %s2483_s5  ;;  %v1702_v40 = vsel %vm1684_vm9, %v1669_v41, %v3056_v8  ;;  %v1704_v16 = vsel %vm1684_vm9, %v1671_v12, %v3061_v36  ;;  %v2155_v30 = vcombine.low %v446_v39, %v3079_v62  ;;  %v823_v34 = vrot.slane %v2147_v51, 1  ;;  %v463_v54 = vld [vmem:[#allocation2 + $0x90] sm:$0xf] }
  0xba   :  { %v1735_v60 = vsel %vm1717_vm10, %v1702_v40, %v3083_v31  ;;  %v1737_v21 = vsel %vm1717_vm10, %v1704_v16, %v3109_v24  ;;  %v3506_v31 = vcombine.low %v2934_v46, %v2956_v6  ;;  %v2148_v35 = vcombine.low %v439_v50, %v3091_v7  ;;  %v454_v46 = vld [vmem:[#allocation2 + $0x38] sm:$0xf] }
  0xbb   :  { %v1300_v32 = vpop.permute.xlu1 %1299  ;;  %v1474_v15 = vpop.permute.xlu0 %1473  ;;  %v1768_v28 = vsel %vm1750_vm11, %v1735_v60, %v1298_v18  ;;  %v2179_v6 = vcombine.low %v454_v46, %v3200_v43  ;;  %v831_v51 = vrot.slane %v2155_v30, 1 }
  0xbc   :  { %v1785_v63 = vsel %vm1783_vm12, %v1752_v3, %v1474_v15  ;;  %v1770_v8 = vsel %vm1750_vm11, %v1737_v21, %v1300_v32  ;;  %v447_v32 = vld [vmem:[#allocation2 + $0x88] sm:$0xe]  ;;  %v824_v7 = vrot.slane %v2148_v35, 1  ;;  %v486_v21 = vld [vmem:[#allocation2 + $0x38] sm:$0xe] }
  0xbd   :  { %1483 = vrot.lane.b32.xlu1 %v1402_v61, %s2483_s5  ;;  %1497 = vrot.lane.b32.xlu0 %v1451_v56, %s2483_s5  ;;  %v735_v56 = vrot.slane %v733_v10, 1  ;;  %v2156_v33 = vcombine.low %v447_v32, %v3125_v22  ;;  %v1038_v13 = vshll.u32 %v2179_v6, 16  ;;  %v2163_v10 = vcombine.low %v454_v46, %v454_v46 }
  0xbe   :  { %v1036_v3 = vshrl.u32 %v2179_v6, 16  ;;  %v495_v6 = vld [vmem:[#allocation2 + $0x90] sm:$0xe] }
  0xbf   :  { %v1476_v61 = vpop.permute.xlu1 %1475  ;;  %v1490_v25 = vpop.permute.xlu0 %1489  ;;  %v736_v18 = vor.u32 %v735_v56, %v731_v23  ;;  %v832_v52 = vrot.slane %v2156_v33, 1  ;;  %v2188_v23 = vcombine.low %v463_v54, %v3226_v29  ;;  %v503_v33 = vld [vmem:[#allocation2 + $0x40] sm:$0xf] }
  0xc0   :  { %v1787_v19 = vsel %vm1783_vm12, %v1754_v0, %v1476_v61  ;;  %v1801_v44 = vsel %vm1783_vm12, %v1768_v28, %v1490_v25  ;;  %v1040_v0 = vrot.slane %v1038_v13, 1  ;;  %v2171_v25 = vcombine.low %v462_v53, %v462_v53  ;;  %v3266_v13 = vld [vmem:[#allocation2 + $0x4c] sm:$0x1] }
  0xc1   :  { %v2254_v17 = vcombine.low %v1785_v63, %v1787_v19  ;;  %1499 = vrot.lane.b32.xlu1 %v1458_v49, %s2483_s5  ;;  %749 = vrot.lane.b32.xlu0 %v673_v48, %s2478_s27  ;;  %v3507_v48 = vcombine.low %v2942_v58, %v2965_v20  ;;  %v455_v58 = vld [vmem:[#allocation2 + $0x40] sm:$0xf]  ;;  %v2187_v20 = vcombine.low %v462_v53, %v3214_v57  ;;  %v1101_v56 = vshll.u32 %v2188_v23, 16 }
  0xc2   :  { %v2180_v22 = vcombine.low %v455_v58, %v3216_v2  ;;  %v2164_v61 = vcombine.low %v455_v58, %v455_v58  ;;  %v1041_v16 = vor.u32 %v1040_v0, %v1036_v3  ;;  %v2211_v0 = vcombine.low %v503_v33, %v503_v33 }
  0xc3   :  { %v1492_v26 = vpop.permute.xlu1 %1491  ;;  %2024 = vmatmul.mubr.bf16.vlgmr.msra.gmra.mxu0 %v2254_v17  ;;  %v3188_v36 = vpop.permute.xlu0 %741  ;;  %v1092_v19 = vshrl.u32 %v2187_v20, 16  ;;  %v2172_v17 = vcombine.low %v463_v54, %v463_v54  ;;  %v511_v54 = vld [vmem:[#allocation2 + $0x90] sm:$0xf] }
  0xc4   :  { %v1803_v9 = vsel %vm1783_vm12, %v1770_v8, %v1492_v26  ;;  %2280 = vmatprep.mubr.msk.bf16.mxu0 %vm1569_vm6, %v3506_v31  ;;  %v1045_v41 = vshll.u32 %v2180_v22, 16  ;;  %v1043_v39 = vshrl.u32 %v2180_v22, 16  ;;  %v2195_v8 = vcombine.low %v486_v21, %v3200_v43  ;;  %v487_v31 = vld [vmem:[#allocation2 + $0x40] sm:$0xe]  ;;  %v504_v22 = vld [vmem:[#allocation2 + $0x48] sm:$0xf] }
  0xc5   :  { %v2262_v24 = vcombine.low %v1801_v44, %v1803_v9  ;;  %751 = vrot.lane.b32.xlu1 %v680_v55, %s2478_s27  ;;  %765 = vrot.lane.b32.xlu0 %v729_v37, %s2478_s27  ;;  %v1094_v37 = vshll.u32 %v2187_v20, 16  ;;  %v1099_v26 = vshrl.u32 %v2188_v23, 16  ;;  %v1103_v44 = vrot.slane %v1101_v56, 1 }
  0xc6   :  { %v1047_v60 = vrot.slane %v1045_v41, 1  ;;  %v1191_v43 = vrot.slane %v2195_v8, 1  ;;  %v2196_v32 = vcombine.low %v487_v31, %v3216_v2  ;;  %v2204_v20 = vcombine.low %v495_v6, %v3226_v29 }
  0xc7   :  { %v3202_v15 = vpop.permute.xlu1 %743  ;;  %2056 = vmatmul.mubr.bf16.vlgmr.msra.gmra.mxu1 %v2262_v24  ;;  %v3204_v62 = vpop.permute.xlu0 %757  ;;  %v1096_v40 = vrot.slane %v1094_v37, 1  ;;  %v494_v24 = vld [vmem:[#allocation2 + $0x88] sm:$0xe]  ;;  %v1104_v35 = vor.u32 %v1103_v44, %v1099_v26  ;;  %v2228_v37 = vcombine.low %v504_v22, %v3266_v13  ;;  %v2219_v56 = vcombine.low %v511_v54, %v511_v54 }
  0xc8   :  { %2284 = vmatprep.mubr.msk.bf16.mxu1 %vm1569_vm6, %v3507_v48  ;;  %v1048_v9 = vor.u32 %v1047_v60, %v1043_v39  ;;  %v2203_v46 = vcombine.low %v494_v24, %v3214_v57  ;;  %v3256_v48 = vld [vmem:[#allocation2 + $0x44] sm:$0x1]  ;;  %v1192_v53 = vrot.slane %v2196_v32, 1  ;;  %v3268_v57 = vld [vmem:[#allocation2 + $0x94] sm:$0x1]  ;;  %v1200_v3 = vrot.slane %v2204_v20, 1 }
  0xc9   :  { %767 = vrot.lane.b32.xlu1 %v736_v18, %s2478_s27  ;;  %845 = vrot.lane.b32.xlu0 %v823_v34, %s2477_s26  ;;  %v1097_v30 = vor.u32 %v1096_v40, %v1092_v19  ;;  %v2227_v2 = vcombine.low %v503_v33, %v3256_v48  ;;  %v2235_v29 = vcombine.low %v511_v54, %v3268_v57  ;;  %v512_v19 = vld [vmem:[#allocation2 + $0x98] sm:$0xf]  ;;  %v2470_v20 = vld [vmem:[#allocation2 + $0x10] sm:$0xf] }
  0xca   :  { %v1199_v58 = vrot.slane %v2203_v46, 1  ;;  %v2212_v40 = vcombine.low %v504_v22, %v504_v22  ;;  %v2220_v44 = vcombine.low %v512_v19, %v512_v19  ;;  %v2471_v22 = vld [vmem:[#allocation2 + $0x18] sm:$0xf] }
  0xcb   :  { %v3218_v1 = vpop.permute.xlu1 %759  ;;  %v3220_v49 = vpop.permute.xlu0 %837  ;;  %v1404_v39 = vshrl.u32 %v2227_v2, 16  ;;  %v1462_v21 = vshll.u32 %v2235_v29, 16 }
  0xcd   :  { %847 = vrot.lane.b32.xlu1 %v824_v7, %s2477_s26  ;;  %861 = vrot.lane.b32.xlu0 %v831_v51, %s2477_s26 }
  0xcf   :  { %v3228_v47 = vpop.permute.xlu1 %839  ;;  %v3230_v55 = vpop.permute.xlu0 %853 }
  0xd1   :  { %863 = vrot.lane.b32.xlu1 %v832_v52, %s2477_s26  ;;  %925 = vrot.lane.b32.xlu0 %v2163_v10, %s2479_s28 }
  0xd3   :  { %v3235_v12 = vpop.permute.xlu1 %855  ;;  %v3237_v63 = vpop.permute.xlu0 %917 }
  0xd5   :  { %927 = vrot.lane.b32.xlu1 %v2164_v61, %s2479_s28  ;;  %941 = vrot.lane.b32.xlu0 %v2171_v25, %s2479_s28  ;;  %v3276_v61 = vld [vmem:[#allocation2 + $0x9c] sm:$0x1]  ;;  %v1406_v25 = vshll.u32 %v2227_v2, 16  ;;  %v1578_v2 = vsel %vm1569_vm6, %v2470_v20, %v3188_v36 }
  0xd6   :  { %v1624_v54 = vsel %vm1618_vm7, %v1578_v2, %v3220_v49 }
  0xd7   :  { %v3241_v50 = vpop.permute.xlu1 %919  ;;  %v3243_v28 = vpop.permute.xlu0 %933  ;;  %v1408_v60 = vrot.slane %v1406_v25, 1  ;;  %v1657_v25 = vsel %vm1651_vm8, %v1624_v54, %v3237_v63 }
  0xd9   :  { %943 = vrot.lane.b32.xlu1 %v2172_v17, %s2479_s28  ;;  %1117 = vrot.lane.b32.xlu0 %v1041_v16, %s2480_s12  ;;  %v2236_v16 = vcombine.low %v512_v19, %v3276_v61  ;;  %v1413_v17 = vshll.u32 %v2228_v37, 16  ;;  %v1409_v31 = vor.u32 %v1408_v60, %v1404_v39 }
  0xdb   :  { %v3248_v18 = vpop.permute.xlu1 %935  ;;  %v3250_v34 = vpop.permute.xlu0 %1109  ;;  %v1415_v24 = vrot.slane %v1413_v17, 1 }
  0xdc   :  { %v1690_v36 = vsel %vm1684_vm9, %v1657_v25, %v3250_v34  ;;  %v535_v25 = vld [vmem:[#allocation2 + $0x40] sm:$0xe] }
  0xdd   :  { %1119 = vrot.lane.b32.xlu1 %v1048_v9, %s2480_s12  ;;  %1133 = vrot.lane.b32.xlu0 %v1097_v30, %s2480_s12  ;;  %v1411_v9 = vshrl.u32 %v2228_v37, 16  ;;  %v1469_v30 = vshll.u32 %v2236_v16, 16  ;;  %v1581_v37 = vsel %vm1569_vm6, %v2471_v22, %v3202_v15 }
  0xdf   :  { %v3258_v7 = vpop.permute.xlu1 %1111  ;;  %v3260_v51 = vpop.permute.xlu0 %1125  ;;  %v1416_v6 = vor.u32 %v1415_v24, %v1411_v9 }
  0xe1   :  { %1135 = vrot.lane.b32.xlu1 %v1104_v35, %s2480_s12  ;;  %1213 = vrot.lane.b32.xlu0 %v1191_v43, %s2481_s21  ;;  %v1460_v35 = vshrl.u32 %v2235_v29, 16  ;;  %v1464_v43 = vrot.slane %v1462_v21, 1 }
  0xe3   :  { %v3270_v52 = vpop.permute.xlu1 %1127  ;;  %v1206_v10 = vpop.permute.xlu0 %1205  ;;  %v1465_v33 = vor.u32 %v1464_v43, %v1460_v35  ;;  %v3509_v43 = vcombine.low %v3075_v59, %v3095_v11  ;;  %v536_v59 = vld [vmem:[#allocation2 + $0x48] sm:$0xe] }
  0xe5   :  { %1215 = vrot.lane.b32.xlu1 %v1192_v53, %s2481_s21  ;;  %1229 = vrot.lane.b32.xlu0 %v1199_v58, %s2481_s21  ;;  %v1467_v53 = vshrl.u32 %v2236_v16, 16  ;;  %v1471_v58 = vrot.slane %v1469_v30, 1  ;;  %v2473_v16 = vld [vmem:[#allocation2 + $0x68] sm:$0xf] }
  0xe6   :  { %v1605_v63 = vsel %vm1569_vm6, %v2473_v16, %v3218_v1 }
  0xe7   :  { %v1208_v23 = vpop.permute.xlu1 %1207  ;;  %v3278_v41 = vpop.permute.xlu0 %1221  ;;  %v1472_v49 = vor.u32 %v1471_v58, %v1467_v53  ;;  %v1642_v17 = vsel %vm1618_vm7, %v1605_v63, %v3235_v12 }
  0xe8   :  { %v1675_v1 = vsel %vm1651_vm8, %v1642_v17, %v3248_v18  ;;  %v2474_v17 = vld [vmem:[#allocation2 + $0x20] sm:$0xf] }
  0xe9   :  { %1231 = vrot.lane.b32.xlu1 %v1200_v3, %s2481_s21  ;;  %1293 = vrot.lane.b32.xlu0 %v2211_v0, %s2482_s29  ;;  %v1626_v3 = vsel %vm1618_vm7, %v1581_v37, %v3228_v47  ;;  %v2472_v47 = vld [vmem:[#allocation2 + $0x60] sm:$0xf]  ;;  %v1708_v12 = vsel %vm1684_vm9, %v1675_v1, %v3270_v52  ;;  %v3508_v52 = vcombine.low %v3067_v45, %v3069_v42 }
  0xea   :  { %v1659_v19 = vsel %vm1651_vm8, %v1626_v3, %v3241_v50  ;;  %v1723_v50 = vsel %vm1717_vm10, %v1690_v36, %v1206_v10  ;;  %v2243_v36 = vcombine.low %v535_v25, %v3256_v48 }
  0xeb   :  { %v1224_v8 = vpop.permute.xlu1 %1223  ;;  %v1286_v26 = vpop.permute.xlu0 %1285  ;;  %v1692_v15 = vsel %vm1684_vm9, %v1659_v19, %v3258_v7 }
  0xec   :  { %v1725_v34 = vsel %vm1717_vm10, %v1692_v15, %v1208_v23  ;;  %v2244_v15 = vcombine.low %v536_v59, %v3266_v13  ;;  %v1559_v63 = vrot.slane %v2243_v36, 1 }
  0xed   :  { %1295 = vrot.lane.b32.xlu1 %v2212_v40, %s2482_s29  ;;  %1309 = vrot.lane.b32.xlu0 %v2219_v56, %s2482_s29  ;;  %v1602_v40 = vsel %vm1569_vm6, %v2472_v47, %v3204_v62  ;;  %v1756_v56 = vsel %vm1750_vm11, %v1723_v50, %v1286_v26  ;;  %v544_v47 = vld [vmem:[#allocation2 + $0x98] sm:$0xe] }
  0xee   :  { %v1640_v7 = vsel %vm1618_vm7, %v1602_v40, %v3230_v55  ;;  %v1560_v50 = vrot.slane %v2244_v15, 1 }
  0xef   :  { %v1288_v32 = vpop.permute.xlu1 %1287  ;;  %v1302_v46 = vpop.permute.xlu0 %1301  ;;  %v1673_v21 = vsel %vm1651_vm8, %v1640_v7, %v3243_v28  ;;  %v1741_v28 = vsel %vm1717_vm10, %v1708_v12, %v1224_v8  ;;  %v2252_v7 = vcombine.low %v544_v47, %v3276_v61  ;;  %v2475_v12 = vld [vmem:[#allocation2 + $0x70] sm:$0xf] }
  0xf0   :  { %v1758_v39 = vsel %vm1750_vm11, %v1725_v34, %v1288_v32  ;;  %v1706_v55 = vsel %vm1684_vm9, %v1673_v21, %v3260_v51 }
  0xf1   :  { %1311 = vrot.lane.b32.xlu1 %v2220_v44, %s2482_s29  ;;  %1485 = vrot.lane.b32.xlu0 %v1409_v31, %s2483_s5  ;;  %v1739_v44 = vsel %vm1717_vm10, %v1706_v55, %v3278_v41  ;;  %v1568_v55 = vrot.slane %v2252_v7, 1 }
  0xf2   :  { %v1772_v18 = vsel %vm1750_vm11, %v1739_v44, %v1302_v46 }
  0xf3   :  { %v1304_v0 = vpop.permute.xlu1 %1303  ;;  %v1478_v29 = vpop.permute.xlu0 %1477 }
  0xf4   :  { %v1789_v10 = vsel %vm1783_vm12, %v1756_v56, %v1478_v29  ;;  %v1774_v9 = vsel %vm1750_vm11, %v1741_v28, %v1304_v0 }
  0xf5   :  { %1487 = vrot.lane.b32.xlu1 %v1416_v6, %s2483_s5  ;;  %1501 = vrot.lane.b32.xlu0 %v1465_v33, %s2483_s5 }
  0xf7   :  { %v1480_v60 = vpop.permute.xlu1 %1479  ;;  %v1494_v62 = vpop.permute.xlu0 %1493 }
  0xf8   :  { %v1791_v23 = vsel %vm1783_vm12, %v1758_v39, %v1480_v60  ;;  %v1805_v51 = vsel %vm1783_vm12, %v1772_v18, %v1494_v62 }
  0xf9   :  { %v2256_v26 = vcombine.low %v1789_v10, %v1791_v23  ;;  %1503 = vrot.lane.b32.xlu1 %v1472_v49, %s2483_s5  ;;  %v543_v49 = vld [vmem:[#allocation2 + $0x90] sm:$0xe]  ;;  %v2261_v10 = vcombine.low %v1559_v63, %v1560_v50 }
  0xfa   :  { %v2251_v34 = vcombine.low %v543_v49, %v3268_v57 }
  0xfb   :  { %v1496_v30 = vpop.permute.xlu1 %1495  ;;  %2032 = vmatmul.mubr.bf16.gmra.mxu0 %v2256_v26  ;;  %v746_v31 = vpop.permute.xlu0 %745 }
  0xfc   :  { %v1807_v24 = vsel %vm1783_vm12, %v1774_v9, %v1496_v30  ;;  %2281 = vmatprep.mubr.msk.bf16.mxu0 %vm1569_vm6, %v3508_v52  ;;  %v1584_v56 = vsel %vm1569_vm6, %v2474_v17, %v746_v31  ;;  %v1567_v23 = vrot.slane %v2251_v34, 1 }
  0xfd   :  { %v2264_v35 = vcombine.low %v1805_v51, %v1807_v24 }
  0xff   :  { %v748_v41 = vpop.permute.xlu1 %747  ;;  %2064 = vmatmul.mubr.bf16.gmra.mxu1 %v2264_v35  ;;  %v762_v8 = vpop.permute.xlu0 %761 }
 0x100   :  { %2285 = vmatprep.mubr.msk.bf16.mxu1 %vm1569_vm6, %v3509_v43  ;;  %v1587_v39 = vsel %vm1569_vm6, %v2954_v4, %v748_v41  ;;  %v1608_v4 = vsel %vm1569_vm6, %v2475_v12, %v762_v8 }
 0x103   :  { %v764_v32 = vpop.permute.xlu1 %763  ;;  %v842_v46 = vpop.permute.xlu0 %841 }
 0x104   :  { %v1628_v48 = vsel %vm1618_vm7, %v1584_v56, %v842_v46  ;;  %v1611_v26 = vsel %vm1569_vm6, %v2969_v27, %v764_v32 }
 0x107   :  { %v844_v6 = vpop.permute.xlu1 %843  ;;  %v858_v33 = vpop.permute.xlu0 %857 }
 0x108   :  { %v1630_v13 = vsel %vm1618_vm7, %v1587_v39, %v844_v6  ;;  %v1644_v18 = vsel %vm1618_vm7, %v1608_v4, %v858_v33 }
 0x10b   :  { %v860_v53 = vpop.permute.xlu1 %859  ;;  %v922_v58 = vpop.permute.xlu0 %921 }
 0x10c   :  { %v1661_v21 = vsel %vm1651_vm8, %v1628_v48, %v922_v58  ;;  %v1646_v9 = vsel %vm1618_vm7, %v1611_v26, %v860_v53 }
 0x10f   :  { %v924_v20 = vpop.permute.xlu1 %923  ;;  %v938_v2 = vpop.permute.xlu0 %937 }
 0x110   :  { %v1663_v1 = vsel %vm1651_vm8, %v1630_v13, %v924_v20  ;;  %v1677_v52 = vsel %vm1651_vm8, %v1644_v18, %v938_v2 }
 0x113   :  { %v940_v45 = vpop.permute.xlu1 %939  ;;  %v1114_v42 = vpop.permute.xlu0 %1113 }
 0x114   :  { %v1694_v57 = vsel %vm1684_vm9, %v1661_v21, %v1114_v42  ;;  %v1679_v35 = vsel %vm1651_vm8, %v1646_v9, %v940_v45  ;;  %v2269_v42 = vcombine.low %v1567_v23, %v1568_v55  ;;  %v3510_v55 = vld [vmem:[#allocation3_spill] sm:$0xff] }
 0x117   :  { %v1116_v22 = vpop.permute.xlu1 %1115  ;;  %v1130_v37 = vpop.permute.xlu0 %1129 }
 0x118   :  { %v1696_v61 = vsel %vm1684_vm9, %v1663_v1, %v1116_v22  ;;  %v1710_v8 = vsel %vm1684_vm9, %v1677_v52, %v1130_v37 }
 0x11b   :  { %v1132_v54 = vpop.permute.xlu1 %1131  ;;  %v1210_v3 = vpop.permute.xlu0 %1209 }
 0x11c   :  { %v1727_v44 = vsel %vm1717_vm10, %v1694_v57, %v1210_v3  ;;  %v1712_v43 = vsel %vm1684_vm9, %v1679_v35, %v1132_v54 }
 0x11f   :  { %v1212_v0 = vpop.permute.xlu1 %1211  ;;  %v1226_v29 = vpop.permute.xlu0 %1225 }
 0x120   :  { %v1729_v28 = vsel %vm1717_vm10, %v1696_v61, %v1212_v0  ;;  %v1743_v46 = vsel %vm1717_vm10, %v1710_v8, %v1226_v29 }
 0x123   :  { %v1228_v11 = vpop.permute.xlu1 %1227  ;;  %v1290_v19 = vpop.permute.xlu0 %1289 }
 0x124   :  { %v1760_v30 = vsel %vm1750_vm11, %v1727_v44, %v1290_v19  ;;  %v1745_v6 = vsel %vm1717_vm10, %v1712_v43, %v1228_v11 }
 0x127   :  { %v1292_v40 = vpop.permute.xlu1 %1291  ;;  %v1306_v16 = vpop.permute.xlu0 %1305 }
 0x128   :  { %v1762_v31 = vsel %vm1750_vm11, %v1729_v28, %v1292_v40  ;;  %v1776_v33 = vsel %vm1750_vm11, %v1743_v46, %v1306_v16 }
 0x12b   :  { %v1308_v60 = vpop.permute.xlu1 %1307  ;;  %v1482_v62 = vpop.permute.xlu0 %1481 }
 0x12c   :  { %v1793_v27 = vsel %vm1783_vm12, %v1760_v30, %v1482_v62  ;;  %v1778_v53 = vsel %vm1750_vm11, %v1745_v6, %v1308_v60 }
 0x12f   :  { %v1484_v51 = vpop.permute.xlu1 %1483  ;;  %v1498_v24 = vpop.permute.xlu0 %1497 }
 0x130   :  { %v1795_v41 = vsel %vm1783_vm12, %v1762_v31, %v1484_v51  ;;  %v1809_v2 = vsel %vm1783_vm12, %v1776_v33, %v1498_v24 }
 0x131   :  { %v2258_v32 = vcombine.low %v1793_v27, %v1795_v41 }
 0x133   :  { %v1500_v58 = vpop.permute.xlu1 %1499  ;;  %2040 = vmatmul.mubr.bf16.gmra.mxu0 %v2258_v32  ;;  %v750_v20 = vpop.permute.xlu0 %749 }
 0x134   :  { %v1811_v45 = vsel %vm1783_vm12, %v1778_v53, %v1500_v58  ;;  %2282 = vmatprep.mubr.msk.bf16.mxu0 %vm1569_vm6, %v2261_v10  ;;  %v1590_v48 = vsel %vm1569_vm6, %v3065_v38, %v750_v20  ;;  %v3414_v58 = vld [vmem:[%s3498_s2] ss:$0 sm:$0xff] }
 0x135   :  { %v2266_v22 = vcombine.low %v1809_v2, %v1811_v45 }
 0x137   :  { %v752_v37 = vpop.permute.xlu1 %751  ;;  %2072 = vmatmul.mubr.bf16.gmra.mxu1 %v2266_v22  ;;  %v766_v54 = vpop.permute.xlu0 %765 }
 0x138   :  { %2286 = vmatprep.mubr.msk.bf16.mxu1 %vm1569_vm6, %v2269_v42  ;;  %v1593_v13 = vsel %vm1569_vm6, %v3089_v5, %v752_v37  ;;  %v1614_v38 = vsel %vm1569_vm6, %v3510_v55, %v766_v54 }
 0x13b   :  { %v768_v3 = vpop.permute.xlu1 %767  ;;  %v846_v0 = vpop.permute.xlu0 %845 }
 0x13c   :  { %v1632_v60 = vsel %vm1618_vm7, %v1590_v48, %v846_v0  ;;  %v1617_v5 = vsel %vm1569_vm6, %v3123_v14, %v768_v3 }
 0x13f   :  { %v848_v29 = vpop.permute.xlu1 %847  ;;  %v862_v25 = vpop.permute.xlu0 %861 }
 0x140   :  { %v1634_v62 = vsel %vm1618_vm7, %v1593_v13, %v848_v29  ;;  %v1648_v26 = vsel %vm1618_vm7, %v1614_v38, %v862_v25 }
 0x143   :  { %v864_v59 = vpop.permute.xlu1 %863  ;;  %v926_v11 = vpop.permute.xlu0 %925 }
 0x144   :  { %v1665_v10 = vsel %vm1651_vm8, %v1632_v60, %v926_v11  ;;  %v1650_v44 = vsel %vm1618_vm7, %v1617_v5, %v864_v59 }
 0x147   :  { %v928_v19 = vpop.permute.xlu1 %927  ;;  %v942_v36 = vpop.permute.xlu0 %941 }
 0x148   :  { %v1667_v57 = vsel %vm1651_vm8, %v1634_v62, %v928_v19  ;;  %v1681_v30 = vsel %vm1651_vm8, %v1648_v26, %v942_v36 }
 0x14b   :  { %v944_v15 = vpop.permute.xlu1 %943  ;;  %v1118_v49 = vpop.permute.xlu0 %1117 }
 0x14c   :  { %v1698_v61 = vsel %vm1684_vm9, %v1665_v10, %v1118_v49  ;;  %v1683_v31 = vsel %vm1651_vm8, %v1650_v44, %v944_v15 }
 0x14f   :  { %v1120_v47 = vpop.permute.xlu1 %1119  ;;  %v1134_v40 = vpop.permute.xlu0 %1133 }
 0x150   :  { %v1700_v23 = vsel %vm1684_vm9, %v1667_v57, %v1120_v47  ;;  %v1714_v24 = vsel %vm1684_vm9, %v1681_v30, %v1134_v40 }
 0x153   :  { %v1136_v16 = vpop.permute.xlu1 %1135  ;;  %v1214_v63 = vpop.permute.xlu0 %1213 }
 0x154   :  { %v1731_v12 = vsel %vm1717_vm10, %v1698_v61, %v1214_v63  ;;  %v1716_v52 = vsel %vm1684_vm9, %v1683_v31, %v1136_v16 }
 0x157   :  { %v1216_v50 = vpop.permute.xlu1 %1215  ;;  %v1230_v34 = vpop.permute.xlu0 %1229 }
 0x158   :  { %v1733_v4 = vsel %vm1717_vm10, %v1700_v23, %v1216_v50  ;;  %v1747_v41 = vsel %vm1717_vm10, %v1714_v24, %v1230_v34 }
 0x15b   :  { %v1232_v7 = vpop.permute.xlu1 %1231  ;;  %v1294_v17 = vpop.permute.xlu0 %1293 }
 0x15c   :  { %v1764_v28 = vsel %vm1750_vm11, %v1731_v12, %v1294_v17  ;;  %v1749_v8 = vsel %vm1717_vm10, %v1716_v52, %v1232_v7 }
 0x15f   :  { %v1296_v56 = vpop.permute.xlu1 %1295  ;;  %v1310_v39 = vpop.permute.xlu0 %1309 }
 0x160   :  { %v1766_v18 = vsel %vm1750_vm11, %v1733_v4, %v1296_v56  ;;  %v1780_v43 = vsel %vm1750_vm11, %v1747_v41, %v1310_v39 }
 0x163   :  { %v1312_v21 = vpop.permute.xlu1 %1311  ;;  %v1486_v1 = vpop.permute.xlu0 %1485 }
 0x164   :  { %v1797_v51 = vsel %vm1783_vm12, %v1764_v28, %v1486_v1  ;;  %v1782_v32 = vsel %vm1750_vm11, %v1749_v8, %v1312_v21 }
 0x167   :  { %v1488_v9 = vpop.permute.xlu1 %1487  ;;  %v1502_v27 = vpop.permute.xlu0 %1501 }
 0x168   :  { %v1799_v14 = vsel %vm1783_vm12, %v1766_v18, %v1488_v9  ;;  %v1813_v6 = vsel %vm1783_vm12, %v1780_v43, %v1502_v27 }
 0x169   :  { %v2260_v35 = vcombine.low %v1797_v51, %v1799_v14 }
 0x16b   :  { %v1504_v46 = vpop.permute.xlu1 %1503  ;;  %2048 = vmatmul.mubr.bf16.gmra.mxu0 %v2260_v35 }
 0x16c   :  { %v1815_v33 = vsel %vm1783_vm12, %v1782_v32, %v1504_v46 }
 0x16d   :  { %v2268_v53 = vcombine.low %v1813_v6, %v1815_v33 }
 0x16f   :  { %2080 = vmatmul.mubr.bf16.gmra.mxu1 %v2268_v53 }
 0x183   :  { %v2025_v20 = vpop.f32.mrf.mxu0 }
 0x184   :  { %v2026_v2 = vadd.f32 %v3414_v58, %v2025_v20 }
 0x185   :  { %v2027_v45 = vpop.f32.mrf.mxu0 }
 0x186   :  { %2089 = vst.msk [vmem:[%s3499_s3] sm:$0xff] %vm2088_vm13, %v2026_v2 }
 0x187   :  { %v2028_v42 = vpop.f32.mrf.mxu0  ;;  %v2057_v22 = vpop.f32.mrf.mxu1 }
 0x188   :  { %v2029_v37 = vadd.f32 %v3414_v58, %v2028_v42  ;;  %v2058_v54 = vadd.f32 %v3414_v58, %v2057_v22 }
 0x189   :  { %v2030_v3 = vpop.f32.mrf.mxu0  ;;  %v2059_v0 = vpop.f32.mrf.mxu1 }
 0x18a   :  { %2090 = vst.msk [vmem:[%s3499_s3 + $0x8] sm:$0xff] %vm2088_vm13, %v2029_v37  ;;  %2097 = vst.msk [vmem:[%s3499_s3 + $0x40] sm:$0xff] %vm2088_vm13, %v2058_v54 }
 0x18b   :  { %v2060_v29 = vpop.f32.mrf.mxu1 }
 0x18c   :  { %v2061_v25 = vadd.f32 %v3414_v58, %v2060_v29 }
 0x18d   :  { %v2062_v59 = vpop.f32.mrf.mxu1 }
 0x18e   :  { %2098 = vst.msk [vmem:[%s3499_s3 + $0x48] sm:$0xff] %vm2088_vm13, %v2061_v25 }
 0x1bb   :  { %v2033_v11 = vpop.f32.mrf.mxu0 }
 0x1bc   :  { %v2034_v19 = vadd.f32 %v3414_v58, %v2033_v11 }
 0x1bd   :  { %v2035_v36 = vpop.f32.mrf.mxu0 }
 0x1be   :  { %2091 = vst.msk [vmem:[%s3499_s3 + $0x10] sm:$0xff] %vm2088_vm13, %v2034_v19 }
 0x1bf   :  { %v2036_v15 = vpop.f32.mrf.mxu0  ;;  %v2065_v49 = vpop.f32.mrf.mxu1 }
 0x1c0   :  { %v2037_v47 = vadd.f32 %v3414_v58, %v2036_v15  ;;  %v2066_v40 = vadd.f32 %v3414_v58, %v2065_v49 }
 0x1c1   :  { %v2038_v16 = vpop.f32.mrf.mxu0  ;;  %v2067_v63 = vpop.f32.mrf.mxu1 }
 0x1c2   :  { %2092 = vst.msk [vmem:[%s3499_s3 + $0x18] sm:$0xff] %vm2088_vm13, %v2037_v47  ;;  %2099 = vst.msk [vmem:[%s3499_s3 + $0x50] sm:$0xff] %vm2088_vm13, %v2066_v40 }
 0x1c3   :  { %v2068_v50 = vpop.f32.mrf.mxu1 }
 0x1c4   :  { %v2069_v34 = vadd.f32 %v3414_v58, %v2068_v50 }
 0x1c5   :  { %v2070_v7 = vpop.f32.mrf.mxu1 }
 0x1c6   :  { %2100 = vst.msk [vmem:[%s3499_s3 + $0x58] sm:$0xff] %vm2088_vm13, %v2069_v34 }
 0x1f3   :  { %v2041_v17 = vpop.f32.mrf.mxu0 }
 0x1f4   :  { %v2042_v56 = vadd.f32 %v3414_v58, %v2041_v17 }
 0x1f5   :  { %v2043_v39 = vpop.f32.mrf.mxu0 }
 0x1f6   :  { %2093 = vst.msk [vmem:[%s3499_s3 + $0x20] sm:$0xff] %vm2088_vm13, %v2042_v56 }
 0x1f7   :  { %v2044_v48 = vpop.f32.mrf.mxu0  ;;  %v2073_v13 = vpop.f32.mrf.mxu1 }
 0x1f8   :  { %v2045_v60 = vadd.f32 %v3414_v58, %v2044_v48  ;;  %v2074_v62 = vadd.f32 %v3414_v58, %v2073_v13 }
 0x1f9   :  { %v2046_v21 = vpop.f32.mrf.mxu0  ;;  %v2075_v1 = vpop.f32.mrf.mxu1 }
 0x1fa   :  { %2094 = vst.msk [vmem:[%s3499_s3 + $0x28] sm:$0xff] %vm2088_vm13, %v2045_v60  ;;  %2101 = vst.msk [vmem:[%s3499_s3 + $0x60] sm:$0xff] %vm2088_vm13, %v2074_v62 }
 0x1fb   :  { %v2076_v10 = vpop.f32.mrf.mxu1 }
 0x1fc   :  { %v2077_v57 = vadd.f32 %v3414_v58, %v2076_v10 }
 0x1fd   :  { %v2078_v61 = vpop.f32.mrf.mxu1 }
 0x1fe   :  { %2102 = vst.msk [vmem:[%s3499_s3 + $0x68] sm:$0xff] %vm2088_vm13, %v2077_v57 }
 0x22b   :  { %v2049_v23 = vpop.f32.mrf.mxu0 }
 0x22c   :  { %v2050_v55 = vadd.f32 %v3414_v58, %v2049_v23 }
 0x22d   :  { %v2051_v38 = vpop.f32.mrf.mxu0 }
 0x22e   :  { %2095 = vst.msk [vmem:[%s3499_s3 + $0x30] sm:$0xff] %vm2088_vm13, %v2050_v55 }
 0x22f   :  { %v2052_v5 = vpop.f32.mrf.mxu0  ;;  %v2081_v12 = vpop.f32.mrf.mxu1 }
 0x230   :  { %v2053_v4 = vadd.f32 %v3414_v58, %v2052_v5  ;;  %v2082_v26 = vadd.f32 %v3414_v58, %v2081_v12 }
 0x231   :  { %v2054_v44 = vpop.f32.mrf.mxu0  ;;  %v2083_v28 = vpop.f32.mrf.mxu1 }
 0x232   :  { %2096 = vst.msk [vmem:[%s3499_s3 + $0x38] sm:$0xff] %vm2088_vm13, %v2053_v4  ;;  %2103 = vst.msk [vmem:[%s3499_s3 + $0x70] sm:$0xff] %vm2088_vm13, %v2082_v26 }
 0x233   :  { %v2084_v18 = vpop.f32.mrf.mxu1 }
 0x234   :  { %v2085_v9 = vadd.f32 %v3414_v58, %v2084_v18 }
 0x235   :  { %v2086_v30 = vpop.f32.mrf.mxu1 }
 0x236   :  { %2104 = vst.msk [vmem:[%s3499_s3 + $0x78] sm:$0xff] %vm2088_vm13, %v2085_v9 }

// kernel: dnnet_forward.5
= control target key start
LH: loop header
LB: loop body
LE: loop exit
PB: predicated region body
PF: predicated region fallthrough
CT: control target
= control target key end

     0   :  { %vm38_vm0 = vcmask 125952   ;;  %vm40_vm1 = vcmask 122880   ;;  %v5619_v0 = vmov 0   ;;  %vm322_vm2 = vsmask.f32 7938  ;;  %s5620_s27 = smov 32   ;;  %s7994_s0 = inlined_call_operand.vmem [shape: f32[2,8,8,16], index: 0, kind: input, shape index: {}]   ;;  %s7995_s3 = inlined_call_operand.vmem [shape: bf16[144,48], index: 3, kind: input, shape index: {}]   ;;  %s7996_s4 = inlined_call_operand.vmem [shape: f32[1,48], index: 4, kind: input, shape index: {}]   ;;  %s7997_s5 = inlined_call_operand.vmem [shape: f32[1,48], index: 5, kind: input, shape index: {}]   ;;  %s7998_s6 = inlined_call_operand.vmem [shape: f32[16,3], index: 6, kind: input, shape index: {}]   ;;  %s7999_s7 = inlined_call_operand.vmem [shape: f32[1,3], index: 7, kind: input, shape index: {}]   ;;  %s8000_s8 = inlined_call_operand.vmem [shape: f32[16,1], index: 8, kind: input, shape index: {}]   ;;  %s8001_s1 = inlined_call_operand.vmem [shape: bf16[144,16], index: 1, kind: input, shape index: {}]   ;;  %s8002_s9 = inlined_call_operand.<no memory space> [shape: f32[1,1], index: 9, kind: input, shape index: {}]   ;;  %s8003_s2 = inlined_call_operand.vmem [shape: f32[1,16], index: 2, kind: input, shape index: {}]   ;;  %s8004_s10 = inlined_call_operand.vmem [shape: f32[2,8,8,16], index: 10, kind: output, shape index: {}]  }
   0x1   :  { %39 = vst.msk [vmem:[#allocation2] sm:$0xf] %vm38_vm0, %v5619_v0  ;;  %42 = vst.msk [vmem:[#allocation2 + $0x8] sm:$0xf] %vm38_vm0, %v5619_v0  ;;  %v81_v1 = vld [vmem:[%s7994_s0 + $0x8] sm:$0xff]  ;;  %2014 = vmatprep.subr.bf16.mxu0 %v5619_v0  ;;  %5235 = vmatprep.subr.bf16.mxu1 %v5619_v0  ;;  %v80_v4 = vld [vmem:[%s7994_s0] sm:$0xff] }
   0x2   :  { %41 = vst.msk [vmem:[#allocation2 + $0x4] sm:$0x1] %vm40_vm1, %v5619_v0  ;;  %43 = vst.msk [vmem:[#allocation2 + $0xc] sm:$0x1] %vm40_vm1, %v5619_v0  ;;  %v5184_v2 = vpack.c.bf16 %v81_v1, %v81_v1  ;;  %v89_v3 = vld [vmem:[%s7994_s0 + $0x48] sm:$0xff]  ;;  %v5183_v6 = vpack.c.bf16 %v80_v4, %v80_v4  ;;  %v88_v7 = vld [vmem:[%s7994_s0 + $0x40] sm:$0xff] }
   0x3   :  { %44 = vst.msk [vmem:[#allocation2 + $0x10] sm:$0xf] %vm38_vm0, %v5619_v0  ;;  %46 = vst.msk [vmem:[#allocation2 + $0x18] sm:$0xf] %vm38_vm0, %v5619_v0  ;;  %v5192_v5 = vpack.c.bf16 %v89_v3, %v89_v3  ;;  %v82_v8 = vld [vmem:[%s7994_s0 + $0x10] sm:$0xff]  ;;  %v5793_v11 = vpack.c.bf16 %v88_v7, %v88_v7  ;;  %v83_v18 = vld [vmem:[%s7994_s0 + $0x18] sm:$0xff] }
   0x4   :  { %45 = vst.msk [vmem:[#allocation2 + $0x14] sm:$0x1] %vm40_vm1, %v5619_v0  ;;  %47 = vst.msk [vmem:[#allocation2 + $0x1c] sm:$0x1] %vm40_vm1, %v5619_v0  ;;  %v169_v9 = vshrl.u32 %v5184_v2, 16  ;;  %v172_v10 = vshll.u32 %v5184_v2, 16  ;;  %v5795_v12 = vpack.c.bf16 %v82_v8, %v82_v8  ;;  %v5815_v32 = vpack.c.bf16 %v83_v18, %v83_v18 }
   0x5   :  { %48 = vst.msk [vmem:[#allocation2 + $0x20] sm:$0xf] %vm38_vm0, %v5619_v0  ;;  %50 = vst.msk [vmem:[#allocation2 + $0x28] sm:$0xf] %vm38_vm0, %v5619_v0  ;;  %v233_v13 = vshrl.u32 %v5192_v5, 16  ;;  %v236_v14 = vshll.u32 %v5192_v5, 16 }
   0x6   :  { %49 = vst.msk [vmem:[#allocation2 + $0x24] sm:$0x1] %vm40_vm1, %v5619_v0  ;;  %51 = vst.msk [vmem:[#allocation2 + $0x2c] sm:$0x1] %vm40_vm1, %v5619_v0  ;;  %v161_v15 = vshrl.u32 %v5183_v6, 16  ;;  %v164_v16 = vshll.u32 %v5183_v6, 16 }
   0x7   :  { %52 = vst.msk [vmem:[#allocation2 + $0x30] sm:$0xf] %vm38_vm0, %v5619_v0  ;;  %54 = vst.msk [vmem:[#allocation2 + $0x38] sm:$0xf] %vm38_vm0, %v5619_v0  ;;  %v90_v17 = vld [vmem:[%s7994_s0 + $0x50] sm:$0xff]  ;;  %v171_v19 = vrot.slane %v169_v9, 7 }
   0x8   :  { %53 = vst.msk [vmem:[#allocation2 + $0x34] sm:$0x1] %vm40_vm1, %v5619_v0  ;;  %55 = vst.msk [vmem:[#allocation2 + $0x3c] sm:$0x1] %vm40_vm1, %v5619_v0  ;;  %vm328_vm3 = vsmask.f32 256  ;;  %v5813_v31 = vpack.c.bf16 %v90_v17, %v90_v17 }
   0x9   :  { %56 = vst.msk [vmem:[#allocation2 + $0x40] sm:$0xf] %vm38_vm0, %v5619_v0  ;;  %58 = vst.msk [vmem:[#allocation2 + $0x48] sm:$0xf] %vm38_vm0, %v5619_v0  ;;  %v225_v20 = vshrl.u32 %v5793_v11, 16  ;;  %v228_v21 = vshll.u32 %v5793_v11, 16  ;;  %v174_v30 = vor.u32 %v172_v10, %v171_v19 }
   0xa   :  { %57 = vst.msk [vmem:[#allocation2 + $0x44] sm:$0x1] %vm40_vm1, %v5619_v0  ;;  %59 = vst.msk [vmem:[#allocation2 + $0x4c] sm:$0x1] %vm40_vm1, %v5619_v0  ;;  %v8010_v22 = vmov 0  ;;  %v235_v23 = vrot.slane %v233_v13, 7 }
   0xb   :  { %60 = vst.msk [vmem:[#allocation2 + $0x50] sm:$0xf] %vm38_vm0, %v5619_v0  ;;  %62 = vst.msk [vmem:[#allocation2 + $0x58] sm:$0xf] %vm38_vm0, %v5619_v0  ;;  %v163_v24 = vrot.slane %v161_v15, 7  ;;  %v177_v25 = vshrl.u32 %v5795_v12, 16 }
   0xc   :  { %61 = vst.msk [vmem:[#allocation2 + $0x54] sm:$0x1] %vm40_vm1, %v5619_v0  ;;  %63 = vst.msk [vmem:[#allocation2 + $0x5c] sm:$0x1] %vm40_vm1, %v5619_v0  ;;  %v180_v26 = vshll.u32 %v5795_v12, 16  ;;  %v238_v38 = vor.u32 %v236_v14, %v235_v23  ;;  %v175_v42 = vrot.slane %v171_v19, 4 }
   0xd   :  { %64 = vst.msk [vmem:[#allocation2 + $0x60] sm:$0xf] %vm38_vm0, %v5619_v0  ;;  %66 = vst.msk [vmem:[#allocation2 + $0x68] sm:$0xf] %vm38_vm0, %v5619_v0  ;;  %v457_v27 = vld [vmem:[#allocation2 + $0x4] sm:$0x1]  ;;  %v166_v39 = vor.u32 %v164_v16, %v163_v24 }
   0xe   :  { %65 = vst.msk [vmem:[#allocation2 + $0x64] sm:$0x1] %vm40_vm1, %v5619_v0  ;;  %67 = vst.msk [vmem:[#allocation2 + $0x6c] sm:$0x1] %vm40_vm1, %v5619_v0  ;;  %v473_v28 = vld [vmem:[#allocation2] sm:$0xe] }
   0xf   :  { %68 = vst.msk [vmem:[#allocation2 + $0x70] sm:$0xf] %vm38_vm0, %v5619_v0  ;;  %70 = vst.msk [vmem:[#allocation2 + $0x78] sm:$0xf] %vm38_vm0, %v5619_v0  ;;  %v441_v29 = vld [vmem:[#allocation2] sm:$0xf]  ;;  %v4853_v33 = vcombine.low %v473_v28, %v457_v27 }
  0x10   :  { %69 = vst.msk [vmem:[#allocation2 + $0x74] sm:$0x1] %vm40_vm1, %v5619_v0  ;;  %71 = vst.msk [vmem:[#allocation2 + $0x7c] sm:$0x1] %vm40_vm1, %v5619_v0  ;;  %v4837_v34 = vcombine.low %v441_v29, %v457_v27  ;;  %v333_v43 = vld [vmem:[#allocation2 + $0x10] sm:$0xf] }
  0x11   :  { %72 = vst.msk [vmem:[#allocation2 + $0x80] sm:$0xf] %vm38_vm0, %v5619_v0  ;;  %74 = vst.msk [vmem:[#allocation2 + $0x88] sm:$0xf] %vm38_vm0, %v5619_v0  ;;  %v336_v44 = vld [vmem:[#allocation2 + $0x14] sm:$0x1] }
  0x12   :  { %73 = vst.msk [vmem:[#allocation2 + $0x84] sm:$0x1] %vm40_vm1, %v5619_v0  ;;  %75 = vst.msk [vmem:[#allocation2 + $0x8c] sm:$0x1] %vm40_vm1, %v5619_v0  ;;  %v449_v35 = vld [vmem:[#allocation2 + $0x50] sm:$0xf] }
  0x13   :  { %76 = vst.msk [vmem:[#allocation2 + $0x90] sm:$0xf] %vm38_vm0, %v5619_v0  ;;  %78 = vst.msk [vmem:[#allocation2 + $0x98] sm:$0xf] %vm38_vm0, %v5619_v0  ;;  %v465_v36 = vld [vmem:[#allocation2 + $0x54] sm:$0x1] }
  0x14   :  { %77 = vst.msk [vmem:[#allocation2 + $0x94] sm:$0x1] %vm40_vm1, %v5619_v0  ;;  %79 = vst.msk [vmem:[#allocation2 + $0x9c] sm:$0x1] %vm40_vm1, %v5619_v0  ;;  %v481_v37 = vld [vmem:[#allocation2 + $0x50] sm:$0xe]  ;;  %v4845_v40 = vcombine.low %v449_v35, %v465_v36 }
  0x15   :  { %vm5807_vm4 = vmand %vm38_vm0, %vm322_vm2  ;;  %v4861_v41 = vcombine.low %v481_v37, %v465_v36  ;;  %v239_v45 = vrot.slane %v235_v23, 4  ;;  %v858_v46 = vrot.slane %v4853_v33, 1  ;;  %v669_v47 = vshll.u32 %v4837_v34, 16  ;;  %v381_v51 = vld [vmem:[#allocation2 + $0x60] sm:$0xf]  ;;  %s5621_s28 = smov 16  }
  0x16   :  { %v8011_v22 = vsel %vm5807_vm4, 4294967295, %v8010_v22  ;;  %v667_v48 = vshrl.u32 %v4837_v34, 16  ;;  %vm5819_vm5 = vmand %vm40_vm1, %vm328_vm3  ;;  %v8013_v49 = vmov 0  ;;  %v334_v50 = vsel %vm5807_vm4, %v174_v30, %v333_v43  ;;  %v384_v56 = vld [vmem:[#allocation2 + $0x64] sm:$0x1]  ;;  %s5622_s29 = smov 48  }
  0x17   :  { %8012 = vst [vmem:[#allocation5_spill] sm:$0xff] %v8011_v22  ;;  %v8014_v49 = vsel %vm5819_vm5, 4294967295, %v8013_v49  ;;  %v723_v52 = vshrl.u32 %v4845_v40, 16  ;;  %v725_v53 = vshll.u32 %v4845_v40, 16  ;;  %v866_v54 = vrot.slane %v4861_v41, 1  ;;  %874 = vrot.lane.b32.xlu0 %v858_v46, %s5620_s27  ;;  %s5623_s20 = smov 64  }
  0x18   :  { %8015 = vst [vmem:[#allocation6_spill] sm:$0xff] %v8014_v49  ;;  %335 = vst [vmem:[#allocation2 + $0x10] sm:$0xf] %v334_v50  ;;  %v337_v55 = vsel %vm5819_vm5, %v175_v42, %v336_v44  ;;  %v671_v57 = vrot.slane %v669_v47, 1  ;;  %v382_v58 = vsel %vm5807_vm4, %v238_v38, %v381_v51  ;;  %v385_v59 = vsel %vm5819_vm5, %v239_v45, %v384_v56  ;;  %v324_v61 = vld [vmem:[#allocation2 + $0x8] sm:$0xf] }
  0x19   :  { %338 = vst [vmem:[#allocation2 + $0x14] sm:$0x1] %v337_v55  ;;  %v167_v60 = vrot.slane %v163_v24, 4  ;;  %v330_v62 = vld [vmem:[#allocation2 + $0xc] sm:$0x1]  ;;  %v727_v63 = vrot.slane %v725_v53, 1  ;;  %v325_v1 = vsel %vm5807_vm4, %v166_v39, %v324_v61 }
  0x1a   :  { %383 = vst [vmem:[#allocation2 + $0x60] sm:$0xf] %v382_v58  ;;  %386 = vst [vmem:[#allocation2 + $0x64] sm:$0x1] %v385_v59  ;;  %v227_v2 = vrot.slane %v225_v20, 7  ;;  %v672_v3 = vor.u32 %v671_v57, %v667_v48  ;;  %v179_v7 = vrot.slane %v177_v25, 7 }
  0x1b   :  { %326 = vst [vmem:[#allocation2 + $0x8] sm:$0xf] %v325_v1  ;;  %v331_v4 = vsel %vm5819_vm5, %v167_v60, %v330_v62  ;;  %v375_v5 = vld [vmem:[#allocation2 + $0x58] sm:$0xf]  ;;  %v378_v6 = vld [vmem:[#allocation2 + $0x5c] sm:$0x1]  ;;  %v728_v9 = vor.u32 %v727_v63, %v723_v52  ;;  %890 = vrot.lane.b32.xlu0 %v866_v54, %s5620_s27 }
  0x1c   :  { %v241_v8 = vshrl.u32 %v5813_v31, 16  ;;  %332 = vst [vmem:[#allocation2 + $0xc] sm:$0x1] %v331_v4  ;;  %v230_v10 = vor.u32 %v228_v21, %v227_v2  ;;  %v231_v11 = vrot.slane %v227_v2, 4  ;;  %v339_v12 = vld [vmem:[#allocation2 + $0x18] sm:$0xf]  ;;  %v182_v15 = vor.u32 %v180_v26, %v179_v7 }
  0x1d   :  { %v342_v13 = vld [vmem:[#allocation2 + $0x1c] sm:$0x1]  ;;  %v244_v14 = vshll.u32 %v5813_v31, 16  ;;  %v183_v16 = vrot.slane %v179_v7, 4  ;;  %v185_v18 = vshrl.u32 %v5815_v32, 16  ;;  %794 = vrot.lane.b32.xlu1 %v728_v9, %s5621_s28  ;;  %v188_v28 = vshll.u32 %v5815_v32, 16 }
  0x1e   :  { %v243_v17 = vrot.slane %v241_v8, 7  ;;  %v376_v19 = vsel %vm5807_vm4, %v230_v10, %v375_v5  ;;  %v379_v20 = vsel %vm5819_vm5, %v231_v11, %v378_v6  ;;  %v387_v21 = vld [vmem:[#allocation2 + $0x68] sm:$0xf]  ;;  %v340_v24 = vsel %vm5807_vm4, %v182_v15, %v339_v12  ;;  %v390_v27 = vld [vmem:[#allocation2 + $0x6c] sm:$0x1]  ;;  %v5377_v48 = vld [vmem:[%s8001_s1 + $0x38] sm:$0xff]  }
  0x1f   :  { %v490_v23 = vld [vmem:[#allocation2 + $0x10] sm:$0xf]  ;;  %377 = vst [vmem:[#allocation2 + $0x58] sm:$0xf] %v376_v19  ;;  %380 = vst [vmem:[#allocation2 + $0x5c] sm:$0x1] %v379_v20  ;;  %v343_v25 = vsel %vm5819_vm5, %v183_v16, %v342_v13  ;;  %778 = vrot.lane.b32.xlu0 %v672_v3, %s5621_s28  ;;  %2015 = vmatpush1.bf16.msra.mxu0 %v5377_v48 }
  0x20   :  { %v246_v26 = vor.u32 %v244_v14, %v243_v17  ;;  %v4870_v29 = vcombine.low %v490_v23, %v490_v23  ;;  %341 = vst [vmem:[#allocation2 + $0x18] sm:$0xf] %v340_v24  ;;  %344 = vst [vmem:[#allocation2 + $0x1c] sm:$0x1] %v343_v25  ;;  %v247_v30 = vrot.slane %v243_v17, 4  ;;  %v5850_v31 = vrot.slane %v185_v18, 7  ;;  %2016 = vmatprep.subr.bf16.mxu0 %v5619_v0 }
  0x21   :  { %v5853_v33 = vld [vmem:[#allocation2 + $0x14] sm:$0x1]  ;;  %v498_v34 = vld [vmem:[#allocation2 + $0x60] sm:$0xf]  ;;  %v5863_v44 = vld [vmem:[#allocation2 + $0x64] sm:$0x1]  ;;  %5244 = vmatpush1.bf16.msra.mxu1 %v5377_v48 }
  0x22   :  { %v388_v35 = vsel %vm5807_vm4, %v246_v26, %v387_v21  ;;  %956 = vrot.lane.b32.xlu1 %v4870_v29, %s5622_s29  ;;  %v4878_v36 = vcombine.low %v498_v34, %v498_v34  ;;  %v489_v37 = vld [vmem:[#allocation2 + $0x8] sm:$0xf]  ;;  %v391_v39 = vsel %vm5819_vm5, %v247_v30, %v390_v27  ;;  %v190_v43 = vor.u32 %v188_v28, %v5850_v31  ;;  %v345_v47 = vld [vmem:[#allocation2 + $0x20] sm:$0xf]  ;;  %v5380_v55 = vld [vmem:[%s8001_s1 + $0x30] sm:$0xff]   ;;  %s5624_s12 = smov 80  }
  0x23   :  { %v474_v32 = vld [vmem:[#allocation2 + $0x8] sm:$0xe]  ;;  %389 = vst [vmem:[#allocation2 + $0x68] sm:$0xf] %v388_v35  ;;  %v5860_v40 = vld [vmem:[#allocation2 + $0xc] sm:$0x1]  ;;  %v4869_v41 = vcombine.low %v489_v37, %v489_v37  ;;  %v5869_v50 = vcombine.low %v490_v23, %v5853_v33  ;;  %v5880_v56 = vcombine.low %v498_v34, %v5863_v44  ;;  %5236 = vmatprep.subr.bf16.mxu1 %v5619_v0 }
  0x24   :  { %v442_v38 = vld [vmem:[#allocation2 + $0x8] sm:$0xf]  ;;  %v458_v42 = vld [vmem:[#allocation2 + $0xc] sm:$0x1]  ;;  %392 = vst [vmem:[#allocation2 + $0x6c] sm:$0x1] %v391_v39  ;;  %v4885_v51 = vcombine.low %v489_v37, %v5860_v40  ;;  %v346_v62 = vsel %vm5807_vm4, %v190_v43, %v345_v47  ;;  %2017 = vmatpush1.bf16.msra.mxu0 %v5380_v55 }
  0x25   :  { %v4854_v45 = vcombine.low %v474_v32, %v458_v42  ;;  %v4838_v46 = vcombine.low %v442_v38, %v458_v42  ;;  %954 = vrot.lane.b32.xlu0 %v4869_v41, %s5622_s29  ;;  %347 = vst [vmem:[#allocation2 + $0x20] sm:$0xf] %v346_v62  ;;  %v1044_v6 = vshll.u32 %v5869_v50, 16  ;;  %2018 = vmatprep.subr.bf16.mxu0 %v5619_v0  ;;  %v5381_v13 = vld [vmem:[%s8001_s1 + $0x28] sm:$0xff]   ;;  %v1042_v16 = vshrl.u32 %v5869_v50, 16  ;;  %v5383_v25 = vld [vmem:[%s8001_s1 + $0x20] sm:$0xff]  }
  0x26   :  { %972 = vrot.lane.b32.xlu1 %v4878_v36, %s5622_s29  ;;  %v497_v52 = vld [vmem:[#allocation2 + $0x58] sm:$0xf]  ;;  %v5874_v53 = vld [vmem:[#allocation2 + $0x5c] sm:$0x1]  ;;  %v1035_v4 = vshrl.u32 %v4885_v51, 16  ;;  %v1037_v5 = vshll.u32 %v4885_v51, 16  ;;  %5245 = vmatpush1.bf16.msra.mxu1 %v5380_v55 }
  0x27   :  { %v859_v54 = vrot.slane %v4854_v45, 1  ;;  %v4877_v57 = vcombine.low %v497_v52, %v497_v52  ;;  %v4893_v58 = vcombine.low %v497_v52, %v5874_v53  ;;  %v450_v59 = vld [vmem:[#allocation2 + $0x58] sm:$0xf]  ;;  %v466_v60 = vld [vmem:[#allocation2 + $0x5c] sm:$0x1]  ;;  %v674_v2 = vshrl.u32 %v4838_v46, 16  ;;  %5237 = vmatprep.subr.bf16.mxu1 %v5619_v0 }
  0x28   :  { %v482_v61 = vld [vmem:[#allocation2 + $0x58] sm:$0xe]  ;;  %v4846_v63 = vcombine.low %v450_v59, %v466_v60  ;;  %v676_v3 = vshll.u32 %v4838_v46, 16  ;;  %v1039_v12 = vrot.slane %v1037_v5, 1  ;;  %v1046_v17 = vrot.slane %v1044_v6, 1  ;;  %2019 = vmatpush1.bf16.msra.mxu0 %v5381_v13  ;;  %v84_v45 = vld [vmem:[%s7994_s0 + $0x20] sm:$0xff] }
  0x29   :  { %v4862_v1 = vcombine.low %v482_v61, %v466_v60  ;;  %970 = vrot.lane.b32.xlu0 %v4877_v57, %s5622_s29  ;;  %v1093_v7 = vshll.u32 %v4893_v58, 16  ;;  %v1100_v18 = vshll.u32 %v5880_v56, 16  ;;  %v1091_v21 = vshrl.u32 %v4893_v58, 16  ;;  %v521_v24 = vld [vmem:[#allocation2 + $0x8] sm:$0xe]  ;;  %v91_v26 = vld [vmem:[%s7994_s0 + $0x58] sm:$0xff]  ;;  %2020 = vmatprep.subr.bf16.mxu0 %v5619_v0 }
  0x2a   :  { %876 = vrot.lane.b32.xlu1 %v859_v54, %s5620_s27  ;;  %v678_v9 = vrot.slane %v676_v3, 1  ;;  %v730_v10 = vshrl.u32 %v4846_v63, 16  ;;  %v732_v11 = vshll.u32 %v4846_v63, 16  ;;  %v1040_v20 = vor.u32 %v1039_v12, %v1035_v4  ;;  %5246 = vmatpush1.bf16.msra.mxu1 %v5381_v13  ;;  %v522_v35 = vld [vmem:[#allocation2 + $0x10] sm:$0xe]  ;;  %v5386_v46 = vld [vmem:[%s8001_s1 + $0x18] sm:$0xff]  }
  0x2b   :  { %v867_v8 = vrot.slane %v4862_v1, 1  ;;  %v1095_v23 = vrot.slane %v1093_v7, 1  ;;  %v1098_v27 = vshrl.u32 %v5880_v56, 16  ;;  %5238 = vmatprep.subr.bf16.mxu1 %v5619_v0  ;;  %v1047_v28 = vor.u32 %v1046_v17, %v1042_v16  ;;  %v529_v36 = vld [vmem:[#allocation2 + $0x58] sm:$0xe]  ;;  %s5625_s17 = smov 96  }
  0x2c   :  { %v679_v14 = vor.u32 %v678_v9, %v674_v2  ;;  %v734_v15 = vrot.slane %v732_v11, 1  ;;  %v1102_v30 = vrot.slane %v1100_v18, 1  ;;  %v4901_v34 = vcombine.low %v521_v24, %v5860_v40  ;;  %2021 = vmatpush1.bf16.msra.mxu0 %v5383_v25  ;;  %v5917_v40 = vld [vmem:[#allocation2 + $0x14] sm:$0x1]  ;;  %v530_v42 = vld [vmem:[#allocation2 + $0x60] sm:$0xe] }
  0x2d   :  { %v1096_v29 = vor.u32 %v1095_v23, %v1091_v21  ;;  %v5194_v37 = vpack.c.bf16 %v91_v26, %v91_v26  ;;  %2022 = vmatprep.subr.bf16.mxu0 %v5619_v0  ;;  %v4902_v39 = vcombine.low %v522_v35, %v5853_v33  ;;  %v4909_v41 = vcombine.low %v529_v36, %v5874_v53  ;;  %v5925_v47 = vld [vmem:[#allocation2 + $0x10] sm:$0xf]  ;;  %v348_v48 = vld [vmem:[#allocation2 + $0x24] sm:$0x1]  ;;  %v5934_v51 = vld [vmem:[#allocation2 + $0x1c] sm:$0x1] }
  0x2e   :  { %892 = vrot.lane.b32.xlu1 %v867_v8, %s5620_s27  ;;  %780 = vrot.lane.b32.xlu0 %v679_v14, %s5621_s28  ;;  %v735_v19 = vor.u32 %v734_v15, %v730_v10  ;;  %v1103_v32 = vor.u32 %v1102_v30, %v1098_v27  ;;  %v1226_v38 = vrot.slane %v4901_v34, 1  ;;  %v92_v33 = vld [vmem:[%s7994_s0 + $0x60] sm:$0xff]  ;;  %v5932_v50 = vcombine.low %v5925_v47, %v5917_v40  ;;  %v5391_v53 = vld [vmem:[%s8001_s1 + $0x10] sm:$0xff]   ;;  %v5947_v59 = vld [vmem:[#allocation2 + $0x18] sm:$0xf]  ;;  %s5627_s22 = smov 0  }
  0x2f   :  { %5247 = vmatpush1.bf16.msra.mxu1 %v5383_v25  ;;  %v249_v43 = vshrl.u32 %v5194_v37, 16  ;;  %v5936_v52 = vld [vmem:[#allocation2 + $0x64] sm:$0x1]  ;;  %v1227_v54 = vrot.slane %v4902_v39, 1  ;;  %v1234_v55 = vrot.slane %v4909_v41, 1  ;;  %v4910_v56 = vcombine.low %v530_v42, %v5863_v44  ;;  %v5398_v9 = vld [vmem:[%s8001_s1 + $0x8] sm:$0xff]  }
  0x30   :  { %5239 = vmatprep.subr.bf16.mxu1 %v5619_v0  ;;  %2023 = vmatpush1.bf16.msra.mxu0 %v5386_v46  ;;  %v5944_v57 = vld [vmem:[#allocation2 + $0x60] sm:$0xf]  ;;  %v191_v58 = vrot.slane %v5850_v31, 4  ;;  %v5949_v60 = vld [vmem:[#allocation2 + $0x6c] sm:$0x1]  ;;  %v252_v62 = vshll.u32 %v5194_v37, 16  ;;  %v5187_v63 = vpack.c.bf16 %v84_v45, %v84_v45  ;;  %v5955_v1 = vcombine.low %v5947_v59, %v5934_v51 }
  0x31   :  { %v251_v61 = vrot.slane %v249_v43, 7  ;;  %2024 = vmatprep.subr.bf16.mxu0 %v5619_v0  ;;  %v5959_v44 = vcombine.low %v5944_v57, %v5936_v52  ;;  %v5961_v31 = vld [vmem:[#allocation2 + $0x68] sm:$0xf]  ;;  %v393_v3 = vld [vmem:[#allocation2 + $0x70] sm:$0xf]  ;;  %v5195_v5 = vpack.c.bf16 %v92_v33, %v92_v33  ;;  %v1405_v6 = vshll.u32 %v5932_v50, 16 }
  0x32   :  { %796 = vrot.lane.b32.xlu1 %v735_v19, %s5621_s28  ;;  %1146 = vrot.lane.b32.xlu0 %v1040_v20, %s5623_s20  ;;  %v349_v2 = vsel %vm5819_vm5, %v191_v58, %v348_v48  ;;  %v396_v4 = vld [vmem:[#allocation2 + $0x74] sm:$0x1]  ;;  %v1235_v10 = vrot.slane %v4910_v56, 1  ;;  %v4917_v11 = vcombine.low %v5925_v47, %v5925_v47  ;;  %v4925_v12 = vcombine.low %v5944_v57, %v5944_v57  ;;  %v443_v14 = vld [vmem:[#allocation2 + $0x10] sm:$0xf]  ;;  %v85_v58 = vld [vmem:[%s7994_s0 + $0x28] sm:$0xff] }
  0x33   :  { %5248 = vmatpush1.bf16.msra.mxu1 %v5386_v46  ;;  %350 = vst [vmem:[#allocation2 + $0x24] sm:$0x1] %v349_v2  ;;  %v254_v7 = vor.u32 %v252_v62, %v251_v61  ;;  %v255_v8 = vrot.slane %v251_v61, 4  ;;  %v5977_v13 = vcombine.low %v5961_v31, %v5949_v60  ;;  %v1403_v15 = vshrl.u32 %v5932_v50, 16  ;;  %v5980_v16 = vld [vmem:[#allocation2 + $0x14] sm:$0x1] }
  0x34   :  { %5240 = vmatprep.subr.bf16.mxu1 %v5619_v0  ;;  %2025 = vmatpush1.bf16.msra.mxu0 %v5391_v53  ;;  %v193_v19 = vshrl.u32 %v5187_v63, 16  ;;  %v1412_v20 = vshll.u32 %v5955_v1, 16  ;;  %v1461_v21 = vshll.u32 %v5959_v44, 16  ;;  %v444_v23 = vld [vmem:[#allocation2 + $0x18] sm:$0xf]  ;;  %v196_v27 = vshll.u32 %v5187_v63, 16 }
  0x35   :  { %v394_v17 = vsel %vm5807_vm4, %v254_v7, %v393_v3  ;;  %v397_v18 = vsel %vm5819_vm5, %v255_v8, %v396_v4  ;;  %2026 = vmatprep.subr.bf16.mxu0 %v5619_v0  ;;  %v5990_v24 = vld [vmem:[#allocation2 + $0x1c] sm:$0x1]  ;;  %v451_v25 = vld [vmem:[#allocation2 + $0x60] sm:$0xf]  ;;  %v5992_v26 = vld [vmem:[#allocation2 + $0x64] sm:$0x1]  ;;  %v4839_v41 = vcombine.low %v443_v14, %v5980_v16  ;;  %v15_v48 = vstv %s8002_s9 }
  0x36   :  { %1148 = vrot.lane.b32.xlu1 %v1047_v28, %s5623_s20  ;;  %1162 = vrot.lane.b32.xlu0 %v1096_v29, %s5623_s20  ;;  %395 = vst [vmem:[#allocation2 + $0x70] sm:$0xf] %v394_v17  ;;  %398 = vst [vmem:[#allocation2 + $0x74] sm:$0x1] %v397_v18  ;;  %v257_v28 = vshrl.u32 %v5195_v5, 16  ;;  %v4918_v29 = vcombine.low %v5947_v59, %v5947_v59  ;;  %v1407_v30 = vrot.slane %v1405_v6, 1 }
  0x37   :  { %5249 = vmatpush1.bf16.msra.mxu1 %v5391_v53  ;;  %v195_v34 = vrot.slane %v193_v19, 7  ;;  %v351_v35 = vld [vmem:[#allocation2 + $0x28] sm:$0xf]  ;;  %v354_v36 = vld [vmem:[#allocation2 + $0x2c] sm:$0x1]  ;;  %v260_v37 = vshll.u32 %v5195_v5, 16  ;;  %v4840_v62 = vcombine.low %v444_v23, %v5990_v24  ;;  %v4847_v63 = vcombine.low %v451_v25, %v5992_v26 }
  0x38   :  { %5241 = vmatprep.subr.bf16.mxu1 %v5619_v0  ;;  %2027 = vmatpush1.bf16.msra.mxu0 %v5398_v9  ;;  %v1410_v39 = vshrl.u32 %v5955_v1, 16  ;;  %v259_v42 = vrot.slane %v257_v28, 7  ;;  %v399_v43 = vld [vmem:[#allocation2 + $0x78] sm:$0xf]  ;;  %v1459_v45 = vshrl.u32 %v5959_v44, 16  ;;  %v1414_v33 = vrot.slane %v1412_v20, 1 }
  0x39   :  { %v198_v46 = vor.u32 %v196_v27, %v195_v34  ;;  %v199_v47 = vrot.slane %v195_v34, 4  ;;  %2028 = vmatprep.subr.bf16.mxu0 %v5619_v0  ;;  %v1468_v50 = vshll.u32 %v5977_v13, 16  ;;  %v452_v53 = vld [vmem:[#allocation2 + $0x68] sm:$0xf]  ;;  %v402_v57 = vld [vmem:[#allocation2 + $0x7c] sm:$0x1]  ;;  %v1408_v59 = vor.u32 %v1407_v30, %v1403_v15 }
  0x3a   :  { %1164 = vrot.lane.b32.xlu1 %v1103_v32, %s5623_s20  ;;  %1242 = vrot.lane.b32.xlu0 %v1226_v38, %s5624_s12  ;;  %v5402_v32 = vld [vmem:[%s8001_s1] sm:$0xff]   ;;  %v4926_v38 = vcombine.low %v5961_v31, %v5961_v31  ;;  %v263_v56 = vrot.slane %v259_v42, 4  ;;  %16 = vst [vmem:[#allocation4] sm:$0x1] %v15_v48  ;;  %v1463_v61 = vrot.slane %v1461_v21, 1  ;;  %v683_v44 = vshll.u32 %v4839_v41, 16 }
  0x3b   :  { %5250 = vmatpush1.bf16.msra.mxu1 %v5398_v9  ;;  %v5403_v1 = vld [vmem:[%s8001_s1 + $0x40] sm:$0xff]   ;;  %v352_v31 = vsel %vm5807_vm4, %v198_v46, %v351_v35  ;;  %v355_v2 = vsel %vm5819_vm5, %v199_v47, %v354_v36  ;;  %v1466_v5 = vshrl.u32 %v5977_v13, 16  ;;  %v5188_v6 = vpack.c.bf16 %v85_v58, %v85_v58  ;;  %s5626_s1 = smov 112   ;;  %v475_v25 = vld [vmem:[#allocation2 + $0x10] sm:$0xe]  ;;  %2144 = sst [smem:[#allocation3]] %s5627_s22 }
  0x3c   :  { %5242 = vmatprep.subr.bf16.mxu1 %v5619_v0  ;;  %2029 = vmatpush1.bf16.msra.mxu0 %v5402_v32  ;;  %353 = vst [vmem:[#allocation2 + $0x28] sm:$0xf] %v352_v31  ;;  %356 = vst [vmem:[#allocation2 + $0x2c] sm:$0x1] %v355_v2  ;;  %v403_v4 = vsel %vm5819_vm5, %v263_v56, %v402_v57  ;;  %v1415_v7 = vor.u32 %v1414_v33, %v1410_v39  ;;  %v1470_v8 = vrot.slane %v1468_v50, 1  ;;  %vm1610_vm6 = vcmask 130048  }
  0x3d   :  { %2044 = vmatprep.subr.bf16.mxu0 %v5619_v0  ;;  %404 = vst [vmem:[#allocation2 + $0x7c] sm:$0x1] %v403_v4  ;;  %v681_v9 = vshrl.u32 %v4839_v41, 16  ;;  %v690_v14 = vshll.u32 %v4840_v62, 16  ;;  %v739_v15 = vshll.u32 %v4847_v63, 16  ;;  %v688_v17 = vshrl.u32 %v4840_v62, 16 }
  0x3e   :  { %1244 = vrot.lane.b32.xlu1 %v1227_v54, %s5624_s12  ;;  %1258 = vrot.lane.b32.xlu0 %v1234_v55, %s5624_s12  ;;  %v6012_v54 = vld [vmem:[#allocation2 + $0x6c] sm:$0x1]  ;;  %v262_v55 = vor.u32 %v260_v37, %v259_v42  ;;  %v1471_v13 = vor.u32 %v1470_v8, %v1466_v5  ;;  %v737_v18 = vshrl.u32 %v4847_v63, 16  ;;  %v4855_v36 = vcombine.low %v475_v25, %v5980_v16  ;;  %v476_v37 = vld [vmem:[#allocation2 + $0x18] sm:$0xe]  ;;  %v94_v8 = vld [vmem:[%s7994_s0 + $0x70] sm:$0xff] }
  0x3f   :  { %5251 = vmatpush1.bf16.msra.mxu1 %v5402_v32  ;;  %v692_v20 = vrot.slane %v690_v14, 1  ;;  %v741_v21 = vrot.slane %v739_v15, 1  ;;  %v483_v32 = vld [vmem:[#allocation2 + $0x60] sm:$0xe]  ;;  %v4856_v39 = vcombine.low %v476_v37, %v5990_v24  ;;  %v484_v41 = vld [vmem:[#allocation2 + $0x68] sm:$0xe] }
  0x40   :  { %v400_v3 = vsel %vm5807_vm4, %v262_v55, %v399_v43  ;;  %5243 = vmatprep.subr.bf16.mxu1 %v5619_v0  ;;  %2045 = vmatpush2.bf16.msra.mxu0 %v5403_v1  ;;  %v201_v0 = vshrl.u32 %v5188_v6, 16  ;;  %v860_v46 = vrot.slane %v4855_v36, 1  ;;  %v4863_v47 = vcombine.low %v483_v32, %v5992_v26  ;;  %v357_v16 = vld [vmem:[#allocation2 + $0x30] sm:$0xf]  ;;  %v360_v48 = vld [vmem:[#allocation2 + $0x34] sm:$0x1] }
  0x41   :  { %401 = vst [vmem:[#allocation2 + $0x78] sm:$0xf] %v400_v3  ;;  %v693_v30 = vor.u32 %v692_v20, %v688_v17  ;;  %v742_v34 = vor.u32 %v741_v21, %v737_v18  ;;  %v491_v50 = vld [vmem:[#allocation2 + $0x18] sm:$0xf]  ;;  %v6052_v55 = vld [vmem:[#allocation2 + $0x6c] sm:$0x1]  ;;  %v4864_v57 = vcombine.low %v484_v41, %v6012_v54 }
  0x42   :  { %1260 = vrot.lane.b32.xlu1 %v1235_v10, %s5624_s12  ;;  %1322 = vrot.lane.b32.xlu0 %v4917_v11, %s5625_s17  ;;  %v4848_v10 = vcombine.low %v452_v53, %v6012_v54  ;;  %v1464_v11 = vor.u32 %v1463_v61, %v1459_v45  ;;  %v203_v28 = vrot.slane %v201_v0, 7  ;;  %v6050_v53 = vld [vmem:[#allocation2 + $0x1c] sm:$0x1]  ;;  %v86_v24 = vld [vmem:[%s7994_s0 + $0x30] sm:$0xff]  ;;  %v861_v56 = vrot.slane %v4856_v39, 1  ;;  %s6688_s9 = smov 0  }
  0x43   :  { %5252 = vmatpush2.bf16.msra.mxu1 %v5403_v1  ;;  %v6058_v58 = vld [vmem:[#allocation2 + $0x24] sm:$0x1]  ;;  %v868_v62 = vrot.slane %v4863_v47, 1  ;;  %v4887_v63 = vcombine.low %v491_v50, %v6050_v53  ;;  %v5189_v31 = vpack.c.bf16 %v86_v24, %v86_v24  ;;  %v492_v2 = vld [vmem:[#allocation2 + $0x20] sm:$0xf]  ;;  %v869_v4 = vrot.slane %v4864_v57, 1 }
  0x44   :  { %v746_v23 = vshll.u32 %v4848_v10, 16  ;;  %v744_v27 = vshrl.u32 %v4848_v10, 16  ;;  %v207_v43 = vrot.slane %v203_v28, 4  ;;  %v4888_v5 = vcombine.low %v492_v2, %v6058_v58  ;;  %v6074_v14 = vld [vmem:[#allocation2 + $0x74] sm:$0x1] }
  0x45   :  { %v1051_v10 = vshll.u32 %v4887_v63, 16  ;;  %v5197_v0 = vpack.c.bf16 %v94_v8, %v94_v8  ;;  %v500_v20 = vld [vmem:[#allocation2 + $0x70] sm:$0xf]  ;;  %v363_v37 = vld [vmem:[#allocation2 + $0x38] sm:$0xf]  ;;  %vm1659_vm7 = vcmask 261120  }
  0x46   :  { %1324 = vrot.lane.b32.xlu1 %v4918_v29, %s5625_s17  ;;  %1338 = vrot.lane.b32.xlu0 %v4925_v12, %s5625_s17  ;;  %v685_v12 = vrot.slane %v683_v44, 1  ;;  %v204_v29 = vshll.u32 %v5188_v6, 16  ;;  %v748_v35 = vrot.slane %v746_v23, 1  ;;  %v361_v61 = vsel %vm5819_vm5, %v207_v43, %v360_v48  ;;  %v405_v6 = vld [vmem:[#allocation2 + $0x80] sm:$0xf] }
  0x47   :  { %362 = vst [vmem:[#allocation2 + $0x34] sm:$0x1] %v361_v61  ;;  %v1058_v21 = vshll.u32 %v4888_v5, 16  ;;  %v212_v23 = vshll.u32 %v5189_v31, 16  ;;  %v1056_v36 = vshrl.u32 %v4888_v5, 16  ;;  %v276_v43 = vshll.u32 %v5197_v0, 16 }
  0x48   :  { %v686_v19 = vor.u32 %v685_v12, %v681_v9  ;;  %v206_v42 = vor.u32 %v204_v29, %v203_v28  ;;  %v749_v45 = vor.u32 %v748_v35, %v744_v27  ;;  %v4871_v9 = vcombine.low %v491_v50, %v491_v50  ;;  %v366_v32 = vld [vmem:[#allocation2 + $0x3c] sm:$0x1]  ;;  %v570_v24 = vld [vmem:[#allocation2 + $0x10] sm:$0xe]  ;;  %v556_v8 = vld [vmem:[#allocation2 + $0x24] sm:$0x1] }
  0x49   :  { %v4896_v27 = vcombine.low %v500_v20, %v6074_v14  ;;  %v1049_v28 = vshrl.u32 %v4887_v63, 16  ;;  %v1053_v29 = vrot.slane %v1051_v10, 1  ;;  %v1060_v39 = vrot.slane %v1058_v21, 1 }
  0x4a   :  { %1340 = vrot.lane.b32.xlu1 %v4926_v38, %s5625_s17  ;;  %1514 = vrot.lane.b32.xlu0 %v1408_v59, %s5626_s1  ;;  %v93_v38 = vld [vmem:[%s7994_s0 + $0x68] sm:$0xff]  ;;  %v358_v26 = vsel %vm5807_vm4, %v206_v42, %v357_v16  ;;  %v523_v16 = vld [vmem:[#allocation2 + $0x18] sm:$0xe]  ;;  %vm1692_vm8 = vcmask 392192   ;;  %vm1725_vm9 = vcmask 523264   ;;  %vm1758_vm10 = vcmask 654336  }
  0x4b   :  { %v5196_v33 = vpack.c.bf16 %v93_v38, %v93_v38  ;;  %v499_v59 = vld [vmem:[#allocation2 + $0x68] sm:$0xf]  ;;  %359 = vst [vmem:[#allocation2 + $0x30] sm:$0xf] %v358_v26  ;;  %v273_v38 = vshrl.u32 %v5197_v0, 16  ;;  %v1114_v47 = vshll.u32 %v4896_v27, 16  ;;  %v1061_v26 = vor.u32 %v1060_v39, %v1056_v36 }
  0x4c   :  { %v4895_v54 = vcombine.low %v499_v59, %v6052_v55  ;;  %v4879_v25 = vcombine.low %v499_v59, %v499_v59  ;;  %v411_v59 = vld [vmem:[#allocation2 + $0x88] sm:$0xf]  ;;  %v4903_v63 = vcombine.low %v523_v16, %v6050_v53  ;;  %v564_v0 = vld [vmem:[#allocation2 + $0x74] sm:$0x1]  ;;  %vm1791_vm11 = vcmask 785408  }
  0x4d   :  { %v265_v1 = vshrl.u32 %v5196_v33, 16  ;;  %v268_v44 = vshll.u32 %v5196_v33, 16  ;;  %v275_v48 = vrot.slane %v273_v38, 7  ;;  %v573_v38 = vld [vmem:[#allocation2 + $0x28] sm:$0xe]  ;;  %vm1824_vm12 = vcmask 916480  }
  0x4e   :  { %1516 = vrot.lane.b32.xlu1 %v1415_v7, %s5626_s1  ;;  %1530 = vrot.lane.b32.xlu0 %v1464_v11, %s5626_s1  ;;  %v408_v7 = vld [vmem:[#allocation2 + $0x84] sm:$0x1]  ;;  %v1107_v15 = vshll.u32 %v4895_v54, 16 }
  0x4f   :  { %v267_v3 = vrot.slane %v265_v1, 7  ;;  %v278_v57 = vor.u32 %v276_v43, %v275_v48  ;;  %v414_v1 = vld [vmem:[#allocation2 + $0x8c] sm:$0x1] }
  0x51   :  { %v270_v11 = vor.u32 %v268_v44, %v267_v3  ;;  %v271_v12 = vrot.slane %v267_v3, 4  ;;  %v531_v44 = vld [vmem:[#allocation2 + $0x68] sm:$0xe]  ;;  %v412_v5 = vsel %vm5807_vm4, %v278_v57, %v411_v59  ;;  %v549_v59 = vld [vmem:[#allocation2 + $0x78] sm:$0xf] }
  0x52   :  { %1532 = vrot.lane.b32.xlu1 %v1471_v13, %s5626_s1  ;;  %782 = vrot.lane.b32.xlu0 %v686_v19, %s5621_s28  ;;  %v209_v13 = vshrl.u32 %v5189_v31, 16  ;;  %v4872_v19 = vcombine.low %v492_v2, %v492_v2  ;;  %v279_v31 = vrot.slane %v275_v48, 4  ;;  %v4949_v2 = vcombine.low %v570_v24, %v5917_v40  ;;  %413 = vst [vmem:[#allocation2 + $0x88] sm:$0xf] %v412_v5  ;;  %v453_v24 = vld [vmem:[#allocation2 + $0x70] sm:$0xf] }
  0x53   :  { %v406_v17 = vsel %vm5807_vm4, %v270_v11, %v405_v6  ;;  %v409_v18 = vsel %vm5819_vm5, %v271_v12, %v408_v7  ;;  %v1228_v6 = vrot.slane %v4903_v63, 1  ;;  %v4911_v7 = vcombine.low %v531_v44, %v6052_v55  ;;  %v579_v12 = vld [vmem:[#allocation2 + $0x68] sm:$0xe] }
  0x54   :  { %407 = vst [vmem:[#allocation2 + $0x80] sm:$0xf] %v406_v17  ;;  %410 = vst [vmem:[#allocation2 + $0x84] sm:$0x1] %v409_v18  ;;  %v211_v35 = vrot.slane %v209_v13, 7  ;;  %v415_v53 = vsel %vm5819_vm5, %v279_v31, %v414_v1  ;;  %v1594_v10 = vrot.slane %v4949_v2, 1 }
  0x55   :  { %416 = vst [vmem:[#allocation2 + $0x8c] sm:$0x1] %v415_v53  ;;  %v540_v13 = vld [vmem:[#allocation2 + $0x20] sm:$0xf] }
  0x56   :  { %784 = vrot.lane.b32.xlu1 %v693_v30, %s5621_s28  ;;  %798 = vrot.lane.b32.xlu0 %v742_v34, %s5621_s28  ;;  %v1105_v30 = vshrl.u32 %v4895_v54, 16  ;;  %v1109_v34 = vrot.slane %v1107_v15, 1  ;;  %v214_v41 = vor.u32 %v212_v23, %v211_v35  ;;  %v215_v42 = vrot.slane %v211_v35, 4  ;;  %v532_v15 = vld [vmem:[#allocation2 + $0x70] sm:$0xe] }
  0x57   :  { %v1116_v54 = vrot.slane %v1114_v47, 1  ;;  %v572_v17 = vld [vmem:[#allocation2 + $0x20] sm:$0xe]  ;;  %v6102_v18 = vcombine.low %v540_v13, %v556_v8  ;;  %v4958_v23 = vcombine.low %v579_v12, %v5949_v60  ;;  %v87_v60 = vld [vmem:[%s7994_s0 + $0x38] sm:$0xff] }
  0x58   :  { %v364_v33 = vsel %vm5807_vm4, %v214_v41, %v363_v37  ;;  %v367_v50 = vsel %vm5819_vm5, %v215_v42, %v366_v32  ;;  %v1110_v61 = vor.u32 %v1109_v34, %v1105_v30  ;;  %v580_v30 = vld [vmem:[#allocation2 + $0x70] sm:$0xe]  ;;  %v557_v34 = vld [vmem:[#allocation2 + $0x2c] sm:$0x1]  ;;  %v4919_v37 = vcombine.low %v540_v13, %v540_v13  ;;  %v541_v32 = vld [vmem:[#allocation2 + $0x28] sm:$0xf] }
  0x59   :  { %365 = vst [vmem:[#allocation2 + $0x38] sm:$0xf] %v364_v33  ;;  %368 = vst [vmem:[#allocation2 + $0x3c] sm:$0x1] %v367_v50  ;;  %v1419_v35 = vshll.u32 %v6102_v18, 16  ;;  %v4959_v39 = vcombine.low %v580_v30, %v564_v0  ;;  %v1603_v41 = vrot.slane %v4958_v23, 1  ;;  %v5190_v16 = vpack.c.bf16 %v87_v60, %v87_v60 }
  0x5a   :  { %800 = vrot.lane.b32.xlu1 %v749_v45, %s5621_s28  ;;  %878 = vrot.lane.b32.xlu0 %v860_v46, %s5620_s27  ;;  %v4880_v45 = vcombine.low %v500_v20, %v500_v20  ;;  %v1054_v46 = vor.u32 %v1053_v29, %v1049_v28  ;;  %v6105_v20 = vld [vmem:[#allocation2 + $0x24] sm:$0x1]  ;;  %v4951_v28 = vcombine.low %v572_v17, %v556_v8  ;;  %v548_v29 = vld [vmem:[#allocation2 + $0x70] sm:$0xf]  ;;  %v95_v42 = vld [vmem:[%s7994_s0 + $0x78] sm:$0xff]  ;;  %v1417_v33 = vshrl.u32 %v6102_v18, 16 }
  0x5b   :  { %v565_v47 = vld [vmem:[#allocation2 + $0x7c] sm:$0x1]  ;;  %v4927_v48 = vcombine.low %v548_v29, %v548_v29  ;;  %v4952_v57 = vcombine.low %v573_v38, %v557_v34  ;;  %v5198_v63 = vpack.c.bf16 %v95_v42, %v95_v42  ;;  %v6135_v1 = vrot.slane %v4959_v39, 1  ;;  %v6146_v8 = vld [vmem:[#allocation2 + $0x2c] sm:$0x1] }
  0x5c   :  { %v1421_v44 = vrot.slane %v1419_v35, 1  ;;  %v4920_v2 = vcombine.low %v541_v32, %v541_v32  ;;  %v217_v5 = vshrl.u32 %v5190_v16, 16  ;;  %v369_v18 = vld [vmem:[#allocation2 + $0x40] sm:$0xf]  ;;  %v417_v35 = vld [vmem:[#allocation2 + $0x90] sm:$0xf] }
  0x5d   :  { %v281_v12 = vshrl.u32 %v5198_v63, 16  ;;  %v6317_v49 = vld [vmem:[#allocation2 + $0x8c] sm:$0x1] }
  0x5e   :  { %880 = vrot.lane.b32.xlu1 %v861_v56, %s5620_s27  ;;  %894 = vrot.lane.b32.xlu0 %v868_v62, %s5620_s27  ;;  %v571_v56 = vld [vmem:[#allocation2 + $0x18] sm:$0xe]  ;;  %v1112_v62 = vshrl.u32 %v4896_v27, 16  ;;  %v4912_v27 = vcombine.low %v532_v15, %v6074_v14  ;;  %v4928_v15 = vcombine.low %v549_v59, %v549_v59  ;;  %v1422_v13 = vor.u32 %v1421_v44, %v1417_v33 }
  0x5f   :  { %v4950_v3 = vcombine.low %v571_v56, %v5934_v51  ;;  %v6132_v56 = vld [vmem:[#allocation2 + $0x74] sm:$0x1] }
  0x60   :  { %v1117_v40 = vor.u32 %v1116_v54, %v1112_v62  ;;  %v1237_v43 = vrot.slane %v4912_v27, 1  ;;  %v6137_v54 = vcombine.low %v549_v59, %v565_v47  ;;  %v6160_v27 = vld [vmem:[#allocation2 + $0x78] sm:$0xf] }
  0x61   :  { %v1595_v11 = vrot.slane %v4950_v3, 1 }
  0x62   :  { %896 = vrot.lane.b32.xlu1 %v869_v4, %s5620_s27  ;;  %958 = vrot.lane.b32.xlu0 %v4871_v9, %s5622_s29  ;;  %v524_v4 = vld [vmem:[#allocation2 + $0x20] sm:$0xe]  ;;  %v1482_v17 = vshll.u32 %v6137_v54, 16 }
  0x63   :  { %v578_v9 = vld [vmem:[#allocation2 + $0x60] sm:$0xe]  ;;  %v4904_v51 = vcombine.low %v524_v4, %v6058_v58  ;;  %v4967_v21 = vcombine.low %v1594_v10, %v1595_v11  ;;  %v219_v11 = vrot.slane %v217_v5, 7  ;;  %v485_v5 = vld [vmem:[#allocation2 + $0x70] sm:$0xe] }
  0x64   :  { %v4957_v55 = vcombine.low %v578_v9, %v5936_v52  ;;  %v6111_v52 = vcombine.low %v548_v29, %v564_v0  ;;  %v4849_v9 = vcombine.low %v453_v24, %v6132_v56  ;;  %v372_v0 = vld [vmem:[#allocation2 + $0x44] sm:$0x1]  ;;  %v283_v29 = vrot.slane %v281_v12, 7 }
  0x65   :  { %v1229_v58 = vrot.slane %v4904_v51, 1  ;;  %4991 = vmatprep.mubr.msk.bf16.mxu0 %vm1610_vm6, %v4967_v21  ;;  %v6150_v51 = vrot.slane %v4952_v57, 1 }
  0x66   :  { %960 = vrot.lane.b32.xlu1 %v4872_v19, %s5622_s29  ;;  %974 = vrot.lane.b32.xlu0 %v4879_v25, %s5622_s29  ;;  %v445_v19 = vld [vmem:[#allocation2 + $0x20] sm:$0xf]  ;;  %v1236_v25 = vrot.slane %v4911_v7, 1  ;;  %v1602_v36 = vrot.slane %v4957_v55, 1  ;;  %v1475_v50 = vshll.u32 %v6111_v52, 16  ;;  %v1473_v31 = vshrl.u32 %v6111_v52, 16 }
  0x67   :  { %v6119_v14 = vcombine.low %v445_v19, %v6105_v20  ;;  %v6144_v7 = vld [vmem:[#allocation2 + $0x28] sm:$0xf]  ;;  %v284_v55 = vshll.u32 %v5198_v63, 16  ;;  %v287_v39 = vrot.slane %v283_v29, 4  ;;  %v751_v57 = vshrl.u32 %v4849_v9, 16 }
  0x68   :  { %v4975_v62 = vcombine.low %v1602_v36, %v1603_v41  ;;  %v4842_v21 = vcombine.low %v6144_v7, %v6146_v8  ;;  %v420_v36 = vld [vmem:[#allocation2 + $0x94] sm:$0x1] }
  0x69   :  { %v697_v4 = vshll.u32 %v6119_v14, 16  ;;  %v286_v38 = vor.u32 %v284_v55, %v283_v29  ;;  %v6208_v55 = vld [vmem:[#allocation2 + $0x34] sm:$0x1] }
  0x6a   :  { %976 = vrot.lane.b32.xlu1 %v4880_v45, %s5622_s29  ;;  %1150 = vrot.lane.b32.xlu0 %v1054_v46, %s5623_s20  ;;  %v6126_v45 = vrot.slane %v4951_v28, 1  ;;  %v6128_v46 = vcombine.low %v541_v32, %v557_v34  ;;  %v6162_v28 = vld [vmem:[#allocation2 + $0x7c] sm:$0x1]  ;;  %v1484_v32 = vrot.slane %v1482_v17, 1  ;;  %v704_v42 = vshll.u32 %v4842_v21, 16 }
  0x6b   :  { %4995 = vmatprep.mubr.msk.bf16.mxu1 %vm1610_vm6, %v4975_v62  ;;  %v699_v34 = vrot.slane %v697_v4, 1  ;;  %v702_v24 = vshrl.u32 %v4842_v21, 16  ;;  %v478_v4 = vld [vmem:[#allocation2 + $0x28] sm:$0xe]  ;;  %v501_v21 = vld [vmem:[#allocation2 + $0x78] sm:$0xf] }
  0x6c   :  { %v1426_v3 = vshll.u32 %v6128_v46, 16  ;;  %v1424_v10 = vshrl.u32 %v6128_v46, 16  ;;  %v4850_v46 = vcombine.low %v6160_v27, %v6162_v28 }
  0x6e   :  { %1152 = vrot.lane.b32.xlu1 %v1061_v26, %s5623_s20  ;;  %1166 = vrot.lane.b32.xlu0 %v1110_v61, %s5623_s20  ;;  %v581_v26 = vld [vmem:[#allocation2 + $0x78] sm:$0xe]  ;;  %v695_v61 = vshrl.u32 %v6119_v14, 16  ;;  %v1428_v19 = vrot.slane %v1426_v3, 1  ;;  %v760_v63 = vshll.u32 %v4850_v46, 16 }
  0x6f   :  { %v4960_v53 = vcombine.low %v581_v26, %v565_v47  ;;  %v418_v47 = vsel %vm5807_vm4, %v286_v38, %v417_v35  ;;  %v706_v26 = vrot.slane %v704_v42, 1 }
  0x70   :  { %v1429_v41 = vor.u32 %v1428_v19, %v1424_v10  ;;  %419 = vst [vmem:[#allocation2 + $0x90] sm:$0xf] %v418_v47 }
  0x72   :  { %1168 = vrot.lane.b32.xlu1 %v1117_v40, %s5623_s20  ;;  %1246 = vrot.lane.b32.xlu0 %v1228_v6, %s5624_s12  ;;  %v1477_v6 = vrot.slane %v1475_v50, 1  ;;  %v220_v40 = vshll.u32 %v5190_v16, 16  ;;  %v421_v16 = vsel %vm5819_vm5, %v287_v39, %v420_v36  ;;  %v700_v50 = vor.u32 %v699_v34, %v695_v61  ;;  %v502_v36 = vld [vmem:[#allocation2 + $0x80] sm:$0xf] }
  0x73   :  { %422 = vst [vmem:[#allocation2 + $0x94] sm:$0x1] %v421_v16  ;;  %v758_v61 = vshrl.u32 %v4850_v46, 16 }
  0x74   :  { %v222_v23 = vor.u32 %v220_v40, %v219_v11  ;;  %v1478_v30 = vor.u32 %v1477_v6, %v1473_v31  ;;  %v707_v31 = vor.u32 %v706_v26, %v702_v24  ;;  %v6194_v40 = vld [vmem:[#allocation2 + $0x2c] sm:$0x1] }
  0x76   :  { %1248 = vrot.lane.b32.xlu1 %v1229_v58, %s5624_s12  ;;  %1262 = vrot.lane.b32.xlu0 %v1236_v25, %s5624_s12  ;;  %v223_v58 = vrot.slane %v219_v11, 4  ;;  %v6158_v25 = vrot.slane %v4960_v53, 1  ;;  %v370_v52 = vsel %vm5807_vm4, %v222_v23, %v369_v18  ;;  %v486_v11 = vld [vmem:[#allocation2 + $0x78] sm:$0xe]  ;;  %v494_v23 = vld [vmem:[#allocation2 + $0x30] sm:$0xf] }
  0x77   :  { %371 = vst [vmem:[#allocation2 + $0x40] sm:$0xf] %v370_v52  ;;  %v4874_v39 = vcombine.low %v494_v23, %v494_v23 }
  0x78   :  { %v373_v60 = vsel %vm5819_vm5, %v223_v58, %v372_v0  ;;  %v6204_v0 = vld [vmem:[#allocation2 + $0x7c] sm:$0x1] }
  0x79   :  { %374 = vst [vmem:[#allocation2 + $0x44] sm:$0x1] %v373_v60  ;;  %v4897_v58 = vcombine.low %v501_v21, %v6204_v0  ;;  %v6218_v60 = vld [vmem:[#allocation2 + $0x84] sm:$0x1] }
  0x7a   :  { %1264 = vrot.lane.b32.xlu1 %v1237_v43, %s5624_s12  ;;  %1326 = vrot.lane.b32.xlu0 %v4919_v37, %s5625_s17  ;;  %v1480_v37 = vshrl.u32 %v6137_v54, 16  ;;  %v753_v43 = vshll.u32 %v4849_v9, 16  ;;  %v477_v54 = vld [vmem:[#allocation2 + $0x20] sm:$0xe]  ;;  %v4865_v9 = vcombine.low %v485_v5, %v6132_v56  ;;  %v4898_v42 = vcombine.low %v502_v36, %v6218_v60  ;;  %v526_v5 = vld [vmem:[#allocation2 + $0x30] sm:$0xe] }
  0x7b   :  { %v4857_v44 = vcombine.low %v477_v54, %v6105_v20  ;;  %v4858_v20 = vcombine.low %v478_v4, %v6146_v8  ;;  %v4866_v8 = vcombine.low %v486_v11, %v6162_v28  ;;  %v4890_v28 = vcombine.low %v494_v23, %v6208_v55 }
  0x7c   :  { %v1485_v59 = vor.u32 %v1484_v32, %v1480_v37  ;;  %v755_v62 = vrot.slane %v753_v43, 1  ;;  %v870_v18 = vrot.slane %v4865_v9, 1  ;;  %v1121_v38 = vshll.u32 %v4897_v58, 16 }
  0x7d   :  { %v862_v6 = vrot.slane %v4857_v44, 1  ;;  %v863_v17 = vrot.slane %v4858_v20, 1  ;;  %v1072_v43 = vshll.u32 %v4890_v28, 16  ;;  %v4906_v11 = vcombine.low %v526_v5, %v6208_v55  ;;  %v6269_v5 = vld [vmem:[#allocation2 + $0x80] sm:$0xf] }
  0x7e   :  { %1328 = vrot.lane.b32.xlu1 %v4920_v2, %s5625_s17  ;;  %1342 = vrot.lane.b32.xlu0 %v4927_v48, %s5625_s17  ;;  %v756_v14 = vor.u32 %v755_v62, %v751_v57  ;;  %v762_v2 = vrot.slane %v760_v63, 1  ;;  %v1123_v24 = vrot.slane %v1121_v38, 1  ;;  %v4882_v57 = vcombine.low %v502_v36, %v502_v36  ;;  %v525_v63 = vld [vmem:[#allocation2 + $0x28] sm:$0xe]  ;;  %8016 = vst [vmem:[#allocation7_spill] sm:$0xff] %v6269_v5 }
  0x7f   :  { %v1074_v26 = vrot.slane %v1072_v43, 1  ;;  %v1128_v62 = vshll.u32 %v4898_v42, 16  ;;  %v1231_v55 = vrot.slane %v4906_v11, 1  ;;  %v583_v38 = vld [vmem:[#allocation2 + $0x88] sm:$0xe] }
  0x80   :  { %v763_v53 = vor.u32 %v762_v2, %v758_v61  ;;  %v1126_v2 = vshrl.u32 %v4898_v42, 16  ;;  %v550_v43 = vld [vmem:[#allocation2 + $0x80] sm:$0xf]  ;;  %v551_v11 = vld [vmem:[#allocation2 + $0x88] sm:$0xf] }
  0x81   :  { %v1130_v4 = vrot.slane %v1128_v62, 1  ;;  %v6315_v48 = vld [vmem:[#allocation2 + $0x88] sm:$0xf] }
  0x82   :  { %1344 = vrot.lane.b32.xlu1 %v4928_v15, %s5625_s17  ;;  %1518 = vrot.lane.b32.xlu0 %v1422_v13, %s5626_s1  ;;  %v493_v15 = vld [vmem:[#allocation2 + $0x28] sm:$0xf] }
  0x83   :  { %v4889_v13 = vcombine.low %v493_v15, %v6194_v40  ;;  %v4873_v34 = vcombine.low %v493_v15, %v493_v15  ;;  %v1131_v9 = vor.u32 %v1130_v4, %v1126_v2 }
  0x85   :  { %v1065_v29 = vshll.u32 %v4889_v13, 16  ;;  %v1063_v37 = vshrl.u32 %v4889_v13, 16  ;;  %v574_v13 = vld [vmem:[#allocation2 + $0x30] sm:$0xe] }
  0x86   :  { %1520 = vrot.lane.b32.xlu1 %v1429_v41, %s5626_s1  ;;  %1534 = vrot.lane.b32.xlu0 %v1478_v30, %s5626_s1  ;;  %v871_v30 = vrot.slane %v4866_v8, 1  ;;  %v4881_v41 = vcombine.low %v501_v21, %v501_v21  ;;  %v558_v8 = vld [vmem:[#allocation2 + $0x34] sm:$0x1] }
  0x87   :  { %v1067_v32 = vrot.slane %v1065_v29, 1  ;;  %v582_v29 = vld [vmem:[#allocation2 + $0x80] sm:$0xe] }
  0x89   :  { %v6188_v3 = vpop.permute.xlu0 %874  ;;  %v1068_v16 = vor.u32 %v1067_v32, %v1063_v37  ;;  %v566_v32 = vld [vmem:[#allocation2 + $0x84] sm:$0x1] }
  0x8a   :  { %1536 = vrot.lane.b32.xlu1 %v1485_v59, %s5626_s1  ;;  %786 = vrot.lane.b32.xlu0 %v700_v50, %s5621_s28  ;;  %v1119_v50 = vshrl.u32 %v4897_v58, 16  ;;  %v1070_v59 = vshrl.u32 %v4890_v28, 16  ;;  %v559_v58 = vld [vmem:[#allocation2 + $0x3c] sm:$0x1] }
  0x8c   :  { %v1124_v61 = vor.u32 %v1123_v24, %v1119_v50  ;;  %v6257_v50 = vld [vmem:[#allocation2 + $0x30] sm:$0xf] }
  0x8d   :  { %v6196_v10 = vpop.permute.xlu0 %890 }
  0x8e   :  { %788 = vrot.lane.b32.xlu1 %v707_v31, %s5621_s28  ;;  %802 = vrot.lane.b32.xlu0 %v756_v14, %s5621_s28  ;;  %v4905_v31 = vcombine.low %v525_v63, %v6194_v40  ;;  %v1075_v14 = vor.u32 %v1074_v26, %v1070_v59  ;;  %v4945_v26 = vcombine.low %v550_v43, %v566_v32 }
  0x8f   :  { %v6198_v12 = vpop.permute.xlu1 %794 }
  0x90   :  { %v1230_v40 = vrot.slane %v4905_v31, 1 }
  0x91   :  { %v6206_v56 = vpop.permute.xlu0 %778 }
  0x92   :  { %804 = vrot.lane.b32.xlu1 %v763_v53, %s5621_s28  ;;  %882 = vrot.lane.b32.xlu0 %v862_v6, %s5620_s27  ;;  %v533_v53 = vld [vmem:[#allocation2 + $0x78] sm:$0xe] }
  0x93   :  { %v4913_v15 = vcombine.low %v533_v53, %v6204_v0  ;;  %v6271_v53 = vld [vmem:[#allocation2 + $0x84] sm:$0x1] }
  0x94   :  { %v6210_v19 = vpop.permute.xlu1 %956 }
  0x95   :  { %v1238_v36 = vrot.slane %v4913_v15, 1 }
  0x96   :  { %884 = vrot.lane.b32.xlu1 %v863_v17, %s5620_s27  ;;  %898 = vrot.lane.b32.xlu0 %v870_v18, %s5620_s27  ;;  %v575_v17 = vld [vmem:[#allocation2 + $0x38] sm:$0xe]  ;;  %v534_v18 = vld [vmem:[#allocation2 + $0x80] sm:$0xe] }
  0x97   :  { %v6216_v52 = vpop.permute.xlu0 %954  ;;  %v4954_v28 = vcombine.low %v575_v17, %v559_v58  ;;  %v4914_v0 = vcombine.low %v534_v18, %v6218_v60  ;;  %v6263_v60 = vld [vmem:[#allocation2 + $0x34] sm:$0x1]  ;;  %v6283_v17 = vld [vmem:[#allocation2 + $0x3c] sm:$0x1] }
  0x98   :  { %v6220_v35 = vpop.permute.xlu1 %972  ;;  %v6279_v15 = vcombine.low %v6257_v50, %v6263_v60 }
  0x99   :  { %v6261_v59 = vrot.slane %v4954_v28, 1  ;;  %v1239_v63 = vrot.slane %v4914_v0, 1  ;;  %v6299_v0 = vcombine.low %v6269_v5, %v6271_v53 }
  0x9a   :  { %900 = vrot.lane.b32.xlu1 %v871_v30, %s5620_s27  ;;  %962 = vrot.lane.b32.xlu0 %v4873_v34, %s5622_s29  ;;  %v542_v30 = vld [vmem:[#allocation2 + $0x30] sm:$0xf]  ;;  %v4953_v34 = vcombine.low %v574_v13, %v558_v8  ;;  %v6281_v13 = vld [vmem:[#allocation2 + $0x38] sm:$0xf] }
  0x9b   :  { %v6225_v46 = vpop.permute.xlu0 %970  ;;  %v4937_v37 = vcombine.low %v542_v30, %v558_v8  ;;  %v4921_v31 = vcombine.low %v542_v30, %v542_v30 }
  0x9c   :  { %v6227_v47 = vpop.permute.xlu1 %876  ;;  %v6259_v24 = vrot.slane %v4953_v34, 1  ;;  %v4929_v34 = vcombine.low %v550_v43, %v550_v43 }
  0x9d   :  { %v1431_v4 = vshrl.u32 %v4937_v37, 16 }
  0x9e   :  { %964 = vrot.lane.b32.xlu1 %v4874_v39, %s5622_s29  ;;  %978 = vrot.lane.b32.xlu0 %v4881_v41, %s5622_s29  ;;  %v4961_v39 = vcombine.low %v582_v29, %v566_v32  ;;  %v5440_v29 = vld [vmem:[#allocation2 + $0x8] sm:$0xf] }
  0xa0   :  { %v6231_v54 = vpop.permute.xlu1 %892  ;;  %v6233_v44 = vpop.permute.xlu0 %780  ;;  %v6267_v2 = vrot.slane %v4961_v39, 1  ;;  %v1487_v39 = vshrl.u32 %v4945_v26, 16 }
  0xa1   :  { %v1616_v33 = vsel %vm1610_vm6, %v5440_v29, %v6233_v44 }
  0xa2   :  { %980 = vrot.lane.b32.xlu1 %v4882_v57, %s5622_s29  ;;  %1154 = vrot.lane.b32.xlu0 %v1068_v16, %s5623_s20  ;;  %v567_v16 = vld [vmem:[#allocation2 + $0x8c] sm:$0x1]  ;;  %v543_v57 = vld [vmem:[#allocation2 + $0x38] sm:$0xf]  ;;  %v1663_v22 = vsel %vm1659_vm7, %v1616_v33, %v6227_v47 }
  0xa3   :  { %v4962_v62 = vcombine.low %v583_v38, %v567_v16  ;;  %v6285_v18 = vcombine.low %v551_v11, %v567_v16  ;;  %v4922_v30 = vcombine.low %v543_v57, %v543_v57  ;;  %v711_v38 = vshll.u32 %v6279_v15, 16 }
  0xa4   :  { %v6238_v6 = vpop.permute.xlu1 %796  ;;  %v6240_v20 = vpop.permute.xlu0 %1146 }
  0xa5   :  { %v6287_v8 = vrot.slane %v4962_v62, 1  ;;  %v1496_v16 = vshll.u32 %v6285_v18, 16  ;;  %v4930_v62 = vcombine.low %v551_v11, %v551_v11  ;;  %v5441_v11 = vld [vmem:[#allocation2] sm:$0xf]  ;;  %v1494_v29 = vshrl.u32 %v6285_v18, 16 }
  0xa6   :  { %1156 = vrot.lane.b32.xlu1 %v1075_v14, %s5623_s20  ;;  %1170 = vrot.lane.b32.xlu0 %v1124_v61, %s5623_s20  ;;  %v4938_v14 = vcombine.low %v543_v57, %v559_v58  ;;  %v1433_v61 = vshll.u32 %v4937_v37, 16  ;;  %v1489_v58 = vshll.u32 %v4945_v26, 16  ;;  %v6323_v57 = vld [vmem:[#allocation2 + $0x30] sm:$0xe] }
  0xa8   :  { %v6246_v21 = vpop.permute.xlu1 %1148  ;;  %v6248_v23 = vpop.permute.xlu0 %1162  ;;  %v1435_v28 = vrot.slane %v1433_v61, 1  ;;  %v1491_v43 = vrot.slane %v1489_v58, 1  ;;  %v767_v58 = vshll.u32 %v6299_v0, 16 }
  0xaa   :  { %1172 = vrot.lane.b32.xlu1 %v1131_v9, %s5623_s20  ;;  %1250 = vrot.lane.b32.xlu0 %v1230_v40, %s5624_s12  ;;  %v1492_v44 = vor.u32 %v1491_v43, %v1487_v39 }
  0xac   :  { %v6253_v41 = vpop.permute.xlu1 %1164  ;;  %v6255_v42 = vpop.permute.xlu0 %1242 }
  0xae   :  { %1252 = vrot.lane.b32.xlu1 %v1231_v55, %s5624_s12  ;;  %1266 = vrot.lane.b32.xlu0 %v1238_v36, %s5624_s12  ;;  %v1440_v55 = vshll.u32 %v4938_v14, 16  ;;  %v6295_v36 = vcombine.low %v6281_v13, %v6283_v17 }
  0xb0   :  { %v6273_v9 = vpop.permute.xlu1 %1244  ;;  %v6275_v40 = vpop.permute.xlu0 %1258  ;;  %v1442_v61 = vrot.slane %v1440_v55, 1  ;;  %v718_v26 = vshll.u32 %v6295_v36, 16  ;;  %v1498_v55 = vrot.slane %v1496_v16, 1  ;;  %v716_v39 = vshrl.u32 %v6295_v36, 16 }
  0xb1   :  { %v769_v16 = vrot.slane %v767_v58, 1  ;;  %v1696_v36 = vsel %vm1692_vm8, %v1663_v22, %v6210_v19 }
  0xb2   :  { %1268 = vrot.lane.b32.xlu1 %v1239_v63, %s5624_s12  ;;  %1330 = vrot.lane.b32.xlu0 %v4921_v31, %s5625_s17  ;;  %v1436_v63 = vor.u32 %v1435_v28, %v1431_v4  ;;  %v1438_v31 = vshrl.u32 %v4938_v14, 16  ;;  %v709_v4 = vshrl.u32 %v6279_v15, 16  ;;  %v713_v14 = vrot.slane %v711_v38, 1 }
  0xb3   :  { %v1613_v28 = vsel %vm1610_vm6, %v5441_v11, %v6206_v56  ;;  %v765_v15 = vshrl.u32 %v6299_v0, 16  ;;  %v4852_v38 = vcombine.low %v6315_v48, %v6317_v49  ;;  %v5442_v56 = vld [vmem:[#allocation2 + $0x58] sm:$0xf]  ;;  %v720_v43 = vrot.slane %v718_v26, 1 }
  0xb4   :  { %v6301_v37 = vpop.permute.xlu1 %1260  ;;  %v6303_v32 = vpop.permute.xlu0 %1322  ;;  %v1443_v5 = vor.u32 %v1442_v61, %v1438_v31  ;;  %v1640_v18 = vsel %vm1610_vm6, %v5442_v56, %v6238_v6  ;;  %v1661_v33 = vsel %vm1659_vm7, %v1613_v28, %v6188_v3  ;;  %v4859_v0 = vcombine.low %v6323_v57, %v6263_v60  ;;  %v5443_v31 = vld [vmem:[#allocation2 + $0x50] sm:$0xf] }
  0xb5   :  { %v1637_v61 = vsel %vm1610_vm6, %v5443_v31, %v6198_v12  ;;  %v1694_v6 = vsel %vm1692_vm8, %v1661_v33, %v6216_v52  ;;  %v1499_v26 = vor.u32 %v1498_v55, %v1494_v29  ;;  %v1679_v3 = vsel %vm1659_vm7, %v1640_v18, %v6231_v54  ;;  %v480_v55 = vld [vmem:[#allocation2 + $0x38] sm:$0xe]  ;;  %v6392_v33 = vld [vmem:[#allocation2 + $0x3c] sm:$0x1] }
  0xb6   :  { %1332 = vrot.lane.b32.xlu1 %v4922_v30, %s5625_s17  ;;  %1346 = vrot.lane.b32.xlu0 %v4929_v34, %s5625_s17  ;;  %v1727_v58 = vsel %vm1725_vm9, %v1694_v6, %v6240_v20  ;;  %v1729_v60 = vsel %vm1725_vm9, %v1696_v36, %v6246_v21  ;;  %v774_v12 = vshll.u32 %v4852_v38, 16  ;;  %v721_v19 = vor.u32 %v720_v43, %v716_v39  ;;  %v6408_v6 = vld [vmem:[#allocation2 + $0x44] sm:$0x1] }
  0xb7   :  { %v1760_v52 = vsel %vm1758_vm10, %v1727_v58, %v6255_v42  ;;  %v1762_v22 = vsel %vm1758_vm10, %v1729_v60, %v6273_v9  ;;  %v770_v57 = vor.u32 %v769_v16, %v765_v15  ;;  %v1677_v54 = vsel %vm1659_vm7, %v1637_v61, %v6196_v10  ;;  %v6406_v61 = vld [vmem:[#allocation2 + $0x8c] sm:$0x1] }
  0xb8   :  { %v1325_v30 = vpop.permute.xlu1 %1324  ;;  %v1339_v34 = vpop.permute.xlu0 %1338  ;;  %v1793_v20 = vsel %vm1791_vm11, %v1760_v52, %v6303_v32  ;;  %v1710_v11 = vsel %vm1692_vm8, %v1677_v54, %v6225_v46  ;;  %v1712_v42 = vsel %vm1692_vm8, %v1679_v3, %v6220_v35  ;;  %v487_v46 = vld [vmem:[#allocation2 + $0x80] sm:$0xe]  ;;  %v864_v43 = vrot.slane %v4859_v0, 1  ;;  %v503_v3 = vld [vmem:[#allocation2 + $0x88] sm:$0xf] }
  0xb9   :  { %v1795_v21 = vsel %vm1791_vm11, %v1762_v22, %v1325_v30  ;;  %v1743_v10 = vsel %vm1725_vm9, %v1710_v11, %v6248_v23  ;;  %v1745_v32 = vsel %vm1725_vm9, %v1712_v42, %v6253_v41  ;;  %v4867_v39 = vcombine.low %v487_v46, %v6271_v53  ;;  %v6418_v52 = vld [vmem:[#allocation2 + $0x94] sm:$0x1]  ;;  %v504_v54 = vld [vmem:[#allocation2 + $0x90] sm:$0xf] }
  0xba   :  { %1348 = vrot.lane.b32.xlu1 %v4930_v62, %s5625_s17  ;;  %1522 = vrot.lane.b32.xlu0 %v1436_v63, %s5626_s1  ;;  %v714_v63 = vor.u32 %v713_v14, %v709_v4  ;;  %v772_v14 = vshrl.u32 %v4852_v38, 16  ;;  %v1776_v35 = vsel %vm1758_vm10, %v1743_v10, %v6275_v40  ;;  %v1778_v29 = vsel %vm1758_vm10, %v1745_v32, %v6301_v37 }
  0xbb   :  { %v1809_v15 = vsel %vm1791_vm11, %v1776_v35, %v1339_v34  ;;  %v8017_v40 = vcombine.low %v6126_v45, %v6150_v51  ;;  %v4860_v16 = vcombine.low %v480_v55, %v6283_v17  ;;  %v495_v45 = vld [vmem:[#allocation2 + $0x38] sm:$0xf]  ;;  %v872_v0 = vrot.slane %v4867_v39, 1 }
  0xbc   :  { %v1341_v47 = vpop.permute.xlu1 %1340  ;;  %v1515_v62 = vpop.permute.xlu0 %1514  ;;  %v4891_v51 = vcombine.low %v495_v45, %v6392_v33 }
  0xbd   :  { %v1826_v9 = vsel %vm1824_vm12, %v1793_v20, %v1515_v62  ;;  %v1811_v23 = vsel %vm1791_vm11, %v1778_v29, %v1341_v47  ;;  %v488_v47 = vld [vmem:[#allocation2 + $0x88] sm:$0xe]  ;;  %v865_v17 = vrot.slane %v4860_v16, 1  ;;  %v527_v29 = vld [vmem:[#allocation2 + $0x38] sm:$0xe] }
  0xbe   :  { %1524 = vrot.lane.b32.xlu1 %v1443_v5, %s5626_s1  ;;  %1538 = vrot.lane.b32.xlu0 %v1492_v44, %s5626_s1  ;;  %v776_v44 = vrot.slane %v774_v12, 1  ;;  %v4868_v31 = vcombine.low %v488_v47, %v6317_v49  ;;  %v1079_v58 = vshll.u32 %v4891_v51, 16  ;;  %v4875_v12 = vcombine.low %v495_v45, %v495_v45 }
  0xbf   :  { %v1077_v20 = vshrl.u32 %v4891_v51, 16  ;;  %v536_v51 = vld [vmem:[#allocation2 + $0x90] sm:$0xe] }
  0xc0   :  { %v1517_v5 = vpop.permute.xlu1 %1516  ;;  %v1531_v4 = vpop.permute.xlu0 %1530  ;;  %v777_v34 = vor.u32 %v776_v44, %v772_v14  ;;  %v873_v60 = vrot.slane %v4868_v31, 1  ;;  %v4900_v14 = vcombine.low %v504_v54, %v6418_v52  ;;  %v544_v31 = vld [vmem:[#allocation2 + $0x40] sm:$0xf] }
  0xc1   :  { %v1828_v28 = vsel %vm1824_vm12, %v1795_v21, %v1517_v5  ;;  %v1842_v56 = vsel %vm1824_vm12, %v1809_v15, %v1531_v4  ;;  %v1081_v21 = vrot.slane %v1079_v58, 1  ;;  %v4883_v4 = vcombine.low %v503_v3, %v503_v3  ;;  %v6458_v58 = vld [vmem:[#allocation2 + $0x4c] sm:$0x1] }
  0xc2   :  { %v4966_v30 = vcombine.low %v1826_v9, %v1828_v28  ;;  %1540 = vrot.lane.b32.xlu1 %v1499_v26, %s5626_s1  ;;  %790 = vrot.lane.b32.xlu0 %v714_v63, %s5621_s28  ;;  %v8018_v63 = vcombine.low %v6135_v1, %v6158_v25  ;;  %v496_v1 = vld [vmem:[#allocation2 + $0x40] sm:$0xf]  ;;  %v4899_v25 = vcombine.low %v503_v3, %v6406_v61  ;;  %v1142_v44 = vshll.u32 %v4900_v14, 16 }
  0xc3   :  { %v4892_v49 = vcombine.low %v496_v1, %v6408_v6  ;;  %v4876_v5 = vcombine.low %v496_v1, %v496_v1  ;;  %v1082_v32 = vor.u32 %v1081_v21, %v1077_v20  ;;  %v4923_v21 = vcombine.low %v544_v31, %v544_v31 }
  0xc4   :  { %v1533_v38 = vpop.permute.xlu1 %1532  ;;  %2047 = vmatmul.mubr.bf16.vlgmr.msra.gmra.mxu0 %v4966_v30  ;;  %v6380_v41 = vpop.permute.xlu0 %782  ;;  %v1133_v28 = vshrl.u32 %v4899_v25, 16  ;;  %v4884_v30 = vcombine.low %v504_v54, %v504_v54  ;;  %v552_v54 = vld [vmem:[#allocation2 + $0x90] sm:$0xf] }
  0xc5   :  { %v1844_v18 = vsel %vm1824_vm12, %v1811_v23, %v1533_v38  ;;  %4992 = vmatprep.mubr.msk.bf16.mxu0 %vm1610_vm6, %v8017_v40  ;;  %v1086_v11 = vshll.u32 %v4892_v49, 16  ;;  %v1084_v46 = vshrl.u32 %v4892_v49, 16  ;;  %v4907_v23 = vcombine.low %v527_v29, %v6392_v33  ;;  %v528_v40 = vld [vmem:[#allocation2 + $0x40] sm:$0xe]  ;;  %v545_v49 = vld [vmem:[#allocation2 + $0x48] sm:$0xf] }
  0xc6   :  { %v4974_v37 = vcombine.low %v1842_v56, %v1844_v18  ;;  %792 = vrot.lane.b32.xlu1 %v721_v19, %s5621_s28  ;;  %806 = vrot.lane.b32.xlu0 %v770_v57, %s5621_s28  ;;  %v1135_v57 = vshll.u32 %v4899_v25, 16  ;;  %v1140_v38 = vshrl.u32 %v4900_v14, 16  ;;  %v1144_v56 = vrot.slane %v1142_v44, 1 }
  0xc7   :  { %v1088_v35 = vrot.slane %v1086_v11, 1  ;;  %v1232_v33 = vrot.slane %v4907_v23, 1  ;;  %v4908_v47 = vcombine.low %v528_v40, %v6408_v6  ;;  %v4916_v25 = vcombine.low %v536_v51, %v6418_v52 }
  0xc8   :  { %v6394_v62 = vpop.permute.xlu1 %784  ;;  %2079 = vmatmul.mubr.bf16.vlgmr.msra.gmra.mxu1 %v4974_v37  ;;  %v6396_v53 = vpop.permute.xlu0 %798  ;;  %v1137_v10 = vrot.slane %v1135_v57, 1  ;;  %v535_v37 = vld [vmem:[#allocation2 + $0x88] sm:$0xe]  ;;  %v1145_v16 = vor.u32 %v1144_v56, %v1140_v38  ;;  %v4940_v57 = vcombine.low %v545_v49, %v6458_v58  ;;  %v4931_v44 = vcombine.low %v552_v54, %v552_v54 }
  0xc9   :  { %4996 = vmatprep.mubr.msk.bf16.mxu1 %vm1610_vm6, %v8018_v63  ;;  %v1089_v18 = vor.u32 %v1088_v35, %v1084_v46  ;;  %v4915_v45 = vcombine.low %v535_v37, %v6406_v61  ;;  %v6448_v63 = vld [vmem:[#allocation2 + $0x44] sm:$0x1]  ;;  %v1233_v3 = vrot.slane %v4908_v47, 1  ;;  %v6460_v61 = vld [vmem:[#allocation2 + $0x94] sm:$0x1]  ;;  %v1241_v20 = vrot.slane %v4916_v25, 1 }
  0xca   :  { %808 = vrot.lane.b32.xlu1 %v777_v34, %s5621_s28  ;;  %886 = vrot.lane.b32.xlu0 %v864_v43, %s5620_s27  ;;  %v1138_v39 = vor.u32 %v1137_v10, %v1133_v28  ;;  %v4939_v6 = vcombine.low %v544_v31, %v6448_v63  ;;  %v4947_v52 = vcombine.low %v552_v54, %v6460_v61  ;;  %v553_v28 = vld [vmem:[#allocation2 + $0x98] sm:$0xf]  ;;  %v5444_v25 = vld [vmem:[#allocation2 + $0x10] sm:$0xf] }
  0xcb   :  { %v1240_v1 = vrot.slane %v4915_v45, 1  ;;  %v4924_v10 = vcombine.low %v545_v49, %v545_v49  ;;  %v4932_v56 = vcombine.low %v553_v28, %v553_v28  ;;  %v5445_v49 = vld [vmem:[#allocation2 + $0x18] sm:$0xf] }
  0xcc   :  { %v6410_v36 = vpop.permute.xlu1 %800  ;;  %v6412_v26 = vpop.permute.xlu0 %878  ;;  %v1445_v46 = vshrl.u32 %v4939_v6, 16  ;;  %v1503_v29 = vshll.u32 %v4947_v52, 16  ;;  %v1501_v37 = vshrl.u32 %v4947_v52, 16 }
  0xce   :  { %888 = vrot.lane.b32.xlu1 %v865_v17, %s5620_s27  ;;  %902 = vrot.lane.b32.xlu0 %v872_v0, %s5620_s27 }
  0xd0   :  { %v6420_v22 = vpop.permute.xlu1 %880  ;;  %v6422_v19 = vpop.permute.xlu0 %894 }
  0xd2   :  { %904 = vrot.lane.b32.xlu1 %v873_v60, %s5620_s27  ;;  %966 = vrot.lane.b32.xlu0 %v4875_v12, %s5622_s29 }
  0xd4   :  { %v6427_v42 = vpop.permute.xlu1 %896  ;;  %v6429_v9 = vpop.permute.xlu0 %958 }
  0xd6   :  { %968 = vrot.lane.b32.xlu1 %v4876_v5, %s5622_s29  ;;  %982 = vrot.lane.b32.xlu0 %v4883_v4, %s5622_s29  ;;  %v6468_v5 = vld [vmem:[#allocation2 + $0x9c] sm:$0x1]  ;;  %v1447_v4 = vshll.u32 %v4939_v6, 16  ;;  %v1619_v6 = vsel %vm1610_vm6, %v5444_v25, %v6380_v41 }
  0xd7   :  { %v1665_v54 = vsel %vm1659_vm7, %v1619_v6, %v6412_v26 }
  0xd8   :  { %v6433_v55 = vpop.permute.xlu1 %960  ;;  %v6435_v15 = vpop.permute.xlu0 %974  ;;  %v1449_v35 = vrot.slane %v1447_v4, 1  ;;  %v1698_v4 = vsel %vm1692_vm8, %v1665_v54, %v6429_v9 }
  0xda   :  { %984 = vrot.lane.b32.xlu1 %v4884_v30, %s5622_s29  ;;  %1158 = vrot.lane.b32.xlu0 %v1082_v32, %s5623_s20  ;;  %v4948_v32 = vcombine.low %v553_v28, %v6468_v5  ;;  %v1454_v30 = vshll.u32 %v4940_v57, 16  ;;  %v1450_v40 = vor.u32 %v1449_v35, %v1445_v46 }
  0xdc   :  { %v6440_v34 = vpop.permute.xlu1 %976  ;;  %v6442_v43 = vpop.permute.xlu0 %1150 }
  0xdd   :  { %v1731_v41 = vsel %vm1725_vm9, %v1698_v4, %v6442_v43  ;;  %v576_v4 = vld [vmem:[#allocation2 + $0x40] sm:$0xe] }
  0xde   :  { %1160 = vrot.lane.b32.xlu1 %v1089_v18, %s5623_s20  ;;  %1174 = vrot.lane.b32.xlu0 %v1138_v39, %s5623_s20  ;;  %v1452_v18 = vshrl.u32 %v4940_v57, 16  ;;  %v1456_v39 = vrot.slane %v1454_v30, 1  ;;  %v1622_v57 = vsel %vm1610_vm6, %v5445_v49, %v6394_v62 }
  0xe0   :  { %v6450_v17 = vpop.permute.xlu1 %1152  ;;  %v6452_v0 = vpop.permute.xlu0 %1166  ;;  %v1457_v51 = vor.u32 %v1456_v39, %v1452_v18 }
  0xe2   :  { %1176 = vrot.lane.b32.xlu1 %v1145_v16, %s5623_s20  ;;  %1254 = vrot.lane.b32.xlu0 %v1232_v33, %s5624_s12  ;;  %v1505_v16 = vrot.slane %v1503_v29, 1  ;;  %v1510_v33 = vshll.u32 %v4948_v32, 16 }
  0xe4   :  { %v6462_v60 = vpop.permute.xlu1 %1168  ;;  %v1247_v12 = vpop.permute.xlu0 %1246  ;;  %v1506_v31 = vor.u32 %v1505_v16, %v1501_v37 }
  0xe6   :  { %1256 = vrot.lane.b32.xlu1 %v1233_v3, %s5624_s12  ;;  %1270 = vrot.lane.b32.xlu0 %v1240_v1, %s5624_s12  ;;  %v1508_v3 = vshrl.u32 %v4948_v32, 16  ;;  %v1512_v1 = vrot.slane %v1510_v33, 1  ;;  %v5447_v32 = vld [vmem:[#allocation2 + $0x68] sm:$0xf]  ;;  %v8020_v33 = vcombine.low %v6267_v2, %v6287_v8 }
  0xe7   :  { %v1646_v9 = vsel %vm1610_vm6, %v5447_v32, %v6410_v36  ;;  %v577_v2 = vld [vmem:[#allocation2 + $0x48] sm:$0xe] }
  0xe8   :  { %v1249_v14 = vpop.permute.xlu1 %1248  ;;  %v6470_v11 = vpop.permute.xlu0 %1262  ;;  %v1513_v26 = vor.u32 %v1512_v1, %v1508_v3  ;;  %v1683_v30 = vsel %vm1659_vm7, %v1646_v9, %v6427_v42 }
  0xe9   :  { %v1716_v36 = vsel %vm1692_vm8, %v1683_v30, %v6440_v34  ;;  %v5448_v30 = vld [vmem:[#allocation2 + $0x20] sm:$0xf] }
  0xea   :  { %1272 = vrot.lane.b32.xlu1 %v1241_v20, %s5624_s12  ;;  %1334 = vrot.lane.b32.xlu0 %v4923_v21, %s5625_s17  ;;  %v1667_v20 = vsel %vm1659_vm7, %v1622_v57, %v6420_v22  ;;  %v5446_v22 = vld [vmem:[#allocation2 + $0x60] sm:$0xf]  ;;  %v1749_v42 = vsel %vm1725_vm9, %v1716_v36, %v6462_v60  ;;  %v8019_v60 = vcombine.low %v6259_v24, %v6261_v59 }
  0xeb   :  { %v1700_v28 = vsel %vm1692_vm8, %v1667_v20, %v6433_v55  ;;  %v1764_v55 = vsel %vm1758_vm10, %v1731_v41, %v1247_v12  ;;  %v4955_v41 = vcombine.low %v576_v4, %v6448_v63 }
  0xec   :  { %v1265_v23 = vpop.permute.xlu1 %1264  ;;  %v1327_v38 = vpop.permute.xlu0 %1326  ;;  %v1733_v62 = vsel %vm1725_vm9, %v1700_v28, %v6450_v17 }
  0xed   :  { %v1766_v43 = vsel %vm1758_vm10, %v1733_v62, %v1249_v14  ;;  %v4956_v62 = vcombine.low %v577_v2, %v6458_v58  ;;  %v1600_v9 = vrot.slane %v4955_v41, 1 }
  0xee   :  { %1336 = vrot.lane.b32.xlu1 %v4924_v10, %s5625_s17  ;;  %1350 = vrot.lane.b32.xlu0 %v4931_v44, %s5625_s17  ;;  %v1643_v10 = vsel %vm1610_vm6, %v5446_v22, %v6396_v53  ;;  %v1797_v44 = vsel %vm1791_vm11, %v1764_v55, %v1327_v38  ;;  %v585_v22 = vld [vmem:[#allocation2 + $0x98] sm:$0xe] }
  0xef   :  { %v1681_v17 = vsel %vm1659_vm7, %v1643_v10, %v6422_v19  ;;  %v1601_v55 = vrot.slane %v4956_v62, 1 }
  0xf0   :  { %v1329_v47 = vpop.permute.xlu1 %1328  ;;  %v1343_v45 = vpop.permute.xlu0 %1342  ;;  %v1714_v29 = vsel %vm1692_vm8, %v1681_v17, %v6435_v15  ;;  %v1782_v15 = vsel %vm1758_vm10, %v1749_v42, %v1265_v23  ;;  %v4964_v17 = vcombine.low %v585_v22, %v6468_v5  ;;  %v5449_v42 = vld [vmem:[#allocation2 + $0x70] sm:$0xf] }
  0xf1   :  { %v1799_v46 = vsel %vm1791_vm11, %v1766_v43, %v1329_v47  ;;  %v1747_v19 = vsel %vm1725_vm9, %v1714_v29, %v6452_v0 }
  0xf2   :  { %1352 = vrot.lane.b32.xlu1 %v4932_v56, %s5625_s17  ;;  %1526 = vrot.lane.b32.xlu0 %v1450_v40, %s5626_s1  ;;  %v1780_v56 = vsel %vm1758_vm10, %v1747_v19, %v6470_v11  ;;  %v1609_v19 = vrot.slane %v4964_v17, 1 }
  0xf3   :  { %v1813_v34 = vsel %vm1791_vm11, %v1780_v56, %v1343_v45 }
  0xf4   :  { %v1345_v21 = vpop.permute.xlu1 %1344  ;;  %v1519_v52 = vpop.permute.xlu0 %1518 }
  0xf5   :  { %v1830_v12 = vsel %vm1824_vm12, %v1797_v44, %v1519_v52  ;;  %v1815_v18 = vsel %vm1791_vm11, %v1782_v15, %v1345_v21 }
  0xf6   :  { %1528 = vrot.lane.b32.xlu1 %v1457_v51, %s5626_s1  ;;  %1542 = vrot.lane.b32.xlu0 %v1506_v31, %s5626_s1 }
  0xf8   :  { %v1521_v35 = vpop.permute.xlu1 %1520  ;;  %v1535_v53 = vpop.permute.xlu0 %1534 }
  0xf9   :  { %v1832_v14 = vsel %vm1824_vm12, %v1799_v46, %v1521_v35  ;;  %v1846_v0 = vsel %vm1824_vm12, %v1813_v34, %v1535_v53 }
  0xfa   :  { %v4968_v38 = vcombine.low %v1830_v12, %v1832_v14  ;;  %1544 = vrot.lane.b32.xlu1 %v1513_v26, %s5626_s1  ;;  %v584_v26 = vld [vmem:[#allocation2 + $0x90] sm:$0xe]  ;;  %v4973_v12 = vcombine.low %v1600_v9, %v1601_v55 }
  0xfb   :  { %v4963_v43 = vcombine.low %v584_v26, %v6460_v61 }
  0xfc   :  { %v1537_v39 = vpop.permute.xlu1 %1536  ;;  %2055 = vmatmul.mubr.bf16.gmra.mxu0 %v4968_v38  ;;  %v787_v40 = vpop.permute.xlu0 %786 }
  0xfd   :  { %v1848_v37 = vsel %vm1824_vm12, %v1815_v18, %v1537_v39  ;;  %4993 = vmatprep.mubr.msk.bf16.mxu0 %vm1610_vm6, %v8019_v60  ;;  %v1625_v44 = vsel %vm1610_vm6, %v5448_v30, %v787_v40  ;;  %v1608_v14 = vrot.slane %v4963_v43, 1 }
  0xfe   :  { %v4976_v16 = vcombine.low %v1846_v0, %v1848_v37 }
 0x100   :  { %v789_v11 = vpop.permute.xlu1 %788  ;;  %2087 = vmatmul.mubr.bf16.gmra.mxu1 %v4976_v16  ;;  %v803_v23 = vpop.permute.xlu0 %802 }
 0x101   :  { %4997 = vmatprep.mubr.msk.bf16.mxu1 %vm1610_vm6, %v8020_v33  ;;  %v1628_v46 = vsel %vm1610_vm6, %v6144_v7, %v789_v11  ;;  %v1649_v7 = vsel %vm1610_vm6, %v5449_v42, %v803_v23 }
 0x104   :  { %v805_v47 = vpop.permute.xlu1 %804  ;;  %v883_v45 = vpop.permute.xlu0 %882 }
 0x105   :  { %v1669_v63 = vsel %vm1659_vm7, %v1625_v44, %v883_v45  ;;  %v1652_v38 = vsel %vm1610_vm6, %v6160_v27, %v805_v47 }
 0x108   :  { %v885_v51 = vpop.permute.xlu1 %884  ;;  %v899_v31 = vpop.permute.xlu0 %898 }
 0x109   :  { %v1671_v58 = vsel %vm1659_vm7, %v1628_v46, %v885_v51  ;;  %v1685_v34 = vsel %vm1659_vm7, %v1649_v7, %v899_v31 }
 0x10c   :  { %v901_v3 = vpop.permute.xlu1 %900  ;;  %v963_v1 = vpop.permute.xlu0 %962 }
 0x10d   :  { %v1702_v29 = vsel %vm1692_vm8, %v1669_v63, %v963_v1  ;;  %v1687_v18 = vsel %vm1659_vm7, %v1652_v38, %v901_v3 }
 0x110   :  { %v965_v25 = vpop.permute.xlu1 %964  ;;  %v979_v6 = vpop.permute.xlu0 %978 }
 0x111   :  { %v1704_v36 = vsel %vm1692_vm8, %v1671_v58, %v965_v25  ;;  %v1718_v60 = vsel %vm1692_vm8, %v1685_v34, %v979_v6 }
 0x114   :  { %v981_v24 = vpop.permute.xlu1 %980  ;;  %v1155_v59 = vpop.permute.xlu0 %1154 }
 0x115   :  { %v1735_v61 = vsel %vm1725_vm9, %v1702_v29, %v1155_v59  ;;  %v1720_v16 = vsel %vm1692_vm8, %v1687_v18, %v981_v24  ;;  %v4981_v59 = vcombine.low %v1608_v14, %v1609_v19  ;;  %v8021_v19 = vld [vmem:[#allocation7_spill] sm:$0xff] }
 0x118   :  { %v1157_v49 = vpop.permute.xlu1 %1156  ;;  %v1171_v57 = vpop.permute.xlu0 %1170 }
 0x119   :  { %v1737_v5 = vsel %vm1725_vm9, %v1704_v36, %v1157_v49  ;;  %v1751_v23 = vsel %vm1725_vm9, %v1718_v60, %v1171_v57 }
 0x11c   :  { %v1173_v54 = vpop.permute.xlu1 %1172  ;;  %v1251_v20 = vpop.permute.xlu0 %1250 }
 0x11d   :  { %v1768_v56 = vsel %vm1758_vm10, %v1735_v61, %v1251_v20  ;;  %v1753_v33 = vsel %vm1725_vm9, %v1720_v16, %v1173_v54 }
 0x120   :  { %v1253_v21 = vpop.permute.xlu1 %1252  ;;  %v1267_v52 = vpop.permute.xlu0 %1266 }
 0x121   :  { %v1770_v15 = vsel %vm1758_vm10, %v1737_v5, %v1253_v21  ;;  %v1784_v45 = vsel %vm1758_vm10, %v1751_v23, %v1267_v52 }
 0x124   :  { %v1269_v8 = vpop.permute.xlu1 %1268  ;;  %v1331_v28 = vpop.permute.xlu0 %1330 }
 0x125   :  { %v1801_v39 = vsel %vm1791_vm11, %v1768_v56, %v1331_v28  ;;  %v1786_v51 = vsel %vm1758_vm10, %v1753_v33, %v1269_v8 }
 0x128   :  { %v1333_v10 = vpop.permute.xlu1 %1332  ;;  %v1347_v32 = vpop.permute.xlu0 %1346 }
 0x129   :  { %v1803_v40 = vsel %vm1791_vm11, %v1770_v15, %v1333_v10  ;;  %v1817_v31 = vsel %vm1791_vm11, %v1784_v45, %v1347_v32 }
 0x12c   :  { %v1349_v35 = vpop.permute.xlu1 %1348  ;;  %v1523_v53 = vpop.permute.xlu0 %1522 }
 0x12d   :  { %v1834_v27 = vsel %vm1824_vm12, %v1801_v39, %v1523_v53  ;;  %v1819_v3 = vsel %vm1791_vm11, %v1786_v51, %v1349_v35 }
 0x130   :  { %v1525_v0 = vpop.permute.xlu1 %1524  ;;  %v1539_v37 = vpop.permute.xlu0 %1538 }
 0x131   :  { %v1836_v11 = vsel %vm1824_vm12, %v1803_v40, %v1525_v0  ;;  %v1850_v6 = vsel %vm1824_vm12, %v1817_v31, %v1539_v37 }
 0x132   :  { %v4970_v47 = vcombine.low %v1834_v27, %v1836_v11 }
 0x134   :  { %v1541_v1 = vpop.permute.xlu1 %1540  ;;  %2063 = vmatmul.mubr.bf16.gmra.mxu0 %v4970_v47  ;;  %v791_v25 = vpop.permute.xlu0 %790 }
 0x135   :  { %v1852_v24 = vsel %vm1824_vm12, %v1819_v3, %v1541_v1  ;;  %4994 = vmatprep.mubr.msk.bf16.mxu0 %vm1610_vm6, %v4973_v12  ;;  %v1631_v63 = vsel %vm1610_vm6, %v6257_v50, %v791_v25  ;;  %v6606_v1 = vld [vmem:[%s8003_s2] ss:$0 sm:$0xff] }
 0x136   :  { %v4978_v49 = vcombine.low %v1850_v6, %v1852_v24 }
 0x138   :  { %v793_v57 = vpop.permute.xlu1 %792  ;;  %2095 = vmatmul.mubr.bf16.gmra.mxu1 %v4978_v49  ;;  %v807_v54 = vpop.permute.xlu0 %806 }
 0x139   :  { %4998 = vmatprep.mubr.msk.bf16.mxu1 %vm1610_vm6, %v4981_v59  ;;  %v1634_v58 = vsel %vm1610_vm6, %v6281_v13, %v793_v57  ;;  %v1655_v50 = vsel %vm1610_vm6, %v8021_v19, %v807_v54 }
 0x13c   :  { %v809_v20 = vpop.permute.xlu1 %808  ;;  %v887_v21 = vpop.permute.xlu0 %886 }
 0x13d   :  { %v1673_v35 = vsel %vm1659_vm7, %v1631_v63, %v887_v21  ;;  %v1658_v13 = vsel %vm1610_vm6, %v6315_v48, %v809_v20 }
 0x140   :  { %v889_v52 = vpop.permute.xlu1 %888  ;;  %v903_v4 = vpop.permute.xlu0 %902 }
 0x141   :  { %v1675_v53 = vsel %vm1659_vm7, %v1634_v58, %v889_v52  ;;  %v1689_v38 = vsel %vm1659_vm7, %v1655_v50, %v903_v4 }
 0x144   :  { %v905_v2 = vpop.permute.xlu1 %904  ;;  %v967_v8 = vpop.permute.xlu0 %966 }
 0x145   :  { %v1706_v12 = vsel %vm1692_vm8, %v1673_v35, %v967_v8  ;;  %v1691_v56 = vsel %vm1659_vm7, %v1658_v13, %v905_v2 }
 0x148   :  { %v969_v28 = vpop.permute.xlu1 %968  ;;  %v983_v41 = vpop.permute.xlu0 %982 }
 0x149   :  { %v1708_v61 = vsel %vm1692_vm8, %v1675_v53, %v969_v28  ;;  %v1722_v39 = vsel %vm1692_vm8, %v1689_v38, %v983_v41 }
 0x14c   :  { %v985_v62 = vpop.permute.xlu1 %984  ;;  %v1159_v26 = vpop.permute.xlu0 %1158 }
 0x14d   :  { %v1739_v5 = vsel %vm1725_vm9, %v1706_v12, %v1159_v26  ;;  %v1724_v40 = vsel %vm1692_vm8, %v1691_v56, %v985_v62 }
 0x150   :  { %v1161_v22 = vpop.permute.xlu1 %1160  ;;  %v1175_v10 = vpop.permute.xlu0 %1174 }
 0x151   :  { %v1741_v14 = vsel %vm1725_vm9, %v1708_v61, %v1161_v22  ;;  %v1755_v37 = vsel %vm1725_vm9, %v1722_v39, %v1175_v10 }
 0x154   :  { %v1177_v32 = vpop.permute.xlu1 %1176  ;;  %v1255_v9 = vpop.permute.xlu0 %1254 }
 0x155   :  { %v1772_v42 = vsel %vm1758_vm10, %v1739_v5, %v1255_v9  ;;  %v1757_v60 = vsel %vm1725_vm9, %v1724_v40, %v1177_v32 }
 0x158   :  { %v1257_v55 = vpop.permute.xlu1 %1256  ;;  %v1271_v43 = vpop.permute.xlu0 %1270 }
 0x159   :  { %v1774_v7 = vsel %vm1758_vm10, %v1741_v14, %v1257_v55  ;;  %v1788_v11 = vsel %vm1758_vm10, %v1755_v37, %v1271_v43 }
 0x15c   :  { %v1273_v17 = vpop.permute.xlu1 %1272  ;;  %v1335_v30 = vpop.permute.xlu0 %1334 }
 0x15d   :  { %v1805_v15 = vsel %vm1791_vm11, %v1772_v42, %v1335_v30  ;;  %v1790_v23 = vsel %vm1758_vm10, %v1757_v60, %v1273_v17 }
 0x160   :  { %v1337_v44 = vpop.permute.xlu1 %1336  ;;  %v1351_v46 = vpop.permute.xlu0 %1350 }
 0x161   :  { %v1807_v34 = vsel %vm1791_vm11, %v1774_v7, %v1337_v44  ;;  %v1821_v33 = vsel %vm1791_vm11, %v1788_v11, %v1351_v46 }
 0x164   :  { %v1353_v29 = vpop.permute.xlu1 %1352  ;;  %v1527_v36 = vpop.permute.xlu0 %1526 }
 0x165   :  { %v1838_v0 = vsel %vm1824_vm12, %v1805_v15, %v1527_v36  ;;  %v1823_v47 = vsel %vm1791_vm11, %v1790_v23, %v1353_v29 }
 0x168   :  { %v1529_v18 = vpop.permute.xlu1 %1528  ;;  %v1543_v27 = vpop.permute.xlu0 %1542 }
 0x169   :  { %v1840_v48 = vsel %vm1824_vm12, %v1807_v34, %v1529_v18  ;;  %v1854_v51 = vsel %vm1824_vm12, %v1821_v33, %v1543_v27 }
 0x16a   :  { %v4972_v16 = vcombine.low %v1838_v0, %v1840_v48 }
 0x16c   :  { %v1545_v45 = vpop.permute.xlu1 %1544  ;;  %2071 = vmatmul.mubr.bf16.gmra.mxu0 %v4972_v16 }
 0x16d   :  { %v1856_v31 = vsel %vm1824_vm12, %v1823_v47, %v1545_v45 }
 0x16e   :  { %v4980_v3 = vcombine.low %v1854_v51, %v1856_v31 }
 0x170   :  { %2103 = vmatmul.mubr.bf16.gmra.mxu1 %v4980_v3 }
 0x184   :  { %v2048_v25 = vpop.f32.mrf.mxu0 }
 0x185   :  { %v2049_v6 = vadd.f32 %v6606_v1, %v2048_v25 }
 0x186   :  { %v2050_v24 = vpop.f32.mrf.mxu0 }
 0x187   :  { %v2111_v59 = vmax.f32 %v2049_v6, 0.0 }
 0x188   :  { %v2051_v49 = vpop.f32.mrf.mxu0  ;;  %v2080_v57 = vpop.f32.mrf.mxu1 }
 0x189   :  { %2127 = vst.msk [vmem:[%s8004_s10] sm:$0xff] %vm1610_vm6, %v2111_v59  ;;  %v2052_v54 = vadd.f32 %v6606_v1, %v2051_v49  ;;  %v2081_v20 = vadd.f32 %v6606_v1, %v2080_v57 }
 0x18a   :  { %v2053_v21 = vpop.f32.mrf.mxu0  ;;  %v2082_v52 = vpop.f32.mrf.mxu1 }
 0x18b   :  { %v2112_v4 = vmax.f32 %v2052_v54, 0.0  ;;  %v2119_v2 = vmax.f32 %v2081_v20, 0.0 }
 0x18c   :  { %v2083_v8 = vpop.f32.mrf.mxu1 }
 0x18d   :  { %2128 = vst.msk [vmem:[%s8004_s10 + $0x8] sm:$0xff] %vm1610_vm6, %v2112_v4  ;;  %2135 = vst.msk [vmem:[%s8004_s10 + $0x40] sm:$0xff] %vm1610_vm6, %v2119_v2  ;;  %v2084_v28 = vadd.f32 %v6606_v1, %v2083_v8 }
 0x18e   :  { %v2085_v41 = vpop.f32.mrf.mxu1 }
 0x18f   :  { %v2120_v62 = vmax.f32 %v2084_v28, 0.0 }
 0x191   :  { %2136 = vst.msk [vmem:[%s8004_s10 + $0x48] sm:$0xff] %vm1610_vm6, %v2120_v62 }
 0x1bc   :  { %v2056_v26 = vpop.f32.mrf.mxu0 }
 0x1bd   :  { %v2057_v22 = vadd.f32 %v6606_v1, %v2056_v26 }
 0x1be   :  { %v2058_v10 = vpop.f32.mrf.mxu0 }
 0x1bf   :  { %v2113_v32 = vmax.f32 %v2057_v22, 0.0 }
 0x1c0   :  { %v2059_v9 = vpop.f32.mrf.mxu0  ;;  %v2088_v55 = vpop.f32.mrf.mxu1 }
 0x1c1   :  { %2129 = vst.msk [vmem:[%s8004_s10 + $0x10] sm:$0xff] %vm1610_vm6, %v2113_v32  ;;  %v2060_v43 = vadd.f32 %v6606_v1, %v2059_v9  ;;  %v2089_v17 = vadd.f32 %v6606_v1, %v2088_v55 }
 0x1c2   :  { %v2061_v30 = vpop.f32.mrf.mxu0  ;;  %v2090_v44 = vpop.f32.mrf.mxu1 }
 0x1c3   :  { %v2114_v46 = vmax.f32 %v2060_v43, 0.0  ;;  %v2121_v63 = vmax.f32 %v2089_v17, 0.0 }
 0x1c4   :  { %v2091_v58 = vpop.f32.mrf.mxu1 }
 0x1c5   :  { %2130 = vst.msk [vmem:[%s8004_s10 + $0x18] sm:$0xff] %vm1610_vm6, %v2114_v46  ;;  %2137 = vst.msk [vmem:[%s8004_s10 + $0x50] sm:$0xff] %vm1610_vm6, %v2121_v63  ;;  %v2092_v35 = vadd.f32 %v6606_v1, %v2091_v58 }
 0x1c6   :  { %v2093_v53 = vpop.f32.mrf.mxu1 }
 0x1c7   :  { %v2122_v29 = vmax.f32 %v2092_v35, 0.0 }
 0x1c9   :  { %2138 = vst.msk [vmem:[%s8004_s10 + $0x58] sm:$0xff] %vm1610_vm6, %v2122_v29 }
 0x1f4   :  { %v2064_v36 = vpop.f32.mrf.mxu0 }
 0x1f5   :  { %v2065_v12 = vadd.f32 %v6606_v1, %v2064_v36 }
 0x1f6   :  { %v2066_v61 = vpop.f32.mrf.mxu0 }
 0x1f7   :  { %v2115_v5 = vmax.f32 %v2065_v12, 0.0 }
 0x1f8   :  { %v2067_v14 = vpop.f32.mrf.mxu0  ;;  %v2096_v19 = vpop.f32.mrf.mxu1 }
 0x1f9   :  { %2131 = vst.msk [vmem:[%s8004_s10 + $0x20] sm:$0xff] %vm1610_vm6, %v2115_v5  ;;  %v2068_v50 = vadd.f32 %v6606_v1, %v2067_v14  ;;  %v2097_v13 = vadd.f32 %v6606_v1, %v2096_v19 }
 0x1fa   :  { %v2069_v42 = vpop.f32.mrf.mxu0  ;;  %v2098_v7 = vpop.f32.mrf.mxu1 }
 0x1fb   :  { %v2116_v38 = vmax.f32 %v2068_v50, 0.0  ;;  %v2123_v56 = vmax.f32 %v2097_v13, 0.0 }
 0x1fc   :  { %v2099_v15 = vpop.f32.mrf.mxu1 }
 0x1fd   :  { %2132 = vst.msk [vmem:[%s8004_s10 + $0x28] sm:$0xff] %vm1610_vm6, %v2116_v38  ;;  %2139 = vst.msk [vmem:[%s8004_s10 + $0x60] sm:$0xff] %vm1610_vm6, %v2123_v56  ;;  %v2100_v34 = vadd.f32 %v6606_v1, %v2099_v15 }
 0x1fe   :  { %v2101_v18 = vpop.f32.mrf.mxu1 }
 0x1ff   :  { %v2124_v39 = vmax.f32 %v2100_v34, 0.0 }
 0x201   :  { %2140 = vst.msk [vmem:[%s8004_s10 + $0x68] sm:$0xff] %vm1610_vm6, %v2124_v39 }
 0x22c   :  { %v2072_v40 = vpop.f32.mrf.mxu0 }
 0x22d   :  { %v2073_v0 = vadd.f32 %v6606_v1, %v2072_v40 }
 0x22e   :  { %v2074_v48 = vpop.f32.mrf.mxu0 }
 0x22f   :  { %v2117_v37 = vmax.f32 %v2073_v0, 0.0 }
 0x230   :  { %v2075_v60 = vpop.f32.mrf.mxu0  ;;  %v2104_v16 = vpop.f32.mrf.mxu1 }
 0x231   :  { %2133 = vst.msk [vmem:[%s8004_s10 + $0x30] sm:$0xff] %vm1610_vm6, %v2117_v37  ;;  %v2076_v27 = vadd.f32 %v6606_v1, %v2075_v60  ;;  %v2105_v11 = vadd.f32 %v6606_v1, %v2104_v16 }
 0x232   :  { %v2077_v23 = vpop.f32.mrf.mxu0  ;;  %v2106_v33 = vpop.f32.mrf.mxu1 }
 0x233   :  { %v2118_v47 = vmax.f32 %v2076_v27, 0.0  ;;  %v2125_v45 = vmax.f32 %v2105_v11, 0.0 }
 0x234   :  { %v2107_v51 = vpop.f32.mrf.mxu1 }
 0x235   :  { %2134 = vst.msk [vmem:[%s8004_s10 + $0x38] sm:$0xff] %vm1610_vm6, %v2118_v47  ;;  %2141 = vst.msk [vmem:[%s8004_s10 + $0x70] sm:$0xff] %vm1610_vm6, %v2125_v45  ;;  %v2108_v31 = vadd.f32 %v6606_v1, %v2107_v51 }
 0x236   :  { %v2109_v3 = vpop.f32.mrf.mxu1 }
 0x237   :  { %v2126_v25 = vmax.f32 %v2108_v31, 0.0 }
 0x239   :  { %2142 = vst.msk [vmem:[%s8004_s10 + $0x78] sm:$0xff] %vm1610_vm6, %v2126_v25 }
 0x23a LB: > { %s2151_s23 = sld [smem:[#allocation3]]  ;;  %s5617_s9 = sphi %s6688_s9, %s2150_s9  }
 0x240   : > { %p4999_p0 = scmp.ne.s32.totalorder %s2151_s23, 0 }
 0x241   : > { %s5628_s30 = smov (!%p4999_p0), 96   ;;  %s5629_s0 = smov (!%p4999_p0), 112  }
 0x242   : > { %2155 = sbr.rel (%p4999_p0) target bundleno = 1931 (0x78b), region = 52  ;;  %s5632_s17 = smov (!%p4999_p0), 48  }
 0x243   : > { %s5633_s25 = smov (!%p4999_p0), 32   ;;  %s5634_s26 = smov (!%p4999_p0), 80  }
 0x244   : > { %s5635_s11 = smov (!%p4999_p0), 16   ;;  %s5636_s28 = smov (!%p4999_p0), 64  }
 0x247   : > { %v2755_v6 = vld [vmem:[#allocation2 + $0x48] sm:$0xf]  ;;  %v2771_v24 = vld [vmem:[#allocation2 + $0x4c] sm:$0x1]  ;;  %v6696_v49 = vld [vmem:[%s8004_s10 + $0x30] sm:$0xff]  ;;  %vm5631_vm13 = vmmov 0  }
 0x248   : > { %v5105_v1 = vcombine.low %v2755_v6, %v2755_v6  ;;  %v5121_v59 = vcombine.low %v2755_v6, %v2771_v24  ;;  %v5205_v57 = vpack.c.bf16 %v6696_v49, %v6696_v49  ;;  %v6703_v54 = vld [vmem:[%s8004_s10 + $0x38] sm:$0xff]  ;;  %v6711_v4 = vld [vmem:[%s8004_s10 + $0x28] sm:$0xff]  ;;  %v6718_v32 = vld [vmem:[%s8004_s10 + $0x40] sm:$0xff]  ;;  %vm2228_vm14 = vcmask 1041409  }
 0x249   : > { %v5206_v52 = vpack.c.bf16 %v6703_v54, %v6703_v54  ;;  %v5204_v28 = vpack.c.bf16 %v6711_v4, %v6711_v4  ;;  %v2574_v62 = vld [vmem:[#allocation2 + $0x38] sm:$0xf]  ;;  %v2577_v26 = vld [vmem:[#allocation2 + $0x3c] sm:$0x1]  ;;  %v2580_v55 = vld [vmem:[#allocation2 + $0x40] sm:$0xf]  ;;  %v5207_v44 = vpack.c.bf16 %v6718_v32, %v6718_v32 }
 0x24a   : > { %v3662_v20 = vshrl.u32 %v5121_v59, 16  ;;  %v3664_v21 = vshll.u32 %v5121_v59, 16  ;;  %3546 = vrot.lane.b32.xlu1 %v5105_v1, %s5628_s30  ;;  %v2427_v2 = vshrl.u32 %v5205_v57, 16  ;;  %v2430_v8 = vshll.u32 %v5205_v57, 16  ;;  %v2583_v43 = vld [vmem:[#allocation2 + $0x44] sm:$0x1] }
 0x24b   : > { %v2435_v22 = vshrl.u32 %v5206_v52, 16  ;;  %v2438_v10 = vshll.u32 %v5206_v52, 16  ;;  %v2419_v17 = vshrl.u32 %v5204_v28, 16  ;;  %v2422_v30 = vshll.u32 %v5204_v28, 16  ;;  %v6725_v46 = vld [vmem:[%s8004_s10 + $0x48] sm:$0xff]  ;;  %v6745_v27 = vld [vmem:[%s8004_s10] sm:$0xff] }
 0x24c   : > { %v3666_v41 = vrot.slane %v3664_v21, 1  ;;  %v2429_v9 = vrot.slane %v2427_v2, 7  ;;  %v2660_v35 = vld [vmem:[#allocation2 + $0x50] sm:$0xf]  ;;  %v2676_v53 = vld [vmem:[#allocation2 + $0x54] sm:$0x1]  ;;  %v5208_v29 = vpack.c.bf16 %v6725_v46, %v6725_v46  ;;  %v6758_v57 = vpack.c.bf16 %v6745_v27, %v6745_v27 }
 0x24d   : > { %v2437_v58 = vrot.slane %v2435_v22, 7  ;;  %v2421_v61 = vrot.slane %v2419_v17, 7  ;;  %v2568_v5 = vld [vmem:[#allocation2 + $0x30] sm:$0xf]  ;;  %v2443_v14 = vshrl.u32 %v5207_v44, 16  ;;  %v2446_v42 = vshll.u32 %v5207_v44, 16 }
 0x24e   : > { %v3667_v63 = vor.u32 %v3666_v41, %v3662_v20  ;;  %v2432_v36 = vor.u32 %v2430_v8, %v2429_v9  ;;  %v2433_v12 = vrot.slane %v2429_v9, 4  ;;  %v2571_v13 = vld [vmem:[#allocation2 + $0x34] sm:$0x1]  ;;  %v6730_v7 = vcombine.low %v2660_v35, %v2676_v53  ;;  %v2692_v38 = vld [vmem:[#allocation2 + $0x50] sm:$0xe]  ;;  %v2218_v20 = vld [vmem:[%s7998_s6 + $0x8] sm:$0xff] }
 0x24f   : > { %v2440_v19 = vor.u32 %v2438_v10, %v2437_v58  ;;  %v2441_v50 = vrot.slane %v2437_v58, 4  ;;  %v2424_v39 = vor.u32 %v2422_v30, %v2421_v61  ;;  %v2425_v40 = vrot.slane %v2421_v61, 4  ;;  %v2652_v60 = vld [vmem:[#allocation2] sm:$0xf]  ;;  %v6740_v16 = vld [vmem:[#allocation2 + $0x4] sm:$0x1] }
 0x250   : > { %3738 = vrot.lane.b32.xlu1 %v3667_v63, %s5629_s0  ;;  %v2575_v15 = vsel %vm5807_vm4, %v2432_v36, %v2574_v62  ;;  %v2578_v18 = vsel %vm5819_vm5, %v2433_v12, %v2577_v26  ;;  %v2445_v37 = vrot.slane %v2443_v14, 7  ;;  %v2586_v33 = vld [vmem:[#allocation2 + $0x58] sm:$0xf]  ;;  %v2589_v47 = vld [vmem:[#allocation2 + $0x5c] sm:$0x1]  ;;  %v2935_v45 = vshll.u32 %v6730_v7, 16 }
 0x251   : > { %2576 = vst [vmem:[#allocation2 + $0x38] sm:$0xf] %v2575_v15  ;;  %2579 = vst [vmem:[#allocation2 + $0x3c] sm:$0x1] %v2578_v18  ;;  %v2581_v0 = vsel %vm5807_vm4, %v2440_v19, %v2580_v55  ;;  %v2584_v48 = vsel %vm5819_vm5, %v2441_v50, %v2583_v43  ;;  %v2569_v11 = vsel %vm5807_vm4, %v2424_v39, %v2568_v5  ;;  %v2451_v25 = vshrl.u32 %v5208_v29, 16  ;;  %v2217_v10 = vld [vmem:[%s7998_s6] sm:$0xff] }
 0x252   : > { %2582 = vst [vmem:[#allocation2 + $0x40] sm:$0xf] %v2581_v0  ;;  %2585 = vst [vmem:[#allocation2 + $0x44] sm:$0x1] %v2584_v48  ;;  %v2572_v23 = vsel %vm5819_vm5, %v2425_v40, %v2571_v13  ;;  %v5042_v51 = vcombine.low %v2692_v38, %v2676_v53  ;;  %v2448_v31 = vor.u32 %v2446_v42, %v2445_v37  ;;  %v2449_v3 = vrot.slane %v2445_v37, 4 }
 0x253   : > { %2570 = vst [vmem:[#allocation2 + $0x30] sm:$0xf] %v2569_v11  ;;  %2573 = vst [vmem:[#allocation2 + $0x34] sm:$0x1] %v2572_v23  ;;  %v2454_v6 = vshll.u32 %v5208_v29, 16  ;;  %v2933_v24 = vshrl.u32 %v6730_v7, 16  ;;  %v6754_v59 = vcombine.low %v2652_v60, %v6740_v16 }
 0x254   : > { %v2937_v1 = vrot.slane %v2935_v45, 1  ;;  %v2587_v21 = vsel %vm5807_vm4, %v2448_v31, %v2586_v33  ;;  %v2590_v52 = vsel %vm5819_vm5, %v2449_v3, %v2589_v47  ;;  %v2453_v2 = vrot.slane %v2451_v25, 7  ;;  %v2592_v8 = vld [vmem:[#allocation2 + $0x60] sm:$0xf]  ;;  %v2595_v43 = vld [vmem:[#allocation2 + $0x64] sm:$0x1] }
 0x255   : > { %2588 = vst [vmem:[#allocation2 + $0x58] sm:$0xf] %v2587_v21  ;;  %2591 = vst [vmem:[#allocation2 + $0x5c] sm:$0x1] %v2590_v52  ;;  %v6767_v28 = vrot.slane %v5042_v51, 1  ;;  %v2877_v41 = vshrl.u32 %v6754_v59, 16 }
 0x256   : > { %v2879_v62 = vshll.u32 %v6754_v59, 16  ;;  %v2379_v26 = vshrl.u32 %v6758_v57, 16  ;;  %v5630_v22 = vmov 0.0   ;;  %v2456_v9 = vor.u32 %v2454_v6, %v2453_v2  ;;  %v6794_v48 = vld [vmem:[#allocation2] sm:$0xe]  ;;  %v6803_v6 = vld [vmem:[%s8004_s10 + $0x8] sm:$0xff] }
 0x257   : > { %5221 = vmatprep.subr.mxu0 %v5630_v22  ;;  %v2457_v55 = vrot.slane %v2453_v2, 4  ;;  %v2382_v17 = vshll.u32 %v6758_v57, 16  ;;  %5225 = vmatprep.mubr.msk.f32.mxu0 %vm5631_vm13, %v5630_v22  ;;  %v6798_v47 = vor.u32 %v2937_v1, %v2933_v24  ;;  %v2166_v59 = vld [vmem:[%s8004_s10 + $0x50] sm:$0xff]  ;;  %vm2302_vm15 = vcmask 17408  }
 0x258   : > { %5222 = vmatpush3.msra.mxu0 %v2218_v20  ;;  %v2706_v30 = vld [vmem:[#allocation2 + $0x38] sm:$0xf]  ;;  %v2722_v44 = vld [vmem:[#allocation2 + $0x3c] sm:$0x1]  ;;  %v2593_v61 = vsel %vm5807_vm4, %v2456_v9, %v2592_v8  ;;  %vm4798_vm0 = vcmask 1024  }
 0x259   : > { %v2738_v63 = vld [vmem:[#allocation2 + $0x38] sm:$0xe]  ;;  %5223 = vmatprep.subr.mxu0 %v5630_v22  ;;  %v5056_v58 = vcombine.low %v2706_v30, %v2706_v30  ;;  %v6780_v35 = vcombine.low %v2706_v30, %v2722_v44  ;;  %v2707_v53 = vld [vmem:[#allocation2 + $0x40] sm:$0xf]  ;;  %v6782_v36 = vld [vmem:[#allocation2 + $0x44] sm:$0x1]  ;;  %v2596_v7 = vsel %vm5819_vm5, %v2457_v55, %v2595_v43 }
 0x25a   : > { %v2754_v29 = vld [vmem:[#allocation2 + $0x40] sm:$0xf]  ;;  %v5088_v12 = vcombine.low %v2738_v63, %v2722_v44  ;;  %5224 = vmatpush3.msra.mxu0 %v2217_v10  ;;  %v5057_v5 = vcombine.low %v2707_v53, %v2707_v53  ;;  %v2674_v50 = vld [vmem:[#allocation2 + $0x34] sm:$0x1]  ;;  %v2690_v13 = vld [vmem:[#allocation2 + $0x30] sm:$0xe] }
 0x25b   : > { %v5104_v14 = vcombine.low %v2754_v29, %v2754_v29  ;;  %v6787_v19 = vcombine.low %v2754_v29, %v6782_v36  ;;  %v2658_v42 = vld [vmem:[#allocation2 + $0x30] sm:$0xf]  ;;  %2594 = vst [vmem:[#allocation2 + $0x60] sm:$0xf] %v2593_v61  ;;  %v3287_v38 = vshrl.u32 %v6780_v35, 16  ;;  %v3289_v15 = vshll.u32 %v6780_v35, 16  ;;  %3176 = vrot.lane.b32.xlu0 %v5056_v58, %s5632_s17 }
 0x25c   : > { %v5040_v18 = vcombine.low %v2690_v13, %v2674_v50  ;;  %v5024_v39 = vcombine.low %v2658_v42, %v2674_v50  ;;  %v2659_v40 = vld [vmem:[#allocation2 + $0x38] sm:$0xf]  ;;  %v2675_v0 = vld [vmem:[#allocation2 + $0x3c] sm:$0x1]  ;;  %2597 = vst [vmem:[#allocation2 + $0x64] sm:$0x1] %v2596_v7  ;;  %3178 = vrot.lane.b32.xlu1 %v5057_v5, %s5632_s17  ;;  %v6824_v29 = vpack.c.bf16 %v6803_v6, %v6803_v6 }
 0x25d   : > { %v3442_v37 = vrot.slane %v5088_v12, 1  ;;  %v2691_v60 = vld [vmem:[#allocation2 + $0x38] sm:$0xe]  ;;  %v5025_v11 = vcombine.low %v2659_v40, %v2675_v0  ;;  %v2723_v23 = vld [vmem:[#allocation2 + $0x44] sm:$0x1]  ;;  %v3655_v33 = vshrl.u32 %v6787_v19, 16 }
 0x25e   : > { %v3074_v45 = vrot.slane %v5040_v18, 1  ;;  %v5041_v51 = vcombine.low %v2691_v60, %v2675_v0  ;;  %v2919_v31 = vshrl.u32 %v5024_v39, 16  ;;  %v2921_v3 = vshll.u32 %v5024_v39, 16  ;;  %v2739_v25 = vld [vmem:[#allocation2 + $0x40] sm:$0xe]  ;;  %v6810_v43 = vld [vmem:[%s8004_s10 + $0x10] sm:$0xff] }
 0x25f   : > { %v5073_v20 = vcombine.low %v2707_v53, %v2723_v23  ;;  %v5089_v21 = vcombine.low %v2739_v25, %v2723_v23  ;;  %v2926_v52 = vshrl.u32 %v5025_v11, 16  ;;  %v2928_v2 = vshll.u32 %v5025_v11, 16  ;;  %v2661_v8 = vld [vmem:[#allocation2 + $0x58] sm:$0xf]  ;;  %v2677_v10 = vld [vmem:[#allocation2 + $0x5c] sm:$0x1]  ;;  %3544 = vrot.lane.b32.xlu0 %v5104_v14, %s5628_s30 }
 0x260   : > { %v3075_v24 = vrot.slane %v5041_v51, 1  ;;  %v2923_v1 = vrot.slane %v2921_v3, 1  ;;  %v3291_v9 = vrot.slane %v3289_v15, 1  ;;  %v3657_v55 = vshll.u32 %v6787_v19, 16  ;;  %v6815_v30 = vld [vmem:[%s8004_s10 + $0x18] sm:$0xff]  ;;  %3096 = vrot.lane.b32.xlu1 %v3074_v45, %s5633_s25 }
 0x261   : > { %v2930_v44 = vrot.slane %v2928_v2, 1  ;;  %v3296_v63 = vshll.u32 %v5073_v20, 16  ;;  %v2693_v58 = vld [vmem:[#allocation2 + $0x58] sm:$0xe]  ;;  %v5034_v53 = vcombine.low %v6794_v48, %v6740_v16  ;;  %v5027_v61 = vcombine.low %v2661_v8, %v2677_v10  ;;  %v2724_v14 = vld [vmem:[#allocation2 + $0x5c] sm:$0x1] }
 0x262   : > { %v6818_v35 = vld [vmem:[#allocation2 + $0x58] sm:$0xf]  ;;  %v3659_v12 = vrot.slane %v3657_v55, 1  ;;  %v6826_v5 = vld [vmem:[#allocation2 + $0x60] sm:$0xf]  ;;  %v6830_v19 = vpack.c.bf16 %v6810_v43, %v6810_v43  ;;  %v6834_v50 = vpack.c.bf16 %v6815_v30, %v6815_v30  ;;  %v2924_v13 = vor.u32 %v2923_v1, %v2919_v31 }
 0x263   : > { %v3443_v42 = vrot.slane %v5089_v21, 1  ;;  %v3294_v7 = vshrl.u32 %v5073_v20, 16  ;;  %v3298_v15 = vrot.slane %v3296_v63, 1  ;;  %v2725_v18 = vld [vmem:[#allocation2 + $0x64] sm:$0x1]  ;;  %3464 = vrot.lane.b32.xlu0 %v3442_v37, %s5634_s26  ;;  %v6837_v39 = vor.u32 %v3291_v9, %v3287_v38 }
 0x264   : > { %v2942_v40 = vshll.u32 %v5027_v61, 16  ;;  %v5043_v0 = vcombine.low %v2693_v58, %v2677_v10  ;;  %v5075_v60 = vcombine.low %v6826_v5, %v2725_v18  ;;  %v2740_v11 = vld [vmem:[#allocation2 + $0x58] sm:$0xe]  ;;  %3098 = vrot.lane.b32.xlu1 %v3075_v24, %s5633_s25  ;;  %v2931_v23 = vor.u32 %v2930_v44, %v2926_v52  ;;  %v2741_v3 = vld [vmem:[#allocation2 + $0x60] sm:$0xe] }
 0x265   : > { %v6841_v45 = vor.u32 %v3659_v12, %v3655_v33  ;;  %v5059_v51 = vcombine.low %v6826_v5, %v6826_v5  ;;  %v5074_v31 = vcombine.low %v6818_v35, %v2724_v14  ;;  %v2940_v25 = vshrl.u32 %v5027_v61, 16  ;;  %v2538_v52 = vld [vmem:[#allocation2 + $0x8] sm:$0xf]  ;;  %v2541_v9 = vld [vmem:[#allocation2 + $0xc] sm:$0x1] }
 0x266   : > { %v2944_v37 = vrot.slane %v2942_v40, 1  ;;  %v3310_v38 = vshll.u32 %v5075_v60, 16  ;;  %v2881_v20 = vrot.slane %v2879_v62, 1  ;;  %v3299_v21 = vor.u32 %v3298_v15, %v3294_v7  ;;  %v2167_v15 = vld [vmem:[%s8004_s10 + $0x58] sm:$0xff] }
 0x267   : > { %v3303_v2 = vshll.u32 %v5074_v31, 16  ;;  %v2381_v8 = vrot.slane %v2379_v26, 7  ;;  %v5090_v33 = vcombine.low %v2740_v11, %v2724_v14  ;;  %3000 = vrot.lane.b32.xlu0 %v2924_v13, %s5635_s11  ;;  %v6851_v10 = vrot.slane %v5043_v0, 1  ;;  %v2160_v14 = vld [vmem:[%s8004_s10 + $0x20] sm:$0xff]  ;;  %v2170_v11 = vld [vmem:[%s8004_s10 + $0x70] sm:$0xff] }
 0x268   : > { %v3308_v24 = vshrl.u32 %v5075_v60, 16  ;;  %v3312_v1 = vrot.slane %v3310_v38, 1  ;;  %v5091_v55 = vcombine.low %v2741_v3, %v2725_v18  ;;  %3466 = vrot.lane.b32.xlu1 %v3443_v42, %s5634_s26  ;;  %v3301_v44 = vshrl.u32 %v5074_v31, 16  ;;  %v2168_v0 = vld [vmem:[%s8004_s10 + $0x60] sm:$0xff]  ;;  %v2169_v60 = vld [vmem:[%s8004_s10 + $0x68] sm:$0xff]  ;;  %v2171_v3 = vld [vmem:[%s8004_s10 + $0x78] sm:$0xff] }
 0x269   : > { %v3305_v62 = vrot.slane %v3303_v2, 1  ;;  %v2384_v63 = vor.u32 %v2382_v17, %v2381_v8  ;;  %v2385_v58 = vrot.slane %v2381_v8, 4  ;;  %v2945_v26 = vor.u32 %v2944_v37, %v2940_v25 }
 0x26a   : > { %v5058_v12 = vcombine.low %v6818_v35, %v6818_v35  ;;  %v6860_v61 = vor.u32 %v2881_v20, %v2877_v41  ;;  %v2172_v13 = vsel %vm1610_vm6, %v6745_v27, 0.0  ;;  %v6871_v42 = vrot.slane %v5090_v33, 1 }
 0x26b   : > { %v2539_v57 = vsel %vm5807_vm4, %v2384_v63, %v2538_v52  ;;  %v2542_v17 = vsel %vm5819_vm5, %v2385_v58, %v2541_v9  ;;  %v2173_v41 = vsel %vm1610_vm6, %v6803_v6, 0.0  ;;  %3002 = vrot.lane.b32.xlu0 %v2931_v23, %s5635_s11  ;;  %v6879_v7 = vor.u32 %v3312_v1, %v3308_v24  ;;  %v6927_v1 = vld [vmem:[#allocation2 + $0x64] sm:$0x1] }
 0x26c   : > { %2540 = vst [vmem:[#allocation2 + $0x8] sm:$0xf] %v2539_v57  ;;  %2543 = vst [vmem:[#allocation2 + $0xc] sm:$0x1] %v2542_v17  ;;  %v6881_v27 = vrot.slane %v5091_v55, 1  ;;  %v2174_v18 = vadd.f32 %v2173_v41, %v2172_v13  ;;  %v2175_v40 = vsel %vm1610_vm6, %v6810_v43, 0.0  ;;  %3370 = vrot.lane.b32.xlu1 %v3299_v21, %s5636_s28  ;;  %v6889_v6 = vor.u32 %v3305_v62, %v3301_v44 }
 0x26d   : > { %v2177_v43 = vsel %vm1610_vm6, %v6815_v30, 0.0  ;;  %v2179_v23 = vsel %vm1610_vm6, %v2160_v14, 0.0  ;;  %v2193_v31 = vsel %vm1610_vm6, %v6718_v32, 0.0  ;;  %v2181_v37 = vsel %vm1610_vm6, %v6711_v4, 0.0  ;;  %v6935_v62 = vld [vmem:[#allocation2 + $0x60] sm:$0xf] }
 0x26e   : > { %v2176_v25 = vadd.f32 %v2175_v40, %v2174_v18  ;;  %v2194_v38 = vsel %vm1610_vm6, %v6725_v46, 0.0  ;;  %v2196_v20 = vsel %vm1610_vm6, %v2166_v59, 0.0  ;;  %v2183_v30 = vsel %vm1610_vm6, %v6696_v49, 0.0 }
 0x26f   : > { %v2185_v21 = vsel %vm1610_vm6, %v6703_v54, 0.0  ;;  %v2195_v32 = vadd.f32 %v2194_v38, %v2193_v31  ;;  %v2198_v2 = vsel %vm1610_vm6, %v2167_v15, 0.0  ;;  %3368 = vrot.lane.b32.xlu0 %v6837_v39, %s5636_s28  ;;  %v2200_v4 = vsel %vm1610_vm6, %v2168_v0, 0.0 }
 0x270   : > { %v2178_v8 = vadd.f32 %v2177_v43, %v2176_v25  ;;  %v2202_v52 = vsel %vm1610_vm6, %v2169_v60, 0.0  ;;  %v2204_v46 = vsel %vm1610_vm6, %v2170_v11, 0.0  ;;  %3006 = vrot.lane.b32.xlu1 %v2945_v26, %s5635_s11  ;;  %v2206_v49 = vsel %vm1610_vm6, %v2171_v3, 0.0 }
 0x271   : > { %v2197_v33 = vadd.f32 %v2196_v20, %v2195_v32  ;;  %v5203_v24 = vpack.c.bf16 %v2160_v14, %v2160_v14  ;;  %v6925_v54 = vpack.c.bf16 %v2166_v59, %v2166_v59  ;;  %v6929_v55 = vpack.c.bf16 %v2167_v15, %v2167_v15 }
 0x272   : > { %v2180_v9 = vadd.f32 %v2179_v23, %v2178_v8  ;;  %v6931_v39 = vpack.c.bf16 %v2168_v0, %v2168_v0  ;;  %v6933_v44 = vpack.c.bf16 %v2169_v60, %v2169_v60  ;;  %v6937_v57 = vpack.c.bf16 %v2170_v11, %v2170_v11 }
 0x273   : > { %v2653_v63 = vld [vmem:[#allocation2 + $0x8] sm:$0xf]  ;;  %v2669_v58 = vld [vmem:[#allocation2 + $0xc] sm:$0x1]  ;;  %v2199_v13 = vadd.f32 %v2198_v2, %v2197_v33  ;;  %v6939_v14 = vpack.c.bf16 %v2171_v3, %v2171_v3  ;;  %v6943_v17 = vcombine.low %v6935_v62, %v6927_v1  ;;  %3736 = vrot.lane.b32.xlu0 %v6841_v45, %s5629_s0  ;;  %v2387_v18 = vshrl.u32 %v6824_v29, 16 }
 0x274   : > { %v2685_v26 = vld [vmem:[#allocation2 + $0x8] sm:$0xe]  ;;  %v5019_v59 = vcombine.low %v2653_v63, %v2669_v58  ;;  %v2182_v15 = vadd.f32 %v2181_v37, %v2180_v9  ;;  %3102 = vrot.lane.b32.xlu1 %v6851_v10, %s5633_s25  ;;  %v2390_v0 = vshll.u32 %v6824_v29, 16  ;;  %v2395_v60 = vshrl.u32 %v6830_v19, 16 }
 0x275   : > { %v5035_v41 = vcombine.low %v2685_v26, %v2669_v58  ;;  %v2201_v40 = vadd.f32 %v2200_v4, %v2199_v13  ;;  %v2398_v11 = vshll.u32 %v6830_v19, 16  ;;  %v6955_v25 = vrot.slane %v2387_v18, 7  ;;  %v2700_v16 = vld [vmem:[#allocation2 + $0x8] sm:$0xf] }
 0x276   : > { %v2884_v43 = vshrl.u32 %v5019_v59, 16  ;;  %v2886_v23 = vshll.u32 %v5019_v59, 16  ;;  %v2184_v45 = vadd.f32 %v2183_v30, %v2182_v15  ;;  %v6957_v37 = vrot.slane %v2395_v60, 7 }
 0x277   : > { %v6953_v31 = vrot.slane %v5035_v41, 1  ;;  %v2203_v3 = vadd.f32 %v2202_v52, %v2201_v40  ;;  %v2403_v38 = vshrl.u32 %v6834_v50, 16  ;;  %3004 = vrot.lane.b32.xlu0 %v6798_v47, %s5635_s11  ;;  %v2406_v20 = vshll.u32 %v6834_v50, 16 }
 0x278   : > { %v2888_v29 = vrot.slane %v2886_v23, 1  ;;  %v2186_v10 = vadd.f32 %v2185_v21, %v2184_v45  ;;  %v2411_v19 = vshrl.u32 %v5203_v24, 16  ;;  %3182 = vrot.lane.b32.xlu1 %v5059_v51, %s5632_s17  ;;  %v6968_v32 = vor.u32 %v2390_v0, %v6955_v25  ;;  %v2544_v0 = vld [vmem:[#allocation2 + $0x10] sm:$0xf] }
 0x279   : > { %v2205_v30 = vadd.f32 %v2204_v46, %v2203_v3  ;;  %v2393_v2 = vrot.slane %v6955_v25, 4  ;;  %v6972_v8 = vor.u32 %v2398_v11, %v6957_v37  ;;  %v2401_v21 = vrot.slane %v6957_v37, 4  ;;  %v2613_v25 = vld [vmem:[#allocation2 + $0x7c] sm:$0x1] }
 0x27a   : > { %v2889_v47 = vor.u32 %v2888_v29, %v2884_v43  ;;  %v2187_v4 = vrot.slane %v2186_v10, 4  ;;  %v6975_v50 = vrot.slane %v2403_v38, 7  ;;  %v6977_v33 = vrot.slane %v2411_v19, 7  ;;  %v2547_v38 = vld [vmem:[#allocation2 + $0x14] sm:$0x1] }
 0x27b   : > { %v2207_v52 = vadd.f32 %v2206_v49, %v2205_v30  ;;  %v2414_v5 = vshll.u32 %v5203_v24, 16  ;;  %v2459_v51 = vshrl.u32 %v6925_v54, 16  ;;  %3100 = vrot.lane.b32.xlu0 %v6767_v28, %s5633_s25  ;;  %v2462_v58 = vshll.u32 %v6925_v54, 16  ;;  %v2553_v19 = vld [vmem:[#allocation2 + $0x1c] sm:$0x1] }
 0x27c   : > { %v2188_v46 = vadd.f32 %v2187_v4, %v2186_v10  ;;  %v6983_v9 = vor.u32 %v2406_v20, %v6975_v50  ;;  %v2409_v63 = vrot.slane %v6975_v50, 4  ;;  %3374 = vrot.lane.b32.xlu1 %v6879_v7, %s5636_s28  ;;  %v2417_v24 = vrot.slane %v6977_v33, 4  ;;  %v2550_v20 = vld [vmem:[#allocation2 + $0x18] sm:$0xf]  ;;  %v2556_v30 = vld [vmem:[#allocation2 + $0x20] sm:$0xf] }
 0x27d   : > { %v2208_v49 = vrot.slane %v2207_v52, 4  ;;  %v6990_v26 = vor.u32 %v2414_v5, %v6977_v33  ;;  %v6993_v13 = vrot.slane %v2459_v51, 7  ;;  %v2467_v59 = vshrl.u32 %v6929_v55, 16  ;;  %v2562_v5 = vld [vmem:[#allocation2 + $0x28] sm:$0xf] }
 0x27e   : > { %v2189_v28 = vrot.slane %v2188_v46, 2  ;;  %v2470_v41 = vshll.u32 %v6929_v55, 16  ;;  %v2475_v15 = vshrl.u32 %v6931_v39, 16  ;;  %v2478_v40 = vshll.u32 %v6931_v39, 16 }
 0x27f   : > { %v2209_v18 = vadd.f32 %v2208_v49, %v2207_v52  ;;  %v6999_v54 = vor.u32 %v2462_v58, %v6993_v13  ;;  %v2465_v7 = vrot.slane %v6993_v13, 4  ;;  %3180 = vrot.lane.b32.xlu0 %v5058_v12, %s5632_s17  ;;  %v7007_v11 = vrot.slane %v2467_v59, 7  ;;  %v2598_v59 = vld [vmem:[#allocation2 + $0x68] sm:$0xf] }
 0x280   : > { %v2190_v60 = vadd.f32 %v2189_v28, %v2188_v46  ;;  %v7009_v55 = vrot.slane %v2475_v15, 7  ;;  %v2483_v43 = vshrl.u32 %v6933_v44, 16  ;;  %2990 = vrot.lane.b32.xlu1 %v2889_v47, %s5635_s11  ;;  %v2486_v45 = vshll.u32 %v6933_v44, 16  ;;  %v2565_v28 = vld [vmem:[#allocation2 + $0x2c] sm:$0x1] }
 0x281   : > { %v2210_v23 = vrot.slane %v2209_v18, 2  ;;  %v2491_v39 = vshrl.u32 %v6937_v57, 16  ;;  %v2494_v3 = vshll.u32 %v6937_v57, 16  ;;  %v7017_v12 = vor.u32 %v2470_v41, %v7007_v11  ;;  %v2559_v57 = vld [vmem:[#allocation2 + $0x24] sm:$0x1] }
 0x282   : > { %v2191_v35 = vrot.slane %v2190_v60, 1  ;;  %v2473_v29 = vrot.slane %v7007_v11, 4  ;;  %v7021_v10 = vor.u32 %v2478_v40, %v7009_v55  ;;  %v2481_v44 = vrot.slane %v7009_v55, 4  ;;  %v2601_v41 = vld [vmem:[#allocation2 + $0x6c] sm:$0x1] }
 0x283   : > { %v2211_v47 = vadd.f32 %v2210_v23, %v2209_v18  ;;  %v7024_v4 = vrot.slane %v2483_v43, 7  ;;  %v7026_v52 = vrot.slane %v2491_v39, 7  ;;  %3372 = vrot.lane.b32.xlu0 %v6889_v6, %s5636_s28  ;;  %v2499_v46 = vshrl.u32 %v6939_v14, 16  ;;  %v2607_v55 = vld [vmem:[#allocation2 + $0x74] sm:$0x1] }
 0x284   : > { %v2192_v51 = vadd.f32 %v2191_v35, %v2190_v60  ;;  %v2502_v58 = vshll.u32 %v6939_v14, 16  ;;  %v2545_v49 = vsel %vm5807_vm4, %v6968_v32, %v2544_v0  ;;  %3470 = vrot.lane.b32.xlu1 %v6881_v27, %s5634_s26  ;;  %v2604_v60 = vld [vmem:[#allocation2 + $0x70] sm:$0xf]  ;;  %v2548_v0 = vsel %vm5819_vm5, %v2393_v2, %v2547_v38  ;;  %v2610_v27 = vld [vmem:[#allocation2 + $0x78] sm:$0xf] }
 0x285   : > { %v2212_v15 = vrot.slane %v2211_v47, 1  ;;  %v2488_v18 = vor.u32 %v2486_v45, %v7024_v4  ;;  %v2489_v6 = vrot.slane %v7024_v4, 4  ;;  %v2496_v40 = vor.u32 %v2494_v3, %v7026_v52  ;;  %2546 = vst [vmem:[#allocation2 + $0x10] sm:$0xf] %v2545_v49  ;;  %2549 = vst [vmem:[#allocation2 + $0x14] sm:$0x1] %v2548_v0 }
 0x286   : > { %v2215_v14 = vmul.f32 0.015625, %v2192_v51  ;;  %v2497_v43 = vrot.slane %v7026_v52, 4  ;;  %v2501_v32 = vrot.slane %v2499_v46, 7  ;;  %v2551_v45 = vsel %vm5807_vm4, %v6972_v8, %v2550_v20  ;;  %v2616_v35 = vld [vmem:[#allocation2 + $0x80] sm:$0xf] }
 0x287   : > { %v2213_v23 = vadd.f32 %v2212_v15, %v2211_v47  ;;  %v2554_v39 = vsel %vm5819_vm5, %v2401_v21, %v2553_v19  ;;  %v2557_v3 = vsel %vm5807_vm4, %v6983_v9, %v2556_v30  ;;  %v2619_v4 = vld [vmem:[#allocation2 + $0x84] sm:$0x1]  ;;  %2988 = vrot.lane.b32.xlu0 %v6860_v61, %s5635_s11  ;;  %2552 = vst [vmem:[#allocation2 + $0x18] sm:$0xf] %v2551_v45  ;;  %v2622_v21 = vld [vmem:[#allocation2 + $0x88] sm:$0xf] }
 0x288   : > { %v2504_v2 = vor.u32 %v2502_v58, %v2501_v32  ;;  %v2505_v38 = vrot.slane %v2501_v32, 4  ;;  %2555 = vst [vmem:[#allocation2 + $0x1c] sm:$0x1] %v2554_v39  ;;  %2558 = vst [vmem:[#allocation2 + $0x20] sm:$0xf] %v2557_v3  ;;  %v2560_v37 = vsel %vm5819_vm5, %v2409_v63, %v2559_v57  ;;  %v2563_v8 = vsel %vm5807_vm4, %v6990_v26, %v2562_v5 }
 0x289   : > { %v2625_v9 = vld [vmem:[#allocation2 + $0x8c] sm:$0x1]  ;;  %3086 = vrot.lane.b32.xlu1 %v6953_v31, %s5633_s25  ;;  %v2216_v61 = vmul.f32 0.015625, %v2213_v23  ;;  %2561 = vst [vmem:[#allocation2 + $0x24] sm:$0x1] %v2560_v37  ;;  %v2566_v50 = vsel %vm5819_vm5, %v2417_v24, %v2565_v28  ;;  %v2599_v63 = vsel %vm5807_vm4, %v6999_v54, %v2598_v59  ;;  %v2602_v26 = vsel %vm5819_vm5, %v2465_v7, %v2601_v41 }
 0x28a   : > { %2564 = vst [vmem:[#allocation2 + $0x28] sm:$0xf] %v2563_v8  ;;  %v2628_v20 = vld [vmem:[#allocation2 + $0x90] sm:$0xf]  ;;  %v2631_v19 = vld [vmem:[#allocation2 + $0x94] sm:$0x1]  ;;  %v2605_v31 = vsel %vm5807_vm4, %v7017_v12, %v2604_v60  ;;  %v2608_v33 = vsel %vm5819_vm5, %v2473_v29, %v2607_v55  ;;  %v2611_v24 = vsel %vm5807_vm4, %v7021_v10, %v2610_v27  ;;  %v2614_v13 = vsel %vm5819_vm5, %v2481_v44, %v2613_v25 }
 0x28b   : > { %2567 = vst [vmem:[#allocation2 + $0x2c] sm:$0x1] %v2566_v50  ;;  %2600 = vst [vmem:[#allocation2 + $0x68] sm:$0xf] %v2599_v63  ;;  %v2229_v54 = vsel %vm2228_vm14, %v2216_v61, %v2215_v14  ;;  %v2617_v7 = vsel %vm5807_vm4, %v2488_v18, %v2616_v35  ;;  %v2620_v11 = vsel %vm5819_vm5, %v2489_v6, %v2619_v4  ;;  %3468 = vrot.lane.b32.xlu0 %v6871_v42, %s5634_s26  ;;  %v7108_v44 = vld [vmem:[#allocation2 + $0xc] sm:$0x1] }
 0x28c   : > { %2603 = vst [vmem:[#allocation2 + $0x6c] sm:$0x1] %v2602_v26  ;;  %2606 = vst [vmem:[#allocation2 + $0x70] sm:$0xf] %v2605_v31  ;;  %v2623_v12 = vsel %vm5807_vm4, %v2496_v40, %v2622_v21  ;;  %v3068_v29 = vrot.slane %v5034_v53, 1  ;;  %5226 = vmatmul.mubr.msk.f32.vlgmr.msra.gmra.mxu0 %vm1610_vm6, %v2229_v54  ;;  %v2626_v10 = vsel %vm5819_vm5, %v2497_v43, %v2625_v9  ;;  %v3671_v57 = vshll.u32 %v6943_v17, 16 }
 0x28d   : > { %2609 = vst [vmem:[#allocation2 + $0x74] sm:$0x1] %v2608_v33  ;;  %2612 = vst [vmem:[#allocation2 + $0x78] sm:$0xf] %v2611_v24  ;;  %v2629_v30 = vsel %vm5807_vm4, %v2504_v2, %v2628_v20  ;;  %v2632_v47 = vsel %vm5819_vm5, %v2505_v38, %v2631_v19  ;;  %v7110_v48 = vld [vmem:[#allocation2 + $0x14] sm:$0x1]  ;;  %v5066_v42 = vcombine.low %v2700_v16, %v7108_v44 }
 0x28e   : > { %2615 = vst [vmem:[#allocation2 + $0x7c] sm:$0x1] %v2614_v13  ;;  %2618 = vst [vmem:[#allocation2 + $0x80] sm:$0xf] %v2617_v7  ;;  %v2662_v53 = vld [vmem:[#allocation2 + $0x60] sm:$0xf]  ;;  %v5106_v51 = vcombine.low %v6935_v62, %v6935_v62  ;;  %v5050_v40 = vcombine.low %v2700_v16, %v2700_v16 }
 0x28f   : > { %2621 = vst [vmem:[#allocation2 + $0x84] sm:$0x1] %v2620_v11  ;;  %2624 = vst [vmem:[#allocation2 + $0x88] sm:$0xf] %v2623_v12  ;;  %v2701_v52 = vld [vmem:[#allocation2 + $0x10] sm:$0xf]  ;;  %3084 = vrot.lane.b32.xlu0 %v3068_v29, %s5633_s25 }
 0x290   : > { %2627 = vst [vmem:[#allocation2 + $0x8c] sm:$0x1] %v2626_v10  ;;  %2630 = vst [vmem:[#allocation2 + $0x90] sm:$0xf] %v2629_v30  ;;  %v7114_v5 = vld [vmem:[#allocation2 + $0x64] sm:$0x1]  ;;  %v5067_v46 = vcombine.low %v2701_v52, %v7110_v48  ;;  %v5051_v60 = vcombine.low %v2701_v52, %v2701_v52 }
 0x291   : > { %2633 = vst [vmem:[#allocation2 + $0x94] sm:$0x1] %v2632_v47  ;;  %v3669_v41 = vshrl.u32 %v6943_v17, 16  ;;  %v5028_v15 = vcombine.low %v2662_v53, %v7114_v5  ;;  %v3673_v55 = vrot.slane %v3671_v57, 1  ;;  %v3247_v14 = vshll.u32 %v5066_v42, 16  ;;  %v5509_v63 = vld [vmem:[%s7995_s3 + $0x38] sm:$0xff]  }
 0x292   : > { %v2757_v58 = vld [vmem:[#allocation2 + $0x68] sm:$0xf]  ;;  %v3254_v32 = vshll.u32 %v5067_v46, 16  ;;  %v3245_v23 = vshrl.u32 %v5066_v42, 16  ;;  %v3252_v25 = vshrl.u32 %v5067_v46, 16  ;;  %v5637_v13 = vmov 0  }
 0x293   : > { %v7120_v49 = vld [vmem:[#allocation2 + $0x6c] sm:$0x1]  ;;  %v5107_v28 = vcombine.low %v2757_v58, %v2757_v58  ;;  %v2663_v18 = vld [vmem:[#allocation2 + $0x68] sm:$0xf]  ;;  %3548 = vrot.lane.b32.xlu0 %v5106_v51, %s5628_s30  ;;  %v3674_v17 = vor.u32 %v3673_v55, %v3669_v41  ;;  %v3249_v45 = vrot.slane %v3247_v14, 1  ;;  %v2949_v39 = vshll.u32 %v5028_v15, 16  ;;  %5253 = vmatprep.subr.bf16.mxu1 %v5637_v13 }
 0x294   : > { %v5123_v59 = vcombine.low %v2757_v58, %v7120_v49  ;;  %v7125_v6 = vld [vmem:[#allocation2 + $0x6c] sm:$0x1]  ;;  %v3256_v35 = vrot.slane %v3254_v32, 1  ;;  %v2947_v2 = vshrl.u32 %v5028_v15, 16  ;;  %v2732_v61 = vld [vmem:[#allocation2 + $0x8] sm:$0xe]  ;;  %4210 = vmatprep.subr.bf16.mxu0 %v5637_v13  ;;  %5262 = vmatpush1.bf16.msra.mxu1 %v5509_v63 }
 0x295   : > { %3550 = vrot.lane.b32.xlu1 %v5107_v28, %s5628_s30  ;;  %v5029_v0 = vcombine.low %v2663_v18, %v7125_v6  ;;  %v2951_v38 = vrot.slane %v2949_v39, 1  ;;  %v3250_v37 = vor.u32 %v3249_v45, %v3245_v23  ;;  %v2733_v50 = vld [vmem:[#allocation2 + $0x10] sm:$0xe]  ;;  %v5082_v26 = vcombine.low %v2732_v61, %v7108_v44  ;;  %v2694_v33 = vld [vmem:[#allocation2 + $0x60] sm:$0xe]  ;;  %5254 = vmatprep.subr.bf16.mxu1 %v5637_v13  ;;  %v5517_v44 = vld [vmem:[%s7995_s3 + $0x28] sm:$0xff]  }
 0x296   : > { %v3676_v62 = vshrl.u32 %v5123_v59, 16  ;;  %v3678_v43 = vshll.u32 %v5123_v59, 16  ;;  %v3257_v8 = vor.u32 %v3256_v35, %v3252_v25  ;;  %v5083_v31 = vcombine.low %v2733_v50, %v7110_v48  ;;  %v2695_v24 = vld [vmem:[#allocation2 + $0x68] sm:$0xe]  ;;  %v5512_v54 = vld [vmem:[%s7995_s3 + $0x30] sm:$0xff]   ;;  %4211 = vmatpush1.bf16.msra.mxu0 %v5509_v63  ;;  %v5522_v59 = vld [vmem:[%s7995_s3 + $0x20] sm:$0xff]  }
 0x297   : > { %3164 = vrot.lane.b32.xlu0 %v5050_v40, %s5632_s17  ;;  %v2956_v4 = vshll.u32 %v5029_v0, 16  ;;  %v2954_v21 = vshrl.u32 %v5029_v0, 16  ;;  %v2952_v20 = vor.u32 %v2951_v38, %v2947_v2  ;;  %v3436_v7 = vrot.slane %v5082_v26, 1  ;;  %v7151_v10 = vld [vmem:[#allocation2 + $0x14] sm:$0x1]  ;;  %4212 = vmatprep.subr.bf16.mxu0 %v5637_v13  ;;  %v5523_v39 = vld [vmem:[%s7995_s3 + $0x18] sm:$0xff]  }
 0x298   : > { %v3680_v27 = vrot.slane %v3678_v43, 1  ;;  %v3437_v11 = vrot.slane %v5083_v31, 1  ;;  %v5044_v12 = vcombine.low %v2694_v33, %v7114_v5  ;;  %v5045_v29 = vcombine.low %v2695_v24, %v7125_v6  ;;  %v7153_v30 = vld [vmem:[#allocation2 + $0x1c] sm:$0x1]  ;;  %v2748_v47 = vld [vmem:[#allocation2 + $0x10] sm:$0xf]  ;;  %5263 = vmatpush1.bf16.msra.mxu1 %v5512_v54 }
 0x299   : > { %3166 = vrot.lane.b32.xlu1 %v5051_v60, %s5632_s17  ;;  %v2958_v9 = vrot.slane %v2956_v4, 1  ;;  %v5114_v16 = vcombine.low %v2748_v47, %v7151_v10  ;;  %v2749_v48 = vld [vmem:[#allocation2 + $0x18] sm:$0xf]  ;;  %5255 = vmatprep.subr.bf16.mxu1 %v5637_v13  ;;  %v7164_v57 = vld [vmem:[#allocation2 + $0x6c] sm:$0x1]  ;;  %v5098_v41 = vcombine.low %v2748_v47, %v2748_v47 }
 0x29a   : > { %v3681_v3 = vor.u32 %v3680_v27, %v3676_v62  ;;  %4213 = vmatpush1.bf16.msra.mxu0 %v5512_v54  ;;  %v3078_v53 = vrot.slane %v5044_v12, 1  ;;  %v3079_v42 = vrot.slane %v5045_v29, 1  ;;  %v5115_v52 = vcombine.low %v2749_v48, %v7153_v30  ;;  %v7166_v5 = vld [vmem:[#allocation2 + $0x74] sm:$0x1]  ;;  %v2786_v51 = vld [vmem:[#allocation2 + $0x40] sm:$0xe] }
 0x29b   : > { %3740 = vrot.lane.b32.xlu0 %v3674_v17, %s5629_s0  ;;  %v2959_v19 = vor.u32 %v2958_v9, %v2954_v21  ;;  %v2787_v46 = vld [vmem:[#allocation2 + $0x48] sm:$0xe]  ;;  %4214 = vmatprep.subr.bf16.mxu0 %v5637_v13  ;;  %v2711_v28 = vld [vmem:[#allocation2 + $0x70] sm:$0xf]  ;;  %v3615_v6 = vshll.u32 %v5114_v16, 16  ;;  %v5099_v40 = vcombine.low %v2749_v48, %v2749_v48  ;;  %v5136_v14 = vcombine.low %v2786_v51, %v6782_v36  ;;  %v5530_v48 = vld [vmem:[%s7995_s3] sm:$0xff]  }
 0x29c   : > { %v2710_v58 = vld [vmem:[#allocation2 + $0x68] sm:$0xf]  ;;  %5264 = vmatpush1.bf16.msra.mxu1 %v5517_v44  ;;  %v5077_v18 = vcombine.low %v2711_v28, %v7166_v5  ;;  %v3622_v60 = vshll.u32 %v5115_v52, 16  ;;  %v2654_v55 = vld [vmem:[#allocation2 + $0x10] sm:$0xf]  ;;  %v5061_v23 = vcombine.low %v2711_v28, %v2711_v28  ;;  %v3613_v45 = vshrl.u32 %v5114_v16, 16 }
 0x29d   : > { %3742 = vrot.lane.b32.xlu1 %v3681_v3, %s5629_s0  ;;  %v5076_v15 = vcombine.low %v2710_v58, %v7164_v57  ;;  %5256 = vmatprep.subr.bf16.mxu1 %v5637_v13  ;;  %v5600_v62 = vld [vmem:[#allocation2 + $0x4c] sm:$0x1]  ;;  %v5060_v32 = vcombine.low %v2710_v58, %v2710_v58  ;;  %v7178_v0 = vld [vmem:[#allocation2 + $0x14] sm:$0x1]  ;;  %v2655_v27 = vld [vmem:[#allocation2 + $0x18] sm:$0xf] }
 0x29e   : > { %4215 = vmatpush1.bf16.msra.mxu0 %v5517_v44  ;;  %v5137_v43 = vcombine.low %v2787_v46, %v5600_v62  ;;  %v7180_v17 = vld [vmem:[#allocation2 + $0x1c] sm:$0x1]  ;;  %v3810_v3 = vrot.slane %v5136_v14, 1  ;;  %v3617_v36 = vrot.slane %v3615_v6, 1  ;;  %v3620_v35 = vshrl.u32 %v5115_v52, 16  ;;  %v5524_v9 = vld [vmem:[%s7995_s3 + $0x10] sm:$0xff]  }
 0x29f   : > { %3356 = vrot.lane.b32.xlu0 %v3250_v37, %s5636_s28  ;;  %4216 = vmatprep.subr.bf16.mxu0 %v5637_v13  ;;  %v3317_v4 = vshll.u32 %v5076_v15, 16  ;;  %v3324_v2 = vshll.u32 %v5077_v18, 16  ;;  %v3624_v38 = vrot.slane %v3622_v60, 1  ;;  %v5020_v37 = vcombine.low %v2654_v55, %v7178_v0  ;;  %v5527_v24 = vld [vmem:[%s7995_s3 + $0x8] sm:$0xff]   ;;  %v2743_v16 = vld [vmem:[#allocation2 + $0x70] sm:$0xe] }
 0x2a0   : > { %5265 = vmatpush1.bf16.msra.mxu1 %v5522_v59  ;;  %v3811_v25 = vrot.slane %v5137_v43, 1  ;;  %v3618_v61 = vor.u32 %v3617_v36, %v3613_v45  ;;  %v3315_v50 = vshrl.u32 %v5076_v15, 16  ;;  %v3322_v26 = vshrl.u32 %v5077_v18, 16  ;;  %v2742_v44 = vld [vmem:[#allocation2 + $0x68] sm:$0xe] }
 0x2a1   : > { %3358 = vrot.lane.b32.xlu1 %v3257_v8, %s5636_s28  ;;  %5257 = vmatprep.subr.bf16.mxu1 %v5637_v13  ;;  %v5021_v8 = vcombine.low %v2655_v27, %v7180_v17  ;;  %v3319_v63 = vrot.slane %v3317_v4, 1  ;;  %v2893_v31 = vshll.u32 %v5020_v37, 16  ;;  %v5093_v51 = vcombine.low %v2743_v16, %v7166_v5  ;;  %v2686_v46 = vld [vmem:[#allocation2 + $0x10] sm:$0xe]  ;;  %v2687_v58 = vld [vmem:[#allocation2 + $0x18] sm:$0xe] }
 0x2a2   : > { %4217 = vmatpush1.bf16.msra.mxu0 %v5522_v59  ;;  %v5153_v21 = vcombine.low %v3810_v3, %v3811_v25  ;;  %v5036_v5 = vcombine.low %v2686_v46, %v7178_v0  ;;  %v2774_v15 = vld [vmem:[#allocation2 + $0x74] sm:$0x1]  ;;  %v2775_v18 = vld [vmem:[#allocation2 + $0x7c] sm:$0x1]  ;;  %v2758_v6 = vld [vmem:[#allocation2 + $0x70] sm:$0xf] }
 0x2a3   : > { %3008 = vrot.lane.b32.xlu0 %v2952_v20, %s5635_s11  ;;  %4218 = vmatprep.subr.bf16.mxu0 %v5637_v13  ;;  %v3625_v20 = vor.u32 %v3624_v38, %v3620_v35  ;;  %v2900_v33 = vshll.u32 %v5021_v8, 16  ;;  %v3320_v54 = vor.u32 %v3319_v63, %v3315_v50  ;;  %v2895_v12 = vrot.slane %v2893_v31, 1  ;;  %v2759_v60 = vld [vmem:[#allocation2 + $0x78] sm:$0xf]  ;;  %v2780_v55 = vld [vmem:[#allocation2 + $0x10] sm:$0xe] }
 0x2a4   : > { %5266 = vmatpush1.bf16.msra.mxu1 %v5523_v39  ;;  %5174 = vmatprep.mubr.msk.bf16.mxu1 %vm1610_vm6, %v5153_v21  ;;  %v2898_v29 = vshrl.u32 %v5021_v8, 16  ;;  %v3447_v59 = vrot.slane %v5093_v51, 1  ;;  %v2781_v14 = vld [vmem:[#allocation2 + $0x18] sm:$0xe]  ;;  %v3070_v62 = vrot.slane %v5036_v5, 1  ;;  %v5125_v0 = vcombine.low %v2759_v60, %v2775_v18 }
 0x2a5   : > { %3010 = vrot.lane.b32.xlu1 %v2959_v19, %s5635_s11  ;;  %5258 = vmatprep.subr.bf16.mxu1 %v5637_v13  ;;  %v3326_v19 = vrot.slane %v3324_v2, 1  ;;  %v2902_v47 = vrot.slane %v2900_v33, 1  ;;  %v7229_v27 = vld [vmem:[#allocation2 + $0x1c] sm:$0x1]  ;;  %v2703_v45 = vld [vmem:[#allocation2 + $0x20] sm:$0xf]  ;;  %v5131_v3 = vcombine.low %v2781_v14, %v7153_v30  ;;  %v5108_v25 = vcombine.low %v2758_v6, %v2758_v6 }
 0x2a6   : > { %4219 = vmatpush1.bf16.msra.mxu0 %v5523_v39  ;;  %v5130_v39 = vcombine.low %v2780_v55, %v7151_v10  ;;  %v5109_v36 = vcombine.low %v2759_v60, %v2759_v60  ;;  %v7238_v2 = vld [vmem:[#allocation2 + $0x70] sm:$0xf]  ;;  %v7242_v8 = vld [vmem:[#allocation2 + $0x74] sm:$0x1]  ;;  %v7246_v30 = vld [vmem:[#allocation2 + $0x78] sm:$0xf]  ;;  %v5053_v63 = vcombine.low %v2703_v45, %v2703_v45 }
 0x2a7   : > { %3452 = vrot.lane.b32.xlu0 %v3436_v7, %s5634_s26  ;;  %4220 = vmatprep.subr.bf16.mxu0 %v5637_v13  ;;  %v2891_v7 = vshrl.u32 %v5020_v37, 16  ;;  %v2903_v52 = vor.u32 %v2902_v47, %v2898_v29  ;;  %v3692_v37 = vshll.u32 %v5125_v0, 16  ;;  %v3805_v10 = vrot.slane %v5131_v3, 1 }
 0x2a8   : > { %5267 = vmatpush1.bf16.msra.mxu1 %v5524_v9  ;;  %v3804_v21 = vrot.slane %v5130_v39, 1  ;;  %v3690_v33 = vshrl.u32 %v5125_v0, 16  ;;  %v2735_v0 = vld [vmem:[#allocation2 + $0x20] sm:$0xe] }
 0x2a9   : > { %3454 = vrot.lane.b32.xlu1 %v3437_v11, %s5634_s26  ;;  %5259 = vmatprep.subr.bf16.mxu1 %v5637_v13  ;;  %v3327_v11 = vor.u32 %v3326_v19, %v3322_v26  ;;  %v2791_v19 = vld [vmem:[#allocation2 + $0x78] sm:$0xe] }
 0x2aa   : > { %4221 = vmatpush1.bf16.msra.mxu0 %v5524_v9  ;;  %v5147_v26 = vcombine.low %v3804_v21, %v3805_v10  ;;  %v2766_v21 = vld [vmem:[#allocation2 + $0x24] sm:$0x1]  ;;  %v2788_v10 = vld [vmem:[#allocation2 + $0x60] sm:$0xe] }
 0x2ab   : > { %3104 = vrot.lane.b32.xlu0 %v3078_v53, %s5633_s25  ;;  %4222 = vmatprep.subr.bf16.mxu0 %v5637_v13  ;;  %v5092_v53 = vcombine.low %v2742_v44, %v7164_v57  ;;  %v5533_v57 = vld [vmem:[%s7995_s3 + $0x40] sm:$0xff]   ;;  %v5141_v44 = vcombine.low %v2791_v19, %v2775_v18 }
 0x2ac   : > { %5268 = vmatpush1.bf16.msra.mxu1 %v5527_v24  ;;  %5171 = vmatprep.mubr.msk.bf16.mxu0 %vm1610_vm6, %v5147_v26  ;;  %v2767_v26 = vld [vmem:[#allocation2 + $0x2c] sm:$0x1] }
 0x2ad   : > { %3106 = vrot.lane.b32.xlu1 %v3079_v42, %s5633_s25  ;;  %5260 = vmatprep.subr.bf16.mxu1 %v5637_v13  ;;  %v2896_v42 = vor.u32 %v2895_v12, %v2891_v7  ;;  %v3446_v28 = vrot.slane %v5092_v53, 1 }
 0x2ae   : > { %4223 = vmatpush1.bf16.msra.mxu0 %v5527_v24 }
 0x2af   : > { %3532 = vrot.lane.b32.xlu0 %v5098_v41, %s5628_s30  ;;  %4224 = vmatprep.subr.bf16.mxu0 %v5637_v13  ;;  %v5037_v41 = vcombine.low %v2687_v58, %v7180_v17  ;;  %v7231_v17 = vld [vmem:[#allocation2 + $0x24] sm:$0x1]  ;;  %v7263_v58 = vrot.slane %v5141_v44, 1  ;;  %v2782_v44 = vld [vmem:[#allocation2 + $0x20] sm:$0xe] }
 0x2b0   : > { %5269 = vmatpush1.bf16.msra.mxu1 %v5530_v48  ;;  %v5069_v4 = vcombine.low %v2703_v45, %v7231_v17 }
 0x2b1   : > { %3534 = vrot.lane.b32.xlu1 %v5099_v40, %s5628_s30  ;;  %5261 = vmatprep.subr.bf16.mxu1 %v5637_v13  ;;  %v3071_v43 = vrot.slane %v5037_v41, 1 }
 0x2b2   : > { %4225 = vmatpush1.bf16.msra.mxu0 %v5530_v48  ;;  %v3268_v12 = vshll.u32 %v5069_v4, 16  ;;  %v3266_v53 = vshrl.u32 %v5069_v4, 16  ;;  %v2697_v4 = vld [vmem:[#allocation2 + $0x78] sm:$0xe] }
 0x2b3   : > { %3184 = vrot.lane.b32.xlu0 %v5060_v32, %s5632_s17  ;;  %4240 = vmatprep.subr.bf16.mxu0 %v5637_v13  ;;  %v5124_v32 = vcombine.low %v2758_v6, %v2774_v15 }
 0x2b4   : > { %5270 = vmatpush2.bf16.msra.mxu1 %v5533_v57 }
 0x2b5   : > { %3186 = vrot.lane.b32.xlu1 %v5061_v23, %s5632_s17  ;;  %v2702_v23 = vld [vmem:[#allocation2 + $0x18] sm:$0xf]  ;;  %v3685_v38 = vshll.u32 %v5124_v32, 16  ;;  %v3683_v31 = vshrl.u32 %v5124_v32, 16 }
 0x2b6   : > { %4241 = vmatpush2.bf16.msra.mxu0 %v5533_v57  ;;  %v5068_v35 = vcombine.low %v2702_v23, %v7229_v27  ;;  %v5052_v50 = vcombine.low %v2702_v23, %v2702_v23  ;;  %v2734_v32 = vld [vmem:[#allocation2 + $0x18] sm:$0xe] }
 0x2b7   : > { %3724 = vrot.lane.b32.xlu0 %v3618_v61, %s5629_s0  ;;  %5228 = vmatprep.subr.mxu0 %v5630_v22  ;;  %v7248_v61 = vld [vmem:[#allocation2 + $0x7c] sm:$0x1]  ;;  %v3687_v7 = vrot.slane %v3685_v38, 1  ;;  %v5084_v39 = vcombine.low %v2734_v32, %v7229_v27  ;;  %v5601_v27 = vld [vmem:[#allocation2 + $0x30] sm:$0xf] }
 0x2b8   : > { %v3261_v24 = vshll.u32 %v5068_v35, 16  ;;  %v5031_v29 = vcombine.low %v7246_v30, %v7248_v61  ;;  %v3259_v48 = vshrl.u32 %v5068_v35, 16  ;;  %v2696_v35 = vld [vmem:[#allocation2 + $0x70] sm:$0xe] }
 0x2b9   : > { %3726 = vrot.lane.b32.xlu1 %v3625_v20, %s5629_s0  ;;  %v2790_v20 = vld [vmem:[#allocation2 + $0x70] sm:$0xe]  ;;  %v3688_v57 = vor.u32 %v3687_v7, %v3683_v31  ;;  %v7290_v7 = vld [vmem:[#allocation2 + $0x7c] sm:$0x1] }
 0x2ba   : > { %v5140_v47 = vcombine.low %v2790_v20, %v2774_v15  ;;  %v2970_v5 = vshll.u32 %v5031_v29, 16  ;;  %v2789_v20 = vld [vmem:[#allocation2 + $0x68] sm:$0xe] }
 0x2bb   : > { %3376 = vrot.lane.b32.xlu0 %v3320_v54, %s5636_s28  ;;  %v5030_v54 = vcombine.low %v7238_v2, %v7242_v8 }
 0x2bc   : > { %v7225_v40 = vpop.permute.xlu1 %3546  ;;  %v7261_v46 = vrot.slane %v5140_v47, 1  ;;  %v7298_v47 = vld [vmem:[#allocation2 + $0x84] sm:$0x1] }
 0x2bd   : > { %3378 = vrot.lane.b32.xlu1 %v3327_v11, %s5636_s28  ;;  %v3694_v11 = vrot.slane %v3692_v37, 1  ;;  %v2963_v51 = vshll.u32 %v5030_v54, 16  ;;  %v2961_v60 = vshrl.u32 %v5030_v54, 16  ;;  %v7279_v37 = vld [vmem:[#allocation2 + $0x20] sm:$0xf] }
 0x2be   : > { %v5157_v41 = vcombine.low %v7261_v46, %v7263_v58  ;;  %v7288_v54 = vld [vmem:[#allocation2 + $0x28] sm:$0xf]  ;;  %v2752_v46 = vld [vmem:[#allocation2 + $0x30] sm:$0xf]  ;;  %v2753_v58 = vld [vmem:[#allocation2 + $0x38] sm:$0xf] }
 0x2bf   : > { %2992 = vrot.lane.b32.xlu0 %v2896_v42, %s5635_s11  ;;  %v2965_v14 = vrot.slane %v2963_v51, 1 }
 0x2c1   : > { %2994 = vrot.lane.b32.xlu1 %v2903_v52, %s5635_s11  ;;  %v3263_v52 = vrot.slane %v3261_v24, 1  ;;  %v2966_v3 = vor.u32 %v2965_v14, %v2961_v60  ;;  %v5100_v24 = vcombine.low %v7279_v37, %v7279_v37 }
 0x2c2   : > { %v7244_v9 = vpop.permute.xlu1 %3738 }
 0x2c3   : > { %3472 = vrot.lane.b32.xlu0 %v3446_v28, %s5634_s26  ;;  %v3695_v28 = vor.u32 %v3694_v11, %v3690_v33  ;;  %v3264_v6 = vor.u32 %v3263_v52, %v3259_v48  ;;  %v5047_v33 = vcombine.low %v2697_v4, %v7248_v61  ;;  %v5139_v61 = vcombine.low %v2789_v20, %v7120_v49  ;;  %v2783_v48 = vld [vmem:[#allocation2 + $0x28] sm:$0xe]  ;;  %v5602_v52 = vld [vmem:[#allocation2 + $0x38] sm:$0xf] }
 0x2c5   : > { %3474 = vrot.lane.b32.xlu1 %v3447_v59, %s5634_s26  ;;  %v3270_v59 = vrot.slane %v3268_v12, 1  ;;  %v7293_v12 = vcombine.low %v7279_v37, %v2766_v21  ;;  %v3081_v60 = vrot.slane %v5047_v33, 1 }
 0x2c7   : > { %3088 = vrot.lane.b32.xlu0 %v3070_v62, %s5633_s25  ;;  %v3271_v55 = vor.u32 %v3270_v59, %v3266_v53  ;;  %v2968_v62 = vshrl.u32 %v5031_v29, 16  ;;  %v7296_v29 = vcombine.low %v7288_v54, %v2767_v26  ;;  %v5132_v59 = vcombine.low %v2782_v44, %v2766_v21 }
 0x2c8   : > { %v5101_v21 = vcombine.low %v7288_v54, %v7288_v54 }
 0x2c9   : > { %3090 = vrot.lane.b32.xlu1 %v3071_v43, %s5633_s25  ;;  %v2972_v43 = vrot.slane %v2970_v5, 1  ;;  %v5133_v5 = vcombine.low %v2783_v48, %v2767_v26 }
 0x2cb   : > { %3552 = vrot.lane.b32.xlu0 %v5108_v25, %s5628_s30  ;;  %v2973_v25 = vor.u32 %v2972_v43, %v2968_v62  ;;  %v7313_v62 = vrot.slane %v5132_v59, 1  ;;  %v7315_v43 = vrot.slane %v5133_v5, 1 }
 0x2cd   : > { %3554 = vrot.lane.b32.xlu1 %v5109_v36, %s5628_s30  ;;  %v7257_v16 = vpop.permute.xlu0 %3176  ;;  %v5085_v36 = vcombine.low %v2735_v0, %v7231_v17  ;;  %v5046_v17 = vcombine.low %v2696_v35, %v7242_v8  ;;  %v5138_v8 = vcombine.low %v2788_v10, %v6927_v1  ;;  %v3813_v35 = vrot.slane %v5139_v61, 1 }
 0x2ce   : > { %v7259_v42 = vpop.permute.xlu1 %3178  ;;  %v5149_v4 = vcombine.low %v7313_v62, %v7315_v43  ;;  %v3636_v10 = vshll.u32 %v7296_v29, 16  ;;  %v5607_v62 = vld [vmem:[#allocation2 + $0x68] sm:$0xf] }
 0x2cf   : > { %3168 = vrot.lane.b32.xlu0 %v5052_v50, %s5632_s17  ;;  %v3439_v31 = vrot.slane %v5085_v36, 1  ;;  %v3080_v1 = vrot.slane %v5046_v17, 1  ;;  %v3634_v17 = vshrl.u32 %v7296_v29, 16 }
 0x2d1   : > { %3170 = vrot.lane.b32.xlu1 %v5053_v63, %s5632_s17  ;;  %v7269_v15 = vpop.permute.xlu0 %3544  ;;  %v3438_v63 = vrot.slane %v5084_v39, 1  ;;  %v3629_v39 = vshll.u32 %v7293_v12, 16 }
 0x2d2   : > { %v3097_v18 = vpop.permute.xlu1 %3096 }
 0x2d3   : > { %3744 = vrot.lane.b32.xlu0 %v3688_v57, %s5629_s0  ;;  %v3631_v61 = vrot.slane %v3629_v39, 1  ;;  %v2745_v39 = vld [vmem:[#allocation2 + $0x80] sm:$0xe] }
 0x2d5   : > { %3746 = vrot.lane.b32.xlu1 %v3695_v28, %s5629_s0  ;;  %v7273_v23 = vpop.permute.xlu0 %3464  ;;  %v2712_v28 = vld [vmem:[#allocation2 + $0x78] sm:$0xf] }
 0x2d6   : > { %v3099_v45 = vpop.permute.xlu1 %3098  ;;  %v5078_v49 = vcombine.low %v2712_v28, %v7290_v7  ;;  %v5062_v26 = vcombine.low %v2712_v28, %v2712_v28 }
 0x2d7   : > { %3360 = vrot.lane.b32.xlu0 %v3264_v6, %s5636_s28 }
 0x2d8   : > { %v3331_v33 = vshll.u32 %v5078_v49, 16 }
 0x2d9   : > { %3362 = vrot.lane.b32.xlu1 %v3271_v55, %s5636_s28  ;;  %v3001_v38 = vpop.permute.xlu0 %3000  ;;  %v2713_v55 = vld [vmem:[#allocation2 + $0x80] sm:$0xf] }
 0x2da   : > { %v3467_v50 = vpop.permute.xlu1 %3466  ;;  %v3840_v19 = vsel %vm1610_vm6, %v5601_v27, %v3001_v38  ;;  %v7311_v14 = vcombine.low %v2713_v55, %v7298_v47  ;;  %v5063_v20 = vcombine.low %v2713_v55, %v2713_v55  ;;  %v7342_v27 = vld [vmem:[#allocation2 + $0x28] sm:$0xf] }
 0x2db   : > { %3012 = vrot.lane.b32.xlu0 %v2966_v3, %s5635_s11  ;;  %v3881_v53 = vsel %vm1659_vm7, %v3840_v19, %v3097_v18  ;;  %v3812_v3 = vrot.slane %v5138_v8, 1 }
 0x2dc   : > { %v3913_v0 = vsel %vm1692_vm8, %v3881_v53, %v7257_v16  ;;  %v3338_v54 = vshll.u32 %v7311_v14, 16  ;;  %v3336_v28 = vshrl.u32 %v7311_v14, 16 }
 0x2dd   : > { %3014 = vrot.lane.b32.xlu1 %v2973_v25, %s5635_s11  ;;  %v3003_v11 = vpop.permute.xlu0 %3002  ;;  %v5155_v44 = vcombine.low %v3812_v3, %v3813_v35 }
 0x2de   : > { %v3843_v51 = vsel %vm1610_vm6, %v5602_v52, %v3003_v11  ;;  %v3371_v57 = vpop.permute.xlu1 %3370  ;;  %v3340_v37 = vrot.slane %v3338_v54, 1  ;;  %v2760_v54 = vld [vmem:[#allocation2 + $0x80] sm:$0xf] }
 0x2df   : > { %v3883_v6 = vsel %vm1659_vm7, %v3843_v51, %v3099_v45  ;;  %3456 = vrot.lane.b32.xlu0 %v3438_v63, %s5634_s26  ;;  %v3329_v51 = vshrl.u32 %v5078_v49, 16 }
 0x2e0   : > { %v3915_v18 = vsel %vm1692_vm8, %v3883_v6, %v7259_v42 }
 0x2e1   : > { %3458 = vrot.lane.b32.xlu1 %v3439_v31, %s5634_s26  ;;  %v3947_v32 = vsel %vm1725_vm9, %v3915_v18, %v3371_v57  ;;  %v3369_v45 = vpop.permute.xlu0 %3368  ;;  %v3627_v31 = vshrl.u32 %v7293_v12, 16  ;;  %v3638_v12 = vrot.slane %v3636_v10, 1  ;;  %v3333_v57 = vrot.slane %v3331_v33, 1  ;;  %v2689_v10 = vld [vmem:[#allocation2 + $0x28] sm:$0xe] }
 0x2e2   : > { %v3979_v25 = vsel %vm1758_vm10, %v3947_v32, %v3467_v50  ;;  %v3945_v42 = vsel %vm1725_vm9, %v3913_v0, %v3369_v45  ;;  %v7323_v36 = vpop.permute.xlu1 %3006  ;;  %v7336_v50 = vld [vmem:[#allocation2 + $0x20] sm:$0xf]  ;;  %v3341_v18 = vor.u32 %v3340_v37, %v3336_v28  ;;  %v2744_v45 = vld [vmem:[#allocation2 + $0x78] sm:$0xe]  ;;  %v2705_v28 = vld [vmem:[#allocation2 + $0x30] sm:$0xf]  ;;  %v5110_v37 = vcombine.low %v2760_v54, %v2760_v54 }
 0x2e3   : > { %v4011_v38 = vsel %vm1791_vm11, %v3979_v25, %v7225_v40  ;;  %v3977_v16 = vsel %vm1758_vm10, %v3945_v42, %v7273_v23  ;;  %3108 = vrot.lane.b32.xlu0 %v3080_v1, %s5633_s25  ;;  %v7340_v40 = vld [vmem:[#allocation2 + $0x24] sm:$0x1]  ;;  %v7344_v23 = vld [vmem:[#allocation2 + $0x2c] sm:$0x1]  ;;  %v3639_v59 = vor.u32 %v3638_v12, %v3634_v17  ;;  %v5094_v25 = vcombine.low %v2744_v45, %v7290_v7  ;;  %v5603_v12 = vld [vmem:[#allocation2 + $0x58] sm:$0xf] }
 0x2e4   : > { %v4009_v63 = vsel %vm1791_vm11, %v3977_v16, %v7269_v15  ;;  %v4043_v11 = vsel %vm1824_vm12, %v4011_v38, %v7244_v9  ;;  %v5022_v29 = vcombine.low %v7336_v50, %v7340_v40  ;;  %v5023_v9 = vcombine.low %v7342_v27, %v7344_v23  ;;  %v7393_v17 = vld [vmem:[#allocation2 + $0x8c] sm:$0x1] }
 0x2e5   : > { %3110 = vrot.lane.b32.xlu1 %v3081_v60, %s5633_s25  ;;  %v3737_v19 = vpop.permute.xlu0 %3736  ;;  %v3334_v60 = vor.u32 %v3333_v57, %v3329_v51  ;;  %v5095_v16 = vcombine.low %v2745_v39, %v7298_v47  ;;  %v5055_v45 = vcombine.low %v2705_v28, %v2705_v28 }
 0x2e6   : > { %v4041_v15 = vsel %vm1824_vm12, %v4009_v63, %v3737_v19  ;;  %v7352_v8 = vpop.permute.xlu1 %3102  ;;  %v2907_v5 = vshll.u32 %v5022_v29, 16  ;;  %v2914_v6 = vshll.u32 %v5023_v9, 16  ;;  %v2905_v49 = vshrl.u32 %v5022_v29, 16 }
 0x2e7   : > { %v5152_v48 = vcombine.low %v4041_v15, %v4043_v11  ;;  %3536 = vrot.lane.b32.xlu0 %v5100_v24, %s5628_s30  ;;  %v3632_v24 = vor.u32 %v3631_v61, %v3627_v31  ;;  %v2912_v32 = vshrl.u32 %v5023_v9, 16  ;;  %v3449_v7 = vrot.slane %v5095_v16, 1  ;;  %v7391_v31 = vld [vmem:[#allocation2 + $0x84] sm:$0x1]  ;;  %v2761_v11 = vld [vmem:[#allocation2 + $0x88] sm:$0xf] }
 0x2e8   : > { %v2909_v14 = vrot.slane %v2907_v5, 1  ;;  %v2916_v0 = vrot.slane %v2914_v6, 1  ;;  %v5039_v19 = vcombine.low %v2689_v10, %v7344_v23  ;;  %v7397_v15 = vld [vmem:[#allocation2 + $0x2c] sm:$0x1]  ;;  %v5127_v23 = vcombine.low %v2761_v11, %v7393_v17  ;;  %v2704_v9 = vld [vmem:[#allocation2 + $0x28] sm:$0xf] }
 0x2e9   : > { %3538 = vrot.lane.b32.xlu1 %v5101_v21, %s5628_s30  ;;  %4267 = vmatmul.mubr.bf16.vlgmr.msra.gmra.mxu1 %v5152_v48  ;;  %v7363_v53 = vpop.permute.xlu0 %3004  ;;  %v2688_v21 = vld [vmem:[#allocation2 + $0x20] sm:$0xe]  ;;  %v7403_v48 = vld [vmem:[#allocation2 + $0x34] sm:$0x1]  ;;  %v3849_v29 = vsel %vm1610_vm6, %v5603_v12, %v7323_v36  ;;  %v5070_v57 = vcombine.low %v2704_v9, %v7397_v15  ;;  %v5111_v6 = vcombine.low %v2761_v11, %v2761_v11 }
 0x2ea   : > { %v7365_v52 = vpop.permute.xlu1 %3182  ;;  %5175 = vmatprep.mubr.msk.bf16.mxu1 %vm1610_vm6, %v5155_v44  ;;  %v2910_v42 = vor.u32 %v2909_v14, %v2905_v49  ;;  %v2917_v35 = vor.u32 %v2916_v0, %v2912_v32  ;;  %v3073_v44 = vrot.slane %v5039_v19, 1  ;;  %v7417_v49 = vld [vmem:[#allocation2 + $0x80] sm:$0xf]  ;;  %v7421_v14 = vld [vmem:[#allocation2 + $0x88] sm:$0xf] }
 0x2eb   : > { %3188 = vrot.lane.b32.xlu0 %v5062_v26, %s5632_s17  ;;  %v3448_v26 = vrot.slane %v5094_v25, 1  ;;  %v7423_v32 = vld [vmem:[#allocation2 + $0x8c] sm:$0x1]  ;;  %v3275_v39 = vshll.u32 %v5070_v57, 16 }
 0x2ed   : > { %3190 = vrot.lane.b32.xlu1 %v5063_v20, %s5632_s17  ;;  %v7371_v1 = vpop.permute.xlu0 %3100  ;;  %v5038_v20 = vcombine.low %v2688_v21, %v7340_v40  ;;  %v5126_v40 = vcombine.low %v2760_v54, %v7391_v31  ;;  %v3273_v54 = vshrl.u32 %v5070_v57, 16  ;;  %v3277_v11 = vrot.slane %v3275_v39, 1  ;;  %v2736_v39 = vld [vmem:[#allocation2 + $0x28] sm:$0xe] }
 0x2ee   : > { %v7373_v55 = vpop.permute.xlu1 %3374 }
 0x2ef   : > { %3728 = vrot.lane.b32.xlu0 %v3632_v24, %s5629_s0  ;;  %v3072_v61 = vrot.slane %v5038_v20, 1  ;;  %v5071_v24 = vcombine.low %v2705_v28, %v7403_v48  ;;  %v3699_v36 = vshll.u32 %v5126_v40, 16 }
 0x2f1   : > { %3730 = vrot.lane.b32.xlu1 %v3639_v59, %s5629_s0  ;;  %v7377_v3 = vpop.permute.xlu0 %3180  ;;  %v3887_v59 = vsel %vm1659_vm7, %v3849_v29, %v7352_v8  ;;  %v5054_v8 = vcombine.low %v2704_v9, %v2704_v9  ;;  %v3282_v16 = vshll.u32 %v5071_v24, 16  ;;  %v3701_v21 = vrot.slane %v3699_v36, 1  ;;  %v5604_v9 = vld [vmem:[#allocation2 + $0x50] sm:$0xf] }
 0x2f2   : > { %v7382_v38 = vpop.permute.xlu1 %2990  ;;  %v3919_v25 = vsel %vm1692_vm8, %v3887_v59, %v7365_v52  ;;  %v3846_v28 = vsel %vm1610_vm6, %v5604_v9, %v7363_v53  ;;  %v3278_v59 = vor.u32 %v3277_v11, %v3273_v54  ;;  %v2699_v54 = vld [vmem:[#allocation2 + $0x88] sm:$0xe] }
 0x2f3   : > { %3380 = vrot.lane.b32.xlu0 %v3334_v60, %s5636_s28  ;;  %v3706_v60 = vshll.u32 %v5127_v23, 16  ;;  %v3951_v20 = vsel %vm1725_vm9, %v3919_v25, %v7373_v55  ;;  %v3885_v57 = vsel %vm1659_vm7, %v3846_v28, %v7371_v1  ;;  %v2737_v25 = vld [vmem:[#allocation2 + $0x30] sm:$0xe]  ;;  %v7486_v28 = vld [vmem:[#allocation2 + $0x8c] sm:$0x1] }
 0x2f5   : > { %3382 = vrot.lane.b32.xlu1 %v3341_v18, %s5636_s28  ;;  %v7385_v63 = vpop.permute.xlu0 %3372  ;;  %v7419_v18 = vld [vmem:[#allocation2 + $0x84] sm:$0x1]  ;;  %v3708_v10 = vrot.slane %v3706_v60, 1 }
 0x2f6   : > { %v3471_v47 = vpop.permute.xlu1 %3470 }
 0x2f7   : > { %2996 = vrot.lane.b32.xlu0 %v2910_v42, %s5635_s11  ;;  %v3697_v42 = vshrl.u32 %v5126_v40, 16  ;;  %v3983_v55 = vsel %vm1758_vm10, %v3951_v20, %v3471_v47 }
 0x2f9   : > { %2998 = vrot.lane.b32.xlu1 %v2917_v35, %s5635_s11  ;;  %v7395_v33 = vpop.permute.xlu0 %2988  ;;  %v3704_v35 = vshrl.u32 %v5127_v23, 16  ;;  %v3702_v40 = vor.u32 %v3701_v21, %v3697_v42 }
 0x2fb   : > { %3476 = vrot.lane.b32.xlu0 %v3448_v26, %s5634_s26  ;;  %v7415_v5 = vpop.permute.xlu1 %3086  ;;  %v5032_v26 = vcombine.low %v7417_v49, %v7419_v18  ;;  %v3709_v23 = vor.u32 %v3708_v10, %v3704_v35  ;;  %v5086_v10 = vcombine.low %v2736_v39, %v7397_v15  ;;  %v5103_v39 = vcombine.low %v2753_v58, %v2753_v58 }
 0x2fd   : > { %3478 = vrot.lane.b32.xlu1 %v3449_v7, %s5634_s26  ;;  %v7407_v51 = vpop.permute.xlu0 %3468  ;;  %v5033_v7 = vcombine.low %v7421_v14, %v7423_v32  ;;  %v2977_v12 = vshll.u32 %v5032_v26, 16  ;;  %v2975_v60 = vshrl.u32 %v5032_v26, 16  ;;  %v5087_v26 = vcombine.low %v2737_v25, %v7403_v48 }
 0x2fe   : > { %v3440_v15 = vrot.slane %v5086_v10, 1 }
 0x2ff   : > { %3092 = vrot.lane.b32.xlu0 %v3072_v61, %s5633_s25  ;;  %v3280_v61 = vshrl.u32 %v5071_v24, 16  ;;  %v2984_v29 = vshll.u32 %v5033_v7, 16  ;;  %v2979_v1 = vrot.slane %v2977_v12, 1  ;;  %v3441_v48 = vrot.slane %v5087_v26, 1 }
 0x301   : > { %3094 = vrot.lane.b32.xlu1 %v3073_v44, %s5633_s25  ;;  %v7425_v0 = vpop.permute.xlu0 %3084  ;;  %v3284_v44 = vrot.slane %v3282_v16, 1  ;;  %v2986_v47 = vrot.slane %v2984_v29, 1  ;;  %v2980_v20 = vor.u32 %v2979_v1, %v2975_v60  ;;  %v2714_v60 = vld [vmem:[#allocation2 + $0x88] sm:$0xf] }
 0x303   : > { %3556 = vrot.lane.b32.xlu0 %v5110_v37, %s5628_s30  ;;  %v3285_v36 = vor.u32 %v3284_v44, %v3280_v61  ;;  %v5049_v44 = vcombine.low %v2699_v54, %v7423_v32 }
 0x305   : > { %3558 = vrot.lane.b32.xlu1 %v5111_v6, %s5628_s30  ;;  %v3549_v19 = vpop.permute.xlu0 %3548  ;;  %v3917_v6 = vsel %vm1692_vm8, %v3885_v57, %v7377_v3  ;;  %v3083_v9 = vrot.slane %v5049_v44, 1  ;;  %v5605_v57 = vld [vmem:[#allocation2 + $0x8] sm:$0xf] }
 0x307   : > { %v3551_v52 = vpop.permute.xlu1 %3550  ;;  %3172 = vrot.lane.b32.xlu0 %v5054_v8, %s5632_s17  ;;  %v2982_v8 = vshrl.u32 %v5033_v7, 16 }
 0x308   : > { %v4015_v53 = vsel %vm1791_vm11, %v3983_v55, %v3551_v52  ;;  %v7488_v55 = vld [vmem:[#allocation2 + $0x94] sm:$0x1] }
 0x309   : > { %3174 = vrot.lane.b32.xlu1 %v5055_v45, %s5632_s17  ;;  %v7444_v37 = vpop.permute.xlu0 %3164  ;;  %v3949_v45 = vsel %vm1725_vm9, %v3917_v6, %v7385_v63  ;;  %v2987_v52 = vor.u32 %v2986_v47, %v2982_v8  ;;  %v2715_v8 = vld [vmem:[#allocation2 + $0x90] sm:$0xf] }
 0x30a   : > { %v3981_v42 = vsel %vm1758_vm10, %v3949_v45, %v7407_v51  ;;  %v2698_v51 = vld [vmem:[#allocation2 + $0x80] sm:$0xe]  ;;  %v5102_v45 = vcombine.low %v2752_v46, %v2752_v46  ;;  %v5081_v1 = vcombine.low %v2715_v8, %v7488_v55 }
 0x30b   : > { %v7446_v24 = vpop.permute.xlu1 %3166  ;;  %3748 = vrot.lane.b32.xlu0 %v3702_v40, %s5629_s0  ;;  %v4013_v3 = vsel %vm1791_vm11, %v3981_v42, %v3549_v19  ;;  %v5048_v61 = vcombine.low %v2698_v51, %v7419_v18  ;;  %v7474_v40 = vld [vmem:[#allocation2 + $0x34] sm:$0x1] }
 0x30c   : > { %v5118_v18 = vcombine.low %v2752_v46, %v7474_v40  ;;  %v3352_v10 = vshll.u32 %v5081_v1, 16  ;;  %v3350_v44 = vshrl.u32 %v5081_v1, 16  ;;  %v2747_v46 = vld [vmem:[#allocation2 + $0x90] sm:$0xe] }
 0x30d   : > { %3750 = vrot.lane.b32.xlu1 %v3709_v23, %s5629_s0  ;;  %v3741_v35 = vpop.permute.xlu0 %3740  ;;  %v7476_v23 = vld [vmem:[#allocation2 + $0x3c] sm:$0x1] }
 0x30e   : > { %v4045_v21 = vsel %vm1824_vm12, %v4013_v3, %v3741_v35  ;;  %v5119_v32 = vcombine.low %v2753_v58, %v7476_v23  ;;  %v3643_v25 = vshll.u32 %v5118_v18, 16  ;;  %v5064_v35 = vcombine.low %v2714_v60, %v2714_v60 }
 0x30f   : > { %v3743_v16 = vpop.permute.xlu1 %3742  ;;  %3364 = vrot.lane.b32.xlu0 %v3278_v59, %s5636_s28  ;;  %v3825_v59 = vsel %vm1610_vm6, %v5605_v57, %v7382_v38 }
 0x310   : > { %v4047_v63 = vsel %vm1824_vm12, %v4015_v53, %v3743_v16  ;;  %v5080_v53 = vcombine.low %v2714_v60, %v7486_v28  ;;  %v3871_v47 = vsel %vm1659_vm7, %v3825_v59, %v7415_v5  ;;  %v3650_v42 = vshll.u32 %v5119_v32, 16  ;;  %v2763_v59 = vld [vmem:[#allocation2 + $0x98] sm:$0xf]  ;;  %v7514_v60 = vld [vmem:[#allocation2 + $0x9c] sm:$0x1] }
 0x311   : > { %v5154_v7 = vcombine.low %v4045_v21, %v4047_v63  ;;  %3366 = vrot.lane.b32.xlu1 %v3285_v36, %s5636_s28  ;;  %v7464_v19 = vpop.permute.xlu0 %3356  ;;  %v3903_v16 = vsel %vm1692_vm8, %v3871_v47, %v7446_v24  ;;  %v3641_v21 = vshrl.u32 %v5118_v18, 16  ;;  %v5065_v5 = vcombine.low %v2715_v8, %v2715_v8  ;;  %v7509_v18 = vld [vmem:[#allocation2 + $0x94] sm:$0x1] }
 0x312   : > { %v3345_v63 = vshll.u32 %v5080_v53, 16  ;;  %v3645_v26 = vrot.slane %v3643_v25, 1  ;;  %v3354_v24 = vrot.slane %v3352_v10, 1  ;;  %v5097_v47 = vcombine.low %v2747_v46, %v7488_v55 }
 0x313   : > { %4275 = vmatmul.mubr.bf16.gmra.mxu1 %v5154_v7  ;;  %v3359_v11 = vpop.permute.xlu1 %3358  ;;  %3016 = vrot.lane.b32.xlu0 %v2980_v20, %s5635_s11  ;;  %v3648_v7 = vshrl.u32 %v5119_v32, 16  ;;  %v3652_v20 = vrot.slane %v3650_v42, 1  ;;  %v5606_v32 = vld [vmem:[#allocation2] sm:$0xf] }
 0x314   : > { %5176 = vmatprep.mubr.msk.bf16.mxu1 %vm1610_vm6, %v5157_v41  ;;  %v3082_v41 = vrot.slane %v5048_v61, 1  ;;  %v3347_v61 = vrot.slane %v3345_v63, 1  ;;  %v3646_v58 = vor.u32 %v3645_v26, %v3641_v21 }
 0x315   : > { %3018 = vrot.lane.b32.xlu1 %v2987_v52, %s5635_s11  ;;  %v7478_v12 = vpop.permute.xlu0 %3008  ;;  %v3935_v52 = vsel %vm1725_vm9, %v3903_v16, %v3359_v11  ;;  %v3822_v11 = vsel %vm1610_vm6, %v5606_v32, %v7395_v33  ;;  %v3355_v33 = vor.u32 %v3354_v24, %v3350_v44 }
 0x316   : > { %v3869_v8 = vsel %vm1659_vm7, %v3822_v11, %v7425_v0  ;;  %v5129_v0 = vcombine.low %v2763_v59, %v7514_v60 }
 0x317   : > { %v7480_v29 = vpop.permute.xlu1 %3010  ;;  %3460 = vrot.lane.b32.xlu0 %v3440_v15, %s5634_s26  ;;  %v2746_v15 = vld [vmem:[#allocation2 + $0x88] sm:$0xe] }
 0x318   : > { %v5096_v1 = vcombine.low %v2746_v15, %v7486_v28  ;;  %v3855_v43 = vsel %vm1610_vm6, %v5607_v62, %v7480_v29 }
 0x319   : > { %3462 = vrot.lane.b32.xlu1 %v3441_v48, %s5634_s26  ;;  %v3453_v6 = vpop.permute.xlu0 %3452  ;;  %v3343_v48 = vshrl.u32 %v5080_v53, 16 }
 0x31a   : > { %v3450_v10 = vrot.slane %v5096_v1, 1 }
 0x31b   : > { %v3455_v36 = vpop.permute.xlu1 %3454  ;;  %3112 = vrot.lane.b32.xlu0 %v3082_v41, %s5633_s25  ;;  %v3653_v41 = vor.u32 %v3652_v20, %v3648_v7  ;;  %v3348_v25 = vor.u32 %v3347_v61, %v3343_v48  ;;  %v3720_v7 = vshll.u32 %v5129_v0, 16  ;;  %v3718_v48 = vshrl.u32 %v5129_v0, 16 }
 0x31c   : > { %v3967_v57 = vsel %vm1758_vm10, %v3935_v52, %v3455_v36 }
 0x31d   : > { %3114 = vrot.lane.b32.xlu1 %v3083_v9, %s5633_s25  ;;  %v7498_v38 = vpop.permute.xlu0 %3104  ;;  %v2762_v9 = vld [vmem:[#allocation2 + $0x90] sm:$0xf]  ;;  %v3722_v61 = vrot.slane %v3720_v7, 1  ;;  %v5000_v7 = vld [vmem:[%s7999_s7] ss:$0 sm:$0xff] }
 0x31e   : > { %v5128_v36 = vcombine.low %v2762_v9, %v7509_v18 }
 0x31f   : > { %v7500_v3 = vpop.permute.xlu1 %3106  ;;  %3540 = vrot.lane.b32.xlu0 %v5102_v45, %s5628_s30 }
 0x320   : > { %v3713_v26 = vshll.u32 %v5128_v36, 16 }
 0x321   : > { %3542 = vrot.lane.b32.xlu1 %v5103_v39, %s5628_s30  ;;  %v3533_v51 = vpop.permute.xlu0 %3532  ;;  %v3901_v39 = vsel %vm1692_vm8, %v3869_v8, %v7444_v37  ;;  %v2793_v8 = vld [vmem:[#allocation2 + $0x88] sm:$0xe] }
 0x322   : > { %v3933_v42 = vsel %vm1725_vm9, %v3901_v39, %v7464_v19  ;;  %v3715_v15 = vrot.slane %v3713_v26, 1 }
 0x323   : > { %v3535_v54 = vpop.permute.xlu1 %3534  ;;  %3192 = vrot.lane.b32.xlu0 %v5064_v35, %s5632_s17  ;;  %v3965_v28 = vsel %vm1758_vm10, %v3933_v42, %v3453_v6  ;;  %v5112_v6 = vcombine.low %v2762_v9, %v2762_v9  ;;  %v3891_v9 = vsel %vm1659_vm7, %v3855_v43, %v7500_v3 }
 0x324   : > { %v3999_v35 = vsel %vm1791_vm11, %v3967_v57, %v3535_v54  ;;  %v3997_v55 = vsel %vm1791_vm11, %v3965_v28, %v3533_v51  ;;  %v5113_v51 = vcombine.low %v2763_v59, %v2763_v59  ;;  %v3711_v54 = vshrl.u32 %v5128_v36, 16  ;;  %v2792_v59 = vld [vmem:[#allocation2 + $0x80] sm:$0xe] }
 0x325   : > { %3194 = vrot.lane.b32.xlu1 %v5065_v5, %s5632_s17  ;;  %v7518_v45 = vpop.permute.xlu0 %3184  ;;  %v3451_v5 = vrot.slane %v5097_v47, 1  ;;  %v5142_v29 = vcombine.low %v2792_v59, %v7391_v31 }
 0x326   : > { %v3716_v46 = vor.u32 %v3715_v15, %v3711_v54  ;;  %v5609_v54 = vld [vmem:[#allocation2 + $0x18] sm:$0xf] }
 0x327   : > { %v3187_v53 = vpop.permute.xlu1 %3186  ;;  %3732 = vrot.lane.b32.xlu0 %v3646_v58, %s5629_s0  ;;  %v3723_v58 = vor.u32 %v3722_v61, %v3718_v48  ;;  %v3816_v28 = vrot.slane %v5142_v29, 1 }
 0x328   : > { %v3923_v57 = vsel %vm1692_vm8, %v3891_v9, %v3187_v53  ;;  %v2785_v9 = vld [vmem:[#allocation2 + $0x38] sm:$0xe] }
 0x329   : > { %3734 = vrot.lane.b32.xlu1 %v3653_v41, %s5629_s0  ;;  %v3725_v37 = vpop.permute.xlu0 %3724 }
 0x32a   : > { %v4029_v21 = vsel %vm1824_vm12, %v3997_v55, %v3725_v37 }
 0x32b   : > { %v3727_v16 = vpop.permute.xlu1 %3726  ;;  %3384 = vrot.lane.b32.xlu0 %v3348_v25, %s5636_s28  ;;  %v5143_v25 = vcombine.low %v2793_v8, %v7393_v17 }
 0x32c   : > { %v4031_v63 = vsel %vm1824_vm12, %v3999_v35, %v3727_v16 }
 0x32d   : > { %v5146_v19 = vcombine.low %v4029_v21, %v4031_v63  ;;  %3386 = vrot.lane.b32.xlu1 %v3355_v33, %s5636_s28  ;;  %v3377_v20 = vpop.permute.xlu0 %3376  ;;  %v5608_v33 = vld [vmem:[#allocation2 + $0x60] sm:$0xf]  ;;  %v3817_v55 = vrot.slane %v5143_v25, 1 }
 0x32e   : > { %v3852_v3 = vsel %vm1610_vm6, %v5608_v33, %v7478_v12 }
 0x32f   : > { %v3379_v52 = vpop.permute.xlu1 %3378  ;;  %4243 = vmatmul.mubr.bf16.vlgmr.msra.gmra.mxu0 %v5146_v19  ;;  %3480 = vrot.lane.b32.xlu0 %v3450_v10, %s5634_s26  ;;  %v3889_v42 = vsel %vm1659_vm7, %v3852_v3, %v7498_v38  ;;  %v5159_v10 = vcombine.low %v3816_v28, %v3817_v55 }
 0x330   : > { %5172 = vmatprep.mubr.msk.bf16.mxu0 %vm1610_vm6, %v5149_v4  ;;  %v3955_v1 = vsel %vm1725_vm9, %v3923_v57, %v3379_v52  ;;  %v3921_v0 = vsel %vm1692_vm8, %v3889_v42, %v7518_v45 }
 0x331   : > { %3482 = vrot.lane.b32.xlu1 %v3451_v5, %s5634_s26  ;;  %v7543_v44 = vpop.permute.xlu0 %2992  ;;  %v3953_v31 = vsel %vm1725_vm9, %v3921_v0, %v3377_v20 }
 0x333   : > { %v2995_v24 = vpop.permute.xlu1 %2994  ;;  %3560 = vrot.lane.b32.xlu0 %v5112_v6, %s5628_s30 }
 0x334   : > { %v3831_v15 = vsel %vm1610_vm6, %v5609_v54, %v2995_v24 }
 0x335   : > { %3562 = vrot.lane.b32.xlu1 %v5113_v51, %s5628_s30  ;;  %v3473_v4 = vpop.permute.xlu0 %3472 }
 0x336   : > { %v3985_v37 = vsel %vm1758_vm10, %v3953_v31, %v3473_v4 }
 0x337   : > { %v3475_v41 = vpop.permute.xlu1 %3474  ;;  %3752 = vrot.lane.b32.xlu0 %v3716_v46, %s5629_s0 }
 0x338   : > { %v3987_v36 = vsel %vm1758_vm10, %v3955_v1, %v3475_v41  ;;  %v2784_v41 = vld [vmem:[#allocation2 + $0x30] sm:$0xe]  ;;  %v5135_v1 = vcombine.low %v2785_v9, %v7476_v23 }
 0x339   : > { %3754 = vrot.lane.b32.xlu1 %v3723_v58, %s5629_s0  ;;  %v3089_v32 = vpop.permute.xlu0 %3088  ;;  %v5134_v24 = vcombine.low %v2784_v41, %v7474_v40 }
 0x33a   : > { %v3809_v42 = vrot.slane %v5135_v1, 1 }
 0x33b   : > { %v3091_v11 = vpop.permute.xlu1 %3090 }
 0x33c   : > { %v3875_v46 = vsel %vm1659_vm7, %v3831_v15, %v3091_v11 }
 0x33d   : > { %v3553_v47 = vpop.permute.xlu0 %3552 }
 0x33e   : > { %v4017_v12 = vsel %vm1791_vm11, %v3985_v37, %v3553_v47  ;;  %v5610_v47 = vld [vmem:[#allocation2 + $0x10] sm:$0xf] }
 0x33f   : > { %v3555_v39 = vpop.permute.xlu1 %3554  ;;  %v3828_v11 = vsel %vm1610_vm6, %v5610_v47, %v7543_v44 }
 0x340   : > { %v4019_v17 = vsel %vm1791_vm11, %v3987_v36, %v3555_v39  ;;  %v3873_v29 = vsel %vm1659_vm7, %v3828_v11, %v3089_v32  ;;  %v3808_v36 = vrot.slane %v5134_v24, 1 }
 0x341   : > { %v3169_v53 = vpop.permute.xlu0 %3168 }
 0x342   : > { %v3905_v3 = vsel %vm1692_vm8, %v3873_v29, %v3169_v53  ;;  %v5151_v31 = vcombine.low %v3808_v36, %v3809_v42 }
 0x343   : > { %v3171_v35 = vpop.permute.xlu1 %3170 }
 0x344   : > { %v3907_v4 = vsel %vm1692_vm8, %v3875_v46, %v3171_v35 }
 0x345   : > { %v3745_v16 = vpop.permute.xlu0 %3744 }
 0x346   : > { %v4049_v63 = vsel %vm1824_vm12, %v4017_v12, %v3745_v16 }
 0x347   : > { %v3747_v21 = vpop.permute.xlu1 %3746 }
 0x348   : > { %v4051_v38 = vsel %vm1824_vm12, %v4019_v17, %v3747_v21 }
 0x349   : > { %v5156_v19 = vcombine.low %v4049_v63, %v4051_v38  ;;  %v3361_v5 = vpop.permute.xlu0 %3360 }
 0x34a   : > { %v3937_v35 = vsel %vm1725_vm9, %v3905_v3, %v3361_v5 }
 0x34b   : > { %4283 = vmatmul.mubr.bf16.gmra.mxu1 %v5156_v19  ;;  %v3363_v45 = vpop.permute.xlu1 %3362 }
 0x34c   : > { %5177 = vmatprep.mubr.msk.bf16.mxu1 %vm1610_vm6, %v5159_v10  ;;  %v2298_v26 = vpop.f32.mrf.mxu0  ;;  %v3939_v57 = vsel %vm1725_vm9, %v3907_v4, %v3363_v45 }
 0x34d   : > { %v3013_v20 = vpop.permute.xlu0 %3012  ;;  %v7574_v51 = vadd.f32 %v5000_v7, %v2298_v26  ;;  %v2794_v26 = vld [vmem:[#allocation2 + $0x90] sm:$0xe]  ;;  %v2795_v7 = vld [vmem:[#allocation2 + $0x98] sm:$0xe] }
 0x34e   : > { %v5227_v6 = vpop.f32.mrf.mxu0 }
 0x34f   : > { %v3015_v52 = vpop.permute.xlu1 %3014  ;;  %v2303_v58 = vsel %vm2302_vm15, %v7574_v51, -inf }
 0x350   : > { %v3861_v21 = vsel %vm1610_vm6, %v7246_v30, %v3015_v52  ;;  %v3858_v30 = vsel %vm1610_vm6, %v7238_v2, %v3013_v20 }
 0x351   : > { %v3457_v48 = vpop.permute.xlu0 %3456 }
 0x352   : > { %v3969_v23 = vsel %vm1758_vm10, %v3937_v35, %v3457_v48  ;;  %v5144_v48 = vcombine.low %v2794_v26, %v7509_v18 }
 0x353   : > { %v3459_v61 = vpop.permute.xlu1 %3458 }
 0x354   : > { %v3971_v39 = vsel %vm1758_vm10, %v3939_v57, %v3459_v61  ;;  %v5145_v61 = vcombine.low %v2795_v7, %v7514_v60  ;;  %v3818_v41 = vrot.slane %v5144_v48, 1 }
 0x355   : > { %v3109_v62 = vpop.permute.xlu0 %3108 }
 0x356   : > { %2304 = vmax.xlane.f32.xlu0 %v2303_v58  ;;  %v3893_v46 = vsel %vm1659_vm7, %v3858_v30, %v3109_v62  ;;  %v3819_v9 = vrot.slane %v5145_v61, 1 }
 0x357   : > { %v3111_v43 = vpop.permute.xlu1 %3110 }
 0x358   : > { %v3895_v10 = vsel %vm1659_vm7, %v3861_v21, %v3111_v43  ;;  %v5161_v24 = vcombine.low %v3818_v41, %v3819_v9 }
 0x359   : > { %v3537_v59 = vpop.permute.xlu0 %3536 }
 0x35a   : > { %v4001_v0 = vsel %vm1791_vm11, %v3969_v23, %v3537_v59 }
 0x35b   : > { %v3539_v8 = vpop.permute.xlu1 %3538 }
 0x35c   : > { %v4003_v40 = vsel %vm1791_vm11, %v3971_v39, %v3539_v8 }
 0x35d   : > { %v3189_v25 = vpop.permute.xlu0 %3188 }
 0x35e   : > { %v3925_v4 = vsel %vm1692_vm8, %v3893_v46, %v3189_v25 }
 0x35f   : > { %v3191_v33 = vpop.permute.xlu1 %3190 }
 0x360   : > { %v3927_v45 = vsel %vm1692_vm8, %v3895_v10, %v3191_v33 }
 0x361   : > { %v3729_v28 = vpop.permute.xlu0 %3728 }
 0x362   : > { %v4033_v55 = vsel %vm1824_vm12, %v4001_v0, %v3729_v28 }
 0x363   : > { %v3731_v44 = vpop.permute.xlu1 %3730 }
 0x364   : > { %v4035_v32 = vsel %vm1824_vm12, %v4003_v40, %v3731_v44 }
 0x365   : > { %v5148_v17 = vcombine.low %v4033_v55, %v4035_v32  ;;  %v3381_v37 = vpop.permute.xlu0 %3380 }
 0x366   : > { %v3957_v57 = vsel %vm1725_vm9, %v3925_v4, %v3381_v37 }
 0x367   : > { %v3383_v53 = vpop.permute.xlu1 %3382  ;;  %4251 = vmatmul.mubr.bf16.gmra.mxu0 %v5148_v17 }
 0x368   : > { %5173 = vmatprep.mubr.msk.bf16.mxu0 %vm1610_vm6, %v5151_v31  ;;  %v3959_v6 = vsel %vm1725_vm9, %v3927_v45, %v3383_v53 }
 0x369   : > { %v2997_v12 = vpop.permute.xlu0 %2996 }
 0x36a   : > { %v3834_v44 = vsel %vm1610_vm6, %v7336_v50, %v2997_v12 }
 0x36b   : > { %v2999_v16 = vpop.permute.xlu1 %2998 }
 0x36c   : > { %v3837_v25 = vsel %vm1610_vm6, %v7342_v27, %v2999_v16 }
 0x36d   : > { %v3477_v63 = vpop.permute.xlu0 %3476 }
 0x36e   : > { %v3989_v18 = vsel %vm1758_vm10, %v3957_v57, %v3477_v63 }
 0x36f   : > { %v3479_v38 = vpop.permute.xlu1 %3478 }
 0x370   : > { %v3991_v52 = vsel %vm1758_vm10, %v3959_v6, %v3479_v38 }
 0x371   : > { %v3093_v19 = vpop.permute.xlu0 %3092 }
 0x372   : > { %v3877_v32 = vsel %vm1659_vm7, %v3834_v44, %v3093_v19 }
 0x373   : > { %v3095_v5 = vpop.permute.xlu1 %3094 }
 0x374   : > { %v3879_v36 = vsel %vm1659_vm7, %v3837_v25, %v3095_v5 }
 0x375   : > { %v3557_v54 = vpop.permute.xlu0 %3556 }
 0x376   : > { %v4021_v60 = vsel %vm1791_vm11, %v3989_v18, %v3557_v54 }
 0x377   : > { %v3559_v15 = vpop.permute.xlu1 %3558 }
 0x378   : > { %v4023_v59 = vsel %vm1791_vm11, %v3991_v52, %v3559_v15 }
 0x379   : > { %v3173_v58 = vpop.permute.xlu0 %3172 }
 0x37a   : > { %v3909_v17 = vsel %vm1692_vm8, %v3877_v32, %v3173_v58 }
 0x37b   : > { %v3175_v43 = vpop.permute.xlu1 %3174 }
 0x37c   : > { %v3911_v40 = vsel %vm1692_vm8, %v3879_v36, %v3175_v43 }
 0x37d   : > { %v3749_v8 = vpop.permute.xlu0 %3748 }
 0x37e   : > { %v4053_v20 = vsel %vm1824_vm12, %v4021_v60, %v3749_v8 }
 0x37f   : > { %v3751_v2 = vpop.permute.xlu1 %3750 }
 0x380   : > { %v4055_v62 = vsel %vm1824_vm12, %v4023_v59, %v3751_v2 }
 0x381   : > { %v5158_v1 = vcombine.low %v4053_v20, %v4055_v62  ;;  %v3365_v47 = vpop.permute.xlu0 %3364 }
 0x382   : > { %v3941_v37 = vsel %vm1725_vm9, %v3909_v17, %v3365_v47 }
 0x383   : > { %4291 = vmatmul.mubr.bf16.gmra.mxu1 %v5158_v1  ;;  %v3367_v11 = vpop.permute.xlu1 %3366 }
 0x384   : > { %5178 = vmatprep.mubr.msk.bf16.mxu1 %vm1610_vm6, %v5161_v24  ;;  %v3943_v23 = vsel %vm1725_vm9, %v3911_v40, %v3367_v11  ;;  %v5638_v40 = vmov 2  }
 0x385   : > { %v3017_v39 = vpop.permute.xlu0 %3016  ;;  %5451 = vset.pattern.permute.xlu1 %v5638_v40 }
 0x386   : > { %v3864_v15 = vsel %vm1610_vm6, %v7417_v49, %v3017_v39 }
 0x387   : > { %v3019_v29 = vpop.permute.xlu1 %3018 }
 0x388   : > { %v3867_v21 = vsel %vm1610_vm6, %v7421_v14, %v3019_v29 }
 0x389   : > { %v3461_v33 = vpop.permute.xlu0 %3460 }
 0x38a   : > { %v3973_v16 = vsel %vm1758_vm10, %v3941_v37, %v3461_v33 }
 0x38b   : > { %v3463_v3 = vpop.permute.xlu1 %3462 }
 0x38c   : > { %v3975_v55 = vsel %vm1758_vm10, %v3943_v23, %v3463_v3  ;;  %v5639_v23 = vmov 1  }
 0x38d   : > { %v3113_v42 = vpop.permute.xlu0 %3112  ;;  %5450 = vset.pattern.permute.xlu0 %v5639_v23 }
 0x38e   : > { %v3897_v48 = vsel %vm1659_vm7, %v3864_v15, %v3113_v42 }
 0x38f   : > { %v3115_v35 = vpop.permute.xlu1 %3114 }
 0x390   : > { %v3899_v5 = vsel %vm1659_vm7, %v3867_v21, %v3115_v35 }
 0x391   : > { %v3541_v0 = vpop.permute.xlu0 %3540 }
 0x392   : > { %v4005_v63 = vsel %vm1791_vm11, %v3973_v16, %v3541_v0 }
 0x393   : > { %v3543_v28 = vpop.permute.xlu1 %3542 }
 0x394   : > { %v4007_v53 = vsel %vm1791_vm11, %v3975_v55, %v3543_v28 }
 0x395   : > { %v3193_v27 = vpop.permute.xlu0 %3192 }
 0x396   : > { %v3929_v46 = vsel %vm1692_vm8, %v3897_v48, %v3193_v27 }
 0x397   : > { %v3195_v31 = vpop.permute.xlu1 %3194 }
 0x398   : > { %v3931_v7 = vsel %vm1692_vm8, %v3899_v5, %v3195_v31 }
 0x399   : > { %v3733_v50 = vpop.permute.xlu0 %3732 }
 0x39a   : > { %v4037_v38 = vsel %vm1824_vm12, %v4005_v63, %v3733_v50 }
 0x39b   : > { %v3735_v12 = vpop.permute.xlu1 %3734 }
 0x39c   : > { %v4039_v10 = vsel %vm1824_vm12, %v4007_v53, %v3735_v12 }
 0x39d   : > { %v5150_v19 = vcombine.low %v4037_v38, %v4039_v10  ;;  %v3385_v45 = vpop.permute.xlu0 %3384 }
 0x39e   : > { %v3961_v58 = vsel %vm1725_vm9, %v3929_v46, %v3385_v45 }
 0x39f   : > { %v3387_v26 = vpop.permute.xlu1 %3386  ;;  %4259 = vmatmul.mubr.bf16.gmra.mxu0 %v5150_v19 }
 0x3a0   : > { %5232 = vmatprep.mubr.msk.f32.mxu0 %vm5631_vm13, %v5630_v22  ;;  %v3963_v54 = vsel %vm1725_vm9, %v3931_v7, %v3387_v26  ;;  %v5640_v26 = vmov 1966171168  }
 0x3a1   : > { %v3481_v14 = vpop.permute.xlu0 %3480  ;;  %v4371_v7 = vunpack.c.l.s4 %v5640_v26 }
 0x3a2   : > { %v3993_v43 = vsel %vm1758_vm10, %v3961_v58, %v3481_v14  ;;  %v4373_v14 = vlaneseq }
 0x3a3   : > { %v3483_v6 = vpop.permute.xlu1 %3482 }
 0x3a4   : > { %v3995_v61 = vsel %vm1758_vm10, %v3963_v54, %v3483_v6  ;;  %v4372_v6 = vunpack.c.0.s8 %v4371_v7  ;;  %v4374_v54 = vshrl.u32 %v4373_v14, 7 }
 0x3a5   : > { %v3561_v30 = vpop.permute.xlu0 %3560 }
 0x3a6   : > { %v4025_v41 = vsel %vm1791_vm11, %v3993_v43, %v3561_v30  ;;  %v4375_v15 = vsub.s32 %v4372_v6, %v4374_v54 }
 0x3a7   : > { %v3563_v52 = vpop.permute.xlu1 %3562 }
 0x3a8   : > { %v4027_v4 = vsel %vm1791_vm11, %v3995_v61, %v3563_v52  ;;  %v4394_v52 = vsub.s32 0, %v4374_v54 }
 0x3a9   : > { %v7647_v9 = vpop.f32.mrf.mxu1  ;;  %v3753_v57 = vpop.permute.xlu0 %3752 }
 0x3aa   : > { %v4057_v49 = vsel %vm1824_vm12, %v4025_v41, %v3753_v57  ;;  %v7677_v57 = vld [vmem:[%s7996_s4] ss:$0 sm:$0xff] }
 0x3ab   : > { %v3755_v59 = vpop.permute.xlu1 %3754  ;;  %v4270_v60 = vpop.f32.mrf.mxu1 }
 0x3ac   : > { %v4059_v18 = vsel %vm1824_vm12, %v4027_v4, %v3755_v59 }
 0x3ad   : > { %v5160_v8 = vcombine.low %v4057_v49, %v4059_v18  ;;  %v7651_v2 = vpop.f32.mrf.mxu1  ;;  %v7684_v18 = vld [vmem:[%s7997_s5] ss:$0 sm:$0xff] }
 0x3af   : > { %4299 = vmatmul.mubr.bf16.gmra.mxu1 %v5160_v8  ;;  %v4273_v20 = vpop.f32.mrf.mxu1 }
 0x3d3   : > { %v7653_v62 = vpop.f32.mrf.mxu1 }
 0x3d5   : > { %v4278_v24 = vpop.f32.mrf.mxu1 }
 0x3d7   : > { %v7655_v1 = vpop.f32.mrf.mxu1 }
 0x3d9   : > { %v4281_v47 = vpop.f32.mrf.mxu1 }
 0x3df   : > { %v2305_v11 = vpop.xlane.xlu0 %2304 }
 0x3e0   : > { %v2306_v39 = vsub.f32 %v7574_v51, %v2305_v11 }
 0x3e2   : > { %v2307_v29 = vmul.f32 1.442695, %v2306_v39 }
 0x3e4   : > { %5592 = vpow2.f32 %v2307_v29 }
 0x3ef   : > { %v4244_v25 = vpop.f32.mrf.mxu0 }
 0x3f0   : > { %v4314_v49 = vmul.f32 %v7677_v57, %v4244_v25 }
 0x3f1   : > { %v4246_v33 = vpop.f32.mrf.mxu0  ;;  %v5593_v3 = vpop.eup %5592 }
 0x3f2   : > { %v2309_v42 = vsel %vm2302_vm15, %v5593_v3, 0.0  ;;  %v4337_v60 = vadd.f32 %v7684_v18, %v4314_v49 }
 0x3f3   : > { %v4247_v36 = vpop.f32.mrf.mxu0  ;;  %2310 = vadd.xlane.f32.xlu1 %v2309_v42 }
 0x3f4   : > { %v7689_v20 = vmax.f32 %v4337_v60, 0.0 }
 0x3f5   : > { %v4249_v35 = vpop.f32.mrf.mxu0 }
 0x40b   : > { %v7659_v0 = vpop.f32.mrf.mxu1 }
 0x40d   : > { %v4286_v28 = vpop.f32.mrf.mxu1 }
 0x40e   : > { %v4324_v28 = vmul.f32 %v7677_v57, %v7659_v0 }
 0x40f   : > { %v7661_v44 = vpop.f32.mrf.mxu1 }
 0x411   : > { %v4289_v51 = vpop.f32.mrf.mxu1 }
 0x427   : > { %v4252_v55 = vpop.f32.mrf.mxu0 }
 0x428   : > { %v4316_v59 = vmul.f32 %v7677_v57, %v4252_v55 }
 0x429   : > { %v4254_v32 = vpop.f32.mrf.mxu0 }
 0x42a   : > { %v4339_v8 = vadd.f32 %v7684_v18, %v4316_v59 }
 0x42b   : > { %v4255_v27 = vpop.f32.mrf.mxu0 }
 0x42c   : > { %v7692_v47 = vmax.f32 %v4339_v8, 0.0  ;;  %v4317_v11 = vmul.f32 %v7677_v57, %v4255_v27 }
 0x42d   : > { %v4257_v31 = vpop.f32.mrf.mxu0 }
 0x42e   : > { %v4340_v42 = vadd.f32 %v7684_v18, %v4317_v11  ;;  %v4347_v31 = vadd.f32 %v7684_v18, %v4324_v28 }
 0x430   : > { %v7719_v51 = vmax.f32 %v4340_v42, 0.0  ;;  %v4321_v42 = vmul.f32 %v7677_v57, %v7651_v2 }
 0x443   : > { %v7663_v17 = vpop.f32.mrf.mxu1 }
 0x445   : > { %v4294_v37 = vpop.f32.mrf.mxu1 }
 0x447   : > { %v7665_v53 = vpop.f32.mrf.mxu1 }
 0x449   : > { %v4297_v16 = vpop.f32.mrf.mxu1 }
 0x45f   : > { %v4260_v21 = vpop.f32.mrf.mxu0 }
 0x460   : > { %v4318_v55 = vmul.f32 %v7677_v57, %v4260_v21 }
 0x461   : > { %v4262_v63 = vpop.f32.mrf.mxu0 }
 0x462   : > { %v4341_v16 = vadd.f32 %v7684_v18, %v4318_v55 }
 0x463   : > { %v7667_v50 = vpop.f32.mrf.mxu0 }
 0x465   : > { %v4265_v12 = vpop.f32.mrf.mxu0 }
 0x46f   : > { %v7669_v38 = vpop.f32.mrf.mxu1 }
 0x470   : > { %v4328_v28 = vmul.f32 %v7677_v57, %v7669_v38 }
 0x471   : > { %v4302_v10 = vpop.f32.mrf.mxu1 }
 0x472   : > { %v7742_v10 = vmax.f32 %v4347_v31, 0.0  ;;  %v4351_v2 = vadd.f32 %v7684_v18, %v4328_v28 }
 0x473   : > { %v7671_v19 = vpop.f32.mrf.mxu1 }
 0x474   : > { %v4329_v21 = vmul.f32 %v7677_v57, %v7671_v19  ;;  %v4319_v19 = vmul.f32 %v7677_v57, %v7667_v50  ;;  %v7843_v31 = vmax.f32 %v4351_v2, 0.0 }
 0x475   : > { %v4305_v5 = vpop.f32.mrf.mxu1 }
 0x476   : > { %v4325_v5 = vmul.f32 %v7677_v57, %v7661_v44  ;;  %v4352_v26 = vadd.f32 %v7684_v18, %v4329_v21  ;;  %v4342_v54 = vadd.f32 %v7684_v18, %v4319_v19  ;;  %v4693_v19 = vld [vmem:[%s8000_s8 + $0x8] sm:$0xff] }
 0x477   : > { %5229 = vmatpush3.msra.mxu0 %v4693_v19 }
 0x478   : > { %v4348_v44 = vadd.f32 %v7684_v18, %v4325_v5  ;;  %5230 = vmatprep.subr.mxu0 %v5630_v22 }
 0x47c   : > { %v2311_v45 = vpop.xlane.xlu1 %2310 }
 0x47d   : > { %5594 = vrcp.f32 %v2311_v45  ;;  %v7746_v45 = vmax.f32 %v4341_v16, 0.0 }
 0x48a   : > { %v5595_v48 = vpop.eup %5594 }
 0x48b   : > { %v2313_v61 = vmul.f32 %v5595_v48, %v5593_v3  ;;  %v4323_v3 = vmul.f32 %v7677_v57, %v7655_v1 }
 0x48d   : > { %v4376_v30 = vrot.slane %v2313_v61, %v4375_v15  ;;  %v4346_v1 = vadd.f32 %v7684_v18, %v4323_v3 }
 0x48f   : > { %v4384_v46 = vrot.slane %v4376_v30, %v4375_v15  ;;  %v4377_v58 = vcombine.high %v4376_v30, %v4376_v30  ;;  %v7731_v0 = vmax.f32 %v4346_v1, 0.0 }
 0x491   : > { %v4395_v43 = vrot.slane %v4384_v46, %v4394_v52  ;;  %v4391_v4 = vrot.slane %v4377_v58, %v4375_v15  ;;  %v7761_v15 = vmax.f32 %v4352_v26, 0.0  ;;  %v7777_v46 = vmax.f32 %v4348_v44, 0.0 }
 0x492   : > { %v4326_v58 = vmul.f32 %v7677_v57, %v7663_v17 }
 0x493   : > { %4545 = vperm.xlu1 %5451, %v4395_v43   ;;  %4441 = vperm.xlu0 %5450, %v4395_v43   ;;  %v4399_v41 = vrot.slane %v4391_v4, %v4394_v52  ;;  %v4320_v52 = vmul.f32 %v7677_v57, %v7647_v9 }
 0x494   : > { %v4349_v9 = vadd.f32 %v7684_v18, %v4326_v58 }
 0x495   : > { %v4343_v49 = vadd.f32 %v7684_v18, %v4320_v52 }
 0x496   : > { %v7801_v8 = vmax.f32 %v4349_v9, 0.0 }
 0x497   : > { %5452 = vset.pattern.permute.xlu1 %v5639_v23  ;;  %5455 = vset.pattern.permute.xlu0 %v5638_v40  ;;  %v7797_v60 = vmax.f32 %v4343_v49, 0.0 }
 0x498   : > { %4445 = vperm.xlu1 %5452, %v4399_v41  }
 0x49c   : > { %5453 = vset.pattern.permute.xlu1 %v5638_v40 }
 0x49d   : > { %4549 = vperm.xlu1 %5453, %v4399_v41  }
 0x4a1   : > { %5454 = vset.pattern.permute.xlu1 %v5637_v13  ;;  %v4315_v13 = vmul.f32 %v7677_v57, %v4247_v36 }
 0x4a2   : > { %4401 = vperm.xlu1 %5454, %v4395_v43   ;;  %v7781_v43 = vmax.f32 %v4342_v54, 0.0 }
 0x4a3   : > { %v4338_v24 = vadd.f32 %v7684_v18, %v4315_v13  ;;  %v4322_v13 = vmul.f32 %v7677_v57, %v7653_v62 }
 0x4a5   : > { %v7705_v36 = vmax.f32 %v4338_v24, 0.0  ;;  %v4327_v24 = vmul.f32 %v7677_v57, %v7665_v53 }
 0x4a6   : > { %4405 = vperm.xlu1 %5454, %v4399_v41  }
 0x4a7   : > { %v4350_v3 = vadd.f32 %v7684_v18, %v4327_v24 }
 0x50e   : > { %v7695_v39 = vpop.permute.xlu1 %4545  ;;  %v7697_v29 = vpop.permute.xlu0 %4441 }
 0x50f   : > { %v4448_v25 = vmul.f32 %v7697_v29, %v7689_v20  ;;  %v4450_v33 = vmul.f32 %v7697_v29, %v7692_v47  ;;  %v4449_v40 = vmul.f32 %v7697_v29, %v7705_v36  ;;  %v4552_v23 = vmul.f32 %v7695_v39, %v7689_v20 }
 0x510   : > { %v4553_v32 = vmul.f32 %v7695_v39, %v7705_v36  ;;  %v4451_v27 = vmul.f32 %v7697_v29, %v7719_v51  ;;  %v4554_v12 = vmul.f32 %v7695_v39, %v7692_v47  ;;  %v4452_v6 = vmul.f32 %v7697_v29, %v7746_v45 }
 0x511   : > { %4480 = vrot.lane.b32.xlu1 %v4448_v25, %s5629_s0  ;;  %4484 = vrot.lane.b32.xlu0 %v4450_v33, %s5629_s0  ;;  %v4555_v61 = vmul.f32 %v7695_v39, %v7719_v51  ;;  %v4453_v41 = vmul.f32 %v7697_v29, %v7781_v43  ;;  %v4556_v59 = vmul.f32 %v7695_v39, %v7746_v45 }
 0x512   : > { %v4454_v25 = vmul.f32 %v7697_v29, %v7797_v60  ;;  %v4345_v33 = vadd.f32 %v7684_v18, %v4322_v13  ;;  %v4557_v53 = vmul.f32 %v7695_v39, %v7781_v43 }
 0x513   : > { %v7710_v35 = vpop.permute.xlu1 %4445 }
 0x514   : > { %v4457_v63 = vmul.f32 %v7710_v35, %v7731_v0  ;;  %v4458_v14 = vmul.f32 %v7710_v35, %v7742_v10  ;;  %v4459_v4 = vmul.f32 %v7710_v35, %v7777_v46  ;;  %v4460_v11 = vmul.f32 %v7710_v35, %v7801_v8 }
 0x515   : > { %4482 = vrot.lane.b32.xlu1 %v4449_v40, %s5629_s0  ;;  %4584 = vrot.lane.b32.xlu0 %v4552_v23, %s5628_s30  ;;  %v7821_v40 = vmax.f32 %v4345_v33, 0.0  ;;  %v7823_v23 = vmax.f32 %v4350_v3, 0.0 }
 0x517   : > { %v4461_v1 = vmul.f32 %v7710_v35, %v7823_v23  ;;  %v4456_v55 = vmul.f32 %v7710_v35, %v7821_v40 }
 0x518   : > { %v7729_v37 = vpop.permute.xlu1 %4549 }
 0x519   : > { %4586 = vrot.lane.b32.xlu1 %v4553_v32, %s5628_s30  ;;  %4486 = vrot.lane.b32.xlu0 %v4451_v27, %s5629_s0  ;;  %v4561_v48 = vmul.f32 %v7729_v37, %v7731_v0  ;;  %v4562_v17 = vmul.f32 %v7729_v37, %v7742_v10  ;;  %v4563_v62 = vmul.f32 %v7729_v37, %v7777_v46 }
 0x51a   : > { %v4344_v32 = vadd.f32 %v7684_v18, %v4321_v42  ;;  %v4564_v38 = vmul.f32 %v7729_v37, %v7801_v8  ;;  %v4560_v57 = vmul.f32 %v7729_v37, %v7821_v40  ;;  %v4462_v18 = vmul.f32 %v7710_v35, %v7843_v31 }
 0x51b   : > { %v4565_v21 = vmul.f32 %v7729_v37, %v7823_v23  ;;  %v4566_v5 = vmul.f32 %v7729_v37, %v7843_v31 }
 0x51c   : > { %v7841_v27 = vmax.f32 %v4344_v32, 0.0 }
 0x51d   : > { %v7751_v7 = vpop.permute.xlu1 %4401  ;;  %4498 = vrot.lane.b32.xlu1 %v4457_v63, %s5629_s0  ;;  %4588 = vrot.lane.b32.xlu0 %v4554_v12, %s5628_s30  ;;  %v4558_v63 = vmul.f32 %v7695_v39, %v7797_v60  ;;  %v4463_v12 = vmul.f32 %v7710_v35, %v7761_v15  ;;  %v4567_v35 = vmul.f32 %v7729_v37, %v7761_v15 }
 0x51e   : > { %v4455_v16 = vmul.f32 %v7697_v29, %v7841_v27  ;;  %v4559_v29 = vmul.f32 %v7695_v39, %v7841_v27  ;;  %v4692_v39 = vld [vmem:[%s8000_s8] sm:$0xff]  ;;  %v4409_v37 = vmul.f32 %v7751_v7, %v7705_v36  ;;  %v4410_v58 = vmul.f32 %v7751_v7, %v7692_v47 }
 0x51f   : > { %5231 = vmatpush3.msra.mxu0 %v4692_v39 }
 0x521   : > { %v7763_v50 = vpop.permute.xlu1 %4405  ;;  %4500 = vrot.lane.b32.xlu1 %v4458_v14, %s5629_s0  ;;  %4488 = vrot.lane.b32.xlu0 %v4452_v6, %s5629_s0  ;;  %v4408_v6 = vmul.f32 %v7751_v7, %v7689_v20 }
 0x522   : > { %v7773_v30 = vmul.f32 %v7763_v50, %v7761_v15  ;;  %v4417_v33 = vmul.f32 %v7763_v50, %v7731_v0  ;;  %v4418_v2 = vmul.f32 %v7763_v50, %v7742_v10  ;;  %v4419_v19 = vmul.f32 %v7763_v50, %v7777_v46 }
 0x525   : > { %4602 = vrot.lane.b32.xlu1 %v4561_v48, %s5628_s30  ;;  %4590 = vrot.lane.b32.xlu0 %v4555_v61, %s5628_s30 }
 0x529   : > { %4502 = vrot.lane.b32.xlu1 %v4459_v4, %s5629_s0  ;;  %4490 = vrot.lane.b32.xlu0 %v4453_v41, %s5629_s0 }
 0x52d   : > { %4604 = vrot.lane.b32.xlu1 %v4562_v17, %s5628_s30  ;;  %4592 = vrot.lane.b32.xlu0 %v4556_v59, %s5628_s30 }
 0x531   : > { %4504 = vrot.lane.b32.xlu1 %v4460_v11, %s5629_s0  ;;  %4492 = vrot.lane.b32.xlu0 %v4454_v25, %s5629_s0  ;;  %v4411_v25 = vmul.f32 %v7751_v7, %v7719_v51 }
 0x535   : > { %4606 = vrot.lane.b32.xlu1 %v4563_v62, %s5628_s30  ;;  %4594 = vrot.lane.b32.xlu0 %v4557_v53, %s5628_s30 }
 0x539   : > { %4506 = vrot.lane.b32.xlu1 %v4461_v1, %s5629_s0  ;;  %4496 = vrot.lane.b32.xlu0 %v4456_v55, %s5629_s0 }
 0x53d   : > { %4608 = vrot.lane.b32.xlu1 %v4564_v38, %s5628_s30  ;;  %4600 = vrot.lane.b32.xlu0 %v4560_v57, %s5628_s30  ;;  %v4412_v38 = vmul.f32 %v7751_v7, %v7746_v45 }
 0x541   : > { %4508 = vrot.lane.b32.xlu1 %v4462_v18, %s5629_s0  ;;  %4494 = vrot.lane.b32.xlu0 %v4455_v16, %s5629_s0 }
 0x545   : > { %4610 = vrot.lane.b32.xlu1 %v4565_v21, %s5628_s30  ;;  %4596 = vrot.lane.b32.xlu0 %v4558_v63, %s5628_s30 }
 0x549   : > { %4510 = vrot.lane.b32.xlu1 %v4463_v12, %s5629_s0  ;;  %4598 = vrot.lane.b32.xlu0 %v4559_v29, %s5628_s30 }
 0x54d   : > { %4612 = vrot.lane.b32.xlu1 %v4566_v5, %s5628_s30 }
 0x551   : > { %4614 = vrot.lane.b32.xlu1 %v4567_v35, %s5628_s30  ;;  %v4413_v35 = vmul.f32 %v7751_v7, %v7781_v43 }
 0x583   : > { %v4481_v26 = vpop.permute.xlu1 %4480  ;;  %v4485_v14 = vpop.permute.xlu0 %4484 }
 0x584   : > { %v4528_v44 = vadd.f32 %v4481_v26, %v4408_v6  ;;  %v4530_v20 = vadd.f32 %v4485_v14, %v4410_v58 }
 0x587   : > { %v4483_v54 = vpop.permute.xlu1 %4482  ;;  %v4585_v48 = vpop.permute.xlu0 %4584 }
 0x588   : > { %v4632_v15 = vadd.f32 %v4585_v48, %v4528_v44  ;;  %v4529_v22 = vadd.f32 %v4483_v54, %v4409_v37 }
 0x58a   : > { %4782 = vst.msk [vmem:[%s8004_s10] sm:$0xff] %vm1610_vm6, %v4632_v15  ;;  %v4648_v41 = vsel %vm1610_vm6, %v4632_v15, 0.0  ;;  %v4420_v15 = vmul.f32 %v7763_v50, %v7801_v8 }
 0x58b   : > { %v4587_v61 = vpop.permute.xlu1 %4586  ;;  %v4487_v52 = vpop.permute.xlu0 %4486 }
 0x58c   : > { %v4633_v4 = vadd.f32 %v4587_v61, %v4529_v22  ;;  %v4531_v3 = vadd.f32 %v4487_v52, %v4411_v25  ;;  %v4416_v22 = vmul.f32 %v7763_v50, %v7821_v40 }
 0x58e   : > { %v4649_v49 = vsel %vm1610_vm6, %v4633_v4, 0.0  ;;  %4783 = vst.msk [vmem:[%s8004_s10 + $0x8] sm:$0xff] %vm1610_vm6, %v4633_v4 }
 0x58f   : > { %v4650_v36 = vadd.f32 %v4649_v49, %v4648_v41  ;;  %v4499_v9 = vpop.permute.xlu1 %4498  ;;  %v4589_v17 = vpop.permute.xlu0 %4588 }
 0x590   : > { %v4634_v59 = vadd.f32 %v4589_v17, %v4530_v20  ;;  %v4537_v62 = vadd.f32 %v4499_v9, %v4417_v33 }
 0x592   : > { %v4651_v13 = vsel %vm1610_vm6, %v4634_v59, 0.0  ;;  %4784 = vst.msk [vmem:[%s8004_s10 + $0x10] sm:$0xff] %vm1610_vm6, %v4634_v59  ;;  %v4414_v59 = vmul.f32 %v7751_v7, %v7797_v60 }
 0x593   : > { %v4652_v47 = vadd.f32 %v4651_v13, %v4650_v36  ;;  %v4501_v24 = vpop.permute.xlu1 %4500  ;;  %v4489_v11 = vpop.permute.xlu0 %4488  ;;  %v4421_v13 = vmul.f32 %v7763_v50, %v7823_v23 }
 0x594   : > { %v4538_v57 = vadd.f32 %v4501_v24, %v4418_v2  ;;  %v4532_v18 = vadd.f32 %v4489_v11, %v4412_v38  ;;  %v4422_v2 = vmul.f32 %v7763_v50, %v7843_v31 }
 0x597   : > { %v4603_v53 = vpop.permute.xlu1 %4602  ;;  %v4591_v42 = vpop.permute.xlu0 %4590 }
 0x598   : > { %v4641_v28 = vadd.f32 %v4603_v53, %v4537_v62  ;;  %v4635_v1 = vadd.f32 %v4591_v42, %v4531_v3  ;;  %v4415_v42 = vmul.f32 %v7751_v7, %v7841_v27 }
 0x59a   : > { %4791 = vst.msk [vmem:[%s8004_s10 + $0x48] sm:$0xff] %vm1610_vm6, %v4641_v28  ;;  %v4653_v55 = vsel %vm1610_vm6, %v4635_v1, 0.0  ;;  %4785 = vst.msk [vmem:[%s8004_s10 + $0x18] sm:$0xff] %vm1610_vm6, %v4635_v1  ;;  %v4670_v49 = vsel %vm1610_vm6, %v4641_v28, 0.0 }
 0x59b   : > { %v4654_v51 = vadd.f32 %v4653_v55, %v4652_v47  ;;  %v4503_v0 = vpop.permute.xlu1 %4502  ;;  %v4491_v32 = vpop.permute.xlu0 %4490 }
 0x59c   : > { %v4539_v39 = vadd.f32 %v4503_v0, %v4419_v19  ;;  %v4533_v26 = vadd.f32 %v4491_v32, %v4413_v35 }
 0x59f   : > { %v4605_v16 = vpop.permute.xlu1 %4604  ;;  %v4593_v21 = vpop.permute.xlu0 %4592 }
 0x5a0   : > { %v4642_v63 = vadd.f32 %v4605_v16, %v4538_v57  ;;  %v4636_v12 = vadd.f32 %v4593_v21, %v4532_v18 }
 0x5a2   : > { %4792 = vst.msk [vmem:[%s8004_s10 + $0x50] sm:$0xff] %vm1610_vm6, %v4642_v63  ;;  %v4655_v29 = vsel %vm1610_vm6, %v4636_v12, 0.0  ;;  %4786 = vst.msk [vmem:[%s8004_s10 + $0x20] sm:$0xff] %vm1610_vm6, %v4636_v12  ;;  %v4672_v17 = vsel %vm1610_vm6, %v4642_v63, 0.0 }
 0x5a3   : > { %v4656_v10 = vadd.f32 %v4655_v29, %v4654_v51  ;;  %v4505_v45 = vpop.permute.xlu1 %4504  ;;  %v4493_v5 = vpop.permute.xlu0 %4492 }
 0x5a4   : > { %v4540_v61 = vadd.f32 %v4505_v45, %v4420_v15  ;;  %v4534_v24 = vadd.f32 %v4493_v5, %v4414_v59 }
 0x5a7   : > { %v4607_v14 = vpop.permute.xlu1 %4606  ;;  %v4595_v6 = vpop.permute.xlu0 %4594 }
 0x5a8   : > { %v4643_v44 = vadd.f32 %v4607_v14, %v4539_v39  ;;  %v4637_v54 = vadd.f32 %v4595_v6, %v4533_v26 }
 0x5aa   : > { %4793 = vst.msk [vmem:[%s8004_s10 + $0x58] sm:$0xff] %vm1610_vm6, %v4643_v44  ;;  %v4657_v48 = vsel %vm1610_vm6, %v4637_v54, 0.0  ;;  %4787 = vst.msk [vmem:[%s8004_s10 + $0x28] sm:$0xff] %vm1610_vm6, %v4637_v54  ;;  %v4674_v11 = vsel %vm1610_vm6, %v4643_v44, 0.0 }
 0x5ab   : > { %v4658_v46 = vadd.f32 %v4657_v48, %v4656_v10  ;;  %v4507_v43 = vpop.permute.xlu1 %4506  ;;  %v4497_v37 = vpop.permute.xlu0 %4496 }
 0x5ac   : > { %v4536_v52 = vadd.f32 %v4497_v37, %v4416_v22  ;;  %v4541_v25 = vadd.f32 %v4507_v43, %v4421_v13 }
 0x5af   : > { %v4609_v58 = vpop.permute.xlu1 %4608  ;;  %v4601_v4 = vpop.permute.xlu0 %4600 }
 0x5b0   : > { %v4644_v20 = vadd.f32 %v4609_v58, %v4540_v61  ;;  %v4640_v41 = vadd.f32 %v4601_v4, %v4536_v52  ;;  %v5181_v61 = vld [vmem:[#allocation4] ss:$0 sm:$0xff] }
 0x5b2   : > { %4794 = vst.msk [vmem:[%s8004_s10 + $0x60] sm:$0xff] %vm1610_vm6, %v4644_v20  ;;  %v4669_v36 = vsel %vm1610_vm6, %v4640_v41, 0.0  ;;  %4790 = vst.msk [vmem:[%s8004_s10 + $0x40] sm:$0xff] %vm1610_vm6, %v4640_v41  ;;  %v4676_v53 = vsel %vm1610_vm6, %v4644_v20, 0.0 }
 0x5b3   : > { %v4671_v8 = vadd.f32 %v4670_v49, %v4669_v36  ;;  %v4509_v40 = vpop.permute.xlu1 %4508  ;;  %v4495_v9 = vpop.permute.xlu0 %4494 }
 0x5b4   : > { %v4535_v60 = vadd.f32 %v4495_v9, %v4415_v42  ;;  %v4542_v57 = vadd.f32 %v4509_v40, %v4422_v2 }
 0x5b5   : > { %v4673_v47 = vadd.f32 %v4672_v17, %v4671_v8 }
 0x5b7   : > { %v4611_v33 = vpop.permute.xlu1 %4610  ;;  %v4675_v3 = vadd.f32 %v4674_v11, %v4673_v47  ;;  %v4597_v62 = vpop.permute.xlu0 %4596 }
 0x5b8   : > { %v4645_v28 = vadd.f32 %v4611_v33, %v4541_v25  ;;  %v4638_v1 = vadd.f32 %v4597_v62, %v4534_v24 }
 0x5b9   : > { %v4677_v55 = vadd.f32 %v4676_v53, %v4675_v3 }
 0x5ba   : > { %v4678_v51 = vsel %vm1610_vm6, %v4645_v28, 0.0  ;;  %4795 = vst.msk [vmem:[%s8004_s10 + $0x68] sm:$0xff] %vm1610_vm6, %v4645_v28  ;;  %v4659_v23 = vsel %vm1610_vm6, %v4638_v1, 0.0  ;;  %4788 = vst.msk [vmem:[%s8004_s10 + $0x30] sm:$0xff] %vm1610_vm6, %v4638_v1 }
 0x5bb   : > { %v4679_v0 = vadd.f32 %v4678_v51, %v4677_v55  ;;  %v4660_v7 = vadd.f32 %v4659_v23, %v4658_v46  ;;  %v4511_v27 = vpop.permute.xlu1 %4510  ;;  %v4599_v32 = vpop.permute.xlu0 %4598 }
 0x5bc   : > { %v4639_v38 = vadd.f32 %v4599_v32, %v4535_v60  ;;  %v4543_v29 = vadd.f32 %v4511_v27, %v7773_v30 }
 0x5be   : > { %v4661_v18 = vsel %vm1610_vm6, %v4639_v38, 0.0  ;;  %4789 = vst.msk [vmem:[%s8004_s10 + $0x38] sm:$0xff] %vm1610_vm6, %v4639_v38 }
 0x5bf   : > { %v4662_v16 = vadd.f32 %v4661_v18, %v4660_v7  ;;  %v4613_v21 = vpop.permute.xlu1 %4612 }
 0x5c0   : > { %v4646_v63 = vadd.f32 %v4613_v21, %v4542_v57 }
 0x5c1   : > { %v4663_v12 = vrot.slane %v4662_v16, 4 }
 0x5c2   : > { %v4680_v10 = vsel %vm1610_vm6, %v4646_v63, 0.0  ;;  %4796 = vst.msk [vmem:[%s8004_s10 + $0x70] sm:$0xff] %vm1610_vm6, %v4646_v63 }
 0x5c3   : > { %v4664_v50 = vadd.f32 %v4663_v12, %v4662_v16  ;;  %v4681_v31 = vadd.f32 %v4680_v10, %v4679_v0  ;;  %v4615_v45 = vpop.permute.xlu1 %4614 }
 0x5c4   : > { %v4647_v5 = vadd.f32 %v4615_v45, %v4543_v29 }
 0x5c5   : > { %v4665_v19 = vrot.slane %v4664_v50, 2 }
 0x5c6   : > { %v4682_v35 = vsel %vm1610_vm6, %v4647_v5, 0.0  ;;  %4797 = vst.msk [vmem:[%s8004_s10 + $0x78] sm:$0xff] %vm1610_vm6, %v4647_v5 }
 0x5c7   : > { %v4683_v30 = vadd.f32 %v4682_v35, %v4681_v31  ;;  %v4666_v39 = vadd.f32 %v4665_v19, %v4664_v50 }
 0x5c9   : > { %v4684_v26 = vrot.slane %v4683_v30, 4  ;;  %v4667_v6 = vrot.slane %v4666_v39, 1 }
 0x5cb   : > { %v4685_v14 = vadd.f32 %v4684_v26, %v4683_v30  ;;  %v4668_v48 = vadd.f32 %v4667_v6, %v4666_v39 }
 0x5cd   : > { %v4686_v44 = vrot.slane %v4685_v14, 2  ;;  %v4690_v37 = vmul.f32 0.015625, %v4668_v48 }
 0x5cf   : > { %v4687_v54 = vadd.f32 %v4686_v44, %v4685_v14 }
 0x5d1   : > { %v4688_v46 = vrot.slane %v4687_v54, 1 }
 0x5d3   : > { %v4689_v43 = vadd.f32 %v4688_v46, %v4687_v54 }
 0x5d5   : > { %v4691_v15 = vmul.f32 0.015625, %v4689_v43 }
 0x5d7   : > { %v4703_v22 = vsel %vm2228_vm14, %v4691_v15, %v4690_v37 }
 0x5d8   : > { %5233 = vmatmul.mubr.msk.f32.vlgmr.msra.gmra.mxu0 %vm1610_vm6, %v4703_v22 }
 0x698   : > { %v4772_v52 = vpop.f32.mrf.mxu0 }
 0x699   : > { %v4773_v58 = vadd.f32 %v5181_v61, %v4772_v52 }
 0x69a   : > { %v5234_v4 = vpop.f32.mrf.mxu0 }
 0x69b   : > { %v4776_v20 = vsub.f32 0.0, %v4773_v58 }
 0x69d   : > { %v4777_v41 = vmul.f32 1.442695, %v4776_v20 }
 0x69f   : > { %5596 = vpow2.f32 %v4777_v41 }
 0x6ac   : > { %v5597_v49 = vpop.eup %5596 }
 0x6ad   : > { %v4779_v36 = vadd.f32 1.0, %v5597_v49 }
 0x6af   : > { %5598 = vrcp.f32 %v4779_v36 }
 0x6bc   : > { %v5599_v8 = vpop.eup %5598 }
 0x6bd   : > { %v4799_v40 = vsel %vm4798_vm0, %v5599_v8, inf }
 0x6be   : > { %4800 = vmin.xlane.f32.xlu0 %v4799_v40 }
 0x747   : > { %v4801_v9 = vpop.xlane.xlu0 %4800 }
 0x748   : > { %v4802_v17 = vrot.slane %v4801_v9, 4 }
 0x74a   : > { %v4803_v59 = vmin.f32 %v4801_v9, %v4802_v17 }
 0x74c   : > { %v4804_v13 = vrot.slane %v4803_v59, 2 }
 0x74e   : > { %v4805_v47 = vmin.f32 %v4803_v59, %v4804_v13 }
 0x750   : > { %v4806_v24 = vrot.slane %v4805_v47, 1 }
 0x752   : > { %v4807_v11 = vmin.f32 %v4805_v47, %v4806_v24 }
 0x754   : > { %5271 = vpush %v4807_v11 }
 0x785   : > { %s5272_s22 = spop %5271 }
 0x786   : > { %p4809_p1 = scmp.gt.f32.partialorder %s5272_s22, 0.5 }
 0x788   : > { %s4810_s23 = scalar_select %p4809_p1, 1, 0 }
 0x78a   : > { %4811 = sst [smem:[#allocation3]] %s4810_s23 }
 0x78b PF: > { %s2150_s9 = sadd.s32 1, %s5617_s9  }
 0x78c   : > { %p2147_p2 = scmp.ge.s32.totalorder %s2150_s9, 4  }
 0x78e   :  { %2149 = sbr.rel (!%p2147_p2) target bundleno = 570 (0x23a), region = 74 }

</bundles_post_ra>
